<compile_context>
chip_gen: v7x
topology: tpu7x:2x2x1
jax: 0.10.0
libtpu: 0.0.40
codegen_flags: <defaults>
</compile_context>

<pallas_src>
import functools
import math

import jax
import jax.numpy as jnp
from jax.experimental import pallas as pl
from jax.experimental.pallas import tpu as pltpu


def _round_up(x, m):
    return ((x + m - 1) // m) * m


def _choose_block(batch, max_rows=128):
    """Pick (block_rows, padded_batch). Block rows are sublane-aligned (x8),
    capped at `max_rows`, and for any batch that allows it we keep >= 2 grid
    blocks so both v7x TensorCores get work (no-op on single-TC v5e/v6e)."""
    b8 = _round_up(batch, 8)
    g = max(1, -(-b8 // max_rows))
    if g == 1 and b8 >= 16:
        g = 2
    bm = _round_up(-(-b8 // g), 8)
    return bm, bm * g


# ----------------------------------------------------------------------------
# Fused kernel: (pre-folded patch-embed + layer-1) current computed once per
# batch block, then the 5-layer spiking MLP unrolled over n_steps with LIF
# state in VMEM scratch and the spike-rate regularizer.
#
#   snntorch.Leaky(init_hidden=True, reset_mechanism="subtract"):
#     reset_t = H(mem_{t-1} - thr)
#     mem_t   = beta * mem_{t-1} + cur_t - reset_t * thr
#     spk_t   = H(mem_t - thr)
# ----------------------------------------------------------------------------
def _vit_snn_kernel(bsz_ref, patches_ref, wf_ref, bf_ref,
                    w2_ref, b2_ref, w3_ref, b3_ref, w4_ref, b4_ref,
                    w5_ref, b5_ref,
                    spk_out_ref, reg_ref,
                    cur1_ref, mem1_ref, mem2_ref, mem3_ref, mem4_ref, mem5_ref,
                    spk_sum_ref,
                    *, n_steps, beta, threshold, lm_spn, inv_mean):
    f32 = jnp.float32
    bf16 = jnp.bfloat16

    bm = patches_ref.shape[0]

    # Row-validity mask rebuilt in-kernel from the scalar-prefetched batch
    # size (replaces a (B_pad, 128) f32 HBM input).
    row_ids = (jax.lax.broadcasted_iota(jnp.int32, (bm, 1), 0)
               + pl.program_id(0) * bm)
    valid = (row_ids < bsz_ref[0]).astype(f32)                    # (bm, 1)

    # Layer-1 current: patch-embed + pos-embed + fc1 pre-folded offline into a
    # single lane-dense matmul; constant across time steps so computed once.
    cur1_ref[...] = (jnp.dot(patches_ref[...], wf_ref[...],
                             preferred_element_type=f32) + bf_ref[...])

    # Reset LIF state for this batch block (scratch persists across blocks).
    mem1_ref[...] = jnp.zeros_like(mem1_ref)
    mem2_ref[...] = jnp.zeros_like(mem2_ref)
    mem3_ref[...] = jnp.zeros_like(mem3_ref)
    mem4_ref[...] = jnp.zeros_like(mem4_ref)
    mem5_ref[...] = jnp.zeros_like(mem5_ref)
    spk_sum_ref[...] = jnp.zeros_like(spk_sum_ref)

    def lif(mem_ref, cur):
        mem = mem_ref[...]
        reset = (mem > threshold).astype(f32)
        mem_new = beta * mem + cur - reset * threshold
        mem_ref[...] = mem_new
        return (mem_new > threshold).astype(f32)

    step_means = []
    for _ in range(n_steps):                                      # short, unrolled
        spk1 = lif(mem1_ref, cur1_ref[...])
        cur2 = jnp.dot(spk1.astype(bf16), w2_ref[...],
                       preferred_element_type=f32) + b2_ref[...]
        spk2 = lif(mem2_ref, cur2)
        # nn.Dropout(0.3): identity (eval semantics).
        # TODO(synk): train-mode dropout RNG not implemented.
        cur3 = jnp.dot(spk2.astype(bf16), w3_ref[...],
                       preferred_element_type=f32) + b3_ref[...]
        spk3 = lif(mem3_ref, cur3)
        cur4 = jnp.dot(spk3.astype(bf16), w4_ref[...],
                       preferred_element_type=f32) + b4_ref[...]
        spk4 = lif(mem4_ref, cur4)
        cur5 = jnp.dot(spk4.astype(bf16), w5_ref[...],
                       preferred_element_type=f32) + b5_ref[...]
        spk5 = lif(mem5_ref, cur5)

        spk_sum_ref[...] = spk_sum_ref[...] + spk5
        # Leaky_out_final.mean() restricted to valid rows; padded output lanes
        # never spike (zero w5/b5 columns, threshold > 0), so summing all
        # lanes is exact.
        s = jnp.sum(spk5 * valid, axis=0, keepdims=True)          # (1, o_pad)
        step_means.append(jnp.sum(s, axis=1, keepdims=True) * inv_mean)

    spk_out_ref[...] = spk_sum_ref[...] * (1.0 / n_steps)

    # Spike-rate regularizer (same recurrence as the PyTorch forward).  Each
    # per-step mean partial is >= 0, so |total - prev| per block equals the
    # block's partial and the per-block partials sum exactly to the
    # full-batch value.
    total = jnp.zeros((1, 1), f32)
    prev = jnp.zeros((1, 1), f32)
    reg = jnp.zeros((1, 1), f32)
    for t, m_t in enumerate(step_means):
        total = total + m_t
        reg = reg + lm_spn * total
        if t > 0:
            reg = reg + lm_spn * jnp.abs(total - prev)
        prev = total

    # reg_loss_norm = reg_loss / n_steps (matches the PyTorch forward).
    # TODO(synk): this could be a per-block SMEM scalar output; kept as a
    # small blocked store for tiling-rule safety under megacore sharding.
    reg_ref[...] = jnp.broadcast_to(reg * (1.0 / n_steps), reg_ref.shape)


# ----------------------------------------------------------------------------
# Plain-JAX glue: patch extraction (torch .unfold/.permute/.flatten), done with
# a single vectorized gather.
# ----------------------------------------------------------------------------
def extract_patches(x, patch_size, stride):
    x = x.astype(jnp.float32)
    B, C, H, W = x.shape
    nH = (H - patch_size) // stride + 1
    nW = (W - patch_size) // stride + 1
    i_idx = (jnp.arange(nH) * stride)[:, None] + jnp.arange(patch_size)[None, :]
    j_idx = (jnp.arange(nW) * stride)[:, None] + jnp.arange(patch_size)[None, :]
    p = x[:, :, i_idx, :]                      # (B, C, nH, P, W)
    p = p[:, :, :, :, j_idx]                   # (B, C, nH, P, nW, P)
    p = jnp.transpose(p, (0, 1, 2, 4, 3, 5))   # (B, C, nH, nW, P, P)
    p = p.reshape(B, C, nH * nW, patch_size, patch_size)
    p = jnp.transpose(p, (0, 2, 1, 3, 4))      # (B, N, C, P, P)
    return p.reshape(B, nH * nW, C * patch_size * patch_size)


# ----------------------------------------------------------------------------
# Model wrapper with deterministic, PyTorch-style parameter init.
# ----------------------------------------------------------------------------
class ViTDeepSNNPallas:
    def __init__(self, key, *, image_size, patch_size, in_channels, embed_dim,
                 n_hidden, n_output, n_steps=5, beta=0.8, threshold=0.5):
        self.image_size = image_size
        self.patch_size = patch_size
        self.in_channels = in_channels
        self.embed_dim = embed_dim
        self.stride = int(patch_size * 0.5)            # patch_overlap = 0.5
        nH = (image_size - patch_size) // self.stride + 1
        nW = (image_size - patch_size) // self.stride + 1
        self.num_patches = nH * nW
        self.patch_dim = in_channels * patch_size * patch_size
        self.n_input = self.num_patches * embed_dim
        self.n_hidden = n_hidden
        self.n_output = n_output
        # Lane-dense output path.  (For non-toy configs on v6e/v7x, rounding
        # n_hidden / o_pad to multiples of 256 fills the 256-wide MXU.)
        self.o_pad = _round_up(n_output, 128)
        self.n_steps = n_steps
        self.beta = beta
        self.threshold = threshold
        self.lm_spN = 0.001

        def linear_init(k, fan_in, fan_out):
            kw, kb = jax.random.split(k)
            bound = 1.0 / math.sqrt(fan_in)
            w = jax.random.uniform(kw, (fan_in, fan_out), jnp.float32, -bound, bound)
            b = jax.random.uniform(kb, (1, fan_out), jnp.float32, -bound, bound)
            return w, b

        keys = jax.random.split(key, 6)
        self.w_pe, self.b_pe = linear_init(keys[0], self.patch_dim, embed_dim)
        self.pos_embed = jnp.zeros((1, self.num_patches, embed_dim), jnp.float32)

        p = {}
        p["w1"], p["b1"] = linear_init(keys[1], self.n_input, n_hidden)
        p["w2"], p["b2"] = linear_init(keys[2], n_hidden, n_hidden)
        p["w3"], p["b3"] = linear_init(keys[3], n_hidden, n_hidden)
        p["w4"], p["b4"] = linear_init(keys[4], n_hidden, n_hidden)
        p["w5"], p["b5"] = linear_init(keys[5], n_hidden, n_output)
        self.params = p

        # --- kernel-side parameter tensors --------------------------------
        N, E, H, O, Op, PD = (self.num_patches, embed_dim, n_hidden,
                              n_output, self.o_pad, self.patch_dim)
        # Fold patch-embed + pos-embed + fc1 into one (N*PD, H) matmul.
        w1_r = p["w1"].reshape(N, E, H)
        peb = self.pos_embed.reshape(N, E) + self.b_pe                  # (N, E)
        w_fold = jnp.einsum("pe,neh->nph", self.w_pe, w1_r).reshape(N * PD, H)
        b_fold = p["b1"] + jnp.einsum("ne,neh->h", peb, w1_r)[None, :]  # (1, H)
        self._wf = w_fold.astype(jnp.bfloat16)
        self._bf = b_fold
        self._w2 = p["w2"].astype(jnp.bfloat16)
        self._b2 = p["b2"]
        self._w3 = p["w3"].astype(jnp.bfloat16)
        self._b3 = p["b3"]
        self._w4 = p["w4"].astype(jnp.bfloat16)
        self._b4 = p["b4"]
        self._w5 = (jnp.zeros((H, Op), jnp.float32)
                    .at[:, :O].set(p["w5"]).astype(jnp.bfloat16))       # zero-padded
        self._b5 = jnp.zeros((1, Op), jnp.float32).at[:, :O].set(p["b5"])

    # ------------------------------------------------------------------
    def _build_call(self, B, bm, B_pad, single_buffer_weights):
        N, E, H, Op, PD = (self.num_patches, self.embed_dim, self.n_hidden,
                           self.o_pad, self.patch_dim)
        NPD = N * PD
        G = B_pad // bm

        # index maps: scalar-prefetch ref arrives as trailing positional arg.
        def const2(i, bsz):
            return (0, 0)

        def blk2(i, bsz):
            return (i, 0)

        def reg_map(i, bsz):
            return (i, 0, 0)

        if single_buffer_weights:
            def wspec(shape):
                return pl.BlockSpec(shape, const2, pipeline_mode=pl.Buffered(1))
        else:
            def wspec(shape):
                return pl.BlockSpec(shape, const2)

        kernel = functools.partial(
            _vit_snn_kernel,
            n_steps=self.n_steps, beta=self.beta, threshold=self.threshold,
            lm_spn=self.lm_spN, inv_mean=1.0 / float(B * self.n_output))

        in_bytes = (B_pad * NPD * 2 + NPD * H * 2 + H * 4
                    + 3 * (H * H * 2 + H * 4) + H * Op * 2 + Op * 4 + 4)
        out_bytes = B_pad * Op * 4 + G * 8 * 128 * 4
        flops = (2 * B_pad * NPD * H
                 + 2 * self.n_steps * B_pad * (3 * H * H + H * Op))

        return pl.pallas_call(
            kernel,
            out_shape=(
                jax.ShapeDtypeStruct((B_pad, Op), jnp.float32),
                jax.ShapeDtypeStruct((G, 8, 128), jnp.float32),
            ),
            grid_spec=pltpu.PrefetchScalarGridSpec(
                num_scalar_prefetch=1,
                grid=(G,),
                in_specs=[
                    pl.BlockSpec((bm, NPD), blk2),     # patches (per-block)
                    wspec((NPD, H)),                   # folded patch-embed+fc1
                    wspec((1, H)),                     # folded bias
                    wspec((H, H)), wspec((1, H)),      # fc2
                    wspec((H, H)), wspec((1, H)),      # fc3
                    wspec((H, H)), wspec((1, H)),      # fc4
                    wspec((H, Op)), wspec((1, Op)),    # fc5 (lane-padded)
                ],
                out_specs=(
                    pl.BlockSpec((bm, Op), blk2),
                    pl.BlockSpec((1, 8, 128), reg_map),
                ),
                scratch_shapes=[
                    pltpu.VMEM((bm, H), jnp.float32),    # cur1 (hoisted)
                    pltpu.VMEM((bm, H), jnp.float32),    # mem1
                    pltpu.VMEM((bm, H), jnp.float32),    # mem2
                    pltpu.VMEM((bm, H), jnp.float32),    # mem3
                    pltpu.VMEM((bm, H), jnp.float32),    # mem4
                    pltpu.VMEM((bm, Op), jnp.float32),   # mem5
                    pltpu.VMEM((bm, Op), jnp.float32),   # spk_sum
                ],
            ),
            compiler_params=pltpu.CompilerParams(
                dimension_semantics=("parallel",),       # shards blocks on v7x
                vmem_limit_bytes=32 * 1024 * 1024),
            cost_estimate=pl.CostEstimate(
                flops=flops, transcendentals=0,
                bytes_accessed=in_bytes + out_bytes),
        )

    # ------------------------------------------------------------------
    def __call__(self, x):
        B = x.shape[0]
        NPD = self.num_patches * self.patch_dim
        bm, B_pad = _choose_block(B)

        patches = extract_patches(x, self.patch_size, self.stride)   # (B, N, PD)
        patches = patches.reshape(B, NPD)                            # lane-dense
        if B_pad != B:
            patches = jnp.pad(patches, ((0, B_pad - B), (0, 0)))
        patches = patches.astype(jnp.bfloat16)
        bsz = jnp.array([B], jnp.int32)                              # scalar prefetch

        args = (patches, self._wf, self._bf, self._w2, self._b2, self._w3,
                self._b3, self._w4, self._b4, self._w5, self._b5)

        try:
            fn = self._build_call(B, bm, B_pad, single_buffer_weights=True)
            out = fn(bsz, *args)
            jax.block_until_ready(out)
        except Exception:
            # Graceful degradation if pipeline_mode=pl.Buffered(1) is not
            # supported by the installed Pallas version.
            fn = self._build_call(B, bm, B_pad, single_buffer_weights=False)
            out = fn(bsz, *args)

        spk_out, reg_out = out
        spk_rate = spk_out[:B, :self.n_output]
        reg_loss = jnp.sum(reg_out[:, 0, 0])        # per-block partials sum exactly
        return spk_rate, reg_loss


if __name__ == "__main__":
    key = jax.random.PRNGKey(0)
    k_param, k_data = jax.random.split(key)

    # image 16x16, patch 8, 50% overlap -> stride 4 -> 3x3 = 9 patches,
    # embed_dim 32 -> snn_input = 288, hidden 128, 11 outputs, 5 time steps.
    model = ViTDeepSNNPallas(
        k_param,
        image_size=16, patch_size=8, in_channels=1, embed_dim=32,
        n_hidden=128, n_output=11, n_steps=5, beta=0.8, threshold=0.5,
    )

    x = jax.random.normal(k_data, (2, 1, 16, 16), dtype=jnp.float32)  # NCHW
    spk_rate, reg_loss = model(x)
    jax.block_until_ready((spk_rate, reg_loss))
    assert spk_rate.shape == (2, 11)
    assert reg_loss.shape == ()
    assert bool(jnp.isfinite(reg_loss))

    # Exercise the multi-block path (grid > 1, padded rows, partial regularizer).
    x2 = jax.random.normal(jax.random.PRNGKey(1), (20, 1, 16, 16), dtype=jnp.float32)
    spk_rate2, reg_loss2 = model(x2)
    jax.block_until_ready((spk_rate2, reg_loss2))
    assert spk_rate2.shape == (20, 11)
    assert reg_loss2.shape == ()
    assert bool(jnp.isfinite(reg_loss2))

    print("KERNEL_OK")
</pallas_src>

<mosaic_0001>
module attributes {stable_mosaic.version = 11 : i64} {
  func.func @_vit_snn_kernel(%arg0: i32, %arg1: memref<1xi32, #tpu.memory_space<smem>>, %arg2: memref<8x576xbf16, #tpu.memory_space<vmem>>, %arg3: memref<576x128xbf16, #tpu.memory_space<vmem>>, %arg4: memref<1x128xf32, #tpu.memory_space<vmem>>, %arg5: memref<128x128xbf16, #tpu.memory_space<vmem>>, %arg6: memref<1x128xf32, #tpu.memory_space<vmem>>, %arg7: memref<128x128xbf16, #tpu.memory_space<vmem>>, %arg8: memref<1x128xf32, #tpu.memory_space<vmem>>, %arg9: memref<128x128xbf16, #tpu.memory_space<vmem>>, %arg10: memref<1x128xf32, #tpu.memory_space<vmem>>, %arg11: memref<128x128xbf16, #tpu.memory_space<vmem>>, %arg12: memref<1x128xf32, #tpu.memory_space<vmem>>, %arg13: memref<8x128xf32, #tpu.memory_space<vmem>>, %arg14: memref<1x8x128xf32, #tpu.memory_space<vmem>>, %arg15: memref<8x128xf32, #tpu.memory_space<vmem>>, %arg16: memref<8x128xf32, #tpu.memory_space<vmem>>, %arg17: memref<8x128xf32, #tpu.memory_space<vmem>>, %arg18: memref<8x128xf32, #tpu.memory_space<vmem>>, %arg19: memref<8x128xf32, #tpu.memory_space<vmem>>, %arg20: memref<8x128xf32, #tpu.memory_space<vmem>>, %arg21: memref<8x128xf32, #tpu.memory_space<vmem>>) attributes {dimension_semantics = [#tpu.dimension_semantics<parallel>], iteration_bounds = array<i64: 1>, scalar_prefetch = 1 : i64, scratch_operands = 7 : i64, tpu.core_type = #tpu.core_type<tc>, window_params = [{transform_indices = @transform_0, window_bounds = array<i64: 8, 576>}, {pipeline_mode = #tpu.pipeline_mode<synchronous>, transform_indices = @transform_1, window_bounds = array<i64: 576, 128>}, {pipeline_mode = #tpu.pipeline_mode<synchronous>, transform_indices = @transform_2, window_bounds = array<i64: 1, 128>}, {pipeline_mode = #tpu.pipeline_mode<synchronous>, transform_indices = @transform_3, window_bounds = array<i64: 128, 128>}, {pipeline_mode = #tpu.pipeline_mode<synchronous>, transform_indices = @transform_4, window_bounds = array<i64: 1, 128>}, {pipeline_mode = #tpu.pipeline_mode<synchronous>, transform_indices = @transform_5, window_bounds = array<i64: 128, 128>}, {pipeline_mode = #tpu.pipeline_mode<synchronous>, transform_indices = @transform_6, window_bounds = array<i64: 1, 128>}, {pipeline_mode = #tpu.pipeline_mode<synchronous>, transform_indices = @transform_7, window_bounds = array<i64: 128, 128>}, {pipeline_mode = #tpu.pipeline_mode<synchronous>, transform_indices = @transform_8, window_bounds = array<i64: 1, 128>}, {pipeline_mode = #tpu.pipeline_mode<synchronous>, transform_indices = @transform_9, window_bounds = array<i64: 128, 128>}, {pipeline_mode = #tpu.pipeline_mode<synchronous>, transform_indices = @transform_10, window_bounds = array<i64: 1, 128>}, {transform_indices = @transform_11, window_bounds = array<i64: 8, 128>}, {transform_indices = @transform_12, window_bounds = array<i64: 1, 8, 128>}]} {
    %0 = tpu.iota {dimensions = array<i32: 0>} : vector<8x1xi32>
    %c8_i32 = arith.constant 8 : i32
    %1 = arith.muli %arg0, %c8_i32 : i32
    %2 = vector.broadcast %1 : i32 to vector<8x1xi32>
    %3 = arith.addi %0, %2 : vector<8x1xi32>
    %c0 = arith.constant 0 : index
    %4 = memref.load %arg1[%c0] : memref<1xi32, #tpu.memory_space<smem>>
    %5 = vector.broadcast %4 : i32 to vector<8x1xi32>
    %6 = arith.cmpi slt, %3, %5 : vector<8x1xi32>
    %7 = arith.extui %6 : vector<8x1xi1> to vector<8x1xi32>
    %8 = arith.sitofp %7 : vector<8x1xi32> to vector<8x1xf32>
    %c0_0 = arith.constant 0 : index
    %c0_1 = arith.constant 0 : index
    %9 = vector.load %arg2[%c0_0, %c0_1] : memref<8x576xbf16, #tpu.memory_space<vmem>>, vector<8x576xbf16>
    %c0_2 = arith.constant 0 : index
    %c0_3 = arith.constant 0 : index
    %10 = vector.load %arg3[%c0_2, %c0_3] : memref<576x128xbf16, #tpu.memory_space<vmem>>, vector<576x128xbf16>
    %cst = arith.constant dense<0.000000e+00> : vector<8x128xf32>
    %11 = tpu.matmul %9, %10, %cst {dimension_numbers = #tpu.dot_dimension_numbers<[1], [0], [0], [1], [0, 0, 1, 1], [], []>} : vector<8x576xbf16>, vector<576x128xbf16>, vector<8x128xf32> -> vector<8x128xf32>
    %c0_4 = arith.constant 0 : index
    %c0_5 = arith.constant 0 : index
    %12 = vector.load %arg4[%c0_4, %c0_5] : memref<1x128xf32, #tpu.memory_space<vmem>>, vector<1x128xf32>
    %13 = vector.broadcast %12 : vector<1x128xf32> to vector<8x128xf32>
    %14 = arith.addf %11, %13 : vector<8x128xf32>
    %c0_6 = arith.constant 0 : index
    %c0_7 = arith.constant 0 : index
    %15 = vector.load %arg15[%c0_6, %c0_7] : memref<8x128xf32, #tpu.memory_space<vmem>>, vector<8x128xf32>
    tpu.vector_store %arg15[%c0_6, %c0_7], %14 {strides = array<i32>} : memref<8x128xf32, #tpu.memory_space<vmem>>, vector<8x128xf32>,
    %cst_8 = arith.constant 0.000000e+00 : f32
    %16 = vector.broadcast %cst_8 : f32 to vector<8x128xf32>
    %c0_9 = arith.constant 0 : index
    %c0_10 = arith.constant 0 : index
    %17 = vector.load %arg16[%c0_9, %c0_10] : memref<8x128xf32, #tpu.memory_space<vmem>>, vector<8x128xf32>
    tpu.vector_store %arg16[%c0_9, %c0_10], %16 {strides = array<i32>} : memref<8x128xf32, #tpu.memory_space<vmem>>, vector<8x128xf32>,
    %cst_11 = arith.constant 0.000000e+00 : f32
    %18 = vector.broadcast %cst_11 : f32 to vector<8x128xf32>
    %c0_12 = arith.constant 0 : index
    %c0_13 = arith.constant 0 : index
    %19 = vector.load %arg17[%c0_12, %c0_13] : memref<8x128xf32, #tpu.memory_space<vmem>>, vector<8x128xf32>
    tpu.vector_store %arg17[%c0_12, %c0_13], %18 {strides = array<i32>} : memref<8x128xf32, #tpu.memory_space<vmem>>, vector<8x128xf32>,
    %cst_14 = arith.constant 0.000000e+00 : f32
    %20 = vector.broadcast %cst_14 : f32 to vector<8x128xf32>
    %c0_15 = arith.constant 0 : index
    %c0_16 = arith.constant 0 : index
    %21 = vector.load %arg18[%c0_15, %c0_16] : memref<8x128xf32, #tpu.memory_space<vmem>>, vector<8x128xf32>
    tpu.vector_store %arg18[%c0_15, %c0_16], %20 {strides = array<i32>} : memref<8x128xf32, #tpu.memory_space<vmem>>, vector<8x128xf32>,
    %cst_17 = arith.constant 0.000000e+00 : f32
    %22 = vector.broadcast %cst_17 : f32 to vector<8x128xf32>
    %c0_18 = arith.constant 0 : index
    %c0_19 = arith.constant 0 : index
    %23 = vector.load %arg19[%c0_18, %c0_19] : memref<8x128xf32, #tpu.memory_space<vmem>>, vector<8x128xf32>
    tpu.vector_store %arg19[%c0_18, %c0_19], %22 {strides = array<i32>} : memref<8x128xf32, #tpu.memory_space<vmem>>, vector<8x128xf32>,
    %cst_20 = arith.constant 0.000000e+00 : f32
    %24 = vector.broadcast %cst_20 : f32 to vector<8x128xf32>
    %c0_21 = arith.constant 0 : index
    %c0_22 = arith.constant 0 : index
    %25 = vector.load %arg20[%c0_21, %c0_22] : memref<8x128xf32, #tpu.memory_space<vmem>>, vector<8x128xf32>
    tpu.vector_store %arg20[%c0_21, %c0_22], %24 {strides = array<i32>} : memref<8x128xf32, #tpu.memory_space<vmem>>, vector<8x128xf32>,
    %cst_23 = arith.constant 0.000000e+00 : f32
    %26 = vector.broadcast %cst_23 : f32 to vector<8x128xf32>
    %c0_24 = arith.constant 0 : index
    %c0_25 = arith.constant 0 : index
    %27 = vector.load %arg21[%c0_24, %c0_25] : memref<8x128xf32, #tpu.memory_space<vmem>>, vector<8x128xf32>
    tpu.vector_store %arg21[%c0_24, %c0_25], %26 {strides = array<i32>} : memref<8x128xf32, #tpu.memory_space<vmem>>, vector<8x128xf32>,
    %c0_26 = arith.constant 0 : index
    %c0_27 = arith.constant 0 : index
    %28 = vector.load %arg15[%c0_26, %c0_27] : memref<8x128xf32, #tpu.memory_space<vmem>>, vector<8x128xf32>
    %c0_28 = arith.constant 0 : index
    %c0_29 = arith.constant 0 : index
    %29 = vector.load %arg16[%c0_28, %c0_29] : memref<8x128xf32, #tpu.memory_space<vmem>>, vector<8x128xf32>
    %cst_30 = arith.constant 5.000000e-01 : f32
    %30 = vector.broadcast %cst_30 : f32 to vector<8x128xf32>
    %31 = arith.cmpf ogt, %29, %30 : vector<8x128xf32>
    %32 = arith.extui %31 : vector<8x128xi1> to vector<8x128xi32>
    %33 = arith.sitofp %32 : vector<8x128xi32> to vector<8x128xf32>
    %cst_31 = arith.constant 8.000000e-01 : f32
    %34 = vector.broadcast %cst_31 : f32 to vector<8x128xf32>
    %35 = arith.mulf %34, %29 : vector<8x128xf32>
    %36 = arith.addf %35, %28 : vector<8x128xf32>
    %cst_32 = arith.constant 5.000000e-01 : f32
    %37 = vector.broadcast %cst_32 : f32 to vector<8x128xf32>
    %38 = arith.mulf %33, %37 : vector<8x128xf32>
    %39 = arith.subf %36, %38 : vector<8x128xf32>
    %c0_33 = arith.constant 0 : index
    %c0_34 = arith.constant 0 : index
    %40 = vector.load %arg16[%c0_33, %c0_34] : memref<8x128xf32, #tpu.memory_space<vmem>>, vector<8x128xf32>
    tpu.vector_store %arg16[%c0_33, %c0_34], %39 {strides = array<i32>} : memref<8x128xf32, #tpu.memory_space<vmem>>, vector<8x128xf32>,
    %cst_35 = arith.constant 5.000000e-01 : f32
    %41 = vector.broadcast %cst_35 : f32 to vector<8x128xf32>
    %42 = arith.cmpf ogt, %39, %41 : vector<8x128xf32>
    %43 = arith.extui %42 : vector<8x128xi1> to vector<8x128xi32>
    %44 = arith.sitofp %43 : vector<8x128xi32> to vector<8x128xf32>
    %45 = arith.truncf %44 : vector<8x128xf32> to vector<8x128xbf16>
    %c0_36 = arith.constant 0 : index
    %c0_37 = arith.constant 0 : index
    %46 = vector.load %arg5[%c0_36, %c0_37] : memref<128x128xbf16, #tpu.memory_space<vmem>>, vector<128x128xbf16>
    %cst_38 = arith.constant dense<0.000000e+00> : vector<8x128xf32>
    %47 = tpu.matmul %45, %46, %cst_38 {dimension_numbers = #tpu.dot_dimension_numbers<[1], [0], [0], [1], [0, 0, 1, 1], [], []>} : vector<8x128xbf16>, vector<128x128xbf16>, vector<8x128xf32> -> vector<8x128xf32>
    %c0_39 = arith.constant 0 : index
    %c0_40 = arith.constant 0 : index
    %48 = vector.load %arg6[%c0_39, %c0_40] : memref<1x128xf32, #tpu.memory_space<vmem>>, vector<1x128xf32>
    %49 = vector.broadcast %48 : vector<1x128xf32> to vector<8x128xf32>
    %50 = arith.addf %47, %49 : vector<8x128xf32>
    %c0_41 = arith.constant 0 : index
    %c0_42 = arith.constant 0 : index
    %51 = vector.load %arg17[%c0_41, %c0_42] : memref<8x128xf32, #tpu.memory_space<vmem>>, vector<8x128xf32>
    %cst_43 = arith.constant 5.000000e-01 : f32
    %52 = vector.broadcast %cst_43 : f32 to vector<8x128xf32>
    %53 = arith.cmpf ogt, %51, %52 : vector<8x128xf32>
    %54 = arith.extui %53 : vector<8x128xi1> to vector<8x128xi32>
    %55 = arith.sitofp %54 : vector<8x128xi32> to vector<8x128xf32>
    %cst_44 = arith.constant 8.000000e-01 : f32
    %56 = vector.broadcast %cst_44 : f32 to vector<8x128xf32>
    %57 = arith.mulf %56, %51 : vector<8x128xf32>
    %58 = arith.addf %57, %50 : vector<8x128xf32>
    %cst_45 = arith.constant 5.000000e-01 : f32
    %59 = vector.broadcast %cst_45 : f32 to vector<8x128xf32>
    %60 = arith.mulf %55, %59 : vector<8x128xf32>
    %61 = arith.subf %58, %60 : vector<8x128xf32>
    %c0_46 = arith.constant 0 : index
    %c0_47 = arith.constant 0 : index
    %62 = vector.load %arg17[%c0_46, %c0_47] : memref<8x128xf32, #tpu.memory_space<vmem>>, vector<8x128xf32>
    tpu.vector_store %arg17[%c0_46, %c0_47], %61 {strides = array<i32>} : memref<8x128xf32, #tpu.memory_space<vmem>>, vector<8x128xf32>,
    %cst_48 = arith.constant 5.000000e-01 : f32
    %63 = vector.broadcast %cst_48 : f32 to vector<8x128xf32>
    %64 = arith.cmpf ogt, %61, %63 : vector<8x128xf32>
    %65 = arith.extui %64 : vector<8x128xi1> to vector<8x128xi32>
    %66 = arith.sitofp %65 : vector<8x128xi32> to vector<8x128xf32>
    %67 = arith.truncf %66 : vector<8x128xf32> to vector<8x128xbf16>
    %c0_49 = arith.constant 0 : index
    %c0_50 = arith.constant 0 : index
    %68 = vector.load %arg7[%c0_49, %c0_50] : memref<128x128xbf16, #tpu.memory_space<vmem>>, vector<128x128xbf16>
    %cst_51 = arith.constant dense<0.000000e+00> : vector<8x128xf32>
    %69 = tpu.matmul %67, %68, %cst_51 {dimension_numbers = #tpu.dot_dimension_numbers<[1], [0], [0], [1], [0, 0, 1, 1], [], []>} : vector<8x128xbf16>, vector<128x128xbf16>, vector<8x128xf32> -> vector<8x128xf32>
    %c0_52 = arith.constant 0 : index
    %c0_53 = arith.constant 0 : index
    %70 = vector.load %arg8[%c0_52, %c0_53] : memref<1x128xf32, #tpu.memory_space<vmem>>, vector<1x128xf32>
    %71 = vector.broadcast %70 : vector<1x128xf32> to vector<8x128xf32>
    %72 = arith.addf %69, %71 : vector<8x128xf32>
    %c0_54 = arith.constant 0 : index
    %c0_55 = arith.constant 0 : index
    %73 = vector.load %arg18[%c0_54, %c0_55] : memref<8x128xf32, #tpu.memory_space<vmem>>, vector<8x128xf32>
    %cst_56 = arith.constant 5.000000e-01 : f32
    %74 = vector.broadcast %cst_56 : f32 to vector<8x128xf32>
    %75 = arith.cmpf ogt, %73, %74 : vector<8x128xf32>
    %76 = arith.extui %75 : vector<8x128xi1> to vector<8x128xi32>
    %77 = arith.sitofp %76 : vector<8x128xi32> to vector<8x128xf32>
    %cst_57 = arith.constant 8.000000e-01 : f32
    %78 = vector.broadcast %cst_57 : f32 to vector<8x128xf32>
    %79 = arith.mulf %78, %73 : vector<8x128xf32>
    %80 = arith.addf %79, %72 : vector<8x128xf32>
    %cst_58 = arith.constant 5.000000e-01 : f32
    %81 = vector.broadcast %cst_58 : f32 to vector<8x128xf32>
    %82 = arith.mulf %77, %81 : vector<8x128xf32>
    %83 = arith.subf %80, %82 : vector<8x128xf32>
    %c0_59 = arith.constant 0 : index
    %c0_60 = arith.constant 0 : index
    %84 = vector.load %arg18[%c0_59, %c0_60] : memref<8x128xf32, #tpu.memory_space<vmem>>, vector<8x128xf32>
    tpu.vector_store %arg18[%c0_59, %c0_60], %83 {strides = array<i32>} : memref<8x128xf32, #tpu.memory_space<vmem>>, vector<8x128xf32>,
    %cst_61 = arith.constant 5.000000e-01 : f32
    %85 = vector.broadcast %cst_61 : f32 to vector<8x128xf32>
    %86 = arith.cmpf ogt, %83, %85 : vector<8x128xf32>
    %87 = arith.extui %86 : vector<8x128xi1> to vector<8x128xi32>
    %88 = arith.sitofp %87 : vector<8x128xi32> to vector<8x128xf32>
    %89 = arith.truncf %88 : vector<8x128xf32> to vector<8x128xbf16>
    %c0_62 = arith.constant 0 : index
    %c0_63 = arith.constant 0 : index
    %90 = vector.load %arg9[%c0_62, %c0_63] : memref<128x128xbf16, #tpu.memory_space<vmem>>, vector<128x128xbf16>
    %cst_64 = arith.constant dense<0.000000e+00> : vector<8x128xf32>
    %91 = tpu.matmul %89, %90, %cst_64 {dimension_numbers = #tpu.dot_dimension_numbers<[1], [0], [0], [1], [0, 0, 1, 1], [], []>} : vector<8x128xbf16>, vector<128x128xbf16>, vector<8x128xf32> -> vector<8x128xf32>
    %c0_65 = arith.constant 0 : index
    %c0_66 = arith.constant 0 : index
    %92 = vector.load %arg10[%c0_65, %c0_66] : memref<1x128xf32, #tpu.memory_space<vmem>>, vector<1x128xf32>
    %93 = vector.broadcast %92 : vector<1x128xf32> to vector<8x128xf32>
    %94 = arith.addf %91, %93 : vector<8x128xf32>
    %c0_67 = arith.constant 0 : index
    %c0_68 = arith.constant 0 : index
    %95 = vector.load %arg19[%c0_67, %c0_68] : memref<8x128xf32, #tpu.memory_space<vmem>>, vector<8x128xf32>
    %cst_69 = arith.constant 5.000000e-01 : f32
    %96 = vector.broadcast %cst_69 : f32 to vector<8x128xf32>
    %97 = arith.cmpf ogt, %95, %96 : vector<8x128xf32>
    %98 = arith.extui %97 : vector<8x128xi1> to vector<8x128xi32>
    %99 = arith.sitofp %98 : vector<8x128xi32> to vector<8x128xf32>
    %cst_70 = arith.constant 8.000000e-01 : f32
    %100 = vector.broadcast %cst_70 : f32 to vector<8x128xf32>
    %101 = arith.mulf %100, %95 : vector<8x128xf32>
    %102 = arith.addf %101, %94 : vector<8x128xf32>
    %cst_71 = arith.constant 5.000000e-01 : f32
    %103 = vector.broadcast %cst_71 : f32 to vector<8x128xf32>
    %104 = arith.mulf %99, %103 : vector<8x128xf32>
    %105 = arith.subf %102, %104 : vector<8x128xf32>
    %c0_72 = arith.constant 0 : index
    %c0_73 = arith.constant 0 : index
    %106 = vector.load %arg19[%c0_72, %c0_73] : memref<8x128xf32, #tpu.memory_space<vmem>>, vector<8x128xf32>
    tpu.vector_store %arg19[%c0_72, %c0_73], %105 {strides = array<i32>} : memref<8x128xf32, #tpu.memory_space<vmem>>, vector<8x128xf32>,
    %cst_74 = arith.constant 5.000000e-01 : f32
    %107 = vector.broadcast %cst_74 : f32 to vector<8x128xf32>
    %108 = arith.cmpf ogt, %105, %107 : vector<8x128xf32>
    %109 = arith.extui %108 : vector<8x128xi1> to vector<8x128xi32>
    %110 = arith.sitofp %109 : vector<8x128xi32> to vector<8x128xf32>
    %111 = arith.truncf %110 : vector<8x128xf32> to vector<8x128xbf16>
    %c0_75 = arith.constant 0 : index
    %c0_76 = arith.constant 0 : index
    %112 = vector.load %arg11[%c0_75, %c0_76] : memref<128x128xbf16, #tpu.memory_space<vmem>>, vector<128x128xbf16>
    %cst_77 = arith.constant dense<0.000000e+00> : vector<8x128xf32>
    %113 = tpu.matmul %111, %112, %cst_77 {dimension_numbers = #tpu.dot_dimension_numbers<[1], [0], [0], [1], [0, 0, 1, 1], [], []>} : vector<8x128xbf16>, vector<128x128xbf16>, vector<8x128xf32> -> vector<8x128xf32>
    %c0_78 = arith.constant 0 : index
    %c0_79 = arith.constant 0 : index
    %114 = vector.load %arg12[%c0_78, %c0_79] : memref<1x128xf32, #tpu.memory_space<vmem>>, vector<1x128xf32>
    %115 = vector.broadcast %114 : vector<1x128xf32> to vector<8x128xf32>
    %116 = arith.addf %113, %115 : vector<8x128xf32>
    %c0_80 = arith.constant 0 : index
    %c0_81 = arith.constant 0 : index
    %117 = vector.load %arg20[%c0_80, %c0_81] : memref<8x128xf32, #tpu.memory_space<vmem>>, vector<8x128xf32>
    %cst_82 = arith.constant 5.000000e-01 : f32
    %118 = vector.broadcast %cst_82 : f32 to vector<8x128xf32>
    %119 = arith.cmpf ogt, %117, %118 : vector<8x128xf32>
    %120 = arith.extui %119 : vector<8x128xi1> to vector<8x128xi32>
    %121 = arith.sitofp %120 : vector<8x128xi32> to vector<8x128xf32>
    %cst_83 = arith.constant 8.000000e-01 : f32
    %122 = vector.broadcast %cst_83 : f32 to vector<8x128xf32>
    %123 = arith.mulf %122, %117 : vector<8x128xf32>
    %124 = arith.addf %123, %116 : vector<8x128xf32>
    %cst_84 = arith.constant 5.000000e-01 : f32
    %125 = vector.broadcast %cst_84 : f32 to vector<8x128xf32>
    %126 = arith.mulf %121, %125 : vector<8x128xf32>
    %127 = arith.subf %124, %126 : vector<8x128xf32>
    %c0_85 = arith.constant 0 : index
    %c0_86 = arith.constant 0 : index
    %128 = vector.load %arg20[%c0_85, %c0_86] : memref<8x128xf32, #tpu.memory_space<vmem>>, vector<8x128xf32>
    tpu.vector_store %arg20[%c0_85, %c0_86], %127 {strides = array<i32>} : memref<8x128xf32, #tpu.memory_space<vmem>>, vector<8x128xf32>,
    %cst_87 = arith.constant 5.000000e-01 : f32
    %129 = vector.broadcast %cst_87 : f32 to vector<8x128xf32>
    %130 = arith.cmpf ogt, %127, %129 : vector<8x128xf32>
    %131 = arith.extui %130 : vector<8x128xi1> to vector<8x128xi32>
    %132 = arith.sitofp %131 : vector<8x128xi32> to vector<8x128xf32>
    %c0_88 = arith.constant 0 : index
    %c0_89 = arith.constant 0 : index
    %133 = vector.load %arg21[%c0_88, %c0_89] : memref<8x128xf32, #tpu.memory_space<vmem>>, vector<8x128xf32>
    %134 = arith.addf %133, %132 : vector<8x128xf32>
    %c0_90 = arith.constant 0 : index
    %c0_91 = arith.constant 0 : index
    %135 = vector.load %arg21[%c0_90, %c0_91] : memref<8x128xf32, #tpu.memory_space<vmem>>, vector<8x128xf32>
    tpu.vector_store %arg21[%c0_90, %c0_91], %134 {strides = array<i32>} : memref<8x128xf32, #tpu.memory_space<vmem>>, vector<8x128xf32>,
    %136 = vector.broadcast %8 : vector<8x1xf32> to vector<8x128xf32>
    %137 = arith.mulf %132, %136 : vector<8x128xf32>
    %cst_92 = arith.constant dense<0.000000e+00> : vector<128xf32>
    %138 = vector.multi_reduction <add>, %137, %cst_92 [0] : vector<8x128xf32> to vector<128xf32>
    %139 = vector.shape_cast %138 : vector<128xf32> to vector<1x128xf32>
    %cst_93 = arith.constant dense<0.000000e+00> : vector<1xf32>
    %140 = vector.multi_reduction <add>, %139, %cst_93 [1] : vector<1x128xf32> to vector<1xf32>
    %141 = vector.shape_cast %140 : vector<1xf32> to vector<1x1xf32>
    %cst_94 = arith.constant 0.0454545468 : f32
    %142 = vector.broadcast %cst_94 : f32 to vector<1x1xf32>
    %143 = arith.mulf %141, %142 : vector<1x1xf32>
    %c0_95 = arith.constant 0 : index
    %c0_96 = arith.constant 0 : index
    %144 = vector.load %arg15[%c0_95, %c0_96] : memref<8x128xf32, #tpu.memory_space<vmem>>, vector<8x128xf32>
    %c0_97 = arith.constant 0 : index
    %c0_98 = arith.constant 0 : index
    %145 = vector.load %arg16[%c0_97, %c0_98] : memref<8x128xf32, #tpu.memory_space<vmem>>, vector<8x128xf32>
    %cst_99 = arith.constant 5.000000e-01 : f32
    %146 = vector.broadcast %cst_99 : f32 to vector<8x128xf32>
    %147 = arith.cmpf ogt, %145, %146 : vector<8x128xf32>
    %148 = arith.extui %147 : vector<8x128xi1> to vector<8x128xi32>
    %149 = arith.sitofp %148 : vector<8x128xi32> to vector<8x128xf32>
    %cst_100 = arith.constant 8.000000e-01 : f32
    %150 = vector.broadcast %cst_100 : f32 to vector<8x128xf32>
    %151 = arith.mulf %150, %145 : vector<8x128xf32>
    %152 = arith.addf %151, %144 : vector<8x128xf32>
    %cst_101 = arith.constant 5.000000e-01 : f32
    %153 = vector.broadcast %cst_101 : f32 to vector<8x128xf32>
    %154 = arith.mulf %149, %153 : vector<8x128xf32>
    %155 = arith.subf %152, %154 : vector<8x128xf32>
    %c0_102 = arith.constant 0 : index
    %c0_103 = arith.constant 0 : index
    %156 = vector.load %arg16[%c0_102, %c0_103] : memref<8x128xf32, #tpu.memory_space<vmem>>, vector<8x128xf32>
    tpu.vector_store %arg16[%c0_102, %c0_103], %155 {strides = array<i32>} : memref<8x128xf32, #tpu.memory_space<vmem>>, vector<8x128xf32>,
    %cst_104 = arith.constant 5.000000e-01 : f32
    %157 = vector.broadcast %cst_104 : f32 to vector<8x128xf32>
    %158 = arith.cmpf ogt, %155, %157 : vector<8x128xf32>
    %159 = arith.extui %158 : vector<8x128xi1> to vector<8x128xi32>
    %160 = arith.sitofp %159 : vector<8x128xi32> to vector<8x128xf32>
    %161 = arith.truncf %160 : vector<8x128xf32> to vector<8x128xbf16>
    %c0_105 = arith.constant 0 : index
    %c0_106 = arith.constant 0 : index
    %162 = vector.load %arg5[%c0_105, %c0_106] : memref<128x128xbf16, #tpu.memory_space<vmem>>, vector<128x128xbf16>
    %cst_107 = arith.constant dense<0.000000e+00> : vector<8x128xf32>
    %163 = tpu.matmul %161, %162, %cst_107 {dimension_numbers = #tpu.dot_dimension_numbers<[1], [0], [0], [1], [0, 0, 1, 1], [], []>} : vector<8x128xbf16>, vector<128x128xbf16>, vector<8x128xf32> -> vector<8x128xf32>
    %c0_108 = arith.constant 0 : index
    %c0_109 = arith.constant 0 : index
    %164 = vector.load %arg6[%c0_108, %c0_109] : memref<1x128xf32, #tpu.memory_space<vmem>>, vector<1x128xf32>
    %165 = vector.broadcast %164 : vector<1x128xf32> to vector<8x128xf32>
    %166 = arith.addf %163, %165 : vector<8x128xf32>
    %c0_110 = arith.constant 0 : index
    %c0_111 = arith.constant 0 : index
    %167 = vector.load %arg17[%c0_110, %c0_111] : memref<8x128xf32, #tpu.memory_space<vmem>>, vector<8x128xf32>
    %cst_112 = arith.constant 5.000000e-01 : f32
    %168 = vector.broadcast %cst_112 : f32 to vector<8x128xf32>
    %169 = arith.cmpf ogt, %167, %168 : vector<8x128xf32>
    %170 = arith.extui %169 : vector<8x128xi1> to vector<8x128xi32>
    %171 = arith.sitofp %170 : vector<8x128xi32> to vector<8x128xf32>
    %cst_113 = arith.constant 8.000000e-01 : f32
    %172 = vector.broadcast %cst_113 : f32 to vector<8x128xf32>
    %173 = arith.mulf %172, %167 : vector<8x128xf32>
    %174 = arith.addf %173, %166 : vector<8x128xf32>
    %cst_114 = arith.constant 5.000000e-01 : f32
    %175 = vector.broadcast %cst_114 : f32 to vector<8x128xf32>
    %176 = arith.mulf %171, %175 : vector<8x128xf32>
    %177 = arith.subf %174, %176 : vector<8x128xf32>
    %c0_115 = arith.constant 0 : index
    %c0_116 = arith.constant 0 : index
    %178 = vector.load %arg17[%c0_115, %c0_116] : memref<8x128xf32, #tpu.memory_space<vmem>>, vector<8x128xf32>
    tpu.vector_store %arg17[%c0_115, %c0_116], %177 {strides = array<i32>} : memref<8x128xf32, #tpu.memory_space<vmem>>, vector<8x128xf32>,
    %cst_117 = arith.constant 5.000000e-01 : f32
    %179 = vector.broadcast %cst_117 : f32 to vector<8x128xf32>
    %180 = arith.cmpf ogt, %177, %179 : vector<8x128xf32>
    %181 = arith.extui %180 : vector<8x128xi1> to vector<8x128xi32>
    %182 = arith.sitofp %181 : vector<8x128xi32> to vector<8x128xf32>
    %183 = arith.truncf %182 : vector<8x128xf32> to vector<8x128xbf16>
    %c0_118 = arith.constant 0 : index
    %c0_119 = arith.constant 0 : index
    %184 = vector.load %arg7[%c0_118, %c0_119] : memref<128x128xbf16, #tpu.memory_space<vmem>>, vector<128x128xbf16>
    %cst_120 = arith.constant dense<0.000000e+00> : vector<8x128xf32>
    %185 = tpu.matmul %183, %184, %cst_120 {dimension_numbers = #tpu.dot_dimension_numbers<[1], [0], [0], [1], [0, 0, 1, 1], [], []>} : vector<8x128xbf16>, vector<128x128xbf16>, vector<8x128xf32> -> vector<8x128xf32>
    %c0_121 = arith.constant 0 : index
    %c0_122 = arith.constant 0 : index
    %186 = vector.load %arg8[%c0_121, %c0_122] : memref<1x128xf32, #tpu.memory_space<vmem>>, vector<1x128xf32>
    %187 = vector.broadcast %186 : vector<1x128xf32> to vector<8x128xf32>
    %188 = arith.addf %185, %187 : vector<8x128xf32>
    %c0_123 = arith.constant 0 : index
    %c0_124 = arith.constant 0 : index
    %189 = vector.load %arg18[%c0_123, %c0_124] : memref<8x128xf32, #tpu.memory_space<vmem>>, vector<8x128xf32>
    %cst_125 = arith.constant 5.000000e-01 : f32
    %190 = vector.broadcast %cst_125 : f32 to vector<8x128xf32>
    %191 = arith.cmpf ogt, %189, %190 : vector<8x128xf32>
    %192 = arith.extui %191 : vector<8x128xi1> to vector<8x128xi32>
    %193 = arith.sitofp %192 : vector<8x128xi32> to vector<8x128xf32>
    %cst_126 = arith.constant 8.000000e-01 : f32
    %194 = vector.broadcast %cst_126 : f32 to vector<8x128xf32>
    %195 = arith.mulf %194, %189 : vector<8x128xf32>
    %196 = arith.addf %195, %188 : vector<8x128xf32>
    %cst_127 = arith.constant 5.000000e-01 : f32
    %197 = vector.broadcast %cst_127 : f32 to vector<8x128xf32>
    %198 = arith.mulf %193, %197 : vector<8x128xf32>
    %199 = arith.subf %196, %198 : vector<8x128xf32>
    %c0_128 = arith.constant 0 : index
    %c0_129 = arith.constant 0 : index
    %200 = vector.load %arg18[%c0_128, %c0_129] : memref<8x128xf32, #tpu.memory_space<vmem>>, vector<8x128xf32>
    tpu.vector_store %arg18[%c0_128, %c0_129], %199 {strides = array<i32>} : memref<8x128xf32, #tpu.memory_space<vmem>>, vector<8x128xf32>,
    %cst_130 = arith.constant 5.000000e-01 : f32
    %201 = vector.broadcast %cst_130 : f32 to vector<8x128xf32>
    %202 = arith.cmpf ogt, %199, %201 : vector<8x128xf32>
    %203 = arith.extui %202 : vector<8x128xi1> to vector<8x128xi32>
    %204 = arith.sitofp %203 : vector<8x128xi32> to vector<8x128xf32>
    %205 = arith.truncf %204 : vector<8x128xf32> to vector<8x128xbf16>
    %c0_131 = arith.constant 0 : index
    %c0_132 = arith.constant 0 : index
    %206 = vector.load %arg9[%c0_131, %c0_132] : memref<128x128xbf16, #tpu.memory_space<vmem>>, vector<128x128xbf16>
    %cst_133 = arith.constant dense<0.000000e+00> : vector<8x128xf32>
    %207 = tpu.matmul %205, %206, %cst_133 {dimension_numbers = #tpu.dot_dimension_numbers<[1], [0], [0], [1], [0, 0, 1, 1], [], []>} : vector<8x128xbf16>, vector<128x128xbf16>, vector<8x128xf32> -> vector<8x128xf32>
    %c0_134 = arith.constant 0 : index
    %c0_135 = arith.constant 0 : index
    %208 = vector.load %arg10[%c0_134, %c0_135] : memref<1x128xf32, #tpu.memory_space<vmem>>, vector<1x128xf32>
    %209 = vector.broadcast %208 : vector<1x128xf32> to vector<8x128xf32>
    %210 = arith.addf %207, %209 : vector<8x128xf32>
    %c0_136 = arith.constant 0 : index
    %c0_137 = arith.constant 0 : index
    %211 = vector.load %arg19[%c0_136, %c0_137] : memref<8x128xf32, #tpu.memory_space<vmem>>, vector<8x128xf32>
    %cst_138 = arith.constant 5.000000e-01 : f32
    %212 = vector.broadcast %cst_138 : f32 to vector<8x128xf32>
    %213 = arith.cmpf ogt, %211, %212 : vector<8x128xf32>
    %214 = arith.extui %213 : vector<8x128xi1> to vector<8x128xi32>
    %215 = arith.sitofp %214 : vector<8x128xi32> to vector<8x128xf32>
    %cst_139 = arith.constant 8.000000e-01 : f32
    %216 = vector.broadcast %cst_139 : f32 to vector<8x128xf32>
    %217 = arith.mulf %216, %211 : vector<8x128xf32>
    %218 = arith.addf %217, %210 : vector<8x128xf32>
    %cst_140 = arith.constant 5.000000e-01 : f32
    %219 = vector.broadcast %cst_140 : f32 to vector<8x128xf32>
    %220 = arith.mulf %215, %219 : vector<8x128xf32>
    %221 = arith.subf %218, %220 : vector<8x128xf32>
    %c0_141 = arith.constant 0 : index
    %c0_142 = arith.constant 0 : index
    %222 = vector.load %arg19[%c0_141, %c0_142] : memref<8x128xf32, #tpu.memory_space<vmem>>, vector<8x128xf32>
    tpu.vector_store %arg19[%c0_141, %c0_142], %221 {strides = array<i32>} : memref<8x128xf32, #tpu.memory_space<vmem>>, vector<8x128xf32>,
    %cst_143 = arith.constant 5.000000e-01 : f32
    %223 = vector.broadcast %cst_143 : f32 to vector<8x128xf32>
    %224 = arith.cmpf ogt, %221, %223 : vector<8x128xf32>
    %225 = arith.extui %224 : vector<8x128xi1> to vector<8x128xi32>
    %226 = arith.sitofp %225 : vector<8x128xi32> to vector<8x128xf32>
    %227 = arith.truncf %226 : vector<8x128xf32> to vector<8x128xbf16>
    %c0_144 = arith.constant 0 : index
    %c0_145 = arith.constant 0 : index
    %228 = vector.load %arg11[%c0_144, %c0_145] : memref<128x128xbf16, #tpu.memory_space<vmem>>, vector<128x128xbf16>
    %cst_146 = arith.constant dense<0.000000e+00> : vector<8x128xf32>
    %229 = tpu.matmul %227, %228, %cst_146 {dimension_numbers = #tpu.dot_dimension_numbers<[1], [0], [0], [1], [0, 0, 1, 1], [], []>} : vector<8x128xbf16>, vector<128x128xbf16>, vector<8x128xf32> -> vector<8x128xf32>
    %c0_147 = arith.constant 0 : index
    %c0_148 = arith.constant 0 : index
    %230 = vector.load %arg12[%c0_147, %c0_148] : memref<1x128xf32, #tpu.memory_space<vmem>>, vector<1x128xf32>
    %231 = vector.broadcast %230 : vector<1x128xf32> to vector<8x128xf32>
    %232 = arith.addf %229, %231 : vector<8x128xf32>
    %c0_149 = arith.constant 0 : index
    %c0_150 = arith.constant 0 : index
    %233 = vector.load %arg20[%c0_149, %c0_150] : memref<8x128xf32, #tpu.memory_space<vmem>>, vector<8x128xf32>
    %cst_151 = arith.constant 5.000000e-01 : f32
    %234 = vector.broadcast %cst_151 : f32 to vector<8x128xf32>
    %235 = arith.cmpf ogt, %233, %234 : vector<8x128xf32>
    %236 = arith.extui %235 : vector<8x128xi1> to vector<8x128xi32>
    %237 = arith.sitofp %236 : vector<8x128xi32> to vector<8x128xf32>
    %cst_152 = arith.constant 8.000000e-01 : f32
    %238 = vector.broadcast %cst_152 : f32 to vector<8x128xf32>
    %239 = arith.mulf %238, %233 : vector<8x128xf32>
    %240 = arith.addf %239, %232 : vector<8x128xf32>
    %cst_153 = arith.constant 5.000000e-01 : f32
    %241 = vector.broadcast %cst_153 : f32 to vector<8x128xf32>
    %242 = arith.mulf %237, %241 : vector<8x128xf32>
    %243 = arith.subf %240, %242 : vector<8x128xf32>
    %c0_154 = arith.constant 0 : index
    %c0_155 = arith.constant 0 : index
    %244 = vector.load %arg20[%c0_154, %c0_155] : memref<8x128xf32, #tpu.memory_space<vmem>>, vector<8x128xf32>
    tpu.vector_store %arg20[%c0_154, %c0_155], %243 {strides = array<i32>} : memref<8x128xf32, #tpu.memory_space<vmem>>, vector<8x128xf32>,
    %cst_156 = arith.constant 5.000000e-01 : f32
    %245 = vector.broadcast %cst_156 : f32 to vector<8x128xf32>
    %246 = arith.cmpf ogt, %243, %245 : vector<8x128xf32>
    %247 = arith.extui %246 : vector<8x128xi1> to vector<8x128xi32>
    %248 = arith.sitofp %247 : vector<8x128xi32> to vector<8x128xf32>
    %c0_157 = arith.constant 0 : index
    %c0_158 = arith.constant 0 : index
    %249 = vector.load %arg21[%c0_157, %c0_158] : memref<8x128xf32, #tpu.memory_space<vmem>>, vector<8x128xf32>
    %250 = arith.addf %249, %248 : vector<8x128xf32>
    %c0_159 = arith.constant 0 : index
    %c0_160 = arith.constant 0 : index
    %251 = vector.load %arg21[%c0_159, %c0_160] : memref<8x128xf32, #tpu.memory_space<vmem>>, vector<8x128xf32>
    tpu.vector_store %arg21[%c0_159, %c0_160], %250 {strides = array<i32>} : memref<8x128xf32, #tpu.memory_space<vmem>>, vector<8x128xf32>,
    %252 = vector.broadcast %8 : vector<8x1xf32> to vector<8x128xf32>
    %253 = arith.mulf %248, %252 : vector<8x128xf32>
    %cst_161 = arith.constant dense<0.000000e+00> : vector<128xf32>
    %254 = vector.multi_reduction <add>, %253, %cst_161 [0] : vector<8x128xf32> to vector<128xf32>
    %255 = vector.shape_cast %254 : vector<128xf32> to vector<1x128xf32>
    %cst_162 = arith.constant dense<0.000000e+00> : vector<1xf32>
    %256 = vector.multi_reduction <add>, %255, %cst_162 [1] : vector<1x128xf32> to vector<1xf32>
    %257 = vector.shape_cast %256 : vector<1xf32> to vector<1x1xf32>
    %cst_163 = arith.constant 0.0454545468 : f32
    %258 = vector.broadcast %cst_163 : f32 to vector<1x1xf32>
    %259 = arith.mulf %257, %258 : vector<1x1xf32>
    %c0_164 = arith.constant 0 : index
    %c0_165 = arith.constant 0 : index
    %260 = vector.load %arg15[%c0_164, %c0_165] : memref<8x128xf32, #tpu.memory_space<vmem>>, vector<8x128xf32>
    %c0_166 = arith.constant 0 : index
    %c0_167 = arith.constant 0 : index
    %261 = vector.load %arg16[%c0_166, %c0_167] : memref<8x128xf32, #tpu.memory_space<vmem>>, vector<8x128xf32>
    %cst_168 = arith.constant 5.000000e-01 : f32
    %262 = vector.broadcast %cst_168 : f32 to vector<8x128xf32>
    %263 = arith.cmpf ogt, %261, %262 : vector<8x128xf32>
    %264 = arith.extui %263 : vector<8x128xi1> to vector<8x128xi32>
    %265 = arith.sitofp %264 : vector<8x128xi32> to vector<8x128xf32>
    %cst_169 = arith.constant 8.000000e-01 : f32
    %266 = vector.broadcast %cst_169 : f32 to vector<8x128xf32>
    %267 = arith.mulf %266, %261 : vector<8x128xf32>
    %268 = arith.addf %267, %260 : vector<8x128xf32>
    %cst_170 = arith.constant 5.000000e-01 : f32
    %269 = vector.broadcast %cst_170 : f32 to vector<8x128xf32>
    %270 = arith.mulf %265, %269 : vector<8x128xf32>
    %271 = arith.subf %268, %270 : vector<8x128xf32>
    %c0_171 = arith.constant 0 : index
    %c0_172 = arith.constant 0 : index
    %272 = vector.load %arg16[%c0_171, %c0_172] : memref<8x128xf32, #tpu.memory_space<vmem>>, vector<8x128xf32>
    tpu.vector_store %arg16[%c0_171, %c0_172], %271 {strides = array<i32>} : memref<8x128xf32, #tpu.memory_space<vmem>>, vector<8x128xf32>,
    %cst_173 = arith.constant 5.000000e-01 : f32
    %273 = vector.broadcast %cst_173 : f32 to vector<8x128xf32>
    %274 = arith.cmpf ogt, %271, %273 : vector<8x128xf32>
    %275 = arith.extui %274 : vector<8x128xi1> to vector<8x128xi32>
    %276 = arith.sitofp %275 : vector<8x128xi32> to vector<8x128xf32>
    %277 = arith.truncf %276 : vector<8x128xf32> to vector<8x128xbf16>
    %c0_174 = arith.constant 0 : index
    %c0_175 = arith.constant 0 : index
    %278 = vector.load %arg5[%c0_174, %c0_175] : memref<128x128xbf16, #tpu.memory_space<vmem>>, vector<128x128xbf16>
    %cst_176 = arith.constant dense<0.000000e+00> : vector<8x128xf32>
    %279 = tpu.matmul %277, %278, %cst_176 {dimension_numbers = #tpu.dot_dimension_numbers<[1], [0], [0], [1], [0, 0, 1, 1], [], []>} : vector<8x128xbf16>, vector<128x128xbf16>, vector<8x128xf32> -> vector<8x128xf32>
    %c0_177 = arith.constant 0 : index
    %c0_178 = arith.constant 0 : index
    %280 = vector.load %arg6[%c0_177, %c0_178] : memref<1x128xf32, #tpu.memory_space<vmem>>, vector<1x128xf32>
    %281 = vector.broadcast %280 : vector<1x128xf32> to vector<8x128xf32>
    %282 = arith.addf %279, %281 : vector<8x128xf32>
    %c0_179 = arith.constant 0 : index
    %c0_180 = arith.constant 0 : index
    %283 = vector.load %arg17[%c0_179, %c0_180] : memref<8x128xf32, #tpu.memory_space<vmem>>, vector<8x128xf32>
    %cst_181 = arith.constant 5.000000e-01 : f32
    %284 = vector.broadcast %cst_181 : f32 to vector<8x128xf32>
    %285 = arith.cmpf ogt, %283, %284 : vector<8x128xf32>
    %286 = arith.extui %285 : vector<8x128xi1> to vector<8x128xi32>
    %287 = arith.sitofp %286 : vector<8x128xi32> to vector<8x128xf32>
    %cst_182 = arith.constant 8.000000e-01 : f32
    %288 = vector.broadcast %cst_182 : f32 to vector<8x128xf32>
    %289 = arith.mulf %288, %283 : vector<8x128xf32>
    %290 = arith.addf %289, %282 : vector<8x128xf32>
    %cst_183 = arith.constant 5.000000e-01 : f32
    %291 = vector.broadcast %cst_183 : f32 to vector<8x128xf32>
    %292 = arith.mulf %287, %291 : vector<8x128xf32>
    %293 = arith.subf %290, %292 : vector<8x128xf32>
    %c0_184 = arith.constant 0 : index
    %c0_185 = arith.constant 0 : index
    %294 = vector.load %arg17[%c0_184, %c0_185] : memref<8x128xf32, #tpu.memory_space<vmem>>, vector<8x128xf32>
    tpu.vector_store %arg17[%c0_184, %c0_185], %293 {strides = array<i32>} : memref<8x128xf32, #tpu.memory_space<vmem>>, vector<8x128xf32>,
    %cst_186 = arith.constant 5.000000e-01 : f32
    %295 = vector.broadcast %cst_186 : f32 to vector<8x128xf32>
    %296 = arith.cmpf ogt, %293, %295 : vector<8x128xf32>
    %297 = arith.extui %296 : vector<8x128xi1> to vector<8x128xi32>
    %298 = arith.sitofp %297 : vector<8x128xi32> to vector<8x128xf32>
    %299 = arith.truncf %298 : vector<8x128xf32> to vector<8x128xbf16>
    %c0_187 = arith.constant 0 : index
    %c0_188 = arith.constant 0 : index
    %300 = vector.load %arg7[%c0_187, %c0_188] : memref<128x128xbf16, #tpu.memory_space<vmem>>, vector<128x128xbf16>
    %cst_189 = arith.constant dense<0.000000e+00> : vector<8x128xf32>
    %301 = tpu.matmul %299, %300, %cst_189 {dimension_numbers = #tpu.dot_dimension_numbers<[1], [0], [0], [1], [0, 0, 1, 1], [], []>} : vector<8x128xbf16>, vector<128x128xbf16>, vector<8x128xf32> -> vector<8x128xf32>
    %c0_190 = arith.constant 0 : index
    %c0_191 = arith.constant 0 : index
    %302 = vector.load %arg8[%c0_190, %c0_191] : memref<1x128xf32, #tpu.memory_space<vmem>>, vector<1x128xf32>
    %303 = vector.broadcast %302 : vector<1x128xf32> to vector<8x128xf32>
    %304 = arith.addf %301, %303 : vector<8x128xf32>
    %c0_192 = arith.constant 0 : index
    %c0_193 = arith.constant 0 : index
    %305 = vector.load %arg18[%c0_192, %c0_193] : memref<8x128xf32, #tpu.memory_space<vmem>>, vector<8x128xf32>
    %cst_194 = arith.constant 5.000000e-01 : f32
    %306 = vector.broadcast %cst_194 : f32 to vector<8x128xf32>
    %307 = arith.cmpf ogt, %305, %306 : vector<8x128xf32>
    %308 = arith.extui %307 : vector<8x128xi1> to vector<8x128xi32>
    %309 = arith.sitofp %308 : vector<8x128xi32> to vector<8x128xf32>
    %cst_195 = arith.constant 8.000000e-01 : f32
    %310 = vector.broadcast %cst_195 : f32 to vector<8x128xf32>
    %311 = arith.mulf %310, %305 : vector<8x128xf32>
    %312 = arith.addf %311, %304 : vector<8x128xf32>
    %cst_196 = arith.constant 5.000000e-01 : f32
    %313 = vector.broadcast %cst_196 : f32 to vector<8x128xf32>
    %314 = arith.mulf %309, %313 : vector<8x128xf32>
    %315 = arith.subf %312, %314 : vector<8x128xf32>
    %c0_197 = arith.constant 0 : index
    %c0_198 = arith.constant 0 : index
    %316 = vector.load %arg18[%c0_197, %c0_198] : memref<8x128xf32, #tpu.memory_space<vmem>>, vector<8x128xf32>
    tpu.vector_store %arg18[%c0_197, %c0_198], %315 {strides = array<i32>} : memref<8x128xf32, #tpu.memory_space<vmem>>, vector<8x128xf32>,
    %cst_199 = arith.constant 5.000000e-01 : f32
    %317 = vector.broadcast %cst_199 : f32 to vector<8x128xf32>
    %318 = arith.cmpf ogt, %315, %317 : vector<8x128xf32>
    %319 = arith.extui %318 : vector<8x128xi1> to vector<8x128xi32>
    %320 = arith.sitofp %319 : vector<8x128xi32> to vector<8x128xf32>
    %321 = arith.truncf %320 : vector<8x128xf32> to vector<8x128xbf16>
    %c0_200 = arith.constant 0 : index
    %c0_201 = arith.constant 0 : index
    %322 = vector.load %arg9[%c0_200, %c0_201] : memref<128x128xbf16, #tpu.memory_space<vmem>>, vector<128x128xbf16>
    %cst_202 = arith.constant dense<0.000000e+00> : vector<8x128xf32>
    %323 = tpu.matmul %321, %322, %cst_202 {dimension_numbers = #tpu.dot_dimension_numbers<[1], [0], [0], [1], [0, 0, 1, 1], [], []>} : vector<8x128xbf16>, vector<128x128xbf16>, vector<8x128xf32> -> vector<8x128xf32>
    %c0_203 = arith.constant 0 : index
    %c0_204 = arith.constant 0 : index
    %324 = vector.load %arg10[%c0_203, %c0_204] : memref<1x128xf32, #tpu.memory_space<vmem>>, vector<1x128xf32>
    %325 = vector.broadcast %324 : vector<1x128xf32> to vector<8x128xf32>
    %326 = arith.addf %323, %325 : vector<8x128xf32>
    %c0_205 = arith.constant 0 : index
    %c0_206 = arith.constant 0 : index
    %327 = vector.load %arg19[%c0_205, %c0_206] : memref<8x128xf32, #tpu.memory_space<vmem>>, vector<8x128xf32>
    %cst_207 = arith.constant 5.000000e-01 : f32
    %328 = vector.broadcast %cst_207 : f32 to vector<8x128xf32>
    %329 = arith.cmpf ogt, %327, %328 : vector<8x128xf32>
    %330 = arith.extui %329 : vector<8x128xi1> to vector<8x128xi32>
    %331 = arith.sitofp %330 : vector<8x128xi32> to vector<8x128xf32>
    %cst_208 = arith.constant 8.000000e-01 : f32
    %332 = vector.broadcast %cst_208 : f32 to vector<8x128xf32>
    %333 = arith.mulf %332, %327 : vector<8x128xf32>
    %334 = arith.addf %333, %326 : vector<8x128xf32>
    %cst_209 = arith.constant 5.000000e-01 : f32
    %335 = vector.broadcast %cst_209 : f32 to vector<8x128xf32>
    %336 = arith.mulf %331, %335 : vector<8x128xf32>
    %337 = arith.subf %334, %336 : vector<8x128xf32>
    %c0_210 = arith.constant 0 : index
    %c0_211 = arith.constant 0 : index
    %338 = vector.load %arg19[%c0_210, %c0_211] : memref<8x128xf32, #tpu.memory_space<vmem>>, vector<8x128xf32>
    tpu.vector_store %arg19[%c0_210, %c0_211], %337 {strides = array<i32>} : memref<8x128xf32, #tpu.memory_space<vmem>>, vector<8x128xf32>,
    %cst_212 = arith.constant 5.000000e-01 : f32
    %339 = vector.broadcast %cst_212 : f32 to vector<8x128xf32>
    %340 = arith.cmpf ogt, %337, %339 : vector<8x128xf32>
    %341 = arith.extui %340 : vector<8x128xi1> to vector<8x128xi32>
    %342 = arith.sitofp %341 : vector<8x128xi32> to vector<8x128xf32>
    %343 = arith.truncf %342 : vector<8x128xf32> to vector<8x128xbf16>
    %c0_213 = arith.constant 0 : index
    %c0_214 = arith.constant 0 : index
    %344 = vector.load %arg11[%c0_213, %c0_214] : memref<128x128xbf16, #tpu.memory_space<vmem>>, vector<128x128xbf16>
    %cst_215 = arith.constant dense<0.000000e+00> : vector<8x128xf32>
    %345 = tpu.matmul %343, %344, %cst_215 {dimension_numbers = #tpu.dot_dimension_numbers<[1], [0], [0], [1], [0, 0, 1, 1], [], []>} : vector<8x128xbf16>, vector<128x128xbf16>, vector<8x128xf32> -> vector<8x128xf32>
    %c0_216 = arith.constant 0 : index
    %c0_217 = arith.constant 0 : index
    %346 = vector.load %arg12[%c0_216, %c0_217] : memref<1x128xf32, #tpu.memory_space<vmem>>, vector<1x128xf32>
    %347 = vector.broadcast %346 : vector<1x128xf32> to vector<8x128xf32>
    %348 = arith.addf %345, %347 : vector<8x128xf32>
    %c0_218 = arith.constant 0 : index
    %c0_219 = arith.constant 0 : index
    %349 = vector.load %arg20[%c0_218, %c0_219] : memref<8x128xf32, #tpu.memory_space<vmem>>, vector<8x128xf32>
    %cst_220 = arith.constant 5.000000e-01 : f32
    %350 = vector.broadcast %cst_220 : f32 to vector<8x128xf32>
    %351 = arith.cmpf ogt, %349, %350 : vector<8x128xf32>
    %352 = arith.extui %351 : vector<8x128xi1> to vector<8x128xi32>
    %353 = arith.sitofp %352 : vector<8x128xi32> to vector<8x128xf32>
    %cst_221 = arith.constant 8.000000e-01 : f32
    %354 = vector.broadcast %cst_221 : f32 to vector<8x128xf32>
    %355 = arith.mulf %354, %349 : vector<8x128xf32>
    %356 = arith.addf %355, %348 : vector<8x128xf32>
    %cst_222 = arith.constant 5.000000e-01 : f32
    %357 = vector.broadcast %cst_222 : f32 to vector<8x128xf32>
    %358 = arith.mulf %353, %357 : vector<8x128xf32>
    %359 = arith.subf %356, %358 : vector<8x128xf32>
    %c0_223 = arith.constant 0 : index
    %c0_224 = arith.constant 0 : index
    %360 = vector.load %arg20[%c0_223, %c0_224] : memref<8x128xf32, #tpu.memory_space<vmem>>, vector<8x128xf32>
    tpu.vector_store %arg20[%c0_223, %c0_224], %359 {strides = array<i32>} : memref<8x128xf32, #tpu.memory_space<vmem>>, vector<8x128xf32>,
    %cst_225 = arith.constant 5.000000e-01 : f32
    %361 = vector.broadcast %cst_225 : f32 to vector<8x128xf32>
    %362 = arith.cmpf ogt, %359, %361 : vector<8x128xf32>
    %363 = arith.extui %362 : vector<8x128xi1> to vector<8x128xi32>
    %364 = arith.sitofp %363 : vector<8x128xi32> to vector<8x128xf32>
    %c0_226 = arith.constant 0 : index
    %c0_227 = arith.constant 0 : index
    %365 = vector.load %arg21[%c0_226, %c0_227] : memref<8x128xf32, #tpu.memory_space<vmem>>, vector<8x128xf32>
    %366 = arith.addf %365, %364 : vector<8x128xf32>
    %c0_228 = arith.constant 0 : index
    %c0_229 = arith.constant 0 : index
    %367 = vector.load %arg21[%c0_228, %c0_229] : memref<8x128xf32, #tpu.memory_space<vmem>>, vector<8x128xf32>
    tpu.vector_store %arg21[%c0_228, %c0_229], %366 {strides = array<i32>} : memref<8x128xf32, #tpu.memory_space<vmem>>, vector<8x128xf32>,
    %368 = vector.broadcast %8 : vector<8x1xf32> to vector<8x128xf32>
    %369 = arith.mulf %364, %368 : vector<8x128xf32>
    %cst_230 = arith.constant dense<0.000000e+00> : vector<128xf32>
    %370 = vector.multi_reduction <add>, %369, %cst_230 [0] : vector<8x128xf32> to vector<128xf32>
    %371 = vector.shape_cast %370 : vector<128xf32> to vector<1x128xf32>
    %cst_231 = arith.constant dense<0.000000e+00> : vector<1xf32>
    %372 = vector.multi_reduction <add>, %371, %cst_231 [1] : vector<1x128xf32> to vector<1xf32>
    %373 = vector.shape_cast %372 : vector<1xf32> to vector<1x1xf32>
    %cst_232 = arith.constant 0.0454545468 : f32
    %374 = vector.broadcast %cst_232 : f32 to vector<1x1xf32>
    %375 = arith.mulf %373, %374 : vector<1x1xf32>
    %c0_233 = arith.constant 0 : index
    %c0_234 = arith.constant 0 : index
    %376 = vector.load %arg15[%c0_233, %c0_234] : memref<8x128xf32, #tpu.memory_space<vmem>>, vector<8x128xf32>
    %c0_235 = arith.constant 0 : index
    %c0_236 = arith.constant 0 : index
    %377 = vector.load %arg16[%c0_235, %c0_236] : memref<8x128xf32, #tpu.memory_space<vmem>>, vector<8x128xf32>
    %cst_237 = arith.constant 5.000000e-01 : f32
    %378 = vector.broadcast %cst_237 : f32 to vector<8x128xf32>
    %379 = arith.cmpf ogt, %377, %378 : vector<8x128xf32>
    %380 = arith.extui %379 : vector<8x128xi1> to vector<8x128xi32>
    %381 = arith.sitofp %380 : vector<8x128xi32> to vector<8x128xf32>
    %cst_238 = arith.constant 8.000000e-01 : f32
    %382 = vector.broadcast %cst_238 : f32 to vector<8x128xf32>
    %383 = arith.mulf %382, %377 : vector<8x128xf32>
    %384 = arith.addf %383, %376 : vector<8x128xf32>
    %cst_239 = arith.constant 5.000000e-01 : f32
    %385 = vector.broadcast %cst_239 : f32 to vector<8x128xf32>
    %386 = arith.mulf %381, %385 : vector<8x128xf32>
    %387 = arith.subf %384, %386 : vector<8x128xf32>
    %c0_240 = arith.constant 0 : index
    %c0_241 = arith.constant 0 : index
    %388 = vector.load %arg16[%c0_240, %c0_241] : memref<8x128xf32, #tpu.memory_space<vmem>>, vector<8x128xf32>
    tpu.vector_store %arg16[%c0_240, %c0_241], %387 {strides = array<i32>} : memref<8x128xf32, #tpu.memory_space<vmem>>, vector<8x128xf32>,
    %cst_242 = arith.constant 5.000000e-01 : f32
    %389 = vector.broadcast %cst_242 : f32 to vector<8x128xf32>
    %390 = arith.cmpf ogt, %387, %389 : vector<8x128xf32>
    %391 = arith.extui %390 : vector<8x128xi1> to vector<8x128xi32>
    %392 = arith.sitofp %391 : vector<8x128xi32> to vector<8x128xf32>
    %393 = arith.truncf %392 : vector<8x128xf32> to vector<8x128xbf16>
    %c0_243 = arith.constant 0 : index
    %c0_244 = arith.constant 0 : index
    %394 = vector.load %arg5[%c0_243, %c0_244] : memref<128x128xbf16, #tpu.memory_space<vmem>>, vector<128x128xbf16>
    %cst_245 = arith.constant dense<0.000000e+00> : vector<8x128xf32>
    %395 = tpu.matmul %393, %394, %cst_245 {dimension_numbers = #tpu.dot_dimension_numbers<[1], [0], [0], [1], [0, 0, 1, 1], [], []>} : vector<8x128xbf16>, vector<128x128xbf16>, vector<8x128xf32> -> vector<8x128xf32>
    %c0_246 = arith.constant 0 : index
    %c0_247 = arith.constant 0 : index
    %396 = vector.load %arg6[%c0_246, %c0_247] : memref<1x128xf32, #tpu.memory_space<vmem>>, vector<1x128xf32>
    %397 = vector.broadcast %396 : vector<1x128xf32> to vector<8x128xf32>
    %398 = arith.addf %395, %397 : vector<8x128xf32>
    %c0_248 = arith.constant 0 : index
    %c0_249 = arith.constant 0 : index
    %399 = vector.load %arg17[%c0_248, %c0_249] : memref<8x128xf32, #tpu.memory_space<vmem>>, vector<8x128xf32>
    %cst_250 = arith.constant 5.000000e-01 : f32
    %400 = vector.broadcast %cst_250 : f32 to vector<8x128xf32>
    %401 = arith.cmpf ogt, %399, %400 : vector<8x128xf32>
    %402 = arith.extui %401 : vector<8x128xi1> to vector<8x128xi32>
    %403 = arith.sitofp %402 : vector<8x128xi32> to vector<8x128xf32>
    %cst_251 = arith.constant 8.000000e-01 : f32
    %404 = vector.broadcast %cst_251 : f32 to vector<8x128xf32>
    %405 = arith.mulf %404, %399 : vector<8x128xf32>
    %406 = arith.addf %405, %398 : vector<8x128xf32>
    %cst_252 = arith.constant 5.000000e-01 : f32
    %407 = vector.broadcast %cst_252 : f32 to vector<8x128xf32>
    %408 = arith.mulf %403, %407 : vector<8x128xf32>
    %409 = arith.subf %406, %408 : vector<8x128xf32>
    %c0_253 = arith.constant 0 : index
    %c0_254 = arith.constant 0 : index
    %410 = vector.load %arg17[%c0_253, %c0_254] : memref<8x128xf32, #tpu.memory_space<vmem>>, vector<8x128xf32>
    tpu.vector_store %arg17[%c0_253, %c0_254], %409 {strides = array<i32>} : memref<8x128xf32, #tpu.memory_space<vmem>>, vector<8x128xf32>,
    %cst_255 = arith.constant 5.000000e-01 : f32
    %411 = vector.broadcast %cst_255 : f32 to vector<8x128xf32>
    %412 = arith.cmpf ogt, %409, %411 : vector<8x128xf32>
    %413 = arith.extui %412 : vector<8x128xi1> to vector<8x128xi32>
    %414 = arith.sitofp %413 : vector<8x128xi32> to vector<8x128xf32>
    %415 = arith.truncf %414 : vector<8x128xf32> to vector<8x128xbf16>
    %c0_256 = arith.constant 0 : index
    %c0_257 = arith.constant 0 : index
    %416 = vector.load %arg7[%c0_256, %c0_257] : memref<128x128xbf16, #tpu.memory_space<vmem>>, vector<128x128xbf16>
    %cst_258 = arith.constant dense<0.000000e+00> : vector<8x128xf32>
    %417 = tpu.matmul %415, %416, %cst_258 {dimension_numbers = #tpu.dot_dimension_numbers<[1], [0], [0], [1], [0, 0, 1, 1], [], []>} : vector<8x128xbf16>, vector<128x128xbf16>, vector<8x128xf32> -> vector<8x128xf32>
    %c0_259 = arith.constant 0 : index
    %c0_260 = arith.constant 0 : index
    %418 = vector.load %arg8[%c0_259, %c0_260] : memref<1x128xf32, #tpu.memory_space<vmem>>, vector<1x128xf32>
    %419 = vector.broadcast %418 : vector<1x128xf32> to vector<8x128xf32>
    %420 = arith.addf %417, %419 : vector<8x128xf32>
    %c0_261 = arith.constant 0 : index
    %c0_262 = arith.constant 0 : index
    %421 = vector.load %arg18[%c0_261, %c0_262] : memref<8x128xf32, #tpu.memory_space<vmem>>, vector<8x128xf32>
    %cst_263 = arith.constant 5.000000e-01 : f32
    %422 = vector.broadcast %cst_263 : f32 to vector<8x128xf32>
    %423 = arith.cmpf ogt, %421, %422 : vector<8x128xf32>
    %424 = arith.extui %423 : vector<8x128xi1> to vector<8x128xi32>
    %425 = arith.sitofp %424 : vector<8x128xi32> to vector<8x128xf32>
    %cst_264 = arith.constant 8.000000e-01 : f32
    %426 = vector.broadcast %cst_264 : f32 to vector<8x128xf32>
    %427 = arith.mulf %426, %421 : vector<8x128xf32>
    %428 = arith.addf %427, %420 : vector<8x128xf32>
    %cst_265 = arith.constant 5.000000e-01 : f32
    %429 = vector.broadcast %cst_265 : f32 to vector<8x128xf32>
    %430 = arith.mulf %425, %429 : vector<8x128xf32>
    %431 = arith.subf %428, %430 : vector<8x128xf32>
    %c0_266 = arith.constant 0 : index
    %c0_267 = arith.constant 0 : index
    %432 = vector.load %arg18[%c0_266, %c0_267] : memref<8x128xf32, #tpu.memory_space<vmem>>, vector<8x128xf32>
    tpu.vector_store %arg18[%c0_266, %c0_267], %431 {strides = array<i32>} : memref<8x128xf32, #tpu.memory_space<vmem>>, vector<8x128xf32>,
    %cst_268 = arith.constant 5.000000e-01 : f32
    %433 = vector.broadcast %cst_268 : f32 to vector<8x128xf32>
    %434 = arith.cmpf ogt, %431, %433 : vector<8x128xf32>
    %435 = arith.extui %434 : vector<8x128xi1> to vector<8x128xi32>
    %436 = arith.sitofp %435 : vector<8x128xi32> to vector<8x128xf32>
    %437 = arith.truncf %436 : vector<8x128xf32> to vector<8x128xbf16>
    %c0_269 = arith.constant 0 : index
    %c0_270 = arith.constant 0 : index
    %438 = vector.load %arg9[%c0_269, %c0_270] : memref<128x128xbf16, #tpu.memory_space<vmem>>, vector<128x128xbf16>
    %cst_271 = arith.constant dense<0.000000e+00> : vector<8x128xf32>
    %439 = tpu.matmul %437, %438, %cst_271 {dimension_numbers = #tpu.dot_dimension_numbers<[1], [0], [0], [1], [0, 0, 1, 1], [], []>} : vector<8x128xbf16>, vector<128x128xbf16>, vector<8x128xf32> -> vector<8x128xf32>
    %c0_272 = arith.constant 0 : index
    %c0_273 = arith.constant 0 : index
    %440 = vector.load %arg10[%c0_272, %c0_273] : memref<1x128xf32, #tpu.memory_space<vmem>>, vector<1x128xf32>
    %441 = vector.broadcast %440 : vector<1x128xf32> to vector<8x128xf32>
    %442 = arith.addf %439, %441 : vector<8x128xf32>
    %c0_274 = arith.constant 0 : index
    %c0_275 = arith.constant 0 : index
    %443 = vector.load %arg19[%c0_274, %c0_275] : memref<8x128xf32, #tpu.memory_space<vmem>>, vector<8x128xf32>
    %cst_276 = arith.constant 5.000000e-01 : f32
    %444 = vector.broadcast %cst_276 : f32 to vector<8x128xf32>
    %445 = arith.cmpf ogt, %443, %444 : vector<8x128xf32>
    %446 = arith.extui %445 : vector<8x128xi1> to vector<8x128xi32>
    %447 = arith.sitofp %446 : vector<8x128xi32> to vector<8x128xf32>
    %cst_277 = arith.constant 8.000000e-01 : f32
    %448 = vector.broadcast %cst_277 : f32 to vector<8x128xf32>
    %449 = arith.mulf %448, %443 : vector<8x128xf32>
    %450 = arith.addf %449, %442 : vector<8x128xf32>
    %cst_278 = arith.constant 5.000000e-01 : f32
    %451 = vector.broadcast %cst_278 : f32 to vector<8x128xf32>
    %452 = arith.mulf %447, %451 : vector<8x128xf32>
    %453 = arith.subf %450, %452 : vector<8x128xf32>
    %c0_279 = arith.constant 0 : index
    %c0_280 = arith.constant 0 : index
    %454 = vector.load %arg19[%c0_279, %c0_280] : memref<8x128xf32, #tpu.memory_space<vmem>>, vector<8x128xf32>
    tpu.vector_store %arg19[%c0_279, %c0_280], %453 {strides = array<i32>} : memref<8x128xf32, #tpu.memory_space<vmem>>, vector<8x128xf32>,
    %cst_281 = arith.constant 5.000000e-01 : f32
    %455 = vector.broadcast %cst_281 : f32 to vector<8x128xf32>
    %456 = arith.cmpf ogt, %453, %455 : vector<8x128xf32>
    %457 = arith.extui %456 : vector<8x128xi1> to vector<8x128xi32>
    %458 = arith.sitofp %457 : vector<8x128xi32> to vector<8x128xf32>
    %459 = arith.truncf %458 : vector<8x128xf32> to vector<8x128xbf16>
    %c0_282 = arith.constant 0 : index
    %c0_283 = arith.constant 0 : index
    %460 = vector.load %arg11[%c0_282, %c0_283] : memref<128x128xbf16, #tpu.memory_space<vmem>>, vector<128x128xbf16>
    %cst_284 = arith.constant dense<0.000000e+00> : vector<8x128xf32>
    %461 = tpu.matmul %459, %460, %cst_284 {dimension_numbers = #tpu.dot_dimension_numbers<[1], [0], [0], [1], [0, 0, 1, 1], [], []>} : vector<8x128xbf16>, vector<128x128xbf16>, vector<8x128xf32> -> vector<8x128xf32>
    %c0_285 = arith.constant 0 : index
    %c0_286 = arith.constant 0 : index
    %462 = vector.load %arg12[%c0_285, %c0_286] : memref<1x128xf32, #tpu.memory_space<vmem>>, vector<1x128xf32>
    %463 = vector.broadcast %462 : vector<1x128xf32> to vector<8x128xf32>
    %464 = arith.addf %461, %463 : vector<8x128xf32>
    %c0_287 = arith.constant 0 : index
    %c0_288 = arith.constant 0 : index
    %465 = vector.load %arg20[%c0_287, %c0_288] : memref<8x128xf32, #tpu.memory_space<vmem>>, vector<8x128xf32>
    %cst_289 = arith.constant 5.000000e-01 : f32
    %466 = vector.broadcast %cst_289 : f32 to vector<8x128xf32>
    %467 = arith.cmpf ogt, %465, %466 : vector<8x128xf32>
    %468 = arith.extui %467 : vector<8x128xi1> to vector<8x128xi32>
    %469 = arith.sitofp %468 : vector<8x128xi32> to vector<8x128xf32>
    %cst_290 = arith.constant 8.000000e-01 : f32
    %470 = vector.broadcast %cst_290 : f32 to vector<8x128xf32>
    %471 = arith.mulf %470, %465 : vector<8x128xf32>
    %472 = arith.addf %471, %464 : vector<8x128xf32>
    %cst_291 = arith.constant 5.000000e-01 : f32
    %473 = vector.broadcast %cst_291 : f32 to vector<8x128xf32>
    %474 = arith.mulf %469, %473 : vector<8x128xf32>
    %475 = arith.subf %472, %474 : vector<8x128xf32>
    %c0_292 = arith.constant 0 : index
    %c0_293 = arith.constant 0 : index
    %476 = vector.load %arg20[%c0_292, %c0_293] : memref<8x128xf32, #tpu.memory_space<vmem>>, vector<8x128xf32>
    tpu.vector_store %arg20[%c0_292, %c0_293], %475 {strides = array<i32>} : memref<8x128xf32, #tpu.memory_space<vmem>>, vector<8x128xf32>,
    %cst_294 = arith.constant 5.000000e-01 : f32
    %477 = vector.broadcast %cst_294 : f32 to vector<8x128xf32>
    %478 = arith.cmpf ogt, %475, %477 : vector<8x128xf32>
    %479 = arith.extui %478 : vector<8x128xi1> to vector<8x128xi32>
    %480 = arith.sitofp %479 : vector<8x128xi32> to vector<8x128xf32>
    %c0_295 = arith.constant 0 : index
    %c0_296 = arith.constant 0 : index
    %481 = vector.load %arg21[%c0_295, %c0_296] : memref<8x128xf32, #tpu.memory_space<vmem>>, vector<8x128xf32>
    %482 = arith.addf %481, %480 : vector<8x128xf32>
    %c0_297 = arith.constant 0 : index
    %c0_298 = arith.constant 0 : index
    %483 = vector.load %arg21[%c0_297, %c0_298] : memref<8x128xf32, #tpu.memory_space<vmem>>, vector<8x128xf32>
    tpu.vector_store %arg21[%c0_297, %c0_298], %482 {strides = array<i32>} : memref<8x128xf32, #tpu.memory_space<vmem>>, vector<8x128xf32>,
    %484 = vector.broadcast %8 : vector<8x1xf32> to vector<8x128xf32>
    %485 = arith.mulf %480, %484 : vector<8x128xf32>
    %cst_299 = arith.constant dense<0.000000e+00> : vector<128xf32>
    %486 = vector.multi_reduction <add>, %485, %cst_299 [0] : vector<8x128xf32> to vector<128xf32>
    %487 = vector.shape_cast %486 : vector<128xf32> to vector<1x128xf32>
    %cst_300 = arith.constant dense<0.000000e+00> : vector<1xf32>
    %488 = vector.multi_reduction <add>, %487, %cst_300 [1] : vector<1x128xf32> to vector<1xf32>
    %489 = vector.shape_cast %488 : vector<1xf32> to vector<1x1xf32>
    %cst_301 = arith.constant 0.0454545468 : f32
    %490 = vector.broadcast %cst_301 : f32 to vector<1x1xf32>
    %491 = arith.mulf %489, %490 : vector<1x1xf32>
    %c0_302 = arith.constant 0 : index
    %c0_303 = arith.constant 0 : index
    %492 = vector.load %arg15[%c0_302, %c0_303] : memref<8x128xf32, #tpu.memory_space<vmem>>, vector<8x128xf32>
    %c0_304 = arith.constant 0 : index
    %c0_305 = arith.constant 0 : index
    %493 = vector.load %arg16[%c0_304, %c0_305] : memref<8x128xf32, #tpu.memory_space<vmem>>, vector<8x128xf32>
    %cst_306 = arith.constant 5.000000e-01 : f32
    %494 = vector.broadcast %cst_306 : f32 to vector<8x128xf32>
    %495 = arith.cmpf ogt, %493, %494 : vector<8x128xf32>
    %496 = arith.extui %495 : vector<8x128xi1> to vector<8x128xi32>
    %497 = arith.sitofp %496 : vector<8x128xi32> to vector<8x128xf32>
    %cst_307 = arith.constant 8.000000e-01 : f32
    %498 = vector.broadcast %cst_307 : f32 to vector<8x128xf32>
    %499 = arith.mulf %498, %493 : vector<8x128xf32>
    %500 = arith.addf %499, %492 : vector<8x128xf32>
    %cst_308 = arith.constant 5.000000e-01 : f32
    %501 = vector.broadcast %cst_308 : f32 to vector<8x128xf32>
    %502 = arith.mulf %497, %501 : vector<8x128xf32>
    %503 = arith.subf %500, %502 : vector<8x128xf32>
    %c0_309 = arith.constant 0 : index
    %c0_310 = arith.constant 0 : index
    %504 = vector.load %arg16[%c0_309, %c0_310] : memref<8x128xf32, #tpu.memory_space<vmem>>, vector<8x128xf32>
    tpu.vector_store %arg16[%c0_309, %c0_310], %503 {strides = array<i32>} : memref<8x128xf32, #tpu.memory_space<vmem>>, vector<8x128xf32>,
    %cst_311 = arith.constant 5.000000e-01 : f32
    %505 = vector.broadcast %cst_311 : f32 to vector<8x128xf32>
    %506 = arith.cmpf ogt, %503, %505 : vector<8x128xf32>
    %507 = arith.extui %506 : vector<8x128xi1> to vector<8x128xi32>
    %508 = arith.sitofp %507 : vector<8x128xi32> to vector<8x128xf32>
    %509 = arith.truncf %508 : vector<8x128xf32> to vector<8x128xbf16>
    %c0_312 = arith.constant 0 : index
    %c0_313 = arith.constant 0 : index
    %510 = vector.load %arg5[%c0_312, %c0_313] : memref<128x128xbf16, #tpu.memory_space<vmem>>, vector<128x128xbf16>
    %cst_314 = arith.constant dense<0.000000e+00> : vector<8x128xf32>
    %511 = tpu.matmul %509, %510, %cst_314 {dimension_numbers = #tpu.dot_dimension_numbers<[1], [0], [0], [1], [0, 0, 1, 1], [], []>} : vector<8x128xbf16>, vector<128x128xbf16>, vector<8x128xf32> -> vector<8x128xf32>
    %c0_315 = arith.constant 0 : index
    %c0_316 = arith.constant 0 : index
    %512 = vector.load %arg6[%c0_315, %c0_316] : memref<1x128xf32, #tpu.memory_space<vmem>>, vector<1x128xf32>
    %513 = vector.broadcast %512 : vector<1x128xf32> to vector<8x128xf32>
    %514 = arith.addf %511, %513 : vector<8x128xf32>
    %c0_317 = arith.constant 0 : index
    %c0_318 = arith.constant 0 : index
    %515 = vector.load %arg17[%c0_317, %c0_318] : memref<8x128xf32, #tpu.memory_space<vmem>>, vector<8x128xf32>
    %cst_319 = arith.constant 5.000000e-01 : f32
    %516 = vector.broadcast %cst_319 : f32 to vector<8x128xf32>
    %517 = arith.cmpf ogt, %515, %516 : vector<8x128xf32>
    %518 = arith.extui %517 : vector<8x128xi1> to vector<8x128xi32>
    %519 = arith.sitofp %518 : vector<8x128xi32> to vector<8x128xf32>
    %cst_320 = arith.constant 8.000000e-01 : f32
    %520 = vector.broadcast %cst_320 : f32 to vector<8x128xf32>
    %521 = arith.mulf %520, %515 : vector<8x128xf32>
    %522 = arith.addf %521, %514 : vector<8x128xf32>
    %cst_321 = arith.constant 5.000000e-01 : f32
    %523 = vector.broadcast %cst_321 : f32 to vector<8x128xf32>
    %524 = arith.mulf %519, %523 : vector<8x128xf32>
    %525 = arith.subf %522, %524 : vector<8x128xf32>
    %c0_322 = arith.constant 0 : index
    %c0_323 = arith.constant 0 : index
    %526 = vector.load %arg17[%c0_322, %c0_323] : memref<8x128xf32, #tpu.memory_space<vmem>>, vector<8x128xf32>
    tpu.vector_store %arg17[%c0_322, %c0_323], %525 {strides = array<i32>} : memref<8x128xf32, #tpu.memory_space<vmem>>, vector<8x128xf32>,
    %cst_324 = arith.constant 5.000000e-01 : f32
    %527 = vector.broadcast %cst_324 : f32 to vector<8x128xf32>
    %528 = arith.cmpf ogt, %525, %527 : vector<8x128xf32>
    %529 = arith.extui %528 : vector<8x128xi1> to vector<8x128xi32>
    %530 = arith.sitofp %529 : vector<8x128xi32> to vector<8x128xf32>
    %531 = arith.truncf %530 : vector<8x128xf32> to vector<8x128xbf16>
    %c0_325 = arith.constant 0 : index
    %c0_326 = arith.constant 0 : index
    %532 = vector.load %arg7[%c0_325, %c0_326] : memref<128x128xbf16, #tpu.memory_space<vmem>>, vector<128x128xbf16>
    %cst_327 = arith.constant dense<0.000000e+00> : vector<8x128xf32>
    %533 = tpu.matmul %531, %532, %cst_327 {dimension_numbers = #tpu.dot_dimension_numbers<[1], [0], [0], [1], [0, 0, 1, 1], [], []>} : vector<8x128xbf16>, vector<128x128xbf16>, vector<8x128xf32> -> vector<8x128xf32>
    %c0_328 = arith.constant 0 : index
    %c0_329 = arith.constant 0 : index
    %534 = vector.load %arg8[%c0_328, %c0_329] : memref<1x128xf32, #tpu.memory_space<vmem>>, vector<1x128xf32>
    %535 = vector.broadcast %534 : vector<1x128xf32> to vector<8x128xf32>
    %536 = arith.addf %533, %535 : vector<8x128xf32>
    %c0_330 = arith.constant 0 : index
    %c0_331 = arith.constant 0 : index
    %537 = vector.load %arg18[%c0_330, %c0_331] : memref<8x128xf32, #tpu.memory_space<vmem>>, vector<8x128xf32>
    %cst_332 = arith.constant 5.000000e-01 : f32
    %538 = vector.broadcast %cst_332 : f32 to vector<8x128xf32>
    %539 = arith.cmpf ogt, %537, %538 : vector<8x128xf32>
    %540 = arith.extui %539 : vector<8x128xi1> to vector<8x128xi32>
    %541 = arith.sitofp %540 : vector<8x128xi32> to vector<8x128xf32>
    %cst_333 = arith.constant 8.000000e-01 : f32
    %542 = vector.broadcast %cst_333 : f32 to vector<8x128xf32>
    %543 = arith.mulf %542, %537 : vector<8x128xf32>
    %544 = arith.addf %543, %536 : vector<8x128xf32>
    %cst_334 = arith.constant 5.000000e-01 : f32
    %545 = vector.broadcast %cst_334 : f32 to vector<8x128xf32>
    %546 = arith.mulf %541, %545 : vector<8x128xf32>
    %547 = arith.subf %544, %546 : vector<8x128xf32>
    %c0_335 = arith.constant 0 : index
    %c0_336 = arith.constant 0 : index
    %548 = vector.load %arg18[%c0_335, %c0_336] : memref<8x128xf32, #tpu.memory_space<vmem>>, vector<8x128xf32>
    tpu.vector_store %arg18[%c0_335, %c0_336], %547 {strides = array<i32>} : memref<8x128xf32, #tpu.memory_space<vmem>>, vector<8x128xf32>,
    %cst_337 = arith.constant 5.000000e-01 : f32
    %549 = vector.broadcast %cst_337 : f32 to vector<8x128xf32>
    %550 = arith.cmpf ogt, %547, %549 : vector<8x128xf32>
    %551 = arith.extui %550 : vector<8x128xi1> to vector<8x128xi32>
    %552 = arith.sitofp %551 : vector<8x128xi32> to vector<8x128xf32>
    %553 = arith.truncf %552 : vector<8x128xf32> to vector<8x128xbf16>
    %c0_338 = arith.constant 0 : index
    %c0_339 = arith.constant 0 : index
    %554 = vector.load %arg9[%c0_338, %c0_339] : memref<128x128xbf16, #tpu.memory_space<vmem>>, vector<128x128xbf16>
    %cst_340 = arith.constant dense<0.000000e+00> : vector<8x128xf32>
    %555 = tpu.matmul %553, %554, %cst_340 {dimension_numbers = #tpu.dot_dimension_numbers<[1], [0], [0], [1], [0, 0, 1, 1], [], []>} : vector<8x128xbf16>, vector<128x128xbf16>, vector<8x128xf32> -> vector<8x128xf32>
    %c0_341 = arith.constant 0 : index
    %c0_342 = arith.constant 0 : index
    %556 = vector.load %arg10[%c0_341, %c0_342] : memref<1x128xf32, #tpu.memory_space<vmem>>, vector<1x128xf32>
    %557 = vector.broadcast %556 : vector<1x128xf32> to vector<8x128xf32>
    %558 = arith.addf %555, %557 : vector<8x128xf32>
    %c0_343 = arith.constant 0 : index
    %c0_344 = arith.constant 0 : index
    %559 = vector.load %arg19[%c0_343, %c0_344] : memref<8x128xf32, #tpu.memory_space<vmem>>, vector<8x128xf32>
    %cst_345 = arith.constant 5.000000e-01 : f32
    %560 = vector.broadcast %cst_345 : f32 to vector<8x128xf32>
    %561 = arith.cmpf ogt, %559, %560 : vector<8x128xf32>
    %562 = arith.extui %561 : vector<8x128xi1> to vector<8x128xi32>
    %563 = arith.sitofp %562 : vector<8x128xi32> to vector<8x128xf32>
    %cst_346 = arith.constant 8.000000e-01 : f32
    %564 = vector.broadcast %cst_346 : f32 to vector<8x128xf32>
    %565 = arith.mulf %564, %559 : vector<8x128xf32>
    %566 = arith.addf %565, %558 : vector<8x128xf32>
    %cst_347 = arith.constant 5.000000e-01 : f32
    %567 = vector.broadcast %cst_347 : f32 to vector<8x128xf32>
    %568 = arith.mulf %563, %567 : vector<8x128xf32>
    %569 = arith.subf %566, %568 : vector<8x128xf32>
    %c0_348 = arith.constant 0 : index
    %c0_349 = arith.constant 0 : index
    %570 = vector.load %arg19[%c0_348, %c0_349] : memref<8x128xf32, #tpu.memory_space<vmem>>, vector<8x128xf32>
    tpu.vector_store %arg19[%c0_348, %c0_349], %569 {strides = array<i32>} : memref<8x128xf32, #tpu.memory_space<vmem>>, vector<8x128xf32>,
    %cst_350 = arith.constant 5.000000e-01 : f32
    %571 = vector.broadcast %cst_350 : f32 to vector<8x128xf32>
    %572 = arith.cmpf ogt, %569, %571 : vector<8x128xf32>
    %573 = arith.extui %572 : vector<8x128xi1> to vector<8x128xi32>
    %574 = arith.sitofp %573 : vector<8x128xi32> to vector<8x128xf32>
    %575 = arith.truncf %574 : vector<8x128xf32> to vector<8x128xbf16>
    %c0_351 = arith.constant 0 : index
    %c0_352 = arith.constant 0 : index
    %576 = vector.load %arg11[%c0_351, %c0_352] : memref<128x128xbf16, #tpu.memory_space<vmem>>, vector<128x128xbf16>
    %cst_353 = arith.constant dense<0.000000e+00> : vector<8x128xf32>
    %577 = tpu.matmul %575, %576, %cst_353 {dimension_numbers = #tpu.dot_dimension_numbers<[1], [0], [0], [1], [0, 0, 1, 1], [], []>} : vector<8x128xbf16>, vector<128x128xbf16>, vector<8x128xf32> -> vector<8x128xf32>
    %c0_354 = arith.constant 0 : index
    %c0_355 = arith.constant 0 : index
    %578 = vector.load %arg12[%c0_354, %c0_355] : memref<1x128xf32, #tpu.memory_space<vmem>>, vector<1x128xf32>
    %579 = vector.broadcast %578 : vector<1x128xf32> to vector<8x128xf32>
    %580 = arith.addf %577, %579 : vector<8x128xf32>
    %c0_356 = arith.constant 0 : index
    %c0_357 = arith.constant 0 : index
    %581 = vector.load %arg20[%c0_356, %c0_357] : memref<8x128xf32, #tpu.memory_space<vmem>>, vector<8x128xf32>
    %cst_358 = arith.constant 5.000000e-01 : f32
    %582 = vector.broadcast %cst_358 : f32 to vector<8x128xf32>
    %583 = arith.cmpf ogt, %581, %582 : vector<8x128xf32>
    %584 = arith.extui %583 : vector<8x128xi1> to vector<8x128xi32>
    %585 = arith.sitofp %584 : vector<8x128xi32> to vector<8x128xf32>
    %cst_359 = arith.constant 8.000000e-01 : f32
    %586 = vector.broadcast %cst_359 : f32 to vector<8x128xf32>
    %587 = arith.mulf %586, %581 : vector<8x128xf32>
    %588 = arith.addf %587, %580 : vector<8x128xf32>
    %cst_360 = arith.constant 5.000000e-01 : f32
    %589 = vector.broadcast %cst_360 : f32 to vector<8x128xf32>
    %590 = arith.mulf %585, %589 : vector<8x128xf32>
    %591 = arith.subf %588, %590 : vector<8x128xf32>
    %c0_361 = arith.constant 0 : index
    %c0_362 = arith.constant 0 : index
    %592 = vector.load %arg20[%c0_361, %c0_362] : memref<8x128xf32, #tpu.memory_space<vmem>>, vector<8x128xf32>
    tpu.vector_store %arg20[%c0_361, %c0_362], %591 {strides = array<i32>} : memref<8x128xf32, #tpu.memory_space<vmem>>, vector<8x128xf32>,
    %cst_363 = arith.constant 5.000000e-01 : f32
    %593 = vector.broadcast %cst_363 : f32 to vector<8x128xf32>
    %594 = arith.cmpf ogt, %591, %593 : vector<8x128xf32>
    %595 = arith.extui %594 : vector<8x128xi1> to vector<8x128xi32>
    %596 = arith.sitofp %595 : vector<8x128xi32> to vector<8x128xf32>
    %c0_364 = arith.constant 0 : index
    %c0_365 = arith.constant 0 : index
    %597 = vector.load %arg21[%c0_364, %c0_365] : memref<8x128xf32, #tpu.memory_space<vmem>>, vector<8x128xf32>
    %598 = arith.addf %597, %596 : vector<8x128xf32>
    %c0_366 = arith.constant 0 : index
    %c0_367 = arith.constant 0 : index
    %599 = vector.load %arg21[%c0_366, %c0_367] : memref<8x128xf32, #tpu.memory_space<vmem>>, vector<8x128xf32>
    tpu.vector_store %arg21[%c0_366, %c0_367], %598 {strides = array<i32>} : memref<8x128xf32, #tpu.memory_space<vmem>>, vector<8x128xf32>,
    %600 = vector.broadcast %8 : vector<8x1xf32> to vector<8x128xf32>
    %601 = arith.mulf %596, %600 : vector<8x128xf32>
    %cst_368 = arith.constant dense<0.000000e+00> : vector<128xf32>
    %602 = vector.multi_reduction <add>, %601, %cst_368 [0] : vector<8x128xf32> to vector<128xf32>
    %603 = vector.shape_cast %602 : vector<128xf32> to vector<1x128xf32>
    %cst_369 = arith.constant dense<0.000000e+00> : vector<1xf32>
    %604 = vector.multi_reduction <add>, %603, %cst_369 [1] : vector<1x128xf32> to vector<1xf32>
    %605 = vector.shape_cast %604 : vector<1xf32> to vector<1x1xf32>
    %cst_370 = arith.constant 0.0454545468 : f32
    %606 = vector.broadcast %cst_370 : f32 to vector<1x1xf32>
    %607 = arith.mulf %605, %606 : vector<1x1xf32>
    %c0_371 = arith.constant 0 : index
    %c0_372 = arith.constant 0 : index
    %608 = vector.load %arg21[%c0_371, %c0_372] : memref<8x128xf32, #tpu.memory_space<vmem>>, vector<8x128xf32>
    %cst_373 = arith.constant 2.000000e-01 : f32
    %609 = vector.broadcast %cst_373 : f32 to vector<8x128xf32>
    %610 = arith.mulf %608, %609 : vector<8x128xf32>
    %c0_374 = arith.constant 0 : index
    %c0_375 = arith.constant 0 : index
    %611 = vector.load %arg13[%c0_374, %c0_375] : memref<8x128xf32, #tpu.memory_space<vmem>>, vector<8x128xf32>
    tpu.vector_store %arg13[%c0_374, %c0_375], %610 {strides = array<i32>} : memref<8x128xf32, #tpu.memory_space<vmem>>, vector<8x128xf32>,
    %cst_376 = arith.constant 0.000000e+00 : f32
    %612 = vector.broadcast %cst_376 : f32 to vector<1x1xf32>
    %cst_377 = arith.constant 0.000000e+00 : f32
    %613 = vector.broadcast %cst_377 : f32 to vector<1x1xf32>
    %614 = arith.addf %612, %143 : vector<1x1xf32>
    %cst_378 = arith.constant 1.000000e-03 : f32
    %615 = vector.broadcast %cst_378 : f32 to vector<1x1xf32>
    %616 = arith.mulf %615, %614 : vector<1x1xf32>
    %617 = arith.addf %613, %616 : vector<1x1xf32>
    %618 = arith.addf %614, %259 : vector<1x1xf32>
    %cst_379 = arith.constant 1.000000e-03 : f32
    %619 = vector.broadcast %cst_379 : f32 to vector<1x1xf32>
    %620 = arith.mulf %619, %618 : vector<1x1xf32>
    %621 = arith.addf %617, %620 : vector<1x1xf32>
    %622 = arith.subf %618, %614 : vector<1x1xf32>
    %623 = math.absf %622 : vector<1x1xf32>
    %cst_380 = arith.constant 1.000000e-03 : f32
    %624 = vector.broadcast %cst_380 : f32 to vector<1x1xf32>
    %625 = arith.mulf %624, %623 : vector<1x1xf32>
    %626 = arith.addf %621, %625 : vector<1x1xf32>
    %627 = arith.addf %618, %375 : vector<1x1xf32>
    %cst_381 = arith.constant 1.000000e-03 : f32
    %628 = vector.broadcast %cst_381 : f32 to vector<1x1xf32>
    %629 = arith.mulf %628, %627 : vector<1x1xf32>
    %630 = arith.addf %626, %629 : vector<1x1xf32>
    %631 = arith.subf %627, %618 : vector<1x1xf32>
    %632 = math.absf %631 : vector<1x1xf32>
    %cst_382 = arith.constant 1.000000e-03 : f32
    %633 = vector.broadcast %cst_382 : f32 to vector<1x1xf32>
    %634 = arith.mulf %633, %632 : vector<1x1xf32>
    %635 = arith.addf %630, %634 : vector<1x1xf32>
    %636 = arith.addf %627, %491 : vector<1x1xf32>
    %cst_383 = arith.constant 1.000000e-03 : f32
    %637 = vector.broadcast %cst_383 : f32 to vector<1x1xf32>
    %638 = arith.mulf %637, %636 : vector<1x1xf32>
    %639 = arith.addf %635, %638 : vector<1x1xf32>
    %640 = arith.subf %636, %627 : vector<1x1xf32>
    %641 = math.absf %640 : vector<1x1xf32>
    %cst_384 = arith.constant 1.000000e-03 : f32
    %642 = vector.broadcast %cst_384 : f32 to vector<1x1xf32>
    %643 = arith.mulf %642, %641 : vector<1x1xf32>
    %644 = arith.addf %639, %643 : vector<1x1xf32>
    %645 = arith.addf %636, %607 : vector<1x1xf32>
    %cst_385 = arith.constant 1.000000e-03 : f32
    %646 = vector.broadcast %cst_385 : f32 to vector<1x1xf32>
    %647 = arith.mulf %646, %645 : vector<1x1xf32>
    %648 = arith.addf %644, %647 : vector<1x1xf32>
    %649 = arith.subf %645, %636 : vector<1x1xf32>
    %650 = math.absf %649 : vector<1x1xf32>
    %cst_386 = arith.constant 1.000000e-03 : f32
    %651 = vector.broadcast %cst_386 : f32 to vector<1x1xf32>
    %652 = arith.mulf %651, %650 : vector<1x1xf32>
    %653 = arith.addf %648, %652 : vector<1x1xf32>
    %cst_387 = arith.constant 2.000000e-01 : f32
    %654 = vector.broadcast %cst_387 : f32 to vector<1x1xf32>
    %655 = arith.mulf %653, %654 : vector<1x1xf32>
    %656 = vector.shape_cast %655 : vector<1x1xf32> to vector<1x1x1xf32>
    %657 = vector.broadcast %656 : vector<1x1x1xf32> to vector<1x8x128xf32>
    %c0_388 = arith.constant 0 : index
    %c0_389 = arith.constant 0 : index
    %c0_390 = arith.constant 0 : index
    %658 = vector.load %arg14[%c0_388, %c0_389, %c0_390] : memref<1x8x128xf32, #tpu.memory_space<vmem>>, vector<1x8x128xf32>
    tpu.vector_store %arg14[%c0_388, %c0_389, %c0_390], %657 {strides = array<i32>} : memref<1x8x128xf32, #tpu.memory_space<vmem>>, vector<1x8x128xf32>,
    return
  }
  func.func @transform_0(%arg0: i32, %arg1: memref<1xi32, #tpu.memory_space<smem>>) -> (i32, i32) {
    %c0_i32 = arith.constant 0 : i32
    %c0_i32_0 = arith.constant 0 : i32
    return %arg0, %c0_i32 : i32, i32
  }
  func.func @transform_1(%arg0: i32, %arg1: memref<1xi32, #tpu.memory_space<smem>>) -> (i32, i32) {
    %c0_i32 = arith.constant 0 : i32
    %c0_i32_0 = arith.constant 0 : i32
    %c0_i32_1 = arith.constant 0 : i32
    return %c0_i32, %c0_i32_0 : i32, i32
  }
  func.func @transform_2(%arg0: i32, %arg1: memref<1xi32, #tpu.memory_space<smem>>) -> (i32, i32) {
    %c0_i32 = arith.constant 0 : i32
    %c0_i32_0 = arith.constant 0 : i32
    %c0_i32_1 = arith.constant 0 : i32
    return %c0_i32, %c0_i32_0 : i32, i32
  }
  func.func @transform_3(%arg0: i32, %arg1: memref<1xi32, #tpu.memory_space<smem>>) -> (i32, i32) {
    %c0_i32 = arith.constant 0 : i32
    %c0_i32_0 = arith.constant 0 : i32
    %c0_i32_1 = arith.constant 0 : i32
    return %c0_i32, %c0_i32_0 : i32, i32
  }
  func.func @transform_4(%arg0: i32, %arg1: memref<1xi32, #tpu.memory_space<smem>>) -> (i32, i32) {
    %c0_i32 = arith.constant 0 : i32
    %c0_i32_0 = arith.constant 0 : i32
    %c0_i32_1 = arith.constant 0 : i32
    return %c0_i32, %c0_i32_0 : i32, i32
  }
  func.func @transform_5(%arg0: i32, %arg1: memref<1xi32, #tpu.memory_space<smem>>) -> (i32, i32) {
    %c0_i32 = arith.constant 0 : i32
    %c0_i32_0 = arith.constant 0 : i32
    %c0_i32_1 = arith.constant 0 : i32
    return %c0_i32, %c0_i32_0 : i32, i32
  }
  func.func @transform_6(%arg0: i32, %arg1: memref<1xi32, #tpu.memory_space<smem>>) -> (i32, i32) {
    %c0_i32 = arith.constant 0 : i32
    %c0_i32_0 = arith.constant 0 : i32
    %c0_i32_1 = arith.constant 0 : i32
    return %c0_i32, %c0_i32_0 : i32, i32
  }
  func.func @transform_7(%arg0: i32, %arg1: memref<1xi32, #tpu.memory_space<smem>>) -> (i32, i32) {
    %c0_i32 = arith.constant 0 : i32
    %c0_i32_0 = arith.constant 0 : i32
    %c0_i32_1 = arith.constant 0 : i32
    return %c0_i32, %c0_i32_0 : i32, i32
  }
  func.func @transform_8(%arg0: i32, %arg1: memref<1xi32, #tpu.memory_space<smem>>) -> (i32, i32) {
    %c0_i32 = arith.constant 0 : i32
    %c0_i32_0 = arith.constant 0 : i32
    %c0_i32_1 = arith.constant 0 : i32
    return %c0_i32, %c0_i32_0 : i32, i32
  }
  func.func @transform_9(%arg0: i32, %arg1: memref<1xi32, #tpu.memory_space<smem>>) -> (i32, i32) {
    %c0_i32 = arith.constant 0 : i32
    %c0_i32_0 = arith.constant 0 : i32
    %c0_i32_1 = arith.constant 0 : i32
    return %c0_i32, %c0_i32_0 : i32, i32
  }
  func.func @transform_10(%arg0: i32, %arg1: memref<1xi32, #tpu.memory_space<smem>>) -> (i32, i32) {
    %c0_i32 = arith.constant 0 : i32
    %c0_i32_0 = arith.constant 0 : i32
    %c0_i32_1 = arith.constant 0 : i32
    return %c0_i32, %c0_i32_0 : i32, i32
  }
  func.func @transform_11(%arg0: i32, %arg1: memref<1xi32, #tpu.memory_space<smem>>) -> (i32, i32) {
    %c0_i32 = arith.constant 0 : i32
    %c0_i32_0 = arith.constant 0 : i32
    return %arg0, %c0_i32 : i32, i32
  }
  func.func @transform_12(%arg0: i32, %arg1: memref<1xi32, #tpu.memory_space<smem>>) -> (i32, i32, i32) {
    %c0_i32 = arith.constant 0 : i32
    %c0_i32_0 = arith.constant 0 : i32
    %c0_i32_1 = arith.constant 0 : i32
    return %arg0, %c0_i32, %c0_i32_0 : i32, i32, i32
  }
}

module attributes {stable_mosaic.version = 11 : i64} {
  func.func @_vit_snn_kernel(%arg0: i32, %arg1: memref<1xi32, #tpu.memory_space<smem>>, %arg2: memref<8x576xbf16, #tpu.memory_space<vmem>>, %arg3: memref<576x128xbf16, #tpu.memory_space<vmem>>, %arg4: memref<1x128xf32, #tpu.memory_space<vmem>>, %arg5: memref<128x128xbf16, #tpu.memory_space<vmem>>, %arg6: memref<1x128xf32, #tpu.memory_space<vmem>>, %arg7: memref<128x128xbf16, #tpu.memory_space<vmem>>, %arg8: memref<1x128xf32, #tpu.memory_space<vmem>>, %arg9: memref<128x128xbf16, #tpu.memory_space<vmem>>, %arg10: memref<1x128xf32, #tpu.memory_space<vmem>>, %arg11: memref<128x128xbf16, #tpu.memory_space<vmem>>, %arg12: memref<1x128xf32, #tpu.memory_space<vmem>>, %arg13: memref<8x128xf32, #tpu.memory_space<vmem>>, %arg14: memref<1x8x128xf32, #tpu.memory_space<vmem>>, %arg15: memref<8x128xf32, #tpu.memory_space<vmem>>, %arg16: memref<8x128xf32, #tpu.memory_space<vmem>>, %arg17: memref<8x128xf32, #tpu.memory_space<vmem>>, %arg18: memref<8x128xf32, #tpu.memory_space<vmem>>, %arg19: memref<8x128xf32, #tpu.memory_space<vmem>>, %arg20: memref<8x128xf32, #tpu.memory_space<vmem>>, %arg21: memref<8x128xf32, #tpu.memory_space<vmem>>) attributes {dimension_semantics = [#tpu.dimension_semantics<parallel>], iteration_bounds = array<i64: 1>, scalar_prefetch = 1 : i64, scratch_operands = 7 : i64, tpu.core_type = #tpu.core_type<tc>, window_params = [{transform_indices = @transform_0, window_bounds = array<i64: 8, 576>}, {pipeline_mode = #tpu.pipeline_mode<synchronous>, transform_indices = @transform_1, window_bounds = array<i64: 576, 128>}, {pipeline_mode = #tpu.pipeline_mode<synchronous>, transform_indices = @transform_2, window_bounds = array<i64: 1, 128>}, {pipeline_mode = #tpu.pipeline_mode<synchronous>, transform_indices = @transform_3, window_bounds = array<i64: 128, 128>}, {pipeline_mode = #tpu.pipeline_mode<synchronous>, transform_indices = @transform_4, window_bounds = array<i64: 1, 128>}, {pipeline_mode = #tpu.pipeline_mode<synchronous>, transform_indices = @transform_5, window_bounds = array<i64: 128, 128>}, {pipeline_mode = #tpu.pipeline_mode<synchronous>, transform_indices = @transform_6, window_bounds = array<i64: 1, 128>}, {pipeline_mode = #tpu.pipeline_mode<synchronous>, transform_indices = @transform_7, window_bounds = array<i64: 128, 128>}, {pipeline_mode = #tpu.pipeline_mode<synchronous>, transform_indices = @transform_8, window_bounds = array<i64: 1, 128>}, {pipeline_mode = #tpu.pipeline_mode<synchronous>, transform_indices = @transform_9, window_bounds = array<i64: 128, 128>}, {pipeline_mode = #tpu.pipeline_mode<synchronous>, transform_indices = @transform_10, window_bounds = array<i64: 1, 128>}, {transform_indices = @transform_11, window_bounds = array<i64: 8, 128>}, {transform_indices = @transform_12, window_bounds = array<i64: 1, 8, 128>}]} {
    %0 = tpu.iota {dimensions = array<i32: 0>} : vector<8x1xi32>
    %c8_i32 = arith.constant 8 : i32
    %1 = arith.muli %arg0, %c8_i32 : i32
    %2 = vector.broadcast %1 : i32 to vector<8x1xi32>
    %3 = arith.addi %0, %2 : vector<8x1xi32>
    %c0 = arith.constant 0 : index
    %4 = memref.load %arg1[%c0] : memref<1xi32, #tpu.memory_space<smem>>
    %5 = vector.broadcast %4 : i32 to vector<8x1xi32>
    %6 = arith.cmpi slt, %3, %5 : vector<8x1xi32>
    %7 = arith.extui %6 : vector<8x1xi1> to vector<8x1xi32>
    %8 = arith.sitofp %7 : vector<8x1xi32> to vector<8x1xf32>
    %c0_0 = arith.constant 0 : index
    %c0_1 = arith.constant 0 : index
    %9 = vector.load %arg2[%c0_0, %c0_1] : memref<8x576xbf16, #tpu.memory_space<vmem>>, vector<8x576xbf16>
    %c0_2 = arith.constant 0 : index
    %c0_3 = arith.constant 0 : index
    %10 = vector.load %arg3[%c0_2, %c0_3] : memref<576x128xbf16, #tpu.memory_space<vmem>>, vector<576x128xbf16>
    %cst = arith.constant dense<0.000000e+00> : vector<8x128xf32>
    %11 = tpu.matmul %9, %10, %cst {dimension_numbers = #tpu.dot_dimension_numbers<[1], [0], [0], [1], [0, 0, 1, 1], [], []>} : vector<8x576xbf16>, vector<576x128xbf16>, vector<8x128xf32> -> vector<8x128xf32>
    %c0_4 = arith.constant 0 : index
    %c0_5 = arith.constant 0 : index
    %12 = vector.load %arg4[%c0_4, %c0_5] : memref<1x128xf32, #tpu.memory_space<vmem>>, vector<1x128xf32>
    %13 = vector.broadcast %12 : vector<1x128xf32> to vector<8x128xf32>
    %14 = arith.addf %11, %13 : vector<8x128xf32>
    %c0_6 = arith.constant 0 : index
    %c0_7 = arith.constant 0 : index
    %15 = vector.load %arg15[%c0_6, %c0_7] : memref<8x128xf32, #tpu.memory_space<vmem>>, vector<8x128xf32>
    tpu.vector_store %arg15[%c0_6, %c0_7], %14 {strides = array<i32>} : memref<8x128xf32, #tpu.memory_space<vmem>>, vector<8x128xf32>,
    %cst_8 = arith.constant 0.000000e+00 : f32
    %16 = vector.broadcast %cst_8 : f32 to vector<8x128xf32>
    %c0_9 = arith.constant 0 : index
    %c0_10 = arith.constant 0 : index
    %17 = vector.load %arg16[%c0_9, %c0_10] : memref<8x128xf32, #tpu.memory_space<vmem>>, vector<8x128xf32>
    tpu.vector_store %arg16[%c0_9, %c0_10], %16 {strides = array<i32>} : memref<8x128xf32, #tpu.memory_space<vmem>>, vector<8x128xf32>,
    %cst_11 = arith.constant 0.000000e+00 : f32
    %18 = vector.broadcast %cst_11 : f32 to vector<8x128xf32>
    %c0_12 = arith.constant 0 : index
    %c0_13 = arith.constant 0 : index
    %19 = vector.load %arg17[%c0_12, %c0_13] : memref<8x128xf32, #tpu.memory_space<vmem>>, vector<8x128xf32>
    tpu.vector_store %arg17[%c0_12, %c0_13], %18 {strides = array<i32>} : memref<8x128xf32, #tpu.memory_space<vmem>>, vector<8x128xf32>,
    %cst_14 = arith.constant 0.000000e+00 : f32
    %20 = vector.broadcast %cst_14 : f32 to vector<8x128xf32>
    %c0_15 = arith.constant 0 : index
    %c0_16 = arith.constant 0 : index
    %21 = vector.load %arg18[%c0_15, %c0_16] : memref<8x128xf32, #tpu.memory_space<vmem>>, vector<8x128xf32>
    tpu.vector_store %arg18[%c0_15, %c0_16], %20 {strides = array<i32>} : memref<8x128xf32, #tpu.memory_space<vmem>>, vector<8x128xf32>,
    %cst_17 = arith.constant 0.000000e+00 : f32
    %22 = vector.broadcast %cst_17 : f32 to vector<8x128xf32>
    %c0_18 = arith.constant 0 : index
    %c0_19 = arith.constant 0 : index
    %23 = vector.load %arg19[%c0_18, %c0_19] : memref<8x128xf32, #tpu.memory_space<vmem>>, vector<8x128xf32>
    tpu.vector_store %arg19[%c0_18, %c0_19], %22 {strides = array<i32>} : memref<8x128xf32, #tpu.memory_space<vmem>>, vector<8x128xf32>,
    %cst_20 = arith.constant 0.000000e+00 : f32
    %24 = vector.broadcast %cst_20 : f32 to vector<8x128xf32>
    %c0_21 = arith.constant 0 : index
    %c0_22 = arith.constant 0 : index
    %25 = vector.load %arg20[%c0_21, %c0_22] : memref<8x128xf32, #tpu.memory_space<vmem>>, vector<8x128xf32>
    tpu.vector_store %arg20[%c0_21, %c0_22], %24 {strides = array<i32>} : memref<8x128xf32, #tpu.memory_space<vmem>>, vector<8x128xf32>,
    %cst_23 = arith.constant 0.000000e+00 : f32
    %26 = vector.broadcast %cst_23 : f32 to vector<8x128xf32>
    %c0_24 = arith.constant 0 : index
    %c0_25 = arith.constant 0 : index
    %27 = vector.load %arg21[%c0_24, %c0_25] : memref<8x128xf32, #tpu.memory_space<vmem>>, vector<8x128xf32>
    tpu.vector_store %arg21[%c0_24, %c0_25], %26 {strides = array<i32>} : memref<8x128xf32, #tpu.memory_space<vmem>>, vector<8x128xf32>,
    %c0_26 = arith.constant 0 : index
    %c0_27 = arith.constant 0 : index
    %28 = vector.load %arg15[%c0_26, %c0_27] : memref<8x128xf32, #tpu.memory_space<vmem>>, vector<8x128xf32>
    %c0_28 = arith.constant 0 : index
    %c0_29 = arith.constant 0 : index
    %29 = vector.load %arg16[%c0_28, %c0_29] : memref<8x128xf32, #tpu.memory_space<vmem>>, vector<8x128xf32>
    %cst_30 = arith.constant 5.000000e-01 : f32
    %30 = vector.broadcast %cst_30 : f32 to vector<8x128xf32>
    %31 = arith.cmpf ogt, %29, %30 : vector<8x128xf32>
    %32 = arith.extui %31 : vector<8x128xi1> to vector<8x128xi32>
    %33 = arith.sitofp %32 : vector<8x128xi32> to vector<8x128xf32>
    %cst_31 = arith.constant 8.000000e-01 : f32
    %34 = vector.broadcast %cst_31 : f32 to vector<8x128xf32>
    %35 = arith.mulf %34, %29 : vector<8x128xf32>
    %36 = arith.addf %35, %28 : vector<8x128xf32>
    %cst_32 = arith.constant 5.000000e-01 : f32
    %37 = vector.broadcast %cst_32 : f32 to vector<8x128xf32>
    %38 = arith.mulf %33, %37 : vector<8x128xf32>
    %39 = arith.subf %36, %38 : vector<8x128xf32>
    %c0_33 = arith.constant 0 : index
    %c0_34 = arith.constant 0 : index
    %40 = vector.load %arg16[%c0_33, %c0_34] : memref<8x128xf32, #tpu.memory_space<vmem>>, vector<8x128xf32>
    tpu.vector_store %arg16[%c0_33, %c0_34], %39 {strides = array<i32>} : memref<8x128xf32, #tpu.memory_space<vmem>>, vector<8x128xf32>,
    %cst_35 = arith.constant 5.000000e-01 : f32
    %41 = vector.broadcast %cst_35 : f32 to vector<8x128xf32>
    %42 = arith.cmpf ogt, %39, %41 : vector<8x128xf32>
    %43 = arith.extui %42 : vector<8x128xi1> to vector<8x128xi32>
    %44 = arith.sitofp %43 : vector<8x128xi32> to vector<8x128xf32>
    %45 = arith.truncf %44 : vector<8x128xf32> to vector<8x128xbf16>
    %c0_36 = arith.constant 0 : index
    %c0_37 = arith.constant 0 : index
    %46 = vector.load %arg5[%c0_36, %c0_37] : memref<128x128xbf16, #tpu.memory_space<vmem>>, vector<128x128xbf16>
    %cst_38 = arith.constant dense<0.000000e+00> : vector<8x128xf32>
    %47 = tpu.matmul %45, %46, %cst_38 {dimension_numbers = #tpu.dot_dimension_numbers<[1], [0], [0], [1], [0, 0, 1, 1], [], []>} : vector<8x128xbf16>, vector<128x128xbf16>, vector<8x128xf32> -> vector<8x128xf32>
    %c0_39 = arith.constant 0 : index
    %c0_40 = arith.constant 0 : index
    %48 = vector.load %arg6[%c0_39, %c0_40] : memref<1x128xf32, #tpu.memory_space<vmem>>, vector<1x128xf32>
    %49 = vector.broadcast %48 : vector<1x128xf32> to vector<8x128xf32>
    %50 = arith.addf %47, %49 : vector<8x128xf32>
    %c0_41 = arith.constant 0 : index
    %c0_42 = arith.constant 0 : index
    %51 = vector.load %arg17[%c0_41, %c0_42] : memref<8x128xf32, #tpu.memory_space<vmem>>, vector<8x128xf32>
    %cst_43 = arith.constant 5.000000e-01 : f32
    %52 = vector.broadcast %cst_43 : f32 to vector<8x128xf32>
    %53 = arith.cmpf ogt, %51, %52 : vector<8x128xf32>
    %54 = arith.extui %53 : vector<8x128xi1> to vector<8x128xi32>
    %55 = arith.sitofp %54 : vector<8x128xi32> to vector<8x128xf32>
    %cst_44 = arith.constant 8.000000e-01 : f32
    %56 = vector.broadcast %cst_44 : f32 to vector<8x128xf32>
    %57 = arith.mulf %56, %51 : vector<8x128xf32>
    %58 = arith.addf %57, %50 : vector<8x128xf32>
    %cst_45 = arith.constant 5.000000e-01 : f32
    %59 = vector.broadcast %cst_45 : f32 to vector<8x128xf32>
    %60 = arith.mulf %55, %59 : vector<8x128xf32>
    %61 = arith.subf %58, %60 : vector<8x128xf32>
    %c0_46 = arith.constant 0 : index
    %c0_47 = arith.constant 0 : index
    %62 = vector.load %arg17[%c0_46, %c0_47] : memref<8x128xf32, #tpu.memory_space<vmem>>, vector<8x128xf32>
    tpu.vector_store %arg17[%c0_46, %c0_47], %61 {strides = array<i32>} : memref<8x128xf32, #tpu.memory_space<vmem>>, vector<8x128xf32>,
    %cst_48 = arith.constant 5.000000e-01 : f32
    %63 = vector.broadcast %cst_48 : f32 to vector<8x128xf32>
    %64 = arith.cmpf ogt, %61, %63 : vector<8x128xf32>
    %65 = arith.extui %64 : vector<8x128xi1> to vector<8x128xi32>
    %66 = arith.sitofp %65 : vector<8x128xi32> to vector<8x128xf32>
    %67 = arith.truncf %66 : vector<8x128xf32> to vector<8x128xbf16>
    %c0_49 = arith.constant 0 : index
    %c0_50 = arith.constant 0 : index
    %68 = vector.load %arg7[%c0_49, %c0_50] : memref<128x128xbf16, #tpu.memory_space<vmem>>, vector<128x128xbf16>
    %cst_51 = arith.constant dense<0.000000e+00> : vector<8x128xf32>
    %69 = tpu.matmul %67, %68, %cst_51 {dimension_numbers = #tpu.dot_dimension_numbers<[1], [0], [0], [1], [0, 0, 1, 1], [], []>} : vector<8x128xbf16>, vector<128x128xbf16>, vector<8x128xf32> -> vector<8x128xf32>
    %c0_52 = arith.constant 0 : index
    %c0_53 = arith.constant 0 : index
    %70 = vector.load %arg8[%c0_52, %c0_53] : memref<1x128xf32, #tpu.memory_space<vmem>>, vector<1x128xf32>
    %71 = vector.broadcast %70 : vector<1x128xf32> to vector<8x128xf32>
    %72 = arith.addf %69, %71 : vector<8x128xf32>
    %c0_54 = arith.constant 0 : index
    %c0_55 = arith.constant 0 : index
    %73 = vector.load %arg18[%c0_54, %c0_55] : memref<8x128xf32, #tpu.memory_space<vmem>>, vector<8x128xf32>
    %cst_56 = arith.constant 5.000000e-01 : f32
    %74 = vector.broadcast %cst_56 : f32 to vector<8x128xf32>
    %75 = arith.cmpf ogt, %73, %74 : vector<8x128xf32>
    %76 = arith.extui %75 : vector<8x128xi1> to vector<8x128xi32>
    %77 = arith.sitofp %76 : vector<8x128xi32> to vector<8x128xf32>
    %cst_57 = arith.constant 8.000000e-01 : f32
    %78 = vector.broadcast %cst_57 : f32 to vector<8x128xf32>
    %79 = arith.mulf %78, %73 : vector<8x128xf32>
    %80 = arith.addf %79, %72 : vector<8x128xf32>
    %cst_58 = arith.constant 5.000000e-01 : f32
    %81 = vector.broadcast %cst_58 : f32 to vector<8x128xf32>
    %82 = arith.mulf %77, %81 : vector<8x128xf32>
    %83 = arith.subf %80, %82 : vector<8x128xf32>
    %c0_59 = arith.constant 0 : index
    %c0_60 = arith.constant 0 : index
    %84 = vector.load %arg18[%c0_59, %c0_60] : memref<8x128xf32, #tpu.memory_space<vmem>>, vector<8x128xf32>
    tpu.vector_store %arg18[%c0_59, %c0_60], %83 {strides = array<i32>} : memref<8x128xf32, #tpu.memory_space<vmem>>, vector<8x128xf32>,
    %cst_61 = arith.constant 5.000000e-01 : f32
    %85 = vector.broadcast %cst_61 : f32 to vector<8x128xf32>
    %86 = arith.cmpf ogt, %83, %85 : vector<8x128xf32>
    %87 = arith.extui %86 : vector<8x128xi1> to vector<8x128xi32>
    %88 = arith.sitofp %87 : vector<8x128xi32> to vector<8x128xf32>
    %89 = arith.truncf %88 : vector<8x128xf32> to vector<8x128xbf16>
    %c0_62 = arith.constant 0 : index
    %c0_63 = arith.constant 0 : index
    %90 = vector.load %arg9[%c0_62, %c0_63] : memref<128x128xbf16, #tpu.memory_space<vmem>>, vector<128x128xbf16>
    %cst_64 = arith.constant dense<0.000000e+00> : vector<8x128xf32>
    %91 = tpu.matmul %89, %90, %cst_64 {dimension_numbers = #tpu.dot_dimension_numbers<[1], [0], [0], [1], [0, 0, 1, 1], [], []>} : vector<8x128xbf16>, vector<128x128xbf16>, vector<8x128xf32> -> vector<8x128xf32>
    %c0_65 = arith.constant 0 : index
    %c0_66 = arith.constant 0 : index
    %92 = vector.load %arg10[%c0_65, %c0_66] : memref<1x128xf32, #tpu.memory_space<vmem>>, vector<1x128xf32>
    %93 = vector.broadcast %92 : vector<1x128xf32> to vector<8x128xf32>
    %94 = arith.addf %91, %93 : vector<8x128xf32>
    %c0_67 = arith.constant 0 : index
    %c0_68 = arith.constant 0 : index
    %95 = vector.load %arg19[%c0_67, %c0_68] : memref<8x128xf32, #tpu.memory_space<vmem>>, vector<8x128xf32>
    %cst_69 = arith.constant 5.000000e-01 : f32
    %96 = vector.broadcast %cst_69 : f32 to vector<8x128xf32>
    %97 = arith.cmpf ogt, %95, %96 : vector<8x128xf32>
    %98 = arith.extui %97 : vector<8x128xi1> to vector<8x128xi32>
    %99 = arith.sitofp %98 : vector<8x128xi32> to vector<8x128xf32>
    %cst_70 = arith.constant 8.000000e-01 : f32
    %100 = vector.broadcast %cst_70 : f32 to vector<8x128xf32>
    %101 = arith.mulf %100, %95 : vector<8x128xf32>
    %102 = arith.addf %101, %94 : vector<8x128xf32>
    %cst_71 = arith.constant 5.000000e-01 : f32
    %103 = vector.broadcast %cst_71 : f32 to vector<8x128xf32>
    %104 = arith.mulf %99, %103 : vector<8x128xf32>
    %105 = arith.subf %102, %104 : vector<8x128xf32>
    %c0_72 = arith.constant 0 : index
    %c0_73 = arith.constant 0 : index
    %106 = vector.load %arg19[%c0_72, %c0_73] : memref<8x128xf32, #tpu.memory_space<vmem>>, vector<8x128xf32>
    tpu.vector_store %arg19[%c0_72, %c0_73], %105 {strides = array<i32>} : memref<8x128xf32, #tpu.memory_space<vmem>>, vector<8x128xf32>,
    %cst_74 = arith.constant 5.000000e-01 : f32
    %107 = vector.broadcast %cst_74 : f32 to vector<8x128xf32>
    %108 = arith.cmpf ogt, %105, %107 : vector<8x128xf32>
    %109 = arith.extui %108 : vector<8x128xi1> to vector<8x128xi32>
    %110 = arith.sitofp %109 : vector<8x128xi32> to vector<8x128xf32>
    %111 = arith.truncf %110 : vector<8x128xf32> to vector<8x128xbf16>
    %c0_75 = arith.constant 0 : index
    %c0_76 = arith.constant 0 : index
    %112 = vector.load %arg11[%c0_75, %c0_76] : memref<128x128xbf16, #tpu.memory_space<vmem>>, vector<128x128xbf16>
    %cst_77 = arith.constant dense<0.000000e+00> : vector<8x128xf32>
    %113 = tpu.matmul %111, %112, %cst_77 {dimension_numbers = #tpu.dot_dimension_numbers<[1], [0], [0], [1], [0, 0, 1, 1], [], []>} : vector<8x128xbf16>, vector<128x128xbf16>, vector<8x128xf32> -> vector<8x128xf32>
    %c0_78 = arith.constant 0 : index
    %c0_79 = arith.constant 0 : index
    %114 = vector.load %arg12[%c0_78, %c0_79] : memref<1x128xf32, #tpu.memory_space<vmem>>, vector<1x128xf32>
    %115 = vector.broadcast %114 : vector<1x128xf32> to vector<8x128xf32>
    %116 = arith.addf %113, %115 : vector<8x128xf32>
    %c0_80 = arith.constant 0 : index
    %c0_81 = arith.constant 0 : index
    %117 = vector.load %arg20[%c0_80, %c0_81] : memref<8x128xf32, #tpu.memory_space<vmem>>, vector<8x128xf32>
    %cst_82 = arith.constant 5.000000e-01 : f32
    %118 = vector.broadcast %cst_82 : f32 to vector<8x128xf32>
    %119 = arith.cmpf ogt, %117, %118 : vector<8x128xf32>
    %120 = arith.extui %119 : vector<8x128xi1> to vector<8x128xi32>
    %121 = arith.sitofp %120 : vector<8x128xi32> to vector<8x128xf32>
    %cst_83 = arith.constant 8.000000e-01 : f32
    %122 = vector.broadcast %cst_83 : f32 to vector<8x128xf32>
    %123 = arith.mulf %122, %117 : vector<8x128xf32>
    %124 = arith.addf %123, %116 : vector<8x128xf32>
    %cst_84 = arith.constant 5.000000e-01 : f32
    %125 = vector.broadcast %cst_84 : f32 to vector<8x128xf32>
    %126 = arith.mulf %121, %125 : vector<8x128xf32>
    %127 = arith.subf %124, %126 : vector<8x128xf32>
    %c0_85 = arith.constant 0 : index
    %c0_86 = arith.constant 0 : index
    %128 = vector.load %arg20[%c0_85, %c0_86] : memref<8x128xf32, #tpu.memory_space<vmem>>, vector<8x128xf32>
    tpu.vector_store %arg20[%c0_85, %c0_86], %127 {strides = array<i32>} : memref<8x128xf32, #tpu.memory_space<vmem>>, vector<8x128xf32>,
    %cst_87 = arith.constant 5.000000e-01 : f32
    %129 = vector.broadcast %cst_87 : f32 to vector<8x128xf32>
    %130 = arith.cmpf ogt, %127, %129 : vector<8x128xf32>
    %131 = arith.extui %130 : vector<8x128xi1> to vector<8x128xi32>
    %132 = arith.sitofp %131 : vector<8x128xi32> to vector<8x128xf32>
    %c0_88 = arith.constant 0 : index
    %c0_89 = arith.constant 0 : index
    %133 = vector.load %arg21[%c0_88, %c0_89] : memref<8x128xf32, #tpu.memory_space<vmem>>, vector<8x128xf32>
    %134 = arith.addf %133, %132 : vector<8x128xf32>
    %c0_90 = arith.constant 0 : index
    %c0_91 = arith.constant 0 : index
    %135 = vector.load %arg21[%c0_90, %c0_91] : memref<8x128xf32, #tpu.memory_space<vmem>>, vector<8x128xf32>
    tpu.vector_store %arg21[%c0_90, %c0_91], %134 {strides = array<i32>} : memref<8x128xf32, #tpu.memory_space<vmem>>, vector<8x128xf32>,
    %136 = vector.broadcast %8 : vector<8x1xf32> to vector<8x128xf32>
    %137 = arith.mulf %132, %136 : vector<8x128xf32>
    %cst_92 = arith.constant dense<0.000000e+00> : vector<128xf32>
    %138 = vector.multi_reduction <add>, %137, %cst_92 [0] : vector<8x128xf32> to vector<128xf32>
    %139 = vector.shape_cast %138 : vector<128xf32> to vector<1x128xf32>
    %cst_93 = arith.constant dense<0.000000e+00> : vector<1xf32>
    %140 = vector.multi_reduction <add>, %139, %cst_93 [1] : vector<1x128xf32> to vector<1xf32>
    %141 = vector.shape_cast %140 : vector<1xf32> to vector<1x1xf32>
    %cst_94 = arith.constant 0.0454545468 : f32
    %142 = vector.broadcast %cst_94 : f32 to vector<1x1xf32>
    %143 = arith.mulf %141, %142 : vector<1x1xf32>
    %c0_95 = arith.constant 0 : index
    %c0_96 = arith.constant 0 : index
    %144 = vector.load %arg15[%c0_95, %c0_96] : memref<8x128xf32, #tpu.memory_space<vmem>>, vector<8x128xf32>
    %c0_97 = arith.constant 0 : index
    %c0_98 = arith.constant 0 : index
    %145 = vector.load %arg16[%c0_97, %c0_98] : memref<8x128xf32, #tpu.memory_space<vmem>>, vector<8x128xf32>
    %cst_99 = arith.constant 5.000000e-01 : f32
    %146 = vector.broadcast %cst_99 : f32 to vector<8x128xf32>
    %147 = arith.cmpf ogt, %145, %146 : vector<8x128xf32>
    %148 = arith.extui %147 : vector<8x128xi1> to vector<8x128xi32>
    %149 = arith.sitofp %148 : vector<8x128xi32> to vector<8x128xf32>
    %cst_100 = arith.constant 8.000000e-01 : f32
    %150 = vector.broadcast %cst_100 : f32 to vector<8x128xf32>
    %151 = arith.mulf %150, %145 : vector<8x128xf32>
    %152 = arith.addf %151, %144 : vector<8x128xf32>
    %cst_101 = arith.constant 5.000000e-01 : f32
    %153 = vector.broadcast %cst_101 : f32 to vector<8x128xf32>
    %154 = arith.mulf %149, %153 : vector<8x128xf32>
    %155 = arith.subf %152, %154 : vector<8x128xf32>
    %c0_102 = arith.constant 0 : index
    %c0_103 = arith.constant 0 : index
    %156 = vector.load %arg16[%c0_102, %c0_103] : memref<8x128xf32, #tpu.memory_space<vmem>>, vector<8x128xf32>
    tpu.vector_store %arg16[%c0_102, %c0_103], %155 {strides = array<i32>} : memref<8x128xf32, #tpu.memory_space<vmem>>, vector<8x128xf32>,
    %cst_104 = arith.constant 5.000000e-01 : f32
    %157 = vector.broadcast %cst_104 : f32 to vector<8x128xf32>
    %158 = arith.cmpf ogt, %155, %157 : vector<8x128xf32>
    %159 = arith.extui %158 : vector<8x128xi1> to vector<8x128xi32>
    %160 = arith.sitofp %159 : vector<8x128xi32> to vector<8x128xf32>
    %161 = arith.truncf %160 : vector<8x128xf32> to vector<8x128xbf16>
    %c0_105 = arith.constant 0 : index
    %c0_106 = arith.constant 0 : index
    %162 = vector.load %arg5[%c0_105, %c0_106] : memref<128x128xbf16, #tpu.memory_space<vmem>>, vector<128x128xbf16>
    %cst_107 = arith.constant dense<0.000000e+00> : vector<8x128xf32>
    %163 = tpu.matmul %161, %162, %cst_107 {dimension_numbers = #tpu.dot_dimension_numbers<[1], [0], [0], [1], [0, 0, 1, 1], [], []>} : vector<8x128xbf16>, vector<128x128xbf16>, vector<8x128xf32> -> vector<8x128xf32>
    %c0_108 = arith.constant 0 : index
    %c0_109 = arith.constant 0 : index
    %164 = vector.load %arg6[%c0_108, %c0_109] : memref<1x128xf32, #tpu.memory_space<vmem>>, vector<1x128xf32>
    %165 = vector.broadcast %164 : vector<1x128xf32> to vector<8x128xf32>
    %166 = arith.addf %163, %165 : vector<8x128xf32>
    %c0_110 = arith.constant 0 : index
    %c0_111 = arith.constant 0 : index
    %167 = vector.load %arg17[%c0_110, %c0_111] : memref<8x128xf32, #tpu.memory_space<vmem>>, vector<8x128xf32>
    %cst_112 = arith.constant 5.000000e-01 : f32
    %168 = vector.broadcast %cst_112 : f32 to vector<8x128xf32>
    %169 = arith.cmpf ogt, %167, %168 : vector<8x128xf32>
    %170 = arith.extui %169 : vector<8x128xi1> to vector<8x128xi32>
    %171 = arith.sitofp %170 : vector<8x128xi32> to vector<8x128xf32>
    %cst_113 = arith.constant 8.000000e-01 : f32
    %172 = vector.broadcast %cst_113 : f32 to vector<8x128xf32>
    %173 = arith.mulf %172, %167 : vector<8x128xf32>
    %174 = arith.addf %173, %166 : vector<8x128xf32>
    %cst_114 = arith.constant 5.000000e-01 : f32
    %175 = vector.broadcast %cst_114 : f32 to vector<8x128xf32>
    %176 = arith.mulf %171, %175 : vector<8x128xf32>
    %177 = arith.subf %174, %176 : vector<8x128xf32>
    %c0_115 = arith.constant 0 : index
    %c0_116 = arith.constant 0 : index
    %178 = vector.load %arg17[%c0_115, %c0_116] : memref<8x128xf32, #tpu.memory_space<vmem>>, vector<8x128xf32>
    tpu.vector_store %arg17[%c0_115, %c0_116], %177 {strides = array<i32>} : memref<8x128xf32, #tpu.memory_space<vmem>>, vector<8x128xf32>,
    %cst_117 = arith.constant 5.000000e-01 : f32
    %179 = vector.broadcast %cst_117 : f32 to vector<8x128xf32>
    %180 = arith.cmpf ogt, %177, %179 : vector<8x128xf32>
    %181 = arith.extui %180 : vector<8x128xi1> to vector<8x128xi32>
    %182 = arith.sitofp %181 : vector<8x128xi32> to vector<8x128xf32>
    %183 = arith.truncf %182 : vector<8x128xf32> to vector<8x128xbf16>
    %c0_118 = arith.constant 0 : index
    %c0_119 = arith.constant 0 : index
    %184 = vector.load %arg7[%c0_118, %c0_119] : memref<128x128xbf16, #tpu.memory_space<vmem>>, vector<128x128xbf16>
    %cst_120 = arith.constant dense<0.000000e+00> : vector<8x128xf32>
    %185 = tpu.matmul %183, %184, %cst_120 {dimension_numbers = #tpu.dot_dimension_numbers<[1], [0], [0], [1], [0, 0, 1, 1], [], []>} : vector<8x128xbf16>, vector<128x128xbf16>, vector<8x128xf32> -> vector<8x128xf32>
    %c0_121 = arith.constant 0 : index
    %c0_122 = arith.constant 0 : index
    %186 = vector.load %arg8[%c0_121, %c0_122] : memref<1x128xf32, #tpu.memory_space<vmem>>, vector<1x128xf32>
    %187 = vector.broadcast %186 : vector<1x128xf32> to vector<8x128xf32>
    %188 = arith.addf %185, %187 : vector<8x128xf32>
    %c0_123 = arith.constant 0 : index
    %c0_124 = arith.constant 0 : index
    %189 = vector.load %arg18[%c0_123, %c0_124] : memref<8x128xf32, #tpu.memory_space<vmem>>, vector<8x128xf32>
    %cst_125 = arith.constant 5.000000e-01 : f32
    %190 = vector.broadcast %cst_125 : f32 to vector<8x128xf32>
    %191 = arith.cmpf ogt, %189, %190 : vector<8x128xf32>
    %192 = arith.extui %191 : vector<8x128xi1> to vector<8x128xi32>
    %193 = arith.sitofp %192 : vector<8x128xi32> to vector<8x128xf32>
    %cst_126 = arith.constant 8.000000e-01 : f32
    %194 = vector.broadcast %cst_126 : f32 to vector<8x128xf32>
    %195 = arith.mulf %194, %189 : vector<8x128xf32>
    %196 = arith.addf %195, %188 : vector<8x128xf32>
    %cst_127 = arith.constant 5.000000e-01 : f32
    %197 = vector.broadcast %cst_127 : f32 to vector<8x128xf32>
    %198 = arith.mulf %193, %197 : vector<8x128xf32>
    %199 = arith.subf %196, %198 : vector<8x128xf32>
    %c0_128 = arith.constant 0 : index
    %c0_129 = arith.constant 0 : index
    %200 = vector.load %arg18[%c0_128, %c0_129] : memref<8x128xf32, #tpu.memory_space<vmem>>, vector<8x128xf32>
    tpu.vector_store %arg18[%c0_128, %c0_129], %199 {strides = array<i32>} : memref<8x128xf32, #tpu.memory_space<vmem>>, vector<8x128xf32>,
    %cst_130 = arith.constant 5.000000e-01 : f32
    %201 = vector.broadcast %cst_130 : f32 to vector<8x128xf32>
    %202 = arith.cmpf ogt, %199, %201 : vector<8x128xf32>
    %203 = arith.extui %202 : vector<8x128xi1> to vector<8x128xi32>
    %204 = arith.sitofp %203 : vector<8x128xi32> to vector<8x128xf32>
    %205 = arith.truncf %204 : vector<8x128xf32> to vector<8x128xbf16>
    %c0_131 = arith.constant 0 : index
    %c0_132 = arith.constant 0 : index
    %206 = vector.load %arg9[%c0_131, %c0_132] : memref<128x128xbf16, #tpu.memory_space<vmem>>, vector<128x128xbf16>
    %cst_133 = arith.constant dense<0.000000e+00> : vector<8x128xf32>
    %207 = tpu.matmul %205, %206, %cst_133 {dimension_numbers = #tpu.dot_dimension_numbers<[1], [0], [0], [1], [0, 0, 1, 1], [], []>} : vector<8x128xbf16>, vector<128x128xbf16>, vector<8x128xf32> -> vector<8x128xf32>
    %c0_134 = arith.constant 0 : index
    %c0_135 = arith.constant 0 : index
    %208 = vector.load %arg10[%c0_134, %c0_135] : memref<1x128xf32, #tpu.memory_space<vmem>>, vector<1x128xf32>
    %209 = vector.broadcast %208 : vector<1x128xf32> to vector<8x128xf32>
    %210 = arith.addf %207, %209 : vector<8x128xf32>
    %c0_136 = arith.constant 0 : index
    %c0_137 = arith.constant 0 : index
    %211 = vector.load %arg19[%c0_136, %c0_137] : memref<8x128xf32, #tpu.memory_space<vmem>>, vector<8x128xf32>
    %cst_138 = arith.constant 5.000000e-01 : f32
    %212 = vector.broadcast %cst_138 : f32 to vector<8x128xf32>
    %213 = arith.cmpf ogt, %211, %212 : vector<8x128xf32>
    %214 = arith.extui %213 : vector<8x128xi1> to vector<8x128xi32>
    %215 = arith.sitofp %214 : vector<8x128xi32> to vector<8x128xf32>
    %cst_139 = arith.constant 8.000000e-01 : f32
    %216 = vector.broadcast %cst_139 : f32 to vector<8x128xf32>
    %217 = arith.mulf %216, %211 : vector<8x128xf32>
    %218 = arith.addf %217, %210 : vector<8x128xf32>
    %cst_140 = arith.constant 5.000000e-01 : f32
    %219 = vector.broadcast %cst_140 : f32 to vector<8x128xf32>
    %220 = arith.mulf %215, %219 : vector<8x128xf32>
    %221 = arith.subf %218, %220 : vector<8x128xf32>
    %c0_141 = arith.constant 0 : index
    %c0_142 = arith.constant 0 : index
    %222 = vector.load %arg19[%c0_141, %c0_142] : memref<8x128xf32, #tpu.memory_space<vmem>>, vector<8x128xf32>
    tpu.vector_store %arg19[%c0_141, %c0_142], %221 {strides = array<i32>} : memref<8x128xf32, #tpu.memory_space<vmem>>, vector<8x128xf32>,
    %cst_143 = arith.constant 5.000000e-01 : f32
    %223 = vector.broadcast %cst_143 : f32 to vector<8x128xf32>
    %224 = arith.cmpf ogt, %221, %223 : vector<8x128xf32>
    %225 = arith.extui %224 : vector<8x128xi1> to vector<8x128xi32>
    %226 = arith.sitofp %225 : vector<8x128xi32> to vector<8x128xf32>
    %227 = arith.truncf %226 : vector<8x128xf32> to vector<8x128xbf16>
    %c0_144 = arith.constant 0 : index
    %c0_145 = arith.constant 0 : index
    %228 = vector.load %arg11[%c0_144, %c0_145] : memref<128x128xbf16, #tpu.memory_space<vmem>>, vector<128x128xbf16>
    %cst_146 = arith.constant dense<0.000000e+00> : vector<8x128xf32>
    %229 = tpu.matmul %227, %228, %cst_146 {dimension_numbers = #tpu.dot_dimension_numbers<[1], [0], [0], [1], [0, 0, 1, 1], [], []>} : vector<8x128xbf16>, vector<128x128xbf16>, vector<8x128xf32> -> vector<8x128xf32>
    %c0_147 = arith.constant 0 : index
    %c0_148 = arith.constant 0 : index
    %230 = vector.load %arg12[%c0_147, %c0_148] : memref<1x128xf32, #tpu.memory_space<vmem>>, vector<1x128xf32>
    %231 = vector.broadcast %230 : vector<1x128xf32> to vector<8x128xf32>
    %232 = arith.addf %229, %231 : vector<8x128xf32>
    %c0_149 = arith.constant 0 : index
    %c0_150 = arith.constant 0 : index
    %233 = vector.load %arg20[%c0_149, %c0_150] : memref<8x128xf32, #tpu.memory_space<vmem>>, vector<8x128xf32>
    %cst_151 = arith.constant 5.000000e-01 : f32
    %234 = vector.broadcast %cst_151 : f32 to vector<8x128xf32>
    %235 = arith.cmpf ogt, %233, %234 : vector<8x128xf32>
    %236 = arith.extui %235 : vector<8x128xi1> to vector<8x128xi32>
    %237 = arith.sitofp %236 : vector<8x128xi32> to vector<8x128xf32>
    %cst_152 = arith.constant 8.000000e-01 : f32
    %238 = vector.broadcast %cst_152 : f32 to vector<8x128xf32>
    %239 = arith.mulf %238, %233 : vector<8x128xf32>
    %240 = arith.addf %239, %232 : vector<8x128xf32>
    %cst_153 = arith.constant 5.000000e-01 : f32
    %241 = vector.broadcast %cst_153 : f32 to vector<8x128xf32>
    %242 = arith.mulf %237, %241 : vector<8x128xf32>
    %243 = arith.subf %240, %242 : vector<8x128xf32>
    %c0_154 = arith.constant 0 : index
    %c0_155 = arith.constant 0 : index
    %244 = vector.load %arg20[%c0_154, %c0_155] : memref<8x128xf32, #tpu.memory_space<vmem>>, vector<8x128xf32>
    tpu.vector_store %arg20[%c0_154, %c0_155], %243 {strides = array<i32>} : memref<8x128xf32, #tpu.memory_space<vmem>>, vector<8x128xf32>,
    %cst_156 = arith.constant 5.000000e-01 : f32
    %245 = vector.broadcast %cst_156 : f32 to vector<8x128xf32>
    %246 = arith.cmpf ogt, %243, %245 : vector<8x128xf32>
    %247 = arith.extui %246 : vector<8x128xi1> to vector<8x128xi32>
    %248 = arith.sitofp %247 : vector<8x128xi32> to vector<8x128xf32>
    %c0_157 = arith.constant 0 : index
    %c0_158 = arith.constant 0 : index
    %249 = vector.load %arg21[%c0_157, %c0_158] : memref<8x128xf32, #tpu.memory_space<vmem>>, vector<8x128xf32>
    %250 = arith.addf %249, %248 : vector<8x128xf32>
    %c0_159 = arith.constant 0 : index
    %c0_160 = arith.constant 0 : index
    %251 = vector.load %arg21[%c0_159, %c0_160] : memref<8x128xf32, #tpu.memory_space<vmem>>, vector<8x128xf32>
    tpu.vector_store %arg21[%c0_159, %c0_160], %250 {strides = array<i32>} : memref<8x128xf32, #tpu.memory_space<vmem>>, vector<8x128xf32>,
    %252 = vector.broadcast %8 : vector<8x1xf32> to vector<8x128xf32>
    %253 = arith.mulf %248, %252 : vector<8x128xf32>
    %cst_161 = arith.constant dense<0.000000e+00> : vector<128xf32>
    %254 = vector.multi_reduction <add>, %253, %cst_161 [0] : vector<8x128xf32> to vector<128xf32>
    %255 = vector.shape_cast %254 : vector<128xf32> to vector<1x128xf32>
    %cst_162 = arith.constant dense<0.000000e+00> : vector<1xf32>
    %256 = vector.multi_reduction <add>, %255, %cst_162 [1] : vector<1x128xf32> to vector<1xf32>
    %257 = vector.shape_cast %256 : vector<1xf32> to vector<1x1xf32>
    %cst_163 = arith.constant 0.0454545468 : f32
    %258 = vector.broadcast %cst_163 : f32 to vector<1x1xf32>
    %259 = arith.mulf %257, %258 : vector<1x1xf32>
    %c0_164 = arith.constant 0 : index
    %c0_165 = arith.constant 0 : index
    %260 = vector.load %arg15[%c0_164, %c0_165] : memref<8x128xf32, #tpu.memory_space<vmem>>, vector<8x128xf32>
    %c0_166 = arith.constant 0 : index
    %c0_167 = arith.constant 0 : index
    %261 = vector.load %arg16[%c0_166, %c0_167] : memref<8x128xf32, #tpu.memory_space<vmem>>, vector<8x128xf32>
    %cst_168 = arith.constant 5.000000e-01 : f32
    %262 = vector.broadcast %cst_168 : f32 to vector<8x128xf32>
    %263 = arith.cmpf ogt, %261, %262 : vector<8x128xf32>
    %264 = arith.extui %263 : vector<8x128xi1> to vector<8x128xi32>
    %265 = arith.sitofp %264 : vector<8x128xi32> to vector<8x128xf32>
    %cst_169 = arith.constant 8.000000e-01 : f32
    %266 = vector.broadcast %cst_169 : f32 to vector<8x128xf32>
    %267 = arith.mulf %266, %261 : vector<8x128xf32>
    %268 = arith.addf %267, %260 : vector<8x128xf32>
    %cst_170 = arith.constant 5.000000e-01 : f32
    %269 = vector.broadcast %cst_170 : f32 to vector<8x128xf32>
    %270 = arith.mulf %265, %269 : vector<8x128xf32>
    %271 = arith.subf %268, %270 : vector<8x128xf32>
    %c0_171 = arith.constant 0 : index
    %c0_172 = arith.constant 0 : index
    %272 = vector.load %arg16[%c0_171, %c0_172] : memref<8x128xf32, #tpu.memory_space<vmem>>, vector<8x128xf32>
    tpu.vector_store %arg16[%c0_171, %c0_172], %271 {strides = array<i32>} : memref<8x128xf32, #tpu.memory_space<vmem>>, vector<8x128xf32>,
    %cst_173 = arith.constant 5.000000e-01 : f32
    %273 = vector.broadcast %cst_173 : f32 to vector<8x128xf32>
    %274 = arith.cmpf ogt, %271, %273 : vector<8x128xf32>
    %275 = arith.extui %274 : vector<8x128xi1> to vector<8x128xi32>
    %276 = arith.sitofp %275 : vector<8x128xi32> to vector<8x128xf32>
    %277 = arith.truncf %276 : vector<8x128xf32> to vector<8x128xbf16>
    %c0_174 = arith.constant 0 : index
    %c0_175 = arith.constant 0 : index
    %278 = vector.load %arg5[%c0_174, %c0_175] : memref<128x128xbf16, #tpu.memory_space<vmem>>, vector<128x128xbf16>
    %cst_176 = arith.constant dense<0.000000e+00> : vector<8x128xf32>
    %279 = tpu.matmul %277, %278, %cst_176 {dimension_numbers = #tpu.dot_dimension_numbers<[1], [0], [0], [1], [0, 0, 1, 1], [], []>} : vector<8x128xbf16>, vector<128x128xbf16>, vector<8x128xf32> -> vector<8x128xf32>
    %c0_177 = arith.constant 0 : index
    %c0_178 = arith.constant 0 : index
    %280 = vector.load %arg6[%c0_177, %c0_178] : memref<1x128xf32, #tpu.memory_space<vmem>>, vector<1x128xf32>
    %281 = vector.broadcast %280 : vector<1x128xf32> to vector<8x128xf32>
    %282 = arith.addf %279, %281 : vector<8x128xf32>
    %c0_179 = arith.constant 0 : index
    %c0_180 = arith.constant 0 : index
    %283 = vector.load %arg17[%c0_179, %c0_180] : memref<8x128xf32, #tpu.memory_space<vmem>>, vector<8x128xf32>
    %cst_181 = arith.constant 5.000000e-01 : f32
    %284 = vector.broadcast %cst_181 : f32 to vector<8x128xf32>
    %285 = arith.cmpf ogt, %283, %284 : vector<8x128xf32>
    %286 = arith.extui %285 : vector<8x128xi1> to vector<8x128xi32>
    %287 = arith.sitofp %286 : vector<8x128xi32> to vector<8x128xf32>
    %cst_182 = arith.constant 8.000000e-01 : f32
    %288 = vector.broadcast %cst_182 : f32 to vector<8x128xf32>
    %289 = arith.mulf %288, %283 : vector<8x128xf32>
    %290 = arith.addf %289, %282 : vector<8x128xf32>
    %cst_183 = arith.constant 5.000000e-01 : f32
    %291 = vector.broadcast %cst_183 : f32 to vector<8x128xf32>
    %292 = arith.mulf %287, %291 : vector<8x128xf32>
    %293 = arith.subf %290, %292 : vector<8x128xf32>
    %c0_184 = arith.constant 0 : index
    %c0_185 = arith.constant 0 : index
    %294 = vector.load %arg17[%c0_184, %c0_185] : memref<8x128xf32, #tpu.memory_space<vmem>>, vector<8x128xf32>
    tpu.vector_store %arg17[%c0_184, %c0_185], %293 {strides = array<i32>} : memref<8x128xf32, #tpu.memory_space<vmem>>, vector<8x128xf32>,
    %cst_186 = arith.constant 5.000000e-01 : f32
    %295 = vector.broadcast %cst_186 : f32 to vector<8x128xf32>
    %296 = arith.cmpf ogt, %293, %295 : vector<8x128xf32>
    %297 = arith.extui %296 : vector<8x128xi1> to vector<8x128xi32>
    %298 = arith.sitofp %297 : vector<8x128xi32> to vector<8x128xf32>
    %299 = arith.truncf %298 : vector<8x128xf32> to vector<8x128xbf16>
    %c0_187 = arith.constant 0 : index
    %c0_188 = arith.constant 0 : index
    %300 = vector.load %arg7[%c0_187, %c0_188] : memref<128x128xbf16, #tpu.memory_space<vmem>>, vector<128x128xbf16>
    %cst_189 = arith.constant dense<0.000000e+00> : vector<8x128xf32>
    %301 = tpu.matmul %299, %300, %cst_189 {dimension_numbers = #tpu.dot_dimension_numbers<[1], [0], [0], [1], [0, 0, 1, 1], [], []>} : vector<8x128xbf16>, vector<128x128xbf16>, vector<8x128xf32> -> vector<8x128xf32>
    %c0_190 = arith.constant 0 : index
    %c0_191 = arith.constant 0 : index
    %302 = vector.load %arg8[%c0_190, %c0_191] : memref<1x128xf32, #tpu.memory_space<vmem>>, vector<1x128xf32>
    %303 = vector.broadcast %302 : vector<1x128xf32> to vector<8x128xf32>
    %304 = arith.addf %301, %303 : vector<8x128xf32>
    %c0_192 = arith.constant 0 : index
    %c0_193 = arith.constant 0 : index
    %305 = vector.load %arg18[%c0_192, %c0_193] : memref<8x128xf32, #tpu.memory_space<vmem>>, vector<8x128xf32>
    %cst_194 = arith.constant 5.000000e-01 : f32
    %306 = vector.broadcast %cst_194 : f32 to vector<8x128xf32>
    %307 = arith.cmpf ogt, %305, %306 : vector<8x128xf32>
    %308 = arith.extui %307 : vector<8x128xi1> to vector<8x128xi32>
    %309 = arith.sitofp %308 : vector<8x128xi32> to vector<8x128xf32>
    %cst_195 = arith.constant 8.000000e-01 : f32
    %310 = vector.broadcast %cst_195 : f32 to vector<8x128xf32>
    %311 = arith.mulf %310, %305 : vector<8x128xf32>
    %312 = arith.addf %311, %304 : vector<8x128xf32>
    %cst_196 = arith.constant 5.000000e-01 : f32
    %313 = vector.broadcast %cst_196 : f32 to vector<8x128xf32>
    %314 = arith.mulf %309, %313 : vector<8x128xf32>
    %315 = arith.subf %312, %314 : vector<8x128xf32>
    %c0_197 = arith.constant 0 : index
    %c0_198 = arith.constant 0 : index
    %316 = vector.load %arg18[%c0_197, %c0_198] : memref<8x128xf32, #tpu.memory_space<vmem>>, vector<8x128xf32>
    tpu.vector_store %arg18[%c0_197, %c0_198], %315 {strides = array<i32>} : memref<8x128xf32, #tpu.memory_space<vmem>>, vector<8x128xf32>,
    %cst_199 = arith.constant 5.000000e-01 : f32
    %317 = vector.broadcast %cst_199 : f32 to vector<8x128xf32>
    %318 = arith.cmpf ogt, %315, %317 : vector<8x128xf32>
    %319 = arith.extui %318 : vector<8x128xi1> to vector<8x128xi32>
    %320 = arith.sitofp %319 : vector<8x128xi32> to vector<8x128xf32>
    %321 = arith.truncf %320 : vector<8x128xf32> to vector<8x128xbf16>
    %c0_200 = arith.constant 0 : index
    %c0_201 = arith.constant 0 : index
    %322 = vector.load %arg9[%c0_200, %c0_201] : memref<128x128xbf16, #tpu.memory_space<vmem>>, vector<128x128xbf16>
    %cst_202 = arith.constant dense<0.000000e+00> : vector<8x128xf32>
    %323 = tpu.matmul %321, %322, %cst_202 {dimension_numbers = #tpu.dot_dimension_numbers<[1], [0], [0], [1], [0, 0, 1, 1], [], []>} : vector<8x128xbf16>, vector<128x128xbf16>, vector<8x128xf32> -> vector<8x128xf32>
    %c0_203 = arith.constant 0 : index
    %c0_204 = arith.constant 0 : index
    %324 = vector.load %arg10[%c0_203, %c0_204] : memref<1x128xf32, #tpu.memory_space<vmem>>, vector<1x128xf32>
    %325 = vector.broadcast %324 : vector<1x128xf32> to vector<8x128xf32>
    %326 = arith.addf %323, %325 : vector<8x128xf32>
    %c0_205 = arith.constant 0 : index
    %c0_206 = arith.constant 0 : index
    %327 = vector.load %arg19[%c0_205, %c0_206] : memref<8x128xf32, #tpu.memory_space<vmem>>, vector<8x128xf32>
    %cst_207 = arith.constant 5.000000e-01 : f32
    %328 = vector.broadcast %cst_207 : f32 to vector<8x128xf32>
    %329 = arith.cmpf ogt, %327, %328 : vector<8x128xf32>
    %330 = arith.extui %329 : vector<8x128xi1> to vector<8x128xi32>
    %331 = arith.sitofp %330 : vector<8x128xi32> to vector<8x128xf32>
    %cst_208 = arith.constant 8.000000e-01 : f32
    %332 = vector.broadcast %cst_208 : f32 to vector<8x128xf32>
    %333 = arith.mulf %332, %327 : vector<8x128xf32>
    %334 = arith.addf %333, %326 : vector<8x128xf32>
    %cst_209 = arith.constant 5.000000e-01 : f32
    %335 = vector.broadcast %cst_209 : f32 to vector<8x128xf32>
    %336 = arith.mulf %331, %335 : vector<8x128xf32>
    %337 = arith.subf %334, %336 : vector<8x128xf32>
    %c0_210 = arith.constant 0 : index
    %c0_211 = arith.constant 0 : index
    %338 = vector.load %arg19[%c0_210, %c0_211] : memref<8x128xf32, #tpu.memory_space<vmem>>, vector<8x128xf32>
    tpu.vector_store %arg19[%c0_210, %c0_211], %337 {strides = array<i32>} : memref<8x128xf32, #tpu.memory_space<vmem>>, vector<8x128xf32>,
    %cst_212 = arith.constant 5.000000e-01 : f32
    %339 = vector.broadcast %cst_212 : f32 to vector<8x128xf32>
    %340 = arith.cmpf ogt, %337, %339 : vector<8x128xf32>
    %341 = arith.extui %340 : vector<8x128xi1> to vector<8x128xi32>
    %342 = arith.sitofp %341 : vector<8x128xi32> to vector<8x128xf32>
    %343 = arith.truncf %342 : vector<8x128xf32> to vector<8x128xbf16>
    %c0_213 = arith.constant 0 : index
    %c0_214 = arith.constant 0 : index
    %344 = vector.load %arg11[%c0_213, %c0_214] : memref<128x128xbf16, #tpu.memory_space<vmem>>, vector<128x128xbf16>
    %cst_215 = arith.constant dense<0.000000e+00> : vector<8x128xf32>
    %345 = tpu.matmul %343, %344, %cst_215 {dimension_numbers = #tpu.dot_dimension_numbers<[1], [0], [0], [1], [0, 0, 1, 1], [], []>} : vector<8x128xbf16>, vector<128x128xbf16>, vector<8x128xf32> -> vector<8x128xf32>
    %c0_216 = arith.constant 0 : index
    %c0_217 = arith.constant 0 : index
    %346 = vector.load %arg12[%c0_216, %c0_217] : memref<1x128xf32, #tpu.memory_space<vmem>>, vector<1x128xf32>
    %347 = vector.broadcast %346 : vector<1x128xf32> to vector<8x128xf32>
    %348 = arith.addf %345, %347 : vector<8x128xf32>
    %c0_218 = arith.constant 0 : index
    %c0_219 = arith.constant 0 : index
    %349 = vector.load %arg20[%c0_218, %c0_219] : memref<8x128xf32, #tpu.memory_space<vmem>>, vector<8x128xf32>
    %cst_220 = arith.constant 5.000000e-01 : f32
    %350 = vector.broadcast %cst_220 : f32 to vector<8x128xf32>
    %351 = arith.cmpf ogt, %349, %350 : vector<8x128xf32>
    %352 = arith.extui %351 : vector<8x128xi1> to vector<8x128xi32>
    %353 = arith.sitofp %352 : vector<8x128xi32> to vector<8x128xf32>
    %cst_221 = arith.constant 8.000000e-01 : f32
    %354 = vector.broadcast %cst_221 : f32 to vector<8x128xf32>
    %355 = arith.mulf %354, %349 : vector<8x128xf32>
    %356 = arith.addf %355, %348 : vector<8x128xf32>
    %cst_222 = arith.constant 5.000000e-01 : f32
    %357 = vector.broadcast %cst_222 : f32 to vector<8x128xf32>
    %358 = arith.mulf %353, %357 : vector<8x128xf32>
    %359 = arith.subf %356, %358 : vector<8x128xf32>
    %c0_223 = arith.constant 0 : index
    %c0_224 = arith.constant 0 : index
    %360 = vector.load %arg20[%c0_223, %c0_224] : memref<8x128xf32, #tpu.memory_space<vmem>>, vector<8x128xf32>
    tpu.vector_store %arg20[%c0_223, %c0_224], %359 {strides = array<i32>} : memref<8x128xf32, #tpu.memory_space<vmem>>, vector<8x128xf32>,
    %cst_225 = arith.constant 5.000000e-01 : f32
    %361 = vector.broadcast %cst_225 : f32 to vector<8x128xf32>
    %362 = arith.cmpf ogt, %359, %361 : vector<8x128xf32>
    %363 = arith.extui %362 : vector<8x128xi1> to vector<8x128xi32>
    %364 = arith.sitofp %363 : vector<8x128xi32> to vector<8x128xf32>
    %c0_226 = arith.constant 0 : index
    %c0_227 = arith.constant 0 : index
    %365 = vector.load %arg21[%c0_226, %c0_227] : memref<8x128xf32, #tpu.memory_space<vmem>>, vector<8x128xf32>
    %366 = arith.addf %365, %364 : vector<8x128xf32>
    %c0_228 = arith.constant 0 : index
    %c0_229 = arith.constant 0 : index
    %367 = vector.load %arg21[%c0_228, %c0_229] : memref<8x128xf32, #tpu.memory_space<vmem>>, vector<8x128xf32>
    tpu.vector_store %arg21[%c0_228, %c0_229], %366 {strides = array<i32>} : memref<8x128xf32, #tpu.memory_space<vmem>>, vector<8x128xf32>,
    %368 = vector.broadcast %8 : vector<8x1xf32> to vector<8x128xf32>
    %369 = arith.mulf %364, %368 : vector<8x128xf32>
    %cst_230 = arith.constant dense<0.000000e+00> : vector<128xf32>
    %370 = vector.multi_reduction <add>, %369, %cst_230 [0] : vector<8x128xf32> to vector<128xf32>
    %371 = vector.shape_cast %370 : vector<128xf32> to vector<1x128xf32>
    %cst_231 = arith.constant dense<0.000000e+00> : vector<1xf32>
    %372 = vector.multi_reduction <add>, %371, %cst_231 [1] : vector<1x128xf32> to vector<1xf32>
    %373 = vector.shape_cast %372 : vector<1xf32> to vector<1x1xf32>
    %cst_232 = arith.constant 0.0454545468 : f32
    %374 = vector.broadcast %cst_232 : f32 to vector<1x1xf32>
    %375 = arith.mulf %373, %374 : vector<1x1xf32>
    %c0_233 = arith.constant 0 : index
    %c0_234 = arith.constant 0 : index
    %376 = vector.load %arg15[%c0_233, %c0_234] : memref<8x128xf32, #tpu.memory_space<vmem>>, vector<8x128xf32>
    %c0_235 = arith.constant 0 : index
    %c0_236 = arith.constant 0 : index
    %377 = vector.load %arg16[%c0_235, %c0_236] : memref<8x128xf32, #tpu.memory_space<vmem>>, vector<8x128xf32>
    %cst_237 = arith.constant 5.000000e-01 : f32
    %378 = vector.broadcast %cst_237 : f32 to vector<8x128xf32>
    %379 = arith.cmpf ogt, %377, %378 : vector<8x128xf32>
    %380 = arith.extui %379 : vector<8x128xi1> to vector<8x128xi32>
    %381 = arith.sitofp %380 : vector<8x128xi32> to vector<8x128xf32>
    %cst_238 = arith.constant 8.000000e-01 : f32
    %382 = vector.broadcast %cst_238 : f32 to vector<8x128xf32>
    %383 = arith.mulf %382, %377 : vector<8x128xf32>
    %384 = arith.addf %383, %376 : vector<8x128xf32>
    %cst_239 = arith.constant 5.000000e-01 : f32
    %385 = vector.broadcast %cst_239 : f32 to vector<8x128xf32>
    %386 = arith.mulf %381, %385 : vector<8x128xf32>
    %387 = arith.subf %384, %386 : vector<8x128xf32>
    %c0_240 = arith.constant 0 : index
    %c0_241 = arith.constant 0 : index
    %388 = vector.load %arg16[%c0_240, %c0_241] : memref<8x128xf32, #tpu.memory_space<vmem>>, vector<8x128xf32>
    tpu.vector_store %arg16[%c0_240, %c0_241], %387 {strides = array<i32>} : memref<8x128xf32, #tpu.memory_space<vmem>>, vector<8x128xf32>,
    %cst_242 = arith.constant 5.000000e-01 : f32
    %389 = vector.broadcast %cst_242 : f32 to vector<8x128xf32>
    %390 = arith.cmpf ogt, %387, %389 : vector<8x128xf32>
    %391 = arith.extui %390 : vector<8x128xi1> to vector<8x128xi32>
    %392 = arith.sitofp %391 : vector<8x128xi32> to vector<8x128xf32>
    %393 = arith.truncf %392 : vector<8x128xf32> to vector<8x128xbf16>
    %c0_243 = arith.constant 0 : index
    %c0_244 = arith.constant 0 : index
    %394 = vector.load %arg5[%c0_243, %c0_244] : memref<128x128xbf16, #tpu.memory_space<vmem>>, vector<128x128xbf16>
    %cst_245 = arith.constant dense<0.000000e+00> : vector<8x128xf32>
    %395 = tpu.matmul %393, %394, %cst_245 {dimension_numbers = #tpu.dot_dimension_numbers<[1], [0], [0], [1], [0, 0, 1, 1], [], []>} : vector<8x128xbf16>, vector<128x128xbf16>, vector<8x128xf32> -> vector<8x128xf32>
    %c0_246 = arith.constant 0 : index
    %c0_247 = arith.constant 0 : index
    %396 = vector.load %arg6[%c0_246, %c0_247] : memref<1x128xf32, #tpu.memory_space<vmem>>, vector<1x128xf32>
    %397 = vector.broadcast %396 : vector<1x128xf32> to vector<8x128xf32>
    %398 = arith.addf %395, %397 : vector<8x128xf32>
    %c0_248 = arith.constant 0 : index
    %c0_249 = arith.constant 0 : index
    %399 = vector.load %arg17[%c0_248, %c0_249] : memref<8x128xf32, #tpu.memory_space<vmem>>, vector<8x128xf32>
    %cst_250 = arith.constant 5.000000e-01 : f32
    %400 = vector.broadcast %cst_250 : f32 to vector<8x128xf32>
    %401 = arith.cmpf ogt, %399, %400 : vector<8x128xf32>
    %402 = arith.extui %401 : vector<8x128xi1> to vector<8x128xi32>
    %403 = arith.sitofp %402 : vector<8x128xi32> to vector<8x128xf32>
    %cst_251 = arith.constant 8.000000e-01 : f32
    %404 = vector.broadcast %cst_251 : f32 to vector<8x128xf32>
    %405 = arith.mulf %404, %399 : vector<8x128xf32>
    %406 = arith.addf %405, %398 : vector<8x128xf32>
    %cst_252 = arith.constant 5.000000e-01 : f32
    %407 = vector.broadcast %cst_252 : f32 to vector<8x128xf32>
    %408 = arith.mulf %403, %407 : vector<8x128xf32>
    %409 = arith.subf %406, %408 : vector<8x128xf32>
    %c0_253 = arith.constant 0 : index
    %c0_254 = arith.constant 0 : index
    %410 = vector.load %arg17[%c0_253, %c0_254] : memref<8x128xf32, #tpu.memory_space<vmem>>, vector<8x128xf32>
    tpu.vector_store %arg17[%c0_253, %c0_254], %409 {strides = array<i32>} : memref<8x128xf32, #tpu.memory_space<vmem>>, vector<8x128xf32>,
    %cst_255 = arith.constant 5.000000e-01 : f32
    %411 = vector.broadcast %cst_255 : f32 to vector<8x128xf32>
    %412 = arith.cmpf ogt, %409, %411 : vector<8x128xf32>
    %413 = arith.extui %412 : vector<8x128xi1> to vector<8x128xi32>
    %414 = arith.sitofp %413 : vector<8x128xi32> to vector<8x128xf32>
    %415 = arith.truncf %414 : vector<8x128xf32> to vector<8x128xbf16>
    %c0_256 = arith.constant 0 : index
    %c0_257 = arith.constant 0 : index
    %416 = vector.load %arg7[%c0_256, %c0_257] : memref<128x128xbf16, #tpu.memory_space<vmem>>, vector<128x128xbf16>
    %cst_258 = arith.constant dense<0.000000e+00> : vector<8x128xf32>
    %417 = tpu.matmul %415, %416, %cst_258 {dimension_numbers = #tpu.dot_dimension_numbers<[1], [0], [0], [1], [0, 0, 1, 1], [], []>} : vector<8x128xbf16>, vector<128x128xbf16>, vector<8x128xf32> -> vector<8x128xf32>
    %c0_259 = arith.constant 0 : index
    %c0_260 = arith.constant 0 : index
    %418 = vector.load %arg8[%c0_259, %c0_260] : memref<1x128xf32, #tpu.memory_space<vmem>>, vector<1x128xf32>
    %419 = vector.broadcast %418 : vector<1x128xf32> to vector<8x128xf32>
    %420 = arith.addf %417, %419 : vector<8x128xf32>
    %c0_261 = arith.constant 0 : index
    %c0_262 = arith.constant 0 : index
    %421 = vector.load %arg18[%c0_261, %c0_262] : memref<8x128xf32, #tpu.memory_space<vmem>>, vector<8x128xf32>
    %cst_263 = arith.constant 5.000000e-01 : f32
    %422 = vector.broadcast %cst_263 : f32 to vector<8x128xf32>
    %423 = arith.cmpf ogt, %421, %422 : vector<8x128xf32>
    %424 = arith.extui %423 : vector<8x128xi1> to vector<8x128xi32>
    %425 = arith.sitofp %424 : vector<8x128xi32> to vector<8x128xf32>
    %cst_264 = arith.constant 8.000000e-01 : f32
    %426 = vector.broadcast %cst_264 : f32 to vector<8x128xf32>
    %427 = arith.mulf %426, %421 : vector<8x128xf32>
    %428 = arith.addf %427, %420 : vector<8x128xf32>
    %cst_265 = arith.constant 5.000000e-01 : f32
    %429 = vector.broadcast %cst_265 : f32 to vector<8x128xf32>
    %430 = arith.mulf %425, %429 : vector<8x128xf32>
    %431 = arith.subf %428, %430 : vector<8x128xf32>
    %c0_266 = arith.constant 0 : index
    %c0_267 = arith.constant 0 : index
    %432 = vector.load %arg18[%c0_266, %c0_267] : memref<8x128xf32, #tpu.memory_space<vmem>>, vector<8x128xf32>
    tpu.vector_store %arg18[%c0_266, %c0_267], %431 {strides = array<i32>} : memref<8x128xf32, #tpu.memory_space<vmem>>, vector<8x128xf32>,
    %cst_268 = arith.constant 5.000000e-01 : f32
    %433 = vector.broadcast %cst_268 : f32 to vector<8x128xf32>
    %434 = arith.cmpf ogt, %431, %433 : vector<8x128xf32>
    %435 = arith.extui %434 : vector<8x128xi1> to vector<8x128xi32>
    %436 = arith.sitofp %435 : vector<8x128xi32> to vector<8x128xf32>
    %437 = arith.truncf %436 : vector<8x128xf32> to vector<8x128xbf16>
    %c0_269 = arith.constant 0 : index
    %c0_270 = arith.constant 0 : index
    %438 = vector.load %arg9[%c0_269, %c0_270] : memref<128x128xbf16, #tpu.memory_space<vmem>>, vector<128x128xbf16>
    %cst_271 = arith.constant dense<0.000000e+00> : vector<8x128xf32>
    %439 = tpu.matmul %437, %438, %cst_271 {dimension_numbers = #tpu.dot_dimension_numbers<[1], [0], [0], [1], [0, 0, 1, 1], [], []>} : vector<8x128xbf16>, vector<128x128xbf16>, vector<8x128xf32> -> vector<8x128xf32>
    %c0_272 = arith.constant 0 : index
    %c0_273 = arith.constant 0 : index
    %440 = vector.load %arg10[%c0_272, %c0_273] : memref<1x128xf32, #tpu.memory_space<vmem>>, vector<1x128xf32>
    %441 = vector.broadcast %440 : vector<1x128xf32> to vector<8x128xf32>
    %442 = arith.addf %439, %441 : vector<8x128xf32>
    %c0_274 = arith.constant 0 : index
    %c0_275 = arith.constant 0 : index
    %443 = vector.load %arg19[%c0_274, %c0_275] : memref<8x128xf32, #tpu.memory_space<vmem>>, vector<8x128xf32>
    %cst_276 = arith.constant 5.000000e-01 : f32
    %444 = vector.broadcast %cst_276 : f32 to vector<8x128xf32>
    %445 = arith.cmpf ogt, %443, %444 : vector<8x128xf32>
    %446 = arith.extui %445 : vector<8x128xi1> to vector<8x128xi32>
    %447 = arith.sitofp %446 : vector<8x128xi32> to vector<8x128xf32>
    %cst_277 = arith.constant 8.000000e-01 : f32
    %448 = vector.broadcast %cst_277 : f32 to vector<8x128xf32>
    %449 = arith.mulf %448, %443 : vector<8x128xf32>
    %450 = arith.addf %449, %442 : vector<8x128xf32>
    %cst_278 = arith.constant 5.000000e-01 : f32
    %451 = vector.broadcast %cst_278 : f32 to vector<8x128xf32>
    %452 = arith.mulf %447, %451 : vector<8x128xf32>
    %453 = arith.subf %450, %452 : vector<8x128xf32>
    %c0_279 = arith.constant 0 : index
    %c0_280 = arith.constant 0 : index
    %454 = vector.load %arg19[%c0_279, %c0_280] : memref<8x128xf32, #tpu.memory_space<vmem>>, vector<8x128xf32>
    tpu.vector_store %arg19[%c0_279, %c0_280], %453 {strides = array<i32>} : memref<8x128xf32, #tpu.memory_space<vmem>>, vector<8x128xf32>,
    %cst_281 = arith.constant 5.000000e-01 : f32
    %455 = vector.broadcast %cst_281 : f32 to vector<8x128xf32>
    %456 = arith.cmpf ogt, %453, %455 : vector<8x128xf32>
    %457 = arith.extui %456 : vector<8x128xi1> to vector<8x128xi32>
    %458 = arith.sitofp %457 : vector<8x128xi32> to vector<8x128xf32>
    %459 = arith.truncf %458 : vector<8x128xf32> to vector<8x128xbf16>
    %c0_282 = arith.constant 0 : index
    %c0_283 = arith.constant 0 : index
    %460 = vector.load %arg11[%c0_282, %c0_283] : memref<128x128xbf16, #tpu.memory_space<vmem>>, vector<128x128xbf16>
    %cst_284 = arith.constant dense<0.000000e+00> : vector<8x128xf32>
    %461 = tpu.matmul %459, %460, %cst_284 {dimension_numbers = #tpu.dot_dimension_numbers<[1], [0], [0], [1], [0, 0, 1, 1], [], []>} : vector<8x128xbf16>, vector<128x128xbf16>, vector<8x128xf32> -> vector<8x128xf32>
    %c0_285 = arith.constant 0 : index
    %c0_286 = arith.constant 0 : index
    %462 = vector.load %arg12[%c0_285, %c0_286] : memref<1x128xf32, #tpu.memory_space<vmem>>, vector<1x128xf32>
    %463 = vector.broadcast %462 : vector<1x128xf32> to vector<8x128xf32>
    %464 = arith.addf %461, %463 : vector<8x128xf32>
    %c0_287 = arith.constant 0 : index
    %c0_288 = arith.constant 0 : index
    %465 = vector.load %arg20[%c0_287, %c0_288] : memref<8x128xf32, #tpu.memory_space<vmem>>, vector<8x128xf32>
    %cst_289 = arith.constant 5.000000e-01 : f32
    %466 = vector.broadcast %cst_289 : f32 to vector<8x128xf32>
    %467 = arith.cmpf ogt, %465, %466 : vector<8x128xf32>
    %468 = arith.extui %467 : vector<8x128xi1> to vector<8x128xi32>
    %469 = arith.sitofp %468 : vector<8x128xi32> to vector<8x128xf32>
    %cst_290 = arith.constant 8.000000e-01 : f32
    %470 = vector.broadcast %cst_290 : f32 to vector<8x128xf32>
    %471 = arith.mulf %470, %465 : vector<8x128xf32>
    %472 = arith.addf %471, %464 : vector<8x128xf32>
    %cst_291 = arith.constant 5.000000e-01 : f32
    %473 = vector.broadcast %cst_291 : f32 to vector<8x128xf32>
    %474 = arith.mulf %469, %473 : vector<8x128xf32>
    %475 = arith.subf %472, %474 : vector<8x128xf32>
    %c0_292 = arith.constant 0 : index
    %c0_293 = arith.constant 0 : index
    %476 = vector.load %arg20[%c0_292, %c0_293] : memref<8x128xf32, #tpu.memory_space<vmem>>, vector<8x128xf32>
    tpu.vector_store %arg20[%c0_292, %c0_293], %475 {strides = array<i32>} : memref<8x128xf32, #tpu.memory_space<vmem>>, vector<8x128xf32>,
    %cst_294 = arith.constant 5.000000e-01 : f32
    %477 = vector.broadcast %cst_294 : f32 to vector<8x128xf32>
    %478 = arith.cmpf ogt, %475, %477 : vector<8x128xf32>
    %479 = arith.extui %478 : vector<8x128xi1> to vector<8x128xi32>
    %480 = arith.sitofp %479 : vector<8x128xi32> to vector<8x128xf32>
    %c0_295 = arith.constant 0 : index
    %c0_296 = arith.constant 0 : index
    %481 = vector.load %arg21[%c0_295, %c0_296] : memref<8x128xf32, #tpu.memory_space<vmem>>, vector<8x128xf32>
    %482 = arith.addf %481, %480 : vector<8x128xf32>
    %c0_297 = arith.constant 0 : index
    %c0_298 = arith.constant 0 : index
    %483 = vector.load %arg21[%c0_297, %c0_298] : memref<8x128xf32, #tpu.memory_space<vmem>>, vector<8x128xf32>
    tpu.vector_store %arg21[%c0_297, %c0_298], %482 {strides = array<i32>} : memref<8x128xf32, #tpu.memory_space<vmem>>, vector<8x128xf32>,
    %484 = vector.broadcast %8 : vector<8x1xf32> to vector<8x128xf32>
    %485 = arith.mulf %480, %484 : vector<8x128xf32>
    %cst_299 = arith.constant dense<0.000000e+00> : vector<128xf32>
    %486 = vector.multi_reduction <add>, %485, %cst_299 [0] : vector<8x128xf32> to vector<128xf32>
    %487 = vector.shape_cast %486 : vector<128xf32> to vector<1x128xf32>
    %cst_300 = arith.constant dense<0.000000e+00> : vector<1xf32>
    %488 = vector.multi_reduction <add>, %487, %cst_300 [1] : vector<1x128xf32> to vector<1xf32>
    %489 = vector.shape_cast %488 : vector<1xf32> to vector<1x1xf32>
    %cst_301 = arith.constant 0.0454545468 : f32
    %490 = vector.broadcast %cst_301 : f32 to vector<1x1xf32>
    %491 = arith.mulf %489, %490 : vector<1x1xf32>
    %c0_302 = arith.constant 0 : index
    %c0_303 = arith.constant 0 : index
    %492 = vector.load %arg15[%c0_302, %c0_303] : memref<8x128xf32, #tpu.memory_space<vmem>>, vector<8x128xf32>
    %c0_304 = arith.constant 0 : index
    %c0_305 = arith.constant 0 : index
    %493 = vector.load %arg16[%c0_304, %c0_305] : memref<8x128xf32, #tpu.memory_space<vmem>>, vector<8x128xf32>
    %cst_306 = arith.constant 5.000000e-01 : f32
    %494 = vector.broadcast %cst_306 : f32 to vector<8x128xf32>
    %495 = arith.cmpf ogt, %493, %494 : vector<8x128xf32>
    %496 = arith.extui %495 : vector<8x128xi1> to vector<8x128xi32>
    %497 = arith.sitofp %496 : vector<8x128xi32> to vector<8x128xf32>
    %cst_307 = arith.constant 8.000000e-01 : f32
    %498 = vector.broadcast %cst_307 : f32 to vector<8x128xf32>
    %499 = arith.mulf %498, %493 : vector<8x128xf32>
    %500 = arith.addf %499, %492 : vector<8x128xf32>
    %cst_308 = arith.constant 5.000000e-01 : f32
    %501 = vector.broadcast %cst_308 : f32 to vector<8x128xf32>
    %502 = arith.mulf %497, %501 : vector<8x128xf32>
    %503 = arith.subf %500, %502 : vector<8x128xf32>
    %c0_309 = arith.constant 0 : index
    %c0_310 = arith.constant 0 : index
    %504 = vector.load %arg16[%c0_309, %c0_310] : memref<8x128xf32, #tpu.memory_space<vmem>>, vector<8x128xf32>
    tpu.vector_store %arg16[%c0_309, %c0_310], %503 {strides = array<i32>} : memref<8x128xf32, #tpu.memory_space<vmem>>, vector<8x128xf32>,
    %cst_311 = arith.constant 5.000000e-01 : f32
    %505 = vector.broadcast %cst_311 : f32 to vector<8x128xf32>
    %506 = arith.cmpf ogt, %503, %505 : vector<8x128xf32>
    %507 = arith.extui %506 : vector<8x128xi1> to vector<8x128xi32>
    %508 = arith.sitofp %507 : vector<8x128xi32> to vector<8x128xf32>
    %509 = arith.truncf %508 : vector<8x128xf32> to vector<8x128xbf16>
    %c0_312 = arith.constant 0 : index
    %c0_313 = arith.constant 0 : index
    %510 = vector.load %arg5[%c0_312, %c0_313] : memref<128x128xbf16, #tpu.memory_space<vmem>>, vector<128x128xbf16>
    %cst_314 = arith.constant dense<0.000000e+00> : vector<8x128xf32>
    %511 = tpu.matmul %509, %510, %cst_314 {dimension_numbers = #tpu.dot_dimension_numbers<[1], [0], [0], [1], [0, 0, 1, 1], [], []>} : vector<8x128xbf16>, vector<128x128xbf16>, vector<8x128xf32> -> vector<8x128xf32>
    %c0_315 = arith.constant 0 : index
    %c0_316 = arith.constant 0 : index
    %512 = vector.load %arg6[%c0_315, %c0_316] : memref<1x128xf32, #tpu.memory_space<vmem>>, vector<1x128xf32>
    %513 = vector.broadcast %512 : vector<1x128xf32> to vector<8x128xf32>
    %514 = arith.addf %511, %513 : vector<8x128xf32>
    %c0_317 = arith.constant 0 : index
    %c0_318 = arith.constant 0 : index
    %515 = vector.load %arg17[%c0_317, %c0_318] : memref<8x128xf32, #tpu.memory_space<vmem>>, vector<8x128xf32>
    %cst_319 = arith.constant 5.000000e-01 : f32
    %516 = vector.broadcast %cst_319 : f32 to vector<8x128xf32>
    %517 = arith.cmpf ogt, %515, %516 : vector<8x128xf32>
    %518 = arith.extui %517 : vector<8x128xi1> to vector<8x128xi32>
    %519 = arith.sitofp %518 : vector<8x128xi32> to vector<8x128xf32>
    %cst_320 = arith.constant 8.000000e-01 : f32
    %520 = vector.broadcast %cst_320 : f32 to vector<8x128xf32>
    %521 = arith.mulf %520, %515 : vector<8x128xf32>
    %522 = arith.addf %521, %514 : vector<8x128xf32>
    %cst_321 = arith.constant 5.000000e-01 : f32
    %523 = vector.broadcast %cst_321 : f32 to vector<8x128xf32>
    %524 = arith.mulf %519, %523 : vector<8x128xf32>
    %525 = arith.subf %522, %524 : vector<8x128xf32>
    %c0_322 = arith.constant 0 : index
    %c0_323 = arith.constant 0 : index
    %526 = vector.load %arg17[%c0_322, %c0_323] : memref<8x128xf32, #tpu.memory_space<vmem>>, vector<8x128xf32>
    tpu.vector_store %arg17[%c0_322, %c0_323], %525 {strides = array<i32>} : memref<8x128xf32, #tpu.memory_space<vmem>>, vector<8x128xf32>,
    %cst_324 = arith.constant 5.000000e-01 : f32
    %527 = vector.broadcast %cst_324 : f32 to vector<8x128xf32>
    %528 = arith.cmpf ogt, %525, %527 : vector<8x128xf32>
    %529 = arith.extui %528 : vector<8x128xi1> to vector<8x128xi32>
    %530 = arith.sitofp %529 : vector<8x128xi32> to vector<8x128xf32>
    %531 = arith.truncf %530 : vector<8x128xf32> to vector<8x128xbf16>
    %c0_325 = arith.constant 0 : index
    %c0_326 = arith.constant 0 : index
    %532 = vector.load %arg7[%c0_325, %c0_326] : memref<128x128xbf16, #tpu.memory_space<vmem>>, vector<128x128xbf16>
    %cst_327 = arith.constant dense<0.000000e+00> : vector<8x128xf32>
    %533 = tpu.matmul %531, %532, %cst_327 {dimension_numbers = #tpu.dot_dimension_numbers<[1], [0], [0], [1], [0, 0, 1, 1], [], []>} : vector<8x128xbf16>, vector<128x128xbf16>, vector<8x128xf32> -> vector<8x128xf32>
    %c0_328 = arith.constant 0 : index
    %c0_329 = arith.constant 0 : index
    %534 = vector.load %arg8[%c0_328, %c0_329] : memref<1x128xf32, #tpu.memory_space<vmem>>, vector<1x128xf32>
    %535 = vector.broadcast %534 : vector<1x128xf32> to vector<8x128xf32>
    %536 = arith.addf %533, %535 : vector<8x128xf32>
    %c0_330 = arith.constant 0 : index
    %c0_331 = arith.constant 0 : index
    %537 = vector.load %arg18[%c0_330, %c0_331] : memref<8x128xf32, #tpu.memory_space<vmem>>, vector<8x128xf32>
    %cst_332 = arith.constant 5.000000e-01 : f32
    %538 = vector.broadcast %cst_332 : f32 to vector<8x128xf32>
    %539 = arith.cmpf ogt, %537, %538 : vector<8x128xf32>
    %540 = arith.extui %539 : vector<8x128xi1> to vector<8x128xi32>
    %541 = arith.sitofp %540 : vector<8x128xi32> to vector<8x128xf32>
    %cst_333 = arith.constant 8.000000e-01 : f32
    %542 = vector.broadcast %cst_333 : f32 to vector<8x128xf32>
    %543 = arith.mulf %542, %537 : vector<8x128xf32>
    %544 = arith.addf %543, %536 : vector<8x128xf32>
    %cst_334 = arith.constant 5.000000e-01 : f32
    %545 = vector.broadcast %cst_334 : f32 to vector<8x128xf32>
    %546 = arith.mulf %541, %545 : vector<8x128xf32>
    %547 = arith.subf %544, %546 : vector<8x128xf32>
    %c0_335 = arith.constant 0 : index
    %c0_336 = arith.constant 0 : index
    %548 = vector.load %arg18[%c0_335, %c0_336] : memref<8x128xf32, #tpu.memory_space<vmem>>, vector<8x128xf32>
    tpu.vector_store %arg18[%c0_335, %c0_336], %547 {strides = array<i32>} : memref<8x128xf32, #tpu.memory_space<vmem>>, vector<8x128xf32>,
    %cst_337 = arith.constant 5.000000e-01 : f32
    %549 = vector.broadcast %cst_337 : f32 to vector<8x128xf32>
    %550 = arith.cmpf ogt, %547, %549 : vector<8x128xf32>
    %551 = arith.extui %550 : vector<8x128xi1> to vector<8x128xi32>
    %552 = arith.sitofp %551 : vector<8x128xi32> to vector<8x128xf32>
    %553 = arith.truncf %552 : vector<8x128xf32> to vector<8x128xbf16>
    %c0_338 = arith.constant 0 : index
    %c0_339 = arith.constant 0 : index
    %554 = vector.load %arg9[%c0_338, %c0_339] : memref<128x128xbf16, #tpu.memory_space<vmem>>, vector<128x128xbf16>
    %cst_340 = arith.constant dense<0.000000e+00> : vector<8x128xf32>
    %555 = tpu.matmul %553, %554, %cst_340 {dimension_numbers = #tpu.dot_dimension_numbers<[1], [0], [0], [1], [0, 0, 1, 1], [], []>} : vector<8x128xbf16>, vector<128x128xbf16>, vector<8x128xf32> -> vector<8x128xf32>
    %c0_341 = arith.constant 0 : index
    %c0_342 = arith.constant 0 : index
    %556 = vector.load %arg10[%c0_341, %c0_342] : memref<1x128xf32, #tpu.memory_space<vmem>>, vector<1x128xf32>
    %557 = vector.broadcast %556 : vector<1x128xf32> to vector<8x128xf32>
    %558 = arith.addf %555, %557 : vector<8x128xf32>
    %c0_343 = arith.constant 0 : index
    %c0_344 = arith.constant 0 : index
    %559 = vector.load %arg19[%c0_343, %c0_344] : memref<8x128xf32, #tpu.memory_space<vmem>>, vector<8x128xf32>
    %cst_345 = arith.constant 5.000000e-01 : f32
    %560 = vector.broadcast %cst_345 : f32 to vector<8x128xf32>
    %561 = arith.cmpf ogt, %559, %560 : vector<8x128xf32>
    %562 = arith.extui %561 : vector<8x128xi1> to vector<8x128xi32>
    %563 = arith.sitofp %562 : vector<8x128xi32> to vector<8x128xf32>
    %cst_346 = arith.constant 8.000000e-01 : f32
    %564 = vector.broadcast %cst_346 : f32 to vector<8x128xf32>
    %565 = arith.mulf %564, %559 : vector<8x128xf32>
    %566 = arith.addf %565, %558 : vector<8x128xf32>
    %cst_347 = arith.constant 5.000000e-01 : f32
    %567 = vector.broadcast %cst_347 : f32 to vector<8x128xf32>
    %568 = arith.mulf %563, %567 : vector<8x128xf32>
    %569 = arith.subf %566, %568 : vector<8x128xf32>
    %c0_348 = arith.constant 0 : index
    %c0_349 = arith.constant 0 : index
    %570 = vector.load %arg19[%c0_348, %c0_349] : memref<8x128xf32, #tpu.memory_space<vmem>>, vector<8x128xf32>
    tpu.vector_store %arg19[%c0_348, %c0_349], %569 {strides = array<i32>} : memref<8x128xf32, #tpu.memory_space<vmem>>, vector<8x128xf32>,
    %cst_350 = arith.constant 5.000000e-01 : f32
    %571 = vector.broadcast %cst_350 : f32 to vector<8x128xf32>
    %572 = arith.cmpf ogt, %569, %571 : vector<8x128xf32>
    %573 = arith.extui %572 : vector<8x128xi1> to vector<8x128xi32>
    %574 = arith.sitofp %573 : vector<8x128xi32> to vector<8x128xf32>
    %575 = arith.truncf %574 : vector<8x128xf32> to vector<8x128xbf16>
    %c0_351 = arith.constant 0 : index
    %c0_352 = arith.constant 0 : index
    %576 = vector.load %arg11[%c0_351, %c0_352] : memref<128x128xbf16, #tpu.memory_space<vmem>>, vector<128x128xbf16>
    %cst_353 = arith.constant dense<0.000000e+00> : vector<8x128xf32>
    %577 = tpu.matmul %575, %576, %cst_353 {dimension_numbers = #tpu.dot_dimension_numbers<[1], [0], [0], [1], [0, 0, 1, 1], [], []>} : vector<8x128xbf16>, vector<128x128xbf16>, vector<8x128xf32> -> vector<8x128xf32>
    %c0_354 = arith.constant 0 : index
    %c0_355 = arith.constant 0 : index
    %578 = vector.load %arg12[%c0_354, %c0_355] : memref<1x128xf32, #tpu.memory_space<vmem>>, vector<1x128xf32>
    %579 = vector.broadcast %578 : vector<1x128xf32> to vector<8x128xf32>
    %580 = arith.addf %577, %579 : vector<8x128xf32>
    %c0_356 = arith.constant 0 : index
    %c0_357 = arith.constant 0 : index
    %581 = vector.load %arg20[%c0_356, %c0_357] : memref<8x128xf32, #tpu.memory_space<vmem>>, vector<8x128xf32>
    %cst_358 = arith.constant 5.000000e-01 : f32
    %582 = vector.broadcast %cst_358 : f32 to vector<8x128xf32>
    %583 = arith.cmpf ogt, %581, %582 : vector<8x128xf32>
    %584 = arith.extui %583 : vector<8x128xi1> to vector<8x128xi32>
    %585 = arith.sitofp %584 : vector<8x128xi32> to vector<8x128xf32>
    %cst_359 = arith.constant 8.000000e-01 : f32
    %586 = vector.broadcast %cst_359 : f32 to vector<8x128xf32>
    %587 = arith.mulf %586, %581 : vector<8x128xf32>
    %588 = arith.addf %587, %580 : vector<8x128xf32>
    %cst_360 = arith.constant 5.000000e-01 : f32
    %589 = vector.broadcast %cst_360 : f32 to vector<8x128xf32>
    %590 = arith.mulf %585, %589 : vector<8x128xf32>
    %591 = arith.subf %588, %590 : vector<8x128xf32>
    %c0_361 = arith.constant 0 : index
    %c0_362 = arith.constant 0 : index
    %592 = vector.load %arg20[%c0_361, %c0_362] : memref<8x128xf32, #tpu.memory_space<vmem>>, vector<8x128xf32>
    tpu.vector_store %arg20[%c0_361, %c0_362], %591 {strides = array<i32>} : memref<8x128xf32, #tpu.memory_space<vmem>>, vector<8x128xf32>,
    %cst_363 = arith.constant 5.000000e-01 : f32
    %593 = vector.broadcast %cst_363 : f32 to vector<8x128xf32>
    %594 = arith.cmpf ogt, %591, %593 : vector<8x128xf32>
    %595 = arith.extui %594 : vector<8x128xi1> to vector<8x128xi32>
    %596 = arith.sitofp %595 : vector<8x128xi32> to vector<8x128xf32>
    %c0_364 = arith.constant 0 : index
    %c0_365 = arith.constant 0 : index
    %597 = vector.load %arg21[%c0_364, %c0_365] : memref<8x128xf32, #tpu.memory_space<vmem>>, vector<8x128xf32>
    %598 = arith.addf %597, %596 : vector<8x128xf32>
    %c0_366 = arith.constant 0 : index
    %c0_367 = arith.constant 0 : index
    %599 = vector.load %arg21[%c0_366, %c0_367] : memref<8x128xf32, #tpu.memory_space<vmem>>, vector<8x128xf32>
    tpu.vector_store %arg21[%c0_366, %c0_367], %598 {strides = array<i32>} : memref<8x128xf32, #tpu.memory_space<vmem>>, vector<8x128xf32>,
    %600 = vector.broadcast %8 : vector<8x1xf32> to vector<8x128xf32>
    %601 = arith.mulf %596, %600 : vector<8x128xf32>
    %cst_368 = arith.constant dense<0.000000e+00> : vector<128xf32>
    %602 = vector.multi_reduction <add>, %601, %cst_368 [0] : vector<8x128xf32> to vector<128xf32>
    %603 = vector.shape_cast %602 : vector<128xf32> to vector<1x128xf32>
    %cst_369 = arith.constant dense<0.000000e+00> : vector<1xf32>
    %604 = vector.multi_reduction <add>, %603, %cst_369 [1] : vector<1x128xf32> to vector<1xf32>
    %605 = vector.shape_cast %604 : vector<1xf32> to vector<1x1xf32>
    %cst_370 = arith.constant 0.0454545468 : f32
    %606 = vector.broadcast %cst_370 : f32 to vector<1x1xf32>
    %607 = arith.mulf %605, %606 : vector<1x1xf32>
    %c0_371 = arith.constant 0 : index
    %c0_372 = arith.constant 0 : index
    %608 = vector.load %arg21[%c0_371, %c0_372] : memref<8x128xf32, #tpu.memory_space<vmem>>, vector<8x128xf32>
    %cst_373 = arith.constant 2.000000e-01 : f32
    %609 = vector.broadcast %cst_373 : f32 to vector<8x128xf32>
    %610 = arith.mulf %608, %609 : vector<8x128xf32>
    %c0_374 = arith.constant 0 : index
    %c0_375 = arith.constant 0 : index
    %611 = vector.load %arg13[%c0_374, %c0_375] : memref<8x128xf32, #tpu.memory_space<vmem>>, vector<8x128xf32>
    tpu.vector_store %arg13[%c0_374, %c0_375], %610 {strides = array<i32>} : memref<8x128xf32, #tpu.memory_space<vmem>>, vector<8x128xf32>,
    %cst_376 = arith.constant 0.000000e+00 : f32
    %612 = vector.broadcast %cst_376 : f32 to vector<1x1xf32>
    %cst_377 = arith.constant 0.000000e+00 : f32
    %613 = vector.broadcast %cst_377 : f32 to vector<1x1xf32>
    %614 = arith.addf %612, %143 : vector<1x1xf32>
    %cst_378 = arith.constant 1.000000e-03 : f32
    %615 = vector.broadcast %cst_378 : f32 to vector<1x1xf32>
    %616 = arith.mulf %615, %614 : vector<1x1xf32>
    %617 = arith.addf %613, %616 : vector<1x1xf32>
    %618 = arith.addf %614, %259 : vector<1x1xf32>
    %cst_379 = arith.constant 1.000000e-03 : f32
    %619 = vector.broadcast %cst_379 : f32 to vector<1x1xf32>
    %620 = arith.mulf %619, %618 : vector<1x1xf32>
    %621 = arith.addf %617, %620 : vector<1x1xf32>
    %622 = arith.subf %618, %614 : vector<1x1xf32>
    %623 = math.absf %622 : vector<1x1xf32>
    %cst_380 = arith.constant 1.000000e-03 : f32
    %624 = vector.broadcast %cst_380 : f32 to vector<1x1xf32>
    %625 = arith.mulf %624, %623 : vector<1x1xf32>
    %626 = arith.addf %621, %625 : vector<1x1xf32>
    %627 = arith.addf %618, %375 : vector<1x1xf32>
    %cst_381 = arith.constant 1.000000e-03 : f32
    %628 = vector.broadcast %cst_381 : f32 to vector<1x1xf32>
    %629 = arith.mulf %628, %627 : vector<1x1xf32>
    %630 = arith.addf %626, %629 : vector<1x1xf32>
    %631 = arith.subf %627, %618 : vector<1x1xf32>
    %632 = math.absf %631 : vector<1x1xf32>
    %cst_382 = arith.constant 1.000000e-03 : f32
    %633 = vector.broadcast %cst_382 : f32 to vector<1x1xf32>
    %634 = arith.mulf %633, %632 : vector<1x1xf32>
    %635 = arith.addf %630, %634 : vector<1x1xf32>
    %636 = arith.addf %627, %491 : vector<1x1xf32>
    %cst_383 = arith.constant 1.000000e-03 : f32
    %637 = vector.broadcast %cst_383 : f32 to vector<1x1xf32>
    %638 = arith.mulf %637, %636 : vector<1x1xf32>
    %639 = arith.addf %635, %638 : vector<1x1xf32>
    %640 = arith.subf %636, %627 : vector<1x1xf32>
    %641 = math.absf %640 : vector<1x1xf32>
    %cst_384 = arith.constant 1.000000e-03 : f32
    %642 = vector.broadcast %cst_384 : f32 to vector<1x1xf32>
    %643 = arith.mulf %642, %641 : vector<1x1xf32>
    %644 = arith.addf %639, %643 : vector<1x1xf32>
    %645 = arith.addf %636, %607 : vector<1x1xf32>
    %cst_385 = arith.constant 1.000000e-03 : f32
    %646 = vector.broadcast %cst_385 : f32 to vector<1x1xf32>
    %647 = arith.mulf %646, %645 : vector<1x1xf32>
    %648 = arith.addf %644, %647 : vector<1x1xf32>
    %649 = arith.subf %645, %636 : vector<1x1xf32>
    %650 = math.absf %649 : vector<1x1xf32>
    %cst_386 = arith.constant 1.000000e-03 : f32
    %651 = vector.broadcast %cst_386 : f32 to vector<1x1xf32>
    %652 = arith.mulf %651, %650 : vector<1x1xf32>
    %653 = arith.addf %648, %652 : vector<1x1xf32>
    %cst_387 = arith.constant 2.000000e-01 : f32
    %654 = vector.broadcast %cst_387 : f32 to vector<1x1xf32>
    %655 = arith.mulf %653, %654 : vector<1x1xf32>
    %656 = vector.shape_cast %655 : vector<1x1xf32> to vector<1x1x1xf32>
    %657 = vector.broadcast %656 : vector<1x1x1xf32> to vector<1x8x128xf32>
    %c0_388 = arith.constant 0 : index
    %c0_389 = arith.constant 0 : index
    %c0_390 = arith.constant 0 : index
    %658 = vector.load %arg14[%c0_388, %c0_389, %c0_390] : memref<1x8x128xf32, #tpu.memory_space<vmem>>, vector<1x8x128xf32>
    tpu.vector_store %arg14[%c0_388, %c0_389, %c0_390], %657 {strides = array<i32>} : memref<1x8x128xf32, #tpu.memory_space<vmem>>, vector<1x8x128xf32>,
    return
  }
  func.func @transform_0(%arg0: i32, %arg1: memref<1xi32, #tpu.memory_space<smem>>) -> (i32, i32) {
    %c0_i32 = arith.constant 0 : i32
    %c0_i32_0 = arith.constant 0 : i32
    return %arg0, %c0_i32 : i32, i32
  }
  func.func @transform_1(%arg0: i32, %arg1: memref<1xi32, #tpu.memory_space<smem>>) -> (i32, i32) {
    %c0_i32 = arith.constant 0 : i32
    %c0_i32_0 = arith.constant 0 : i32
    %c0_i32_1 = arith.constant 0 : i32
    return %c0_i32, %c0_i32_0 : i32, i32
  }
  func.func @transform_2(%arg0: i32, %arg1: memref<1xi32, #tpu.memory_space<smem>>) -> (i32, i32) {
    %c0_i32 = arith.constant 0 : i32
    %c0_i32_0 = arith.constant 0 : i32
    %c0_i32_1 = arith.constant 0 : i32
    return %c0_i32, %c0_i32_0 : i32, i32
  }
  func.func @transform_3(%arg0: i32, %arg1: memref<1xi32, #tpu.memory_space<smem>>) -> (i32, i32) {
    %c0_i32 = arith.constant 0 : i32
    %c0_i32_0 = arith.constant 0 : i32
    %c0_i32_1 = arith.constant 0 : i32
    return %c0_i32, %c0_i32_0 : i32, i32
  }
  func.func @transform_4(%arg0: i32, %arg1: memref<1xi32, #tpu.memory_space<smem>>) -> (i32, i32) {
    %c0_i32 = arith.constant 0 : i32
    %c0_i32_0 = arith.constant 0 : i32
    %c0_i32_1 = arith.constant 0 : i32
    return %c0_i32, %c0_i32_0 : i32, i32
  }
  func.func @transform_5(%arg0: i32, %arg1: memref<1xi32, #tpu.memory_space<smem>>) -> (i32, i32) {
    %c0_i32 = arith.constant 0 : i32
    %c0_i32_0 = arith.constant 0 : i32
    %c0_i32_1 = arith.constant 0 : i32
    return %c0_i32, %c0_i32_0 : i32, i32
  }
  func.func @transform_6(%arg0: i32, %arg1: memref<1xi32, #tpu.memory_space<smem>>) -> (i32, i32) {
    %c0_i32 = arith.constant 0 : i32
    %c0_i32_0 = arith.constant 0 : i32
    %c0_i32_1 = arith.constant 0 : i32
    return %c0_i32, %c0_i32_0 : i32, i32
  }
  func.func @transform_7(%arg0: i32, %arg1: memref<1xi32, #tpu.memory_space<smem>>) -> (i32, i32) {
    %c0_i32 = arith.constant 0 : i32
    %c0_i32_0 = arith.constant 0 : i32
    %c0_i32_1 = arith.constant 0 : i32
    return %c0_i32, %c0_i32_0 : i32, i32
  }
  func.func @transform_8(%arg0: i32, %arg1: memref<1xi32, #tpu.memory_space<smem>>) -> (i32, i32) {
    %c0_i32 = arith.constant 0 : i32
    %c0_i32_0 = arith.constant 0 : i32
    %c0_i32_1 = arith.constant 0 : i32
    return %c0_i32, %c0_i32_0 : i32, i32
  }
  func.func @transform_9(%arg0: i32, %arg1: memref<1xi32, #tpu.memory_space<smem>>) -> (i32, i32) {
    %c0_i32 = arith.constant 0 : i32
    %c0_i32_0 = arith.constant 0 : i32
    %c0_i32_1 = arith.constant 0 : i32
    return %c0_i32, %c0_i32_0 : i32, i32
  }
  func.func @transform_10(%arg0: i32, %arg1: memref<1xi32, #tpu.memory_space<smem>>) -> (i32, i32) {
    %c0_i32 = arith.constant 0 : i32
    %c0_i32_0 = arith.constant 0 : i32
    %c0_i32_1 = arith.constant 0 : i32
    return %c0_i32, %c0_i32_0 : i32, i32
  }
  func.func @transform_11(%arg0: i32, %arg1: memref<1xi32, #tpu.memory_space<smem>>) -> (i32, i32) {
    %c0_i32 = arith.constant 0 : i32
    %c0_i32_0 = arith.constant 0 : i32
    return %arg0, %c0_i32 : i32, i32
  }
  func.func @transform_12(%arg0: i32, %arg1: memref<1xi32, #tpu.memory_space<smem>>) -> (i32, i32, i32) {
    %c0_i32 = arith.constant 0 : i32
    %c0_i32_0 = arith.constant 0 : i32
    %c0_i32_1 = arith.constant 0 : i32
    return %arg0, %c0_i32, %c0_i32_0 : i32, i32, i32
  }
}

</mosaic_0001>

<bundles_post_ra>
// kernel: tpu_custom_call.1
= control target key start
LH: loop header
LB: loop body
LE: loop exit
PB: predicated region body
PF: predicated region fallthrough
CT: control target
= control target key end

     0   :  { %20 = vsyncpa [#allocation12], 0  ;;  %s5318_s0 = inlined_call_operand.<no memory space> [shape: s32[1], index: 0, kind: input, shape index: {}]   ;;  %s5319_s1 = inlined_call_operand.hbm [shape: bf16[8,576], index: 1, kind: input, shape index: {}]   ;;  %s5320_s2 = inlined_call_operand.hbm [shape: bf16[576,128], index: 2, kind: input, shape index: {}]   ;;  %s5321_s3 = inlined_call_operand.vmem [shape: f32[1,128], index: 3, kind: input, shape index: {}]   ;;  %s5322_s4 = inlined_call_operand.hbm [shape: bf16[128,128], index: 4, kind: input, shape index: {}]   ;;  %s5323_s5 = inlined_call_operand.vmem [shape: f32[1,128], index: 5, kind: input, shape index: {}]   ;;  %s5324_s6 = inlined_call_operand.hbm [shape: bf16[128,128], index: 6, kind: input, shape index: {}]   ;;  %s5325_s7 = inlined_call_operand.vmem [shape: f32[1,128], index: 7, kind: input, shape index: {}]   ;;  %s5326_s8 = inlined_call_operand.hbm [shape: bf16[128,128], index: 8, kind: input, shape index: {}]   ;;  %s5327_s9 = inlined_call_operand.vmem [shape: f32[1,128], index: 9, kind: input, shape index: {}]   ;;  %s5328_s10 = inlined_call_operand.hbm [shape: bf16[128,128], index: 10, kind: input, shape index: {}]   ;;  %s5329_s11 = inlined_call_operand.vmem [shape: f32[1,128], index: 11, kind: input, shape index: {}]   ;;  %s5330_s12 = inlined_call_operand.hbm [shape: f32[8,128], index: 12, kind: output, shape index: {0}]   ;;  %s5331_s13 = inlined_call_operand.hbm [shape: f32[1,8,128], index: 13, kind: output, shape index: {1}]  }
   0x1   :  { %21 = vsyncpa [#allocation15], 0 }
   0x2   :  { %22 = vsyncpa [#allocation18], 0 }
   0x3   :  { %23 = vsyncpa [#allocation21], 0 }
   0x4   :  { %24 = vsyncpa [#allocation13], 0 }
   0x5   :  { %25 = vsyncpa [#allocation24], 0  ;;  %s4616_s25 = smov [#allocation14]   ;;  %s4428_s29 = scalar_lea.hbm %s5320_s2, 4608 }
   0x6   :  { %s41_s26 = sshll.u32 %s4616_s25, 4  ;;  %p4429_p0 = scmp.ne.s32.totalorder %s5320_s2, %s4428_s29  ;;  %s42_s26 = int_to_ptr.vmem [resolvable:$true] %s41_s26 }
   0x7   :  { %p4432_p1 = scmp.lt.u32.totalorder %s4428_s29, %s5320_s2 }
   0x9   :  { %p4434_p2 = pnand %p4432_p1, %p4429_p0 }
   0xb   :  { %4437 = shalt.err (!%p4434_p2)
}
   0xc   :  { %s4438_s17 = scalar_lea.vmem %s42_s26, 4608  ;;  %p4443_p4 = scmp.lt.s32.totalorder %s42_s26, %s42_s26 }
   0xd   :  { %p4439_p3 = scmp.ne.s32.totalorder %s42_s26, %s4438_s17  ;;  %p4444_p5 = scmp.lt.s32.totalorder %s4438_s17, %s4438_s17 }
   0xf   :  { %p4445_p6 = por %p4444_p5, %p4443_p4 }
  0x11   :  { %p4446_p7 = pnand %p4445_p6, %p4439_p3 }
  0x13   :  { %4449 = shalt.err (!%p4446_p7)
}
  0x14   :  { %s4617_s18 = smov 64   ;;  %s4618_s19 = smov 4  }
  0x15   :  { %47 = dma.hbm_to_vmem [thread:$0]  %s5320_s2, 4608, %s42_s26, [#allocation15], %s4617_s18, %s4617_s18, %s4618_s19  }
  0x16   :  { %s4619_s22 = smov [#allocation17]   ;;  %s4620_s24 = smov [#allocation11]  }
  0x17   :  { %s69_s23 = sshll.u32 %s4619_s22, 4  ;;  %s32_s25 = sshll.u32 %s4620_s24, 4  ;;  %s70_s23 = int_to_ptr.vmem [resolvable:$true] %s69_s23  ;;  %s33_s25 = int_to_ptr.vmem [resolvable:$true] %s32_s25 }
  0x18   :  { %s4450_s29 = scalar_lea.hbm %s5324_s6, 1024 }
  0x19   :  { %p4451_p8 = scmp.ne.s32.totalorder %s5324_s6, %s4450_s29  ;;  %p4454_p9 = scmp.lt.u32.totalorder %s4450_s29, %s5324_s6 }
  0x1b   :  { %p4456_p10 = pnand %p4454_p9, %p4451_p8 }
  0x1d   :  { %4459 = shalt.err (!%p4456_p10)
}
  0x1e   :  { %s4460_s2 = scalar_lea.vmem %s70_s23, 1024  ;;  %p4465_p12 = scmp.lt.s32.totalorder %s70_s23, %s70_s23 }
  0x1f   :  { %p4461_p11 = scmp.ne.s32.totalorder %s70_s23, %s4460_s2  ;;  %p4466_p13 = scmp.lt.s32.totalorder %s4460_s2, %s4460_s2 }
  0x21   :  { %p4467_p0 = por %p4466_p13, %p4465_p12 }
  0x23   :  { %p4468_p1 = pnand %p4467_p0, %p4461_p11 }
  0x25   :  { %4471 = shalt.err (!%p4468_p1)
}
  0x26   :  { %75 = dma.hbm_to_vmem [thread:$0]  %s5324_s6, 1024, %s70_s23, [#allocation18], %s4617_s18, %s4617_s18, %s4618_s19  }
  0x27   :  { %s4472_s22 = scalar_lea.hbm %s5319_s1, 320 }
  0x28   :  { %p4473_p2 = scmp.ne.s32.totalorder %s5319_s1, %s4472_s22  ;;  %p4476_p3 = scmp.lt.u32.totalorder %s4472_s22, %s5319_s1 }
  0x2a   :  { %p4478_p4 = pnand %p4476_p3, %p4473_p2 }
  0x2c   :  { %4481 = shalt.err (!%p4478_p4)
}
  0x2d   :  { %s4482_s30 = scalar_lea.vmem %s33_s25, 320  ;;  %p4487_p6 = scmp.lt.s32.totalorder %s33_s25, %s33_s25 }
  0x2e   :  { %p4483_p5 = scmp.ne.s32.totalorder %s33_s25, %s4482_s30  ;;  %p4488_p7 = scmp.lt.s32.totalorder %s4482_s30, %s4482_s30 }
  0x30   :  { %p4489_p8 = por %p4488_p7, %p4487_p6 }
  0x32   :  { %p4490_p9 = pnand %p4489_p8, %p4483_p5 }
  0x34   :  { %4493 = shalt.err (!%p4490_p9)
}
  0x35   :  { %35 = dma.hbm_to_vmem [thread:$0]  %s5319_s1, 320, %s33_s25, [#allocation12]  }
  0x36   :  { %s4621_s14 = smov [#allocation16]   ;;  %s4622_s16 = smov [#allocation19]  }
  0x37   :  { %s55_s15 = sshll.u32 %s4621_s14, 4  ;;  %s83_s2 = sshll.u32 %s4622_s16, 4  ;;  %s56_s15 = int_to_ptr.vmem [resolvable:$true] %s55_s15  ;;  %s84_s2 = int_to_ptr.vmem [resolvable:$true] %s83_s2 }
  0x38   :  { %s4494_s20 = scalar_lea.hbm %s5322_s4, 1024 }
  0x39   :  { %p4495_p10 = scmp.ne.s32.totalorder %s5322_s4, %s4494_s20  ;;  %p4498_p11 = scmp.lt.u32.totalorder %s4494_s20, %s5322_s4 }
  0x3b   :  { %p4500_p12 = pnand %p4498_p11, %p4495_p10 }
  0x3d   :  { %4503 = shalt.err (!%p4500_p12)
}
  0x3e   :  { %s4504_s1 = scalar_lea.vmem %s56_s15, 1024  ;;  %p4509_p0 = scmp.lt.s32.totalorder %s56_s15, %s56_s15 }
  0x3f   :  { %p4505_p13 = scmp.ne.s32.totalorder %s56_s15, %s4504_s1  ;;  %p4510_p1 = scmp.lt.s32.totalorder %s4504_s1, %s4504_s1 }
  0x41   :  { %p4511_p2 = por %p4510_p1, %p4509_p0 }
  0x43   :  { %p4512_p3 = pnand %p4511_p2, %p4505_p13 }
  0x45   :  { %4515 = shalt.err (!%p4512_p3)
}
  0x46   :  { %61 = dma.hbm_to_vmem [thread:$0]  %s5322_s4, 1024, %s56_s15, [#allocation15], %s4617_s18, %s4617_s18, %s4618_s19  }
  0x47   :  { %s4516_s6 = scalar_lea.hbm %s5326_s8, 1024 }
  0x48   :  { %p4517_p4 = scmp.ne.s32.totalorder %s5326_s8, %s4516_s6  ;;  %p4520_p5 = scmp.lt.u32.totalorder %s4516_s6, %s5326_s8 }
  0x4a   :  { %p4522_p6 = pnand %p4520_p5, %p4517_p4 }
  0x4c   :  { %4525 = shalt.err (!%p4522_p6)
}
  0x4d   :  { %s4526_s17 = scalar_lea.vmem %s84_s2, 1024  ;;  %p4531_p8 = scmp.lt.s32.totalorder %s84_s2, %s84_s2 }
  0x4e   :  { %p4527_p7 = scmp.ne.s32.totalorder %s84_s2, %s4526_s17  ;;  %p4532_p9 = scmp.lt.s32.totalorder %s4526_s17, %s4526_s17 }
  0x50   :  { %p4533_p10 = por %p4532_p9, %p4531_p8 }
  0x52   :  { %p4534_p11 = pnand %p4533_p10, %p4527_p7 }
  0x54   :  { %4537 = shalt.err (!%p4534_p11)
}
  0x55   :  { %89 = dma.hbm_to_vmem [thread:$0]  %s5326_s8, 1024, %s84_s2, [#allocation18], %s4617_s18, %s4617_s18, %s4618_s19  }
  0x56   :  { %s4623_s20 = smov [#allocation20]   ;;  %s4538_s27 = scalar_lea.hbm %s5328_s10, 1024 }
  0x57   :  { %s97_s21 = sshll.u32 %s4623_s20, 4  ;;  %p4539_p12 = scmp.ne.s32.totalorder %s5328_s10, %s4538_s27  ;;  %s98_s21 = int_to_ptr.vmem [resolvable:$true] %s97_s21 }
  0x58   :  { %p4542_p13 = scmp.lt.u32.totalorder %s4538_s27, %s5328_s10 }
  0x5a   :  { %p4544_p0 = pnand %p4542_p13, %p4539_p12 }
  0x5c   :  { %4547 = shalt.err (!%p4544_p0)
}
  0x5d   :  { %s4548_s30 = scalar_lea.vmem %s98_s21, 1024  ;;  %p4553_p2 = scmp.lt.s32.totalorder %s98_s21, %s98_s21 }
  0x5e   :  { %p4549_p1 = scmp.ne.s32.totalorder %s98_s21, %s4548_s30  ;;  %p4554_p3 = scmp.lt.s32.totalorder %s4548_s30, %s4548_s30 }
  0x60   :  { %p4555_p4 = por %p4554_p3, %p4553_p2 }
  0x62   :  { %p4556_p5 = pnand %p4555_p4, %p4549_p1 }
  0x64   :  { %4559 = shalt.err (!%p4556_p5)
}
  0x65   :  { %103 = dma.hbm_to_vmem [thread:$0]  %s5328_s10, 1024, %s98_s21, [#allocation21], %s4617_s18, %s4617_s18, %s4618_s19  }
  0x66   :  { %4604 = dma.done.wait [#allocation12], 320  }
  0x67   :  { %4605 = vsyncadd [#allocation12], 4294966976 }
  0x68   :  { %4606 = dma.done.wait [#allocation15], 5632  }
  0x69   :  { %4607 = vsyncadd [#allocation15], 4294961664 }
  0x6a   :  { %4608 = dma.done.wait [#allocation18], 2048  }
  0x6b   :  { %4609 = vsyncadd [#allocation18], 4294965248 }
  0x6c   :  { %4610 = dma.done.wait [#allocation21], 1024  }
  0x6d   :  { %4611 = vsyncadd [#allocation21], 4294966272  ;;  %v4227_v0 = vld [vmem:[#allocation14 + $0x40] sm:$0xff]   ;;  %v4231_v4 = vld [vmem:[#allocation14 + $0x48] sm:$0xff]   ;;  %v4624_v35 = vmov 0.0   ;;  %vm4625_vm0 = vmmov 0  }
  0x6e   :  { %v4228_v1 = vld [vmem:[#allocation14] sm:$0xff]   ;;  %3573 = vmatprep.subr.bf16.mxu0 %v4227_v0  ;;  %v4232_v5 = vld [vmem:[#allocation14 + $0x8] sm:$0xff]   ;;  %v4235_v8 = vld [vmem:[#allocation14 + $0x50] sm:$0xff]   ;;  %vm450_vm1 = vcmask 523264  }
  0x6f   :  { %v4229_v2 = vld [vmem:[#allocation14 + $0xc0] sm:$0xff]   ;;  %3574 = vmatpush3.bf16.msra.mxu0 %v4228_v1  ;;  %v4233_v6 = vld [vmem:[#allocation14 + $0xc8] sm:$0xff]   ;;  %v4236_v9 = vld [vmem:[#allocation14 + $0x10] sm:$0xff]  }
  0x70   :  { %v4230_v3 = vld [vmem:[#allocation14 + $0x80] sm:$0xff]   ;;  %3595 = vmatprep.subr.bf16.mxu1 %v4229_v2  ;;  %3575 = vmatprep.subr.bf16.mxu0 %v4231_v4  ;;  %v4234_v7 = vld [vmem:[#allocation14 + $0x88] sm:$0xff]   ;;  %v4237_v10 = vld [vmem:[#allocation14 + $0xd0] sm:$0xff]  }
  0x71   :  { %3596 = vmatpush3.bf16.msra.mxu1 %v4230_v3  ;;  %v4238_v11 = vld [vmem:[#allocation14 + $0x90] sm:$0xff]   ;;  %v4239_v12 = vld [vmem:[#allocation14 + $0x58] sm:$0xff]   ;;  %v4243_v16 = vld [vmem:[#allocation14 + $0x60] sm:$0xff]  }
  0x72   :  { %3597 = vmatprep.subr.bf16.mxu1 %v4233_v6  ;;  %v4240_v13 = vld [vmem:[#allocation14 + $0x18] sm:$0xff]   ;;  %v4244_v17 = vld [vmem:[#allocation14 + $0x20] sm:$0xff]   ;;  %v4247_v20 = vld [vmem:[#allocation14 + $0x68] sm:$0xff]  }
  0x73   :  { %3576 = vmatpush3.bf16.msra.mxu0 %v4232_v5  ;;  %v4241_v14 = vld [vmem:[#allocation14 + $0xd8] sm:$0xff]   ;;  %v4245_v18 = vld [vmem:[#allocation14 + $0xe0] sm:$0xff]   ;;  %v4248_v21 = vld [vmem:[#allocation14 + $0x28] sm:$0xff]  }
  0x74   :  { %3577 = vmatprep.subr.bf16.mxu0 %v4235_v8  ;;  %v4242_v15 = vld [vmem:[#allocation14 + $0x98] sm:$0xff]   ;;  %v4246_v19 = vld [vmem:[#allocation14 + $0xa0] sm:$0xff]   ;;  %v4249_v22 = vld [vmem:[#allocation14 + $0xe8] sm:$0xff]  }
  0x75   :  { %3598 = vmatpush3.bf16.msra.mxu1 %v4234_v7  ;;  %v4250_v23 = vld [vmem:[#allocation14 + $0xa8] sm:$0xff]   ;;  %v4251_v24 = vld [vmem:[#allocation14 + $0x70] sm:$0xff]   ;;  %v4255_v28 = vld [vmem:[#allocation14 + $0x78] sm:$0xff]  }
  0x76   :  { %3599 = vmatprep.subr.bf16.mxu1 %v4237_v10  ;;  %v4252_v25 = vld [vmem:[#allocation14 + $0x30] sm:$0xff]   ;;  %v4256_v29 = vld [vmem:[#allocation14 + $0x38] sm:$0xff]   ;;  %v4263_v39 = vld [vmem:[#allocation14 + $0x100] sm:$0xff]  }
  0x77   :  { %3578 = vmatpush3.bf16.msra.mxu0 %v4236_v9  ;;  %v4253_v26 = vld [vmem:[#allocation14 + $0xf0] sm:$0xff]   ;;  %v4257_v30 = vld [vmem:[#allocation14 + $0xf8] sm:$0xff]   ;;  %v4264_v40 = vld [vmem:[#allocation14 + $0x108] sm:$0xff]  }
  0x78   :  { %3579 = vmatprep.subr.bf16.mxu0 %v4239_v12  ;;  %v4254_v27 = vld [vmem:[#allocation14 + $0xb0] sm:$0xff]   ;;  %v4260_v34 = vld [vmem:[#allocation14 + $0xb8] sm:$0xff]   ;;  %v4268_v41 = vld [vmem:[#allocation16] sm:$0xff]  }
  0x79   :  { %3600 = vmatpush3.bf16.msra.mxu1 %v4238_v11  ;;  %v135_v31 = vld [vmem:[#allocation11] sm:$0xff]  ;;  %v136_v36 = vld [vmem:[#allocation11 + $0x8] sm:$0xff]  ;;  %v4267_v46 = vld [vmem:[#allocation11 + $0x10] ss:$0 sps:$4 sm:$0xff]  }
  0x7a   :  { %3601 = vmatprep.subr.bf16.mxu1 %v4241_v14  ;;  %v3261_v32 = vcombine.low %v135_v31, %v135_v31  ;;  %v3262_v33 = vcombine.high %v135_v31, %v135_v31  ;;  %v3263_v37 = vcombine.low %v136_v36, %v136_v36  ;;  %v3264_v38 = vcombine.high %v136_v36, %v136_v36  ;;  %v4265_v42 = vld [vmem:[#allocation14 + $0x110] sm:$0xff]   ;;  %v4269_v43 = vld [vmem:[#allocation16 + $0x8] sm:$0xff]   ;;  %v4266_v44 = vld [vmem:[#allocation14 + $0x118] sm:$0xff]  }
  0x7b   :  { %3580 = vmatpush3.bf16.msra.mxu0 %v4240_v13  ;;  %v4270_v45 = vld [vmem:[#allocation16 + $0x10] sm:$0xff]   ;;  %v4271_v47 = vld [vmem:[#allocation16 + $0x18] sm:$0xff]   ;;  %v4272_v48 = vld [vmem:[#allocation16 + $0x20] sm:$0xff]  }
  0x7c   :  { %3581 = vmatprep.subr.bf16.mxu0 %v4243_v16  ;;  %486 = vmatprep.mubr.bf16.mxu0 %v3262_v33  ;;  %v4273_v49 = vld [vmem:[#allocation16 + $0x28] sm:$0xff]   ;;  %v4274_v50 = vld [vmem:[#allocation16 + $0x30] sm:$0xff]   ;;  %v4275_v51 = vld [vmem:[#allocation16 + $0x38] sm:$0xff]  }
  0x7d   :  { %3602 = vmatpush3.bf16.msra.mxu1 %v4242_v15  ;;  %526 = vmatprep.mubr.bf16.mxu1 %v3264_v38  ;;  %v4276_v52 = vld [vmem:[#allocation17] sm:$0xff]   ;;  %v4277_v53 = vld [vmem:[#allocation17 + $0x8] sm:$0xff]   ;;  %v4278_v54 = vld [vmem:[#allocation17 + $0x10] sm:$0xff]   ;;  %v4626_v15 = vmov 1.0|1.0  }
  0x7e   :  { %3603 = vmatprep.subr.bf16.mxu1 %v4245_v18  ;;  %v4279_v55 = vld [vmem:[#allocation17 + $0x18] sm:$0xff]   ;;  %v4280_v56 = vld [vmem:[#allocation17 + $0x20] sm:$0xff]   ;;  %v4281_v57 = vld [vmem:[#allocation17 + $0x28] sm:$0xff]  }
  0x7f   :  { %3582 = vmatpush3.bf16.msra.mxu0 %v4244_v17  ;;  %v4282_v58 = vld [vmem:[#allocation17 + $0x30] sm:$0xff]   ;;  %v3260_v60 = vld [vmem:[%s5321_s3] ss:$0 sm:$0xff]  ;;  %v4284_v36 = vld [vmem:[#allocation19] sm:$0xff]  }
  0x80   :  { %3583 = vmatprep.subr.bf16.mxu0 %v4247_v20  ;;  %v4286_v38 = vld [vmem:[#allocation19 + $0x10] sm:$0xff]  }
  0x81   :  { %3604 = vmatpush3.bf16.msra.mxu1 %v4246_v19 }
  0x82   :  { %3605 = vmatprep.subr.bf16.mxu1 %v4249_v22 }
  0x83   :  { %3584 = vmatpush3.bf16.msra.mxu0 %v4248_v21 }
  0x84   :  { %3585 = vmatprep.subr.bf16.mxu0 %v4251_v24 }
  0x85   :  { %3606 = vmatpush3.bf16.msra.mxu1 %v4250_v23 }
  0x86   :  { %3607 = vmatprep.subr.bf16.mxu1 %v4253_v26 }
  0x87   :  { %3586 = vmatpush3.bf16.msra.mxu0 %v4252_v25 }
  0x88   :  { %3587 = vmatprep.subr.bf16.mxu0 %v4255_v28 }
  0x89   :  { %3608 = vmatpush3.bf16.msra.mxu1 %v4254_v27 }
  0x8a   :  { %3609 = vmatprep.subr.bf16.mxu1 %v4257_v30 }
  0x8b   :  { %3588 = vmatpush3.bf16.msra.mxu0 %v4256_v29 }
  0x8c   :  { %3802 = vmatprep.subr.bf16.mxu0 %v4624_v35 }
  0x8d   :  { %3610 = vmatpush3.bf16.msra.mxu1 %v4260_v34  ;;  %v4283_v34 = vld [vmem:[#allocation17 + $0x38] sm:$0xff]  }
  0x8e   :  { %487 = vmatmul.mubr.bf16.vlgmr.msra.gmra.mrb[0].mxu0 %v3261_v32  ;;  %3814 = vmatprep.subr.bf16.mxu1 %v4624_v35 }
  0x8f   :  { %3803 = vmatpush3.bf16.msra.mxu0 %v4263_v39  ;;  %3810 = vmatprep.mubr.msk.bf16.mxu0 %vm4625_vm0, %v4624_v35  ;;  %v4287_v39 = vld [vmem:[#allocation19 + $0x18] sm:$0xff]  }
  0x90   :  { %527 = vmatmul.mubr.bf16.vlgmr.msra.gmra.mrb[0].mxu1 %v3263_v37  ;;  %3804 = vmatprep.subr.bf16.mxu0 %v4624_v35  ;;  %v4285_v37 = vld [vmem:[#allocation19 + $0x8] sm:$0xff]  }
  0x91   :  { %3830 = vmatprep.mubr.msk.bf16.mxu1 %vm4625_vm0, %v4624_v35  ;;  %3815 = vmatpush3.bf16.msra.mxu1 %v4268_v41  ;;  %v4289_v41 = vld [vmem:[#allocation19 + $0x28] sm:$0xff]  }
  0x92   :  { %3816 = vmatprep.subr.bf16.mxu1 %v4624_v35 }
  0x93   :  { %3805 = vmatpush3.bf16.msra.mxu0 %v4264_v40  ;;  %v4288_v40 = vld [vmem:[#allocation19 + $0x20] sm:$0xff]  }
  0x94   :  { %3806 = vmatprep.subr.bf16.mxu0 %v4624_v35 }
  0x95   :  { %3817 = vmatpush3.bf16.msra.mxu1 %v4269_v43  ;;  %v4859_v43 = vld [vmem:[%s5323_s5] ss:$0 sm:$0xff] }
  0x96   :  { %3818 = vmatprep.subr.bf16.mxu1 %v4624_v35 }
  0x97   :  { %3807 = vmatpush3.bf16.msra.mxu0 %v4265_v42  ;;  %v4290_v42 = vld [vmem:[#allocation19 + $0x30] sm:$0xff]  }
  0x98   :  { %3808 = vmatprep.subr.bf16.mxu0 %v4624_v35 }
  0x99   :  { %3819 = vmatpush3.bf16.msra.mxu1 %v4270_v45 }
  0x9a   :  { %3820 = vmatprep.subr.bf16.mxu1 %v4624_v35 }
  0x9b   :  { %3809 = vmatpush3.bf16.msra.mxu0 %v4266_v44 }
  0x9c   :  { %3834 = vmatprep.subr.bf16.mxu0 %v4624_v35 }
  0x9d   :  { %3821 = vmatpush3.bf16.msra.mxu1 %v4271_v47 }
  0x9e   :  { %3811 = vmatmul.mubr.msk.bf16.vlgmr.msra.gmra.mrb[4].mxu0 %vm450_vm1, %v4267_v46  ;;  %3822 = vmatprep.subr.bf16.mxu1 %v4624_v35 }
  0x9f   :  { %3850 = vmatprep.mubr.msk.bf16.mxu0 %vm4625_vm0, %v4624_v35  ;;  %3835 = vmatpush3.bf16.msra.mxu0 %v4276_v52  ;;  %v4302_v52 = vld [vmem:[#allocation20 + $0x10] sm:$0xff]  }
  0xa0   :  { %3836 = vmatprep.subr.bf16.mxu0 %v4624_v35 }
  0xa1   :  { %3823 = vmatpush3.bf16.msra.mxu1 %v4272_v48 }
  0xa2   :  { %3824 = vmatprep.subr.bf16.mxu1 %v4624_v35 }
  0xa3   :  { %3837 = vmatpush3.bf16.msra.mxu0 %v4277_v53  ;;  %v4303_v53 = vld [vmem:[#allocation20 + $0x18] sm:$0xff]  }
  0xa4   :  { %3838 = vmatprep.subr.bf16.mxu0 %v4624_v35 }
  0xa5   :  { %3825 = vmatpush3.bf16.msra.mxu1 %v4273_v49  ;;  %v4291_v49 = vld [vmem:[#allocation19 + $0x38] sm:$0xff]  }
  0xa6   :  { %3826 = vmatprep.subr.bf16.mxu1 %v4624_v35 }
  0xa7   :  { %3839 = vmatpush3.bf16.msra.mxu0 %v4278_v54  ;;  %v4304_v54 = vld [vmem:[#allocation20 + $0x20] sm:$0xff]  }
  0xa8   :  { %3840 = vmatprep.subr.bf16.mxu0 %v4624_v35 }
  0xa9   :  { %3827 = vmatpush3.bf16.msra.mxu1 %v4274_v50  ;;  %v4300_v50 = vld [vmem:[#allocation20] sm:$0xff]  }
  0xaa   :  { %3828 = vmatprep.subr.bf16.mxu1 %v4624_v35 }
  0xab   :  { %3841 = vmatpush3.bf16.msra.mxu0 %v4279_v55  ;;  %v4305_v55 = vld [vmem:[#allocation20 + $0x28] sm:$0xff]  }
  0xac   :  { %3842 = vmatprep.subr.bf16.mxu0 %v4624_v35 }
  0xad   :  { %3829 = vmatpush3.bf16.msra.mxu1 %v4275_v51  ;;  %v4301_v51 = vld [vmem:[#allocation20 + $0x8] sm:$0xff]  }
  0xae   :  { %3854 = vmatprep.subr.bf16.mxu1 %v4624_v35 }
  0xaf   :  { %3843 = vmatpush3.bf16.msra.mxu0 %v4280_v56  ;;  %v4306_v56 = vld [vmem:[#allocation20 + $0x30] sm:$0xff]  }
  0xb0   :  { %3844 = vmatprep.subr.bf16.mxu0 %v4624_v35 }
  0xb3   :  { %3845 = vmatpush3.bf16.msra.mxu0 %v4281_v57  ;;  %v4882_v57 = vld [vmem:[%s5325_s7] ss:$0 sm:$0xff] }
  0xb4   :  { %3846 = vmatprep.subr.bf16.mxu0 %v4624_v35 }
  0xb7   :  { %3847 = vmatpush3.bf16.msra.mxu0 %v4282_v58 }
  0xb8   :  { %3848 = vmatprep.subr.bf16.mxu0 %v4624_v35 }
  0xbb   :  { %3849 = vmatpush3.bf16.msra.mxu0 %v4283_v34 }
  0xbc   :  { %3874 = vmatprep.subr.bf16.mxu0 %v4624_v35 }
 0x161   :  { %v3589_v59 = vpop.f32.mrb[0].mxu0 }
 0x162   :  { %v3590_v61 = vpop.f32.mrb[1].mxu0 }
 0x163   :  { %v3591_v62 = vadd.f32 %v3590_v61, %v3589_v59  ;;  %v3592_v63 = vpop.f32.mrb[2].mxu0  ;;  %v3611_v0 = vpop.f32.mrb[0].mxu1 }
 0x164   :  { %v3593_v1 = vpop.f32.mrb[3].mxu0  ;;  %v3612_v2 = vpop.f32.mrb[1].mxu1 }
 0x165   :  { %v489_v3 = vadd.f32 %v3591_v62, %v3260_v60  ;;  %v3613_v4 = vadd.f32 %v3612_v2, %v3611_v0  ;;  %v3614_v5 = vpop.f32.mrb[2].mxu1  ;;  %v4292_v62 = vld [vmem:[#allocation16] sm:$0xff]   ;;  %v4293_v0 = vld [vmem:[#allocation16 + $0x8] sm:$0xff]   ;;  %v4294_v1 = vld [vmem:[#allocation16 + $0x10] sm:$0xff]  }
 0x166   :  { %v3615_v6 = vpop.f32.mrb[3].mxu1  ;;  %v4295_v2 = vld [vmem:[#allocation16 + $0x18] sm:$0xff]   ;;  %v4298_v5 = vld [vmem:[#allocation16 + $0x30] sm:$0xff]  }
 0x167   :  { %v529_v7 = vadd.f32 %v3613_v4, %v489_v3  ;;  %v4296_v3 = vld [vmem:[#allocation16 + $0x20] sm:$0xff]   ;;  %v4297_v4 = vld [vmem:[#allocation16 + $0x28] sm:$0xff]   ;;  %v4299_v6 = vld [vmem:[#allocation16 + $0x38] sm:$0xff]  }
 0x171   :  { %v568_v8 = vpop.f32.mrb[4].mxu0 }
 0x172   :  { %v569_v9 = vadd.f32 %v568_v8, %v529_v7  ;;  %v3812_v10 = vpop.f32.mrb[5].mxu0  ;;  %v4307_v7 = vld [vmem:[#allocation20 + $0x38] sm:$0xff]   ;;  %v4912_v8 = vld [vmem:[%s5327_s9] ss:$0 sm:$0xff] }
 0x173   :  { %v571_v11 = vpop.f32.mrb[6].mxu0 }
 0x174   :  { %v3813_v12 = vpop.f32.mrb[7].mxu0  ;;  %vm591_vm2 = vcmp.gt.f32.partialorder %v569_v9, 0.5  ;;  %v1108_v13 = vmul.f32 0.8, %v569_v9 }
 0x175   :  { %vm3314_vm3 = vmpackc.low %vm591_vm2, %vm591_vm2  ;;  %v3357_v14 = vsel %vm591_vm2, 1.0, %v4624_v35 }
 0x176   :  { %3831 = vmatmul.mubr.msk.bf16.vlgmr.msra.gmra.mrb[4].mxu1 %vm3314_vm3, %v4626_v15  ;;  %v1110_v16 = vmul.f32 0.5, %v3357_v14  ;;  %v1109_v17 = vadd.f32 %v1108_v13, %v569_v9  ;;  %v4308_v13 = vld [vmem:[#allocation17] sm:$0xff]  }
 0x177   :  { %3870 = vmatprep.mubr.msk.bf16.mxu1 %vm4625_vm0, %v4624_v35  ;;  %3855 = vmatpush3.bf16.msra.mxu1 %v4284_v36 }
 0x178   :  { %v4821_v18 = vsub.f32 %v1109_v17, %v1110_v16  ;;  %3856 = vmatprep.subr.bf16.mxu1 %v4624_v35  ;;  %v4309_v16 = vld [vmem:[#allocation17 + $0x8] sm:$0xff]   ;;  %v4310_v17 = vld [vmem:[#allocation17 + $0x10] sm:$0xff]  }
 0x17a   :  { %vm1113_vm4 = vcmp.gt.f32.partialorder %v4821_v18, 0.5  ;;  %v1630_v19 = vmul.f32 0.8, %v4821_v18  ;;  %v4311_v18 = vld [vmem:[#allocation17 + $0x18] sm:$0xff]  }
 0x17b   :  { %v3411_v20 = vsel %vm1113_vm4, 1.0, %v4624_v35  ;;  %3857 = vmatpush3.bf16.msra.mxu1 %v4285_v37  ;;  %vm3368_vm11 = vmpackc.low %vm1113_vm4, %vm1113_vm4 }
 0x17c   :  { %v1632_v21 = vmul.f32 0.5, %v3411_v20  ;;  %v1631_v22 = vadd.f32 %v1630_v19, %v569_v9  ;;  %3858 = vmatprep.subr.bf16.mxu1 %v4624_v35  ;;  %v4312_v19 = vld [vmem:[#allocation17 + $0x20] sm:$0xff]   ;;  %v4313_v20 = vld [vmem:[#allocation17 + $0x28] sm:$0xff]  }
 0x17e   :  { %v4828_v23 = vsub.f32 %v1631_v22, %v1632_v21  ;;  %v4314_v21 = vld [vmem:[#allocation17 + $0x30] sm:$0xff]   ;;  %v4315_v22 = vld [vmem:[#allocation17 + $0x38] sm:$0xff]  }
 0x17f   :  { %3859 = vmatpush3.bf16.msra.mxu1 %v4286_v38 }
 0x180   :  { %vm1635_vm5 = vcmp.gt.f32.partialorder %v4828_v23, 0.5  ;;  %v2152_v24 = vmul.f32 0.8, %v4828_v23  ;;  %3860 = vmatprep.subr.bf16.mxu1 %v4624_v35 }
 0x181   :  { %v3465_v25 = vsel %vm1635_vm5, 1.0, %v4624_v35 }
 0x182   :  { %v2154_v26 = vmul.f32 0.5, %v3465_v25  ;;  %v2153_v27 = vadd.f32 %v2152_v24, %v569_v9 }
 0x183   :  { %3861 = vmatpush3.bf16.msra.mxu1 %v4287_v39  ;;  %v4316_v39 = vld [vmem:[#allocation19] sm:$0xff]  }
 0x184   :  { %v4835_v28 = vsub.f32 %v2153_v27, %v2154_v26  ;;  %3862 = vmatprep.subr.bf16.mxu1 %v4624_v35 }
 0x186   :  { %vm2157_vm6 = vcmp.gt.f32.partialorder %v4835_v28, 0.5  ;;  %v2674_v29 = vmul.f32 0.8, %v4835_v28 }
 0x187   :  { %v3519_v30 = vsel %vm2157_vm6, 1.0, %v4624_v35  ;;  %3863 = vmatpush3.bf16.msra.mxu1 %v4288_v40  ;;  %v4317_v40 = vld [vmem:[#allocation19 + $0x8] sm:$0xff]  }
 0x188   :  { %v4842_v31 = vmul.f32 0.5, %v3519_v30  ;;  %v4844_v32 = vadd.f32 %v2674_v29, %v569_v9  ;;  %3864 = vmatprep.subr.bf16.mxu1 %v4624_v35 }
 0x18a   :  { %v2677_v33 = vsub.f32 %v4844_v32, %v4842_v31  ;;  %v5210_v31 = vld [vmem:[%s5327_s9] ss:$0 sm:$0xff] }
 0x18b   :  { %3865 = vmatpush3.bf16.msra.mxu1 %v4289_v41  ;;  %v4318_v41 = vld [vmem:[#allocation19 + $0x10] sm:$0xff]  }
 0x18c   :  { %3866 = vmatprep.subr.bf16.mxu1 %v4624_v35 }
 0x18f   :  { %3867 = vmatpush3.bf16.msra.mxu1 %v4290_v42  ;;  %v4319_v42 = vld [vmem:[#allocation19 + $0x18] sm:$0xff]  }
 0x190   :  { %3868 = vmatprep.subr.bf16.mxu1 %v4624_v35 }
 0x193   :  { %3869 = vmatpush3.bf16.msra.mxu1 %v4291_v49 }
 0x194   :  { %3894 = vmatprep.subr.bf16.mxu1 %v4624_v35 }
 0x249   :  { %v700_v44 = vpop.f32.mrb[4].mxu1 }
 0x24a   :  { %v4862_v45 = vadd.f32 %v4859_v43, %v700_v44  ;;  %v3832_v46 = vpop.f32.mrb[5].mxu1  ;;  %v4320_v44 = vld [vmem:[#allocation19 + $0x20] sm:$0xff]  }
 0x24b   :  { %v703_v47 = vpop.f32.mrb[6].mxu1  ;;  %v4322_v46 = vld [vmem:[#allocation19 + $0x30] sm:$0xff]  }
 0x24c   :  { %vm715_vm7 = vcmp.gt.f32.partialorder %v4862_v45, 0.5  ;;  %v3833_v48 = vpop.f32.mrb[7].mxu1  ;;  %v1232_v26 = vmul.f32 0.8, %v4862_v45  ;;  %v4321_v45 = vld [vmem:[#allocation19 + $0x28] sm:$0xff]   ;;  %v4323_v47 = vld [vmem:[#allocation19 + $0x38] sm:$0xff]  }
 0x24d   :  { %vm3327_vm8 = vmpackc.low %vm715_vm7, %vm715_vm7  ;;  %v3370_v24 = vsel %vm715_vm7, 1.0, %v4624_v35  ;;  %v125_v48 = vlaneseq }
 0x24e   :  { %3851 = vmatmul.mubr.msk.bf16.vlgmr.msra.gmra.mrb[8].mxu0 %vm3327_vm8, %v4626_v15  ;;  %v1234_v34 = vmul.f32 0.5, %v3370_v24  ;;  %v4326_v24 = vld [vmem:[#allocation16 + $0x10] sm:$0xff]   ;;  %vm3422_vm7 = vmpackc.low %vm1635_vm5, %vm1635_vm5 }
 0x24f   :  { %3890 = vmatprep.mubr.msk.bf16.mxu0 %vm4625_vm0, %v4624_v35  ;;  %3875 = vmatpush3.bf16.msra.mxu0 %v4300_v50  ;;  %v126_v49 = vshrl.u32 %v125_v48, 7  ;;  %v131_v50 = vstv %s5318_s0 }
 0x250   :  { %3876 = vmatprep.subr.bf16.mxu0 %v4624_v35 }
 0x251   :  { %vm132_vm1 = vcmp.lt.s32.totalorder %v126_v49, %v131_v50  ;;  %v4340_v49 = vld [vmem:[#allocation17] sm:$0xff]   ;;  %v4342_v50 = vld [vmem:[#allocation17 + $0x10] sm:$0xff]  }
 0x253   :  { %3877 = vmatpush3.bf16.msra.mxu0 %v4301_v51  ;;  %v4960_v51 = vld [vmem:[%s5329_s11] ss:$0 sm:$0xff] }
 0x254   :  { %3878 = vmatprep.subr.bf16.mxu0 %v4624_v35 }
 0x257   :  { %3879 = vmatpush3.bf16.msra.mxu0 %v4302_v52 }
 0x258   :  { %3880 = vmatprep.subr.bf16.mxu0 %v4624_v35 }
 0x25b   :  { %3881 = vmatpush3.bf16.msra.mxu0 %v4303_v53 }
 0x25c   :  { %3882 = vmatprep.subr.bf16.mxu0 %v4624_v35 }
 0x25f   :  { %3883 = vmatpush3.bf16.msra.mxu0 %v4304_v54 }
 0x260   :  { %3884 = vmatprep.subr.bf16.mxu0 %v4624_v35 }
 0x263   :  { %3885 = vmatpush3.bf16.msra.mxu0 %v4305_v55  ;;  %v4966_v55 = vsel %vm132_vm1, 1.0, %v4624_v35 }
 0x264   :  { %3886 = vmatprep.subr.bf16.mxu0 %v4624_v35 }
 0x267   :  { %3887 = vmatpush3.bf16.msra.mxu0 %v4306_v56 }
 0x268   :  { %3888 = vmatprep.subr.bf16.mxu0 %v4624_v35 }
 0x26b   :  { %3889 = vmatpush3.bf16.msra.mxu0 %v4307_v7 }
 0x26c   :  { %3914 = vmatprep.subr.bf16.mxu0 %v4624_v35 }
 0x321   :  { %v824_v58 = vpop.f32.mrb[8].mxu0 }
 0x322   :  { %v4885_v59 = vadd.f32 %v4882_v57, %v824_v58  ;;  %v3852_v60 = vpop.f32.mrb[9].mxu0 }
 0x323   :  { %v827_v61 = vpop.f32.mrb[10].mxu0 }
 0x324   :  { %vm839_vm9 = vcmp.gt.f32.partialorder %v4885_v59, 0.5  ;;  %v3853_v63 = vpop.f32.mrb[11].mxu0  ;;  %v1356_v7 = vmul.f32 0.8, %v4885_v59  ;;  %v4335_v59 = vld [vmem:[#allocation20 + $0x18] sm:$0xff]  }
 0x325   :  { %vm3340_vm10 = vmpackc.low %vm839_vm9, %vm839_vm9 }
 0x326   :  { %3871 = vmatmul.mubr.msk.bf16.vlgmr.msra.gmra.mrb[8].mxu1 %vm3340_vm10, %v4626_v15 }
 0x327   :  { %3895 = vmatpush3.bf16.msra.mxu1 %v4292_v62  ;;  %3910 = vmatprep.mubr.msk.bf16.mxu1 %vm4625_vm0, %v4624_v35 }
 0x328   :  { %3896 = vmatprep.subr.bf16.mxu1 %v4624_v35 }
 0x32b   :  { %3897 = vmatpush3.bf16.msra.mxu1 %v4293_v0 }
 0x32c   :  { %3898 = vmatprep.subr.bf16.mxu1 %v4624_v35 }
 0x32f   :  { %3899 = vmatpush3.bf16.msra.mxu1 %v4294_v1 }
 0x330   :  { %3900 = vmatprep.subr.bf16.mxu1 %v4624_v35 }
 0x333   :  { %3901 = vmatpush3.bf16.msra.mxu1 %v4295_v2 }
 0x334   :  { %3902 = vmatprep.subr.bf16.mxu1 %v4624_v35 }
 0x337   :  { %3903 = vmatpush3.bf16.msra.mxu1 %v4296_v3 }
 0x338   :  { %3904 = vmatprep.subr.bf16.mxu1 %v4624_v35 }
 0x33b   :  { %3905 = vmatpush3.bf16.msra.mxu1 %v4297_v4  ;;  %v4332_v4 = vld [vmem:[#allocation20] sm:$0xff]  }
 0x33c   :  { %3906 = vmatprep.subr.bf16.mxu1 %v4624_v35 }
 0x33f   :  { %3907 = vmatpush3.bf16.msra.mxu1 %v4298_v5  ;;  %v3383_v5 = vsel %vm839_vm9, 1.0, %v4624_v35 }
 0x340   :  { %3908 = vmatprep.subr.bf16.mxu1 %v4624_v35 }
 0x343   :  { %3909 = vmatpush3.bf16.msra.mxu1 %v4299_v6 }
 0x344   :  { %3934 = vmatprep.subr.bf16.mxu1 %v4624_v35 }
 0x346   :  { %3911 = vmatmul.mubr.msk.bf16.vlgmr.msra.gmra.mrb[12].mxu1 %vm3368_vm11, %v4626_v15 }
 0x347   :  { %3950 = vmatprep.mubr.msk.bf16.mxu1 %vm4625_vm0, %v4624_v35  ;;  %3935 = vmatpush3.bf16.msra.mxu1 %v4316_v39 }
 0x348   :  { %3936 = vmatprep.subr.bf16.mxu1 %v4624_v35 }
 0x34b   :  { %3937 = vmatpush3.bf16.msra.mxu1 %v4317_v40 }
 0x34c   :  { %3938 = vmatprep.subr.bf16.mxu1 %v4624_v35 }
 0x34f   :  { %3939 = vmatpush3.bf16.msra.mxu1 %v4318_v41 }
 0x350   :  { %3940 = vmatprep.subr.bf16.mxu1 %v4624_v35 }
 0x353   :  { %3941 = vmatpush3.bf16.msra.mxu1 %v4319_v42 }
 0x354   :  { %3942 = vmatprep.subr.bf16.mxu1 %v4624_v35 }
 0x357   :  { %3943 = vmatpush3.bf16.msra.mxu1 %v4320_v44 }
 0x358   :  { %3944 = vmatprep.subr.bf16.mxu1 %v4624_v35 }
 0x35b   :  { %3945 = vmatpush3.bf16.msra.mxu1 %v4321_v45 }
 0x35c   :  { %3946 = vmatprep.subr.bf16.mxu1 %v4624_v35 }
 0x35f   :  { %3947 = vmatpush3.bf16.msra.mxu1 %v4322_v46 }
 0x360   :  { %3948 = vmatprep.subr.bf16.mxu1 %v4624_v35 }
 0x363   :  { %3949 = vmatpush3.bf16.msra.mxu1 %v4323_v47 }
 0x364   :  { %3974 = vmatprep.subr.bf16.mxu1 %v4624_v35 }
 0x3f9   :  { %v948_v9 = vpop.f32.mrb[8].mxu1 }
 0x3fa   :  { %v4915_v10 = vadd.f32 %v4912_v8, %v948_v9  ;;  %v3872_v11 = vpop.f32.mrb[9].mxu1 }
 0x3fb   :  { %v951_v12 = vpop.f32.mrb[10].mxu1 }
 0x3fc   :  { %vm963_vm12 = vcmp.gt.f32.partialorder %v4915_v10, 0.5  ;;  %v3873_v14 = vpop.f32.mrb[11].mxu1  ;;  %v4333_v12 = vld [vmem:[#allocation20 + $0x8] sm:$0xff]   ;;  %v1480_v40 = vmul.f32 0.8, %v4915_v10 }
 0x3fd   :  { %vm3353_vm13 = vmpackc.low %vm963_vm12, %vm963_vm12  ;;  %v1358_v14 = vmul.f32 0.5, %v3383_v5  ;;  %v3396_v39 = vsel %vm963_vm12, 1.0, %v4624_v35  ;;  %v4341_v10 = vld [vmem:[#allocation17 + $0x8] sm:$0xff]  }
 0x3fe   :  { %3891 = vmatmul.mubr.msk.bf16.vlgmr.msra.gmra.mrb[12].mxu0 %vm3353_vm13, %v4626_v15  ;;  %v1482_v45 = vmul.f32 0.5, %v3396_v39 }
 0x3ff   :  { %3915 = vmatpush3.bf16.msra.mxu0 %v4308_v13  ;;  %3930 = vmatprep.mubr.msk.bf16.mxu0 %vm4625_vm0, %v4624_v35 }
 0x400   :  { %3916 = vmatprep.subr.bf16.mxu0 %v4624_v35 }
 0x403   :  { %3917 = vmatpush3.bf16.msra.mxu0 %v4309_v16 }
 0x404   :  { %3918 = vmatprep.subr.bf16.mxu0 %v4624_v35 }
 0x407   :  { %3919 = vmatpush3.bf16.msra.mxu0 %v4310_v17 }
 0x408   :  { %3920 = vmatprep.subr.bf16.mxu0 %v4624_v35 }
 0x40b   :  { %3921 = vmatpush3.bf16.msra.mxu0 %v4311_v18 }
 0x40c   :  { %3922 = vmatprep.subr.bf16.mxu0 %v4624_v35 }
 0x40f   :  { %3923 = vmatpush3.bf16.msra.mxu0 %v4312_v19  ;;  %v4334_v19 = vld [vmem:[#allocation20 + $0x10] sm:$0xff]  }
 0x410   :  { %3924 = vmatprep.subr.bf16.mxu0 %v4624_v35 }
 0x413   :  { %3925 = vmatpush3.bf16.msra.mxu0 %v4313_v20  ;;  %v4324_v20 = vld [vmem:[#allocation16] sm:$0xff]  }
 0x414   :  { %3926 = vmatprep.subr.bf16.mxu0 %v4624_v35 }
 0x417   :  { %3927 = vmatpush3.bf16.msra.mxu0 %v4314_v21  ;;  %v4325_v21 = vld [vmem:[#allocation16 + $0x8] sm:$0xff]  }
 0x418   :  { %3928 = vmatprep.subr.bf16.mxu0 %v4624_v35 }
 0x419   :  { %v1222_v25 = vpop.f32.mrb[12].mxu1 }
 0x41a   :  { %v1223_v27 = vadd.f32 %v4859_v43, %v1222_v25  ;;  %v3912_v29 = vpop.f32.mrb[13].mxu1  ;;  %v4337_v25 = vld [vmem:[#allocation20 + $0x28] sm:$0xff]  }
 0x41b   :  { %v1225_v30 = vpop.f32.mrb[14].mxu1  ;;  %3929 = vmatpush3.bf16.msra.mxu0 %v4315_v22  ;;  %v4336_v22 = vld [vmem:[#allocation20 + $0x20] sm:$0xff]   ;;  %v4329_v29 = vld [vmem:[#allocation16 + $0x28] sm:$0xff]  }
 0x41c   :  { %v1233_v36 = vadd.f32 %v1232_v26, %v1223_v27  ;;  %v3913_v37 = vpop.f32.mrb[15].mxu1  ;;  %3954 = vmatprep.subr.bf16.mxu0 %v4624_v35  ;;  %v4327_v26 = vld [vmem:[#allocation16 + $0x18] sm:$0xff]   ;;  %v4328_v27 = vld [vmem:[#allocation16 + $0x20] sm:$0xff]   ;;  %v4330_v30 = vld [vmem:[#allocation16 + $0x30] sm:$0xff]  }
 0x41d   :  { %v4339_v37 = vld [vmem:[#allocation20 + $0x38] sm:$0xff]  }
 0x41e   :  { %v4937_v38 = vsub.f32 %v1233_v36, %v1234_v34  ;;  %v4331_v34 = vld [vmem:[#allocation16 + $0x38] sm:$0xff]   ;;  %v4338_v36 = vld [vmem:[#allocation20 + $0x30] sm:$0xff]  }
 0x420   :  { %vm1237_vm14 = vcmp.gt.f32.partialorder %v4937_v38, 0.5 }
 0x421   :  { %vm3381_vm15 = vmpackc.low %vm1237_vm14, %vm1237_vm14 }
 0x422   :  { %3931 = vmatmul.mubr.msk.bf16.vlgmr.msra.gmra.mrb[16].mxu0 %vm3381_vm15, %v4626_v15 }
 0x423   :  { %3970 = vmatprep.mubr.msk.bf16.mxu0 %vm4625_vm0, %v4624_v35  ;;  %3955 = vmatpush3.bf16.msra.mxu0 %v4332_v4 }
 0x424   :  { %3956 = vmatprep.subr.bf16.mxu0 %v4624_v35 }
 0x427   :  { %3957 = vmatpush3.bf16.msra.mxu0 %v4333_v12  ;;  %v4352_v12 = vld [vmem:[#allocation19 + $0x20] sm:$0xff]  }
 0x428   :  { %3958 = vmatprep.subr.bf16.mxu0 %v4624_v35 }
 0x42b   :  { %3959 = vmatpush3.bf16.msra.mxu0 %v4334_v19 }
 0x42c   :  { %3960 = vmatprep.subr.bf16.mxu0 %v4624_v35 }
 0x42f   :  { %3961 = vmatpush3.bf16.msra.mxu0 %v4335_v59 }
 0x430   :  { %3962 = vmatprep.subr.bf16.mxu0 %v4624_v35 }
 0x433   :  { %3963 = vmatpush3.bf16.msra.mxu0 %v4336_v22 }
 0x434   :  { %3964 = vmatprep.subr.bf16.mxu0 %v4624_v35 }
 0x437   :  { %3965 = vmatpush3.bf16.msra.mxu0 %v4337_v25 }
 0x438   :  { %3966 = vmatprep.subr.bf16.mxu0 %v4624_v35 }
 0x43b   :  { %3967 = vmatpush3.bf16.msra.mxu0 %v4338_v36 }
 0x43c   :  { %3968 = vmatprep.subr.bf16.mxu0 %v4624_v35 }
 0x43f   :  { %3969 = vmatpush3.bf16.msra.mxu0 %v4339_v37 }
 0x440   :  { %3994 = vmatprep.subr.bf16.mxu0 %v4624_v35 }
 0x4d1   :  { %v1072_v52 = vpop.f32.mrb[12].mxu0 }
 0x4d2   :  { %v4963_v53 = vadd.f32 %v4960_v51, %v1072_v52  ;;  %v3892_v54 = vpop.f32.mrb[13].mxu0  ;;  %v4343_v52 = vld [vmem:[#allocation17 + $0x18] sm:$0xff]  }
 0x4d3   :  { %v1075_v56 = vpop.f32.mrb[14].mxu0  ;;  %v4344_v54 = vld [vmem:[#allocation17 + $0x20] sm:$0xff]  }
 0x4d4   :  { %vm1087_vm2 = vcmp.gt.f32.partialorder %v4963_v53, 0.5  ;;  %v3893_v58 = vpop.f32.mrb[15].mxu0  ;;  %v4345_v56 = vld [vmem:[#allocation17 + $0x28] sm:$0xff]   ;;  %v1604_v19 = vmul.f32 0.8, %v4963_v53 }
 0x4d5   :  { %v4970_v60 = vsel %vm1087_vm2, 1.0, %v4624_v35  ;;  %v4346_v58 = vld [vmem:[#allocation17 + $0x30] sm:$0xff]  }
 0x4d6   :  { %v1093_v61 = vmul.f32 %v4970_v60, %v4966_v55  ;;  %v1606_v22 = vmul.f32 0.5, %v4970_v60 }
 0x4d8   :  { %v1094_v62 = vrot.slane %v1093_v61, 4 }
 0x4da   :  { %v1095_v63 = vadd.f32 %v1094_v62, %v1093_v61  ;;  %v3424_v62 = vsel %vm1237_vm14, 1.0, %v4624_v35  ;;  %vm3476_vm14 = vmpackc.low %vm2157_vm6, %vm2157_vm6 }
 0x4db   :  { %v1756_v5 = vmul.f32 0.5, %v3424_v62  ;;  %v4367_v62 = vld [vmem:[#allocation20 + $0x18] sm:$0xff]  }
 0x4dc   :  { %v1096_v0 = vrot.slane %v1095_v63, 2 }
 0x4de   :  { %v1097_v1 = vadd.f32 %v1096_v0, %v1095_v63  ;;  %v1754_v0 = vmul.f32 0.8, %v4937_v38  ;;  %v4349_v38 = vld [vmem:[#allocation19 + $0x8] sm:$0xff]  }
 0x4e0   :  { %v1098_v2 = vrot.slane %v1097_v1, 1 }
 0x4e2   :  { %v1099_v3 = vadd.f32 %v1098_v2, %v1097_v1 }
 0x4e4   :  { %1100 = vadd.xlane.f32.xlu0 %v1099_v3  ;;  %v4347_v3 = vld [vmem:[#allocation17 + $0x38] sm:$0xff]  }
 0x4f5   :  { %v1346_v6 = vpop.f32.mrb[16].mxu0 }
 0x4f6   :  { %v1347_v9 = vadd.f32 %v4882_v57, %v1346_v6  ;;  %v3932_v11 = vpop.f32.mrb[17].mxu0 }
 0x4f7   :  { %v1349_v13 = vpop.f32.mrb[18].mxu0  ;;  %v4351_v11 = vld [vmem:[#allocation19 + $0x18] sm:$0xff]  }
 0x4f8   :  { %v1357_v16 = vadd.f32 %v1356_v7, %v1347_v9  ;;  %v3933_v17 = vpop.f32.mrb[19].mxu0  ;;  %v4350_v9 = vld [vmem:[#allocation19 + $0x10] sm:$0xff]   ;;  %v4353_v13 = vld [vmem:[#allocation19 + $0x28] sm:$0xff]  }
 0x4fa   :  { %v4980_v18 = vsub.f32 %v1357_v16, %v1358_v14  ;;  %v4354_v14 = vld [vmem:[#allocation19 + $0x30] sm:$0xff]   ;;  %v4355_v16 = vld [vmem:[#allocation19 + $0x38] sm:$0xff]  }
 0x4fc   :  { %vm1361_vm3 = vcmp.gt.f32.partialorder %v4980_v18, 0.5 }
 0x4fd   :  { %vm3394_vm4 = vmpackc.low %vm1361_vm3, %vm1361_vm3 }
 0x4fe   :  { %3951 = vmatmul.mubr.msk.bf16.vlgmr.msra.gmra.mrb[16].mxu1 %vm3394_vm4, %v4626_v15 }
 0x4ff   :  { %3975 = vmatpush3.bf16.msra.mxu1 %v4324_v20  ;;  %3990 = vmatprep.mubr.msk.bf16.mxu1 %vm4625_vm0, %v4624_v35 }
 0x500   :  { %3976 = vmatprep.subr.bf16.mxu1 %v4624_v35 }
 0x503   :  { %3977 = vmatpush3.bf16.msra.mxu1 %v4325_v21 }
 0x504   :  { %3978 = vmatprep.subr.bf16.mxu1 %v4624_v35 }
 0x507   :  { %3979 = vmatpush3.bf16.msra.mxu1 %v4326_v24 }
 0x508   :  { %3980 = vmatprep.subr.bf16.mxu1 %v4624_v35 }
 0x50b   :  { %3981 = vmatpush3.bf16.msra.mxu1 %v4327_v26 }
 0x50c   :  { %3982 = vmatprep.subr.bf16.mxu1 %v4624_v35 }
 0x50f   :  { %3983 = vmatpush3.bf16.msra.mxu1 %v4328_v27 }
 0x510   :  { %3984 = vmatprep.subr.bf16.mxu1 %v4624_v35 }
 0x513   :  { %3985 = vmatpush3.bf16.msra.mxu1 %v4329_v29 }
 0x514   :  { %3986 = vmatprep.subr.bf16.mxu1 %v4624_v35 }
 0x517   :  { %3987 = vmatpush3.bf16.msra.mxu1 %v4330_v30 }
 0x518   :  { %3988 = vmatprep.subr.bf16.mxu1 %v4624_v35 }
 0x51b   :  { %3989 = vmatpush3.bf16.msra.mxu1 %v4331_v34 }
 0x51c   :  { %4014 = vmatprep.subr.bf16.mxu1 %v4624_v35 }
 0x51e   :  { %3991 = vmatmul.mubr.msk.bf16.vlgmr.msra.gmra.mrb[20].mxu1 %vm3422_vm7, %v4626_v15 }
 0x51f   :  { %4030 = vmatprep.mubr.msk.bf16.mxu1 %vm4625_vm0, %v4624_v35 }
 0x5d1   :  { %v1470_v23 = vpop.f32.mrb[16].mxu1 }
 0x5d2   :  { %v1471_v41 = vadd.f32 %v4912_v8, %v1470_v23  ;;  %v3952_v42 = vpop.f32.mrb[17].mxu1 }
 0x5d3   :  { %v1473_v44 = vpop.f32.mrb[18].mxu1  ;;  %v1878_v42 = vmul.f32 0.8, %v4980_v18  ;;  %v4358_v18 = vld [vmem:[#allocation16 + $0x10] sm:$0xff]  }
 0x5d4   :  { %v1481_v46 = vadd.f32 %v1480_v40, %v1471_v41  ;;  %v3953_v47 = vpop.f32.mrb[19].mxu1  ;;  %v3437_v40 = vsel %vm1361_vm3, 1.0, %v4624_v35 }
 0x5d5   :  { %v1880_v47 = vmul.f32 0.5, %v3437_v40 }
 0x5d6   :  { %v5015_v48 = vsub.f32 %v1481_v46, %v1482_v45 }
 0x5d8   :  { %vm1485_vm5 = vcmp.gt.f32.partialorder %v5015_v48, 0.5 }
 0x5d9   :  { %vm3407_vm8 = vmpackc.low %vm1485_vm5, %vm1485_vm5  ;;  %v3450_v28 = vsel %vm1485_vm5, 1.0, %v4624_v35  ;;  %vm2679_vm5 = vcmp.gt.f32.partialorder %v2677_v33, 0.5 }
 0x5da   :  { %3971 = vmatmul.mubr.msk.bf16.vlgmr.msra.gmra.mrb[20].mxu0 %vm3407_vm8, %v4626_v15  ;;  %vm3530_vm8 = vmpackc.low %vm2679_vm5, %vm2679_vm5 }
 0x5db   :  { %3995 = vmatpush3.bf16.msra.mxu0 %v4340_v49  ;;  %4010 = vmatprep.mubr.msk.bf16.mxu0 %vm4625_vm0, %v4624_v35 }
 0x5dc   :  { %3996 = vmatprep.subr.bf16.mxu0 %v4624_v35 }
 0x5df   :  { %3997 = vmatpush3.bf16.msra.mxu0 %v4341_v10 }
 0x5e0   :  { %3998 = vmatprep.subr.bf16.mxu0 %v4624_v35 }
 0x5e3   :  { %3999 = vmatpush3.bf16.msra.mxu0 %v4342_v50  ;;  %v4356_v50 = vld [vmem:[#allocation16] sm:$0xff]  }
 0x5e4   :  { %4000 = vmatprep.subr.bf16.mxu0 %v4624_v35 }
 0x5e7   :  { %4001 = vmatpush3.bf16.msra.mxu0 %v4343_v52  ;;  %v4364_v52 = vld [vmem:[#allocation20] sm:$0xff]  }
 0x5e8   :  { %4002 = vmatprep.subr.bf16.mxu0 %v4624_v35 }
 0x5eb   :  { %4003 = vmatpush3.bf16.msra.mxu0 %v4344_v54  ;;  %v4365_v54 = vld [vmem:[#allocation20 + $0x8] sm:$0xff]  }
 0x5ec   :  { %4004 = vmatprep.subr.bf16.mxu0 %v4624_v35 }
 0x5ef   :  { %4005 = vmatpush3.bf16.msra.mxu0 %v4345_v56  ;;  %v4359_v56 = vld [vmem:[#allocation16 + $0x18] sm:$0xff]  }
 0x5f0   :  { %4006 = vmatprep.subr.bf16.mxu0 %v4624_v35 }
 0x5f1   :  { %v1744_v61 = vpop.f32.mrb[20].mxu1 }
 0x5f2   :  { %v1745_v63 = vadd.f32 %v4859_v43, %v1744_v61  ;;  %v3992_v1 = vpop.f32.mrb[21].mxu1  ;;  %v4348_v43 = vld [vmem:[#allocation19] sm:$0xff]  }
 0x5f3   :  { %v1747_v2 = vpop.f32.mrb[22].mxu1  ;;  %4007 = vmatpush3.bf16.msra.mxu0 %v4346_v58  ;;  %4015 = vmatpush3.bf16.msra.mxu1 %v4348_v43  ;;  %v4366_v58 = vld [vmem:[#allocation20 + $0x10] sm:$0xff]   ;;  %v4360_v61 = vld [vmem:[#allocation16 + $0x20] sm:$0xff]  }
 0x5f4   :  { %v1755_v4 = vadd.f32 %v1754_v0, %v1745_v63  ;;  %v3993_v6 = vpop.f32.mrb[23].mxu1  ;;  %4008 = vmatprep.subr.bf16.mxu0 %v4624_v35  ;;  %4016 = vmatprep.subr.bf16.mxu1 %v4624_v35  ;;  %v4361_v63 = vld [vmem:[#allocation16 + $0x28] sm:$0xff]   ;;  %v4368_v0 = vld [vmem:[#allocation20 + $0x20] sm:$0xff]   ;;  %v4362_v1 = vld [vmem:[#allocation16 + $0x30] sm:$0xff]  }
 0x5f5   :  { %v4369_v2 = vld [vmem:[#allocation20 + $0x28] sm:$0xff]  }
 0x5f6   :  { %v5036_v7 = vsub.f32 %v1755_v4, %v1756_v5  ;;  %v4370_v4 = vld [vmem:[#allocation20 + $0x30] sm:$0xff]   ;;  %v4371_v5 = vld [vmem:[#allocation20 + $0x38] sm:$0xff]  }
 0x5f7   :  { %4009 = vmatpush3.bf16.msra.mxu0 %v4347_v3  ;;  %4017 = vmatpush3.bf16.msra.mxu1 %v4349_v38  ;;  %v4363_v3 = vld [vmem:[#allocation16 + $0x38] sm:$0xff]   ;;  %v2002_v38 = vmul.f32 0.8, %v5015_v48  ;;  %v4374_v48 = vld [vmem:[#allocation17 + $0x10] sm:$0xff]  }
 0x5f8   :  { %vm1759_vm9 = vcmp.gt.f32.partialorder %v5036_v7, 0.5  ;;  %4034 = vmatprep.subr.bf16.mxu0 %v4624_v35  ;;  %4018 = vmatprep.subr.bf16.mxu1 %v4624_v35 }
 0x5f9   :  { %vm3435_vm10 = vmpackc.low %vm1759_vm9, %vm1759_vm9 }
 0x5fa   :  { %4011 = vmatmul.mubr.msk.bf16.vlgmr.msra.gmra.mrb[24].mxu0 %vm3435_vm10, %v4626_v15 }
 0x5fb   :  { %4050 = vmatprep.mubr.msk.bf16.mxu0 %vm4625_vm0, %v4624_v35  ;;  %4019 = vmatpush3.bf16.msra.mxu1 %v4350_v9 }
 0x5fc   :  { %4020 = vmatprep.subr.bf16.mxu1 %v4624_v35  ;;  %4035 = vmatpush3.bf16.msra.mxu0 %v4364_v52 }
 0x5fd   :  { %4036 = vmatprep.subr.bf16.mxu0 %v4624_v35 }
 0x5ff   :  { %4021 = vmatpush3.bf16.msra.mxu1 %v4351_v11 }
 0x600   :  { %4022 = vmatprep.subr.bf16.mxu1 %v4624_v35  ;;  %4037 = vmatpush3.bf16.msra.mxu0 %v4365_v54 }
 0x601   :  { %4038 = vmatprep.subr.bf16.mxu0 %v4624_v35 }
 0x603   :  { %4023 = vmatpush3.bf16.msra.mxu1 %v4352_v12 }
 0x604   :  { %4024 = vmatprep.subr.bf16.mxu1 %v4624_v35  ;;  %4039 = vmatpush3.bf16.msra.mxu0 %v4366_v58 }
 0x605   :  { %4040 = vmatprep.subr.bf16.mxu0 %v4624_v35 }
 0x607   :  { %4025 = vmatpush3.bf16.msra.mxu1 %v4353_v13  ;;  %v2004_v13 = vmul.f32 0.5, %v3450_v28 }
 0x608   :  { %4026 = vmatprep.subr.bf16.mxu1 %v4624_v35  ;;  %4041 = vmatpush3.bf16.msra.mxu0 %v4367_v62 }
 0x609   :  { %4042 = vmatprep.subr.bf16.mxu0 %v4624_v35 }
 0x60b   :  { %4027 = vmatpush3.bf16.msra.mxu1 %v4354_v14 }
 0x60c   :  { %4028 = vmatprep.subr.bf16.mxu1 %v4624_v35  ;;  %4043 = vmatpush3.bf16.msra.mxu0 %v4368_v0 }
 0x60d   :  { %4044 = vmatprep.subr.bf16.mxu0 %v4624_v35 }
 0x60f   :  { %4029 = vmatpush3.bf16.msra.mxu1 %v4355_v16 }
 0x610   :  { %4054 = vmatprep.subr.bf16.mxu1 %v4624_v35  ;;  %4045 = vmatpush3.bf16.msra.mxu0 %v4369_v2 }
 0x611   :  { %4046 = vmatprep.subr.bf16.mxu0 %v4624_v35 }
 0x614   :  { %4047 = vmatpush3.bf16.msra.mxu0 %v4370_v4 }
 0x615   :  { %4048 = vmatprep.subr.bf16.mxu0 %v4624_v35 }
 0x618   :  { %4049 = vmatpush3.bf16.msra.mxu0 %v4371_v5 }
 0x619   :  { %4074 = vmatprep.subr.bf16.mxu0 %v4624_v35 }
 0x6ad   :  { %v1594_v17 = vpop.f32.mrb[20].mxu0 }
 0x6ae   :  { %v1595_v20 = vadd.f32 %v4960_v51, %v1594_v17  ;;  %v3972_v59 = vpop.f32.mrb[21].mxu0  ;;  %v4372_v17 = vld [vmem:[#allocation17] sm:$0xff]  }
 0x6af   :  { %v1597_v21 = vpop.f32.mrb[22].mxu0  ;;  %v4377_v59 = vld [vmem:[#allocation17 + $0x28] sm:$0xff]  }
 0x6b0   :  { %v1605_v24 = vadd.f32 %v1604_v19, %v1595_v20  ;;  %v3973_v25 = vpop.f32.mrb[23].mxu0  ;;  %v4375_v19 = vld [vmem:[#allocation17 + $0x18] sm:$0xff]   ;;  %v4376_v20 = vld [vmem:[#allocation17 + $0x20] sm:$0xff]   ;;  %v5123_v21 = vld [vmem:[%s5323_s5] ss:$0 sm:$0xff] }
 0x6b1   :  { %v3478_v25 = vsel %vm1759_vm9, 1.0, %v4624_v35 }
 0x6b2   :  { %v5057_v26 = vsub.f32 %v1605_v24, %v1606_v22  ;;  %v4378_v22 = vld [vmem:[#allocation17 + $0x30] sm:$0xff]  }
 0x6b4   :  { %vm1609_vm11 = vcmp.gt.f32.partialorder %v5057_v26, 0.5 }
 0x6b5   :  { %v5061_v27 = vsel %vm1609_vm11, 1.0, %v4624_v35 }
 0x6b6   :  { %v1615_v29 = vmul.f32 %v5061_v27, %v4966_v55  ;;  %v2128_v58 = vmul.f32 0.5, %v5061_v27 }
 0x6b8   :  { %v1616_v30 = vrot.slane %v1615_v29, 4 }
 0x6ba   :  { %v1617_v53 = vadd.f32 %v1616_v30, %v1615_v29  ;;  %v2276_v30 = vmul.f32 0.8, %v5036_v7  ;;  %v4380_v7 = vld [vmem:[#allocation19] sm:$0xff]  }
 0x6bc   :  { %v1618_v34 = vrot.slane %v1617_v53, 2 }
 0x6be   :  { %v1619_v36 = vadd.f32 %v1618_v34, %v1617_v53 }
 0x6c0   :  { %v1620_v37 = vrot.slane %v1619_v36, 1 }
 0x6c2   :  { %v1621_v39 = vadd.f32 %v1620_v37, %v1619_v36  ;;  %v4379_v36 = vld [vmem:[#allocation17 + $0x38] sm:$0xff]  }
 0x6c4   :  { %1622 = vadd.xlane.f32.xlu0 %v1621_v39  ;;  %v2278_v39 = vmul.f32 0.5, %v3478_v25  ;;  %v4399_v25 = vld [vmem:[#allocation20 + $0x18] sm:$0xff]  }
 0x6cd   :  { %v1868_v23 = vpop.f32.mrb[24].mxu0 }
 0x6ce   :  { %v1869_v41 = vadd.f32 %v4882_v57, %v1868_v23  ;;  %v4012_v44 = vpop.f32.mrb[25].mxu0  ;;  %v4357_v57 = vld [vmem:[#allocation16 + $0x8] sm:$0xff]  }
 0x6cf   :  { %v1871_v45 = vpop.f32.mrb[26].mxu0  ;;  %v4383_v44 = vld [vmem:[#allocation19 + $0x18] sm:$0xff]  }
 0x6d0   :  { %v1879_v46 = vadd.f32 %v1878_v42, %v1869_v41  ;;  %v4013_v49 = vpop.f32.mrb[27].mxu0  ;;  %v4381_v41 = vld [vmem:[#allocation19 + $0x8] sm:$0xff]   ;;  %v4382_v42 = vld [vmem:[#allocation19 + $0x10] sm:$0xff]   ;;  %v4384_v45 = vld [vmem:[#allocation19 + $0x20] sm:$0xff]  }
 0x6d1   :  { %v4387_v49 = vld [vmem:[#allocation19 + $0x38] sm:$0xff]  }
 0x6d2   :  { %v5070_v10 = vsub.f32 %v1879_v46, %v1880_v47  ;;  %v4385_v46 = vld [vmem:[#allocation19 + $0x28] sm:$0xff]   ;;  %v4386_v47 = vld [vmem:[#allocation19 + $0x30] sm:$0xff]  }
 0x6d4   :  { %vm1883_vm12 = vcmp.gt.f32.partialorder %v5070_v10, 0.5 }
 0x6d5   :  { %vm3448_vm13 = vmpackc.low %vm1883_vm12, %vm1883_vm12  ;;  %v3491_v28 = vsel %vm1883_vm12, 1.0, %v4624_v35 }
 0x6d6   :  { %4031 = vmatmul.mubr.msk.bf16.vlgmr.msra.gmra.mrb[24].mxu1 %vm3448_vm13, %v4626_v15 }
 0x6d7   :  { %4055 = vmatpush3.bf16.msra.mxu1 %v4356_v50  ;;  %4070 = vmatprep.mubr.msk.bf16.mxu1 %vm4625_vm0, %v4624_v35 }
 0x6d8   :  { %4056 = vmatprep.subr.bf16.mxu1 %v4624_v35 }
 0x6db   :  { %4057 = vmatpush3.bf16.msra.mxu1 %v4357_v57 }
 0x6dc   :  { %4058 = vmatprep.subr.bf16.mxu1 %v4624_v35 }
 0x6df   :  { %4059 = vmatpush3.bf16.msra.mxu1 %v4358_v18  ;;  %v2126_v18 = vmul.f32 0.8, %v5057_v26 }
 0x6e0   :  { %4060 = vmatprep.subr.bf16.mxu1 %v4624_v35 }
 0x6e3   :  { %4061 = vmatpush3.bf16.msra.mxu1 %v4359_v56 }
 0x6e4   :  { %4062 = vmatprep.subr.bf16.mxu1 %v4624_v35 }
 0x6e7   :  { %4063 = vmatpush3.bf16.msra.mxu1 %v4360_v61 }
 0x6e8   :  { %4064 = vmatprep.subr.bf16.mxu1 %v4624_v35 }
 0x6eb   :  { %4065 = vmatpush3.bf16.msra.mxu1 %v4361_v63  ;;  %v1613_v63 = vadd.f32 %v5061_v27, %v4970_v60  ;;  %v5169_v60 = vld [vmem:[%s5325_s7] ss:$0 sm:$0xff] }
 0x6ec   :  { %4066 = vmatprep.subr.bf16.mxu1 %v4624_v35 }
 0x6ef   :  { %4067 = vmatpush3.bf16.msra.mxu1 %v4362_v1 }
 0x6f0   :  { %4068 = vmatprep.subr.bf16.mxu1 %v4624_v35 }
 0x6f3   :  { %4069 = vmatpush3.bf16.msra.mxu1 %v4363_v3 }
 0x6f4   :  { %4094 = vmatprep.subr.bf16.mxu1 %v4624_v35 }
 0x6f6   :  { %4071 = vmatmul.mubr.msk.bf16.vlgmr.msra.gmra.mrb[28].mxu1 %vm3476_vm14, %v4626_v15 }
 0x6f7   :  { %4110 = vmatprep.mubr.msk.bf16.mxu1 %vm4625_vm0, %v4624_v35  ;;  %4095 = vmatpush3.bf16.msra.mxu1 %v4380_v7 }
 0x6f8   :  { %4096 = vmatprep.subr.bf16.mxu1 %v4624_v35 }
 0x6fb   :  { %4097 = vmatpush3.bf16.msra.mxu1 %v4381_v41 }
 0x6fc   :  { %4098 = vmatprep.subr.bf16.mxu1 %v4624_v35 }
 0x6ff   :  { %4099 = vmatpush3.bf16.msra.mxu1 %v4382_v42 }
 0x700   :  { %4100 = vmatprep.subr.bf16.mxu1 %v4624_v35 }
 0x703   :  { %4101 = vmatpush3.bf16.msra.mxu1 %v4383_v44 }
 0x704   :  { %4102 = vmatprep.subr.bf16.mxu1 %v4624_v35 }
 0x707   :  { %4103 = vmatpush3.bf16.msra.mxu1 %v4384_v45 }
 0x708   :  { %4104 = vmatprep.subr.bf16.mxu1 %v4624_v35 }
 0x70b   :  { %4105 = vmatpush3.bf16.msra.mxu1 %v4385_v46 }
 0x70c   :  { %4106 = vmatprep.subr.bf16.mxu1 %v4624_v35 }
 0x70f   :  { %4107 = vmatpush3.bf16.msra.mxu1 %v4386_v47 }
 0x710   :  { %4108 = vmatprep.subr.bf16.mxu1 %v4624_v35 }
 0x713   :  { %4109 = vmatpush3.bf16.msra.mxu1 %v4387_v49  ;;  %v4404_v49 = vld [vmem:[#allocation17] sm:$0xff]  }
 0x714   :  { %4134 = vmatprep.subr.bf16.mxu1 %v4624_v35 }
 0x7a9   :  { %v1992_v6 = vpop.f32.mrb[24].mxu1 }
 0x7aa   :  { %v1993_v43 = vadd.f32 %v4912_v8, %v1992_v6  ;;  %v4032_v9 = vpop.f32.mrb[25].mxu1  ;;  %v4373_v8 = vld [vmem:[#allocation17 + $0x8] sm:$0xff]  }
 0x7ab   :  { %v1995_v11 = vpop.f32.mrb[26].mxu1 }
 0x7ac   :  { %v2003_v12 = vadd.f32 %v2002_v38, %v1993_v43  ;;  %v4033_v14 = vpop.f32.mrb[27].mxu1  ;;  %v2400_v38 = vmul.f32 0.8, %v5070_v10  ;;  %v4396_v10 = vld [vmem:[#allocation20] sm:$0xff]  }
 0x7ae   :  { %v5106_v16 = vsub.f32 %v2003_v12, %v2004_v13  ;;  %v2402_v13 = vmul.f32 0.5, %v3491_v28  ;;  %v4415_v28 = vld [vmem:[#allocation19 + $0x18] sm:$0xff]  }
 0x7b0   :  { %vm2007_vm6 = vcmp.gt.f32.partialorder %v5106_v16, 0.5  ;;  %v2524_v7 = vmul.f32 0.8, %v5106_v16  ;;  %v4406_v16 = vld [vmem:[#allocation17 + $0x10] sm:$0xff]  }
 0x7b1   :  { %vm3461_vm15 = vmpackc.low %vm2007_vm6, %vm2007_vm6  ;;  %v3504_v33 = vsel %vm2007_vm6, 1.0, %v4624_v35 }
 0x7b2   :  { %4051 = vmatmul.mubr.msk.bf16.vlgmr.msra.gmra.mrb[28].mxu0 %vm3461_vm15, %v4626_v15  ;;  %v2526_v45 = vmul.f32 0.5, %v3504_v33 }
 0x7b3   :  { %4075 = vmatpush3.bf16.msra.mxu0 %v4372_v17  ;;  %4090 = vmatprep.mubr.msk.bf16.mxu0 %vm4625_vm0, %v4624_v35 }
 0x7b4   :  { %4076 = vmatprep.subr.bf16.mxu0 %v4624_v35 }
 0x7b7   :  { %4077 = vmatpush3.bf16.msra.mxu0 %v4373_v8  ;;  %v4388_v8 = vld [vmem:[#allocation16] sm:$0xff]  }
 0x7b8   :  { %4078 = vmatprep.subr.bf16.mxu0 %v4624_v35 }
 0x7bb   :  { %4079 = vmatpush3.bf16.msra.mxu0 %v4374_v48  ;;  %v4389_v48 = vld [vmem:[#allocation16 + $0x8] sm:$0xff]  }
 0x7bc   :  { %4080 = vmatprep.subr.bf16.mxu0 %v4624_v35 }
 0x7bf   :  { %4081 = vmatpush3.bf16.msra.mxu0 %v4375_v19  ;;  %v4390_v19 = vld [vmem:[#allocation16 + $0x10] sm:$0xff]  }
 0x7c0   :  { %4082 = vmatprep.subr.bf16.mxu0 %v4624_v35 }
 0x7c3   :  { %4083 = vmatpush3.bf16.msra.mxu0 %v4376_v20  ;;  %v4397_v20 = vld [vmem:[#allocation20 + $0x8] sm:$0xff]  }
 0x7c4   :  { %4084 = vmatprep.subr.bf16.mxu0 %v4624_v35 }
 0x7c7   :  { %4085 = vmatpush3.bf16.msra.mxu0 %v4377_v59  ;;  %v4391_v59 = vld [vmem:[#allocation16 + $0x18] sm:$0xff]  }
 0x7c8   :  { %4086 = vmatprep.subr.bf16.mxu0 %v4624_v35 }
 0x7c9   :  { %v2266_v24 = vpop.f32.mrb[28].mxu1 }
 0x7ca   :  { %v2267_v29 = vadd.f32 %v5123_v21, %v2266_v24  ;;  %v4072_v53 = vpop.f32.mrb[29].mxu1  ;;  %v4392_v24 = vld [vmem:[#allocation16 + $0x20] sm:$0xff]  }
 0x7cb   :  { %v2269_v34 = vpop.f32.mrb[30].mxu1  ;;  %4087 = vmatpush3.bf16.msra.mxu0 %v4378_v22  ;;  %v4398_v22 = vld [vmem:[#allocation20 + $0x10] sm:$0xff]  }
 0x7cc   :  { %v2277_v37 = vadd.f32 %v2276_v30, %v2267_v29  ;;  %v4073_v23 = vpop.f32.mrb[31].mxu1  ;;  %4088 = vmatprep.subr.bf16.mxu0 %v4624_v35  ;;  %v4393_v29 = vld [vmem:[#allocation16 + $0x28] sm:$0xff]   ;;  %v4400_v30 = vld [vmem:[#allocation20 + $0x20] sm:$0xff]   ;;  %v4394_v53 = vld [vmem:[#allocation16 + $0x30] sm:$0xff]  }
 0x7cd   :  { %v4401_v34 = vld [vmem:[#allocation20 + $0x28] sm:$0xff]  }
 0x7ce   :  { %v5132_v40 = vsub.f32 %v2277_v37, %v2278_v39  ;;  %v4402_v37 = vld [vmem:[#allocation20 + $0x30] sm:$0xff]   ;;  %v4403_v39 = vld [vmem:[#allocation20 + $0x38] sm:$0xff]  }
 0x7cf   :  { %4089 = vmatpush3.bf16.msra.mxu0 %v4379_v36  ;;  %v4395_v36 = vld [vmem:[#allocation16 + $0x38] sm:$0xff]  }
 0x7d0   :  { %vm2281_vm1 = vcmp.gt.f32.partialorder %v5132_v40, 0.5  ;;  %4114 = vmatprep.subr.bf16.mxu0 %v4624_v35 }
 0x7d1   :  { %vm3489_vm2 = vmpackc.low %vm2281_vm1, %vm2281_vm1 }
 0x7d2   :  { %4091 = vmatmul.mubr.msk.bf16.vlgmr.msra.gmra.mrb[32].mxu0 %vm3489_vm2, %v4626_v15 }
 0x7d3   :  { %4130 = vmatprep.mubr.msk.bf16.mxu0 %vm4625_vm0, %v4624_v35  ;;  %4115 = vmatpush3.bf16.msra.mxu0 %v4396_v10 }
 0x7d4   :  { %4116 = vmatprep.subr.bf16.mxu0 %v4624_v35 }
 0x7d7   :  { %4117 = vmatpush3.bf16.msra.mxu0 %v4397_v20 }
 0x7d8   :  { %4118 = vmatprep.subr.bf16.mxu0 %v4624_v35 }
 0x7db   :  { %4119 = vmatpush3.bf16.msra.mxu0 %v4398_v22 }
 0x7dc   :  { %4120 = vmatprep.subr.bf16.mxu0 %v4624_v35 }
 0x7df   :  { %4121 = vmatpush3.bf16.msra.mxu0 %v4399_v25 }
 0x7e0   :  { %4122 = vmatprep.subr.bf16.mxu0 %v4624_v35 }
 0x7e3   :  { %4123 = vmatpush3.bf16.msra.mxu0 %v4400_v30 }
 0x7e4   :  { %4124 = vmatprep.subr.bf16.mxu0 %v4624_v35 }
 0x7e7   :  { %4125 = vmatpush3.bf16.msra.mxu0 %v4401_v34 }
 0x7e8   :  { %4126 = vmatprep.subr.bf16.mxu0 %v4624_v35 }
 0x7eb   :  { %4127 = vmatpush3.bf16.msra.mxu0 %v4402_v37 }
 0x7ec   :  { %4128 = vmatprep.subr.bf16.mxu0 %v4624_v35 }
 0x7ef   :  { %4129 = vmatpush3.bf16.msra.mxu0 %v4403_v39 }
 0x7f0   :  { %4154 = vmatprep.subr.bf16.mxu0 %v4624_v35 }
 0x885   :  { %v2116_v50 = vpop.f32.mrb[28].mxu0 }
 0x886   :  { %v2117_v57 = vadd.f32 %v4960_v51, %v2116_v50  ;;  %v4052_v52 = vpop.f32.mrb[29].mxu0  ;;  %v4405_v50 = vld [vmem:[#allocation17 + $0x8] sm:$0xff]  }
 0x887   :  { %v2119_v54 = vpop.f32.mrb[30].mxu0  ;;  %v4409_v52 = vld [vmem:[#allocation17 + $0x28] sm:$0xff]  }
 0x888   :  { %v2127_v56 = vadd.f32 %v2126_v18, %v2117_v57  ;;  %v4053_v61 = vpop.f32.mrb[31].mxu0  ;;  %v4407_v57 = vld [vmem:[#allocation17 + $0x18] sm:$0xff]   ;;  %v4408_v18 = vld [vmem:[#allocation17 + $0x20] sm:$0xff]   ;;  %v4410_v54 = vld [vmem:[#allocation17 + $0x30] sm:$0xff]  }
 0x88a   :  { %v5153_v62 = vsub.f32 %v2127_v56, %v2128_v58  ;;  %v3532_v58 = vsel %vm2281_vm1, 1.0, %v4624_v35 }
 0x88c   :  { %vm2131_vm3 = vcmp.gt.f32.partialorder %v5153_v62, 0.5 }
 0x88d   :  { %v5159_v0 = vsel %vm2131_vm3, 1.0, %v4624_v35 }
 0x88e   :  { %v2137_v51 = vmul.f32 %v5159_v0, %v4966_v55  ;;  %v5164_v26 = vadd.f32 %v5159_v0, %v1613_v63  ;;  %v2798_v63 = vmul.f32 0.8, %v5132_v40  ;;  %v4413_v40 = vld [vmem:[#allocation19 + $0x8] sm:$0xff]   ;;  %v2650_v20 = vmul.f32 0.5, %v5159_v0 }
 0x890   :  { %v2138_v1 = vrot.slane %v2137_v51, 4 }
 0x892   :  { %v2139_v2 = vadd.f32 %v2138_v1, %v2137_v51 }
 0x894   :  { %v2140_v3 = vrot.slane %v2139_v2, 2 }
 0x896   :  { %v2141_v4 = vadd.f32 %v2140_v3, %v2139_v2  ;;  %v4411_v2 = vld [vmem:[#allocation17 + $0x38] sm:$0xff]  }
 0x898   :  { %v2142_v5 = vrot.slane %v2141_v4, 1 }
 0x89a   :  { %v2143_v6 = vadd.f32 %v2142_v5, %v2141_v4  ;;  %v2800_v4 = vmul.f32 0.5, %v3532_v58 }
 0x89c   :  { %2144 = vadd.xlane.f32.xlu1 %v2143_v6 }
 0x8a5   :  { %v2390_v27 = vpop.f32.mrb[32].mxu0 }
 0x8a6   :  { %v2391_v43 = vadd.f32 %v5169_v60, %v2390_v27  ;;  %v4092_v9 = vpop.f32.mrb[33].mxu0  ;;  %v4414_v27 = vld [vmem:[#allocation19 + $0x10] sm:$0xff]  }
 0x8a7   :  { %v2393_v11 = vpop.f32.mrb[34].mxu0  ;;  %v4418_v9 = vld [vmem:[#allocation19 + $0x30] sm:$0xff]  }
 0x8a8   :  { %v2401_v12 = vadd.f32 %v2400_v38, %v2391_v43  ;;  %v4093_v14 = vpop.f32.mrb[35].mxu0  ;;  %v4416_v43 = vld [vmem:[#allocation19 + $0x20] sm:$0xff]   ;;  %v4417_v38 = vld [vmem:[#allocation19 + $0x28] sm:$0xff]   ;;  %v4419_v11 = vld [vmem:[#allocation19 + $0x38] sm:$0xff]  }
 0x8aa   :  { %v5176_v17 = vsub.f32 %v2401_v12, %v2402_v13  ;;  %v5252_v12 = vld [vmem:[%s5329_s11] ss:$0 sm:$0xff]  ;;  %s4627_s11 = smov [#allocation22]  }
 0x8ab   :  { %s3233_s27 = sshll.u32 %s4627_s11, 4  ;;  %s3234_s27 = int_to_ptr.vmem [resolvable:$true] %s3233_s27 }
 0x8ac   :  { %vm2405_vm4 = vcmp.gt.f32.partialorder %v5176_v17, 0.5  ;;  %v2922_v33 = vmul.f32 0.8, %v5176_v17  ;;  %v4424_v17 = vld [vmem:[#allocation20 + $0x20] sm:$0xff]   ;;  %s4560_s1 = scalar_lea.vmem %s3234_s27, 128  ;;  %p4565_p7 = scmp.lt.s32.totalorder %s3234_s27, %s3234_s27 }
 0x8ad   :  { %vm3502_vm7 = vmpackc.low %vm2405_vm4, %vm2405_vm4  ;;  %v3545_v39 = vsel %vm2405_vm4, 1.0, %v4624_v35  ;;  %p4561_p6 = scmp.ne.s32.totalorder %s3234_s27, %s4560_s1  ;;  %p4566_p8 = scmp.lt.s32.totalorder %s4560_s1, %s4560_s1 }
 0x8ae   :  { %4111 = vmatmul.mubr.msk.bf16.vlgmr.msra.gmra.mrb[32].mxu1 %vm3502_vm7, %v4626_v15 }
 0x8af   :  { %4135 = vmatpush3.bf16.msra.mxu1 %v4388_v8  ;;  %4150 = vmatprep.mubr.msk.bf16.mxu1 %vm4625_vm0, %v4624_v35  ;;  %v2648_v8 = vmul.f32 0.8, %v5153_v62  ;;  %p4567_p9 = por %p4566_p8, %p4565_p7 }
 0x8b0   :  { %4136 = vmatprep.subr.bf16.mxu1 %v4624_v35 }
 0x8b1   :  { %p4568_p10 = pnand %p4567_p9, %p4561_p6 }
 0x8b3   :  { %4137 = vmatpush3.bf16.msra.mxu1 %v4389_v48 }
 0x8b4   :  { %4138 = vmatprep.subr.bf16.mxu1 %v4624_v35 }
 0x8b7   :  { %4139 = vmatpush3.bf16.msra.mxu1 %v4390_v19 }
 0x8b8   :  { %4140 = vmatprep.subr.bf16.mxu1 %v4624_v35 }
 0x8bb   :  { %4141 = vmatpush3.bf16.msra.mxu1 %v4391_v59 }
 0x8bc   :  { %4142 = vmatprep.subr.bf16.mxu1 %v4624_v35 }
 0x8bf   :  { %4143 = vmatpush3.bf16.msra.mxu1 %v4392_v24 }
 0x8c0   :  { %4144 = vmatprep.subr.bf16.mxu1 %v4624_v35 }
 0x8c3   :  { %4145 = vmatpush3.bf16.msra.mxu1 %v4393_v29 }
 0x8c4   :  { %4146 = vmatprep.subr.bf16.mxu1 %v4624_v35 }
 0x8c7   :  { %4147 = vmatpush3.bf16.msra.mxu1 %v4394_v53 }
 0x8c8   :  { %4148 = vmatprep.subr.bf16.mxu1 %v4624_v35 }
 0x8cb   :  { %4149 = vmatpush3.bf16.msra.mxu1 %v4395_v36 }
 0x8cc   :  { %4174 = vmatprep.subr.bf16.mxu1 %v4624_v35 }
 0x8ce   :  { %4151 = vmatmul.mubr.msk.bf16.vlgmr.msra.gmra.mrb[36].mxu1 %vm3530_vm8, %v4626_v15 }
 0x8cf   :  { %4190 = vmatprep.mubr.msk.bf16.mxu1 %vm4625_vm0, %v4624_v35 }
 0x981   :  { %v2514_v32 = vpop.f32.mrb[32].mxu1 }
 0x982   :  { %v2515_v23 = vadd.f32 %v5210_v31, %v2514_v32  ;;  %v4112_v41 = vpop.f32.mrb[33].mxu1 }
 0x983   :  { %v2517_v42 = vpop.f32.mrb[34].mxu1  ;;  %v2924_v41 = vmul.f32 0.5, %v3545_v39 }
 0x984   :  { %v2525_v44 = vadd.f32 %v2524_v7, %v2515_v23  ;;  %v4113_v46 = vpop.f32.mrb[35].mxu1 }
 0x985   :  { %v4421_v46 = vld [vmem:[#allocation20 + $0x8] sm:$0xff]  }
 0x986   :  { %v5217_v47 = vsub.f32 %v2525_v44, %v2526_v45  ;;  %v4420_v45 = vld [vmem:[#allocation20] sm:$0xff]  }
 0x988   :  { %vm2529_vm9 = vcmp.gt.f32.partialorder %v5217_v47, 0.5 }
 0x989   :  { %vm3515_vm10 = vmpackc.low %vm2529_vm9, %vm2529_vm9 }
 0x98a   :  { %4131 = vmatmul.mubr.msk.bf16.vlgmr.msra.gmra.mrb[36].mxu0 %vm3515_vm10, %v4626_v15 }
 0x98b   :  { %4155 = vmatpush3.bf16.msra.mxu0 %v4404_v49  ;;  %4170 = vmatprep.mubr.msk.bf16.mxu0 %vm4625_vm0, %v4624_v35  ;;  %v4422_v49 = vld [vmem:[#allocation20 + $0x10] sm:$0xff]  }
 0x98c   :  { %4156 = vmatprep.subr.bf16.mxu0 %v4624_v35 }
 0x98f   :  { %4157 = vmatpush3.bf16.msra.mxu0 %v4405_v50  ;;  %v4425_v50 = vld [vmem:[#allocation20 + $0x28] sm:$0xff]  }
 0x990   :  { %4158 = vmatprep.subr.bf16.mxu0 %v4624_v35 }
 0x993   :  { %4159 = vmatpush3.bf16.msra.mxu0 %v4406_v16  ;;  %v4426_v16 = vld [vmem:[#allocation20 + $0x30] sm:$0xff]  }
 0x994   :  { %4160 = vmatprep.subr.bf16.mxu0 %v4624_v35 }
 0x997   :  { %4161 = vmatpush3.bf16.msra.mxu0 %v4407_v57  ;;  %v4427_v57 = vld [vmem:[#allocation20 + $0x38] sm:$0xff]  }
 0x998   :  { %4162 = vmatprep.subr.bf16.mxu0 %v4624_v35 }
 0x99b   :  { %4163 = vmatpush3.bf16.msra.mxu0 %v4408_v18 }
 0x99c   :  { %4164 = vmatprep.subr.bf16.mxu0 %v4624_v35 }
 0x99f   :  { %4165 = vmatpush3.bf16.msra.mxu0 %v4409_v52  ;;  %v3558_v52 = vsel %vm2529_vm9, 1.0, %v4624_v35 }
 0x9a0   :  { %4166 = vmatprep.subr.bf16.mxu0 %v4624_v35 }
 0x9a1   :  { %v2788_v56 = vpop.f32.mrb[36].mxu1 }
 0x9a2   :  { %v2789_v61 = vadd.f32 %v5123_v21, %v2788_v56  ;;  %v4152_v51 = vpop.f32.mrb[37].mxu1  ;;  %v4412_v21 = vld [vmem:[#allocation19] sm:$0xff]   ;;  %v3046_v56 = vmul.f32 0.8, %v5217_v47 }
 0x9a3   :  { %v2791_v1 = vpop.f32.mrb[38].mxu1  ;;  %4167 = vmatpush3.bf16.msra.mxu0 %v4410_v54  ;;  %4175 = vmatpush3.bf16.msra.mxu1 %v4412_v21  ;;  %v3048_v51 = vmul.f32 0.5, %v3558_v52 }
 0x9a4   :  { %v2799_v3 = vadd.f32 %v2798_v63, %v2789_v61  ;;  %v4153_v5 = vpop.f32.mrb[39].mxu1  ;;  %4168 = vmatprep.subr.bf16.mxu0 %v4624_v35  ;;  %4176 = vmatprep.subr.bf16.mxu1 %v4624_v35 }
 0x9a6   :  { %v2801_v6 = vsub.f32 %v2799_v3, %v2800_v4 }
 0x9a7   :  { %4169 = vmatpush3.bf16.msra.mxu0 %v4411_v2  ;;  %4177 = vmatpush3.bf16.msra.mxu1 %v4413_v40 }
 0x9a8   :  { %vm2803_vm11 = vcmp.gt.f32.partialorder %v2801_v6, 0.5  ;;  %4194 = vmatprep.subr.bf16.mxu0 %v4624_v35  ;;  %4178 = vmatprep.subr.bf16.mxu1 %v4624_v35 }
 0x9a9   :  { %vm3543_vm12 = vmpackc.low %vm2803_vm11, %vm2803_vm11 }
 0x9aa   :  { %4171 = vmatmul.mubr.msk.bf16.vlgmr.msra.gmra.mrb[40].mxu0 %vm3543_vm12, %v4626_v15 }
 0x9ab   :  { %4210 = vmatprep.mubr.msk.bf16.mxu0 %vm4625_vm0, %v4624_v35  ;;  %4179 = vmatpush3.bf16.msra.mxu1 %v4414_v27 }
 0x9ac   :  { %4180 = vmatprep.subr.bf16.mxu1 %v4624_v35  ;;  %4195 = vmatpush3.bf16.msra.mxu0 %v4420_v45 }
 0x9ad   :  { %4196 = vmatprep.subr.bf16.mxu0 %v4624_v35 }
 0x9af   :  { %4181 = vmatpush3.bf16.msra.mxu1 %v4415_v28 }
 0x9b0   :  { %4182 = vmatprep.subr.bf16.mxu1 %v4624_v35  ;;  %4197 = vmatpush3.bf16.msra.mxu0 %v4421_v46 }
 0x9b1   :  { %4198 = vmatprep.subr.bf16.mxu0 %v4624_v35 }
 0x9b3   :  { %4183 = vmatpush3.bf16.msra.mxu1 %v4416_v43 }
 0x9b4   :  { %4184 = vmatprep.subr.bf16.mxu1 %v4624_v35  ;;  %4199 = vmatpush3.bf16.msra.mxu0 %v4422_v49 }
 0x9b5   :  { %4200 = vmatprep.subr.bf16.mxu0 %v4624_v35 }
 0x9b7   :  { %4185 = vmatpush3.bf16.msra.mxu1 %v4417_v38 }
 0x9b8   :  { %4186 = vmatprep.subr.bf16.mxu1 %v4624_v35 }
 0x9bb   :  { %4187 = vmatpush3.bf16.msra.mxu1 %v4418_v9 }
 0x9bc   :  { %4188 = vmatprep.subr.bf16.mxu1 %v4624_v35 }
 0x9bf   :  { %4189 = vmatpush3.bf16.msra.mxu1 %v4419_v11 }
 0xa5d   :  { %v2638_v13 = vpop.f32.mrb[36].mxu0 }
 0xa5e   :  { %v2639_v14 = vadd.f32 %v5252_v12, %v2638_v13  ;;  %v4132_v48 = vpop.f32.mrb[37].mxu0 }
 0xa5f   :  { %v2641_v10 = vpop.f32.mrb[38].mxu0 }
 0xa60   :  { %v2649_v19 = vadd.f32 %v2648_v8, %v2639_v14  ;;  %v4133_v59 = vpop.f32.mrb[39].mxu0 }
 0xa62   :  { %v5257_v22 = vsub.f32 %v2649_v19, %v2650_v20 }
 0xa64   :  { %vm2653_vm0 = vcmp.gt.f32.partialorder %v5257_v22, 0.5  ;;  %v3170_v5 = vmul.f32 0.8, %v5257_v22 }
 0xa65   :  { %v5261_v24 = vsel %vm2653_vm0, 1.0, %v4624_v35 }
 0xa66   :  { %v2659_v25 = vmul.f32 %v5261_v24, %v4966_v55  ;;  %v5267_v29 = vadd.f32 %v5261_v24, %v5164_v26  ;;  %v3172_v47 = vmul.f32 0.5, %v5261_v24 }
 0xa68   :  { %v2660_v62 = vrot.slane %v2659_v25, 4 }
 0xa6a   :  { %v2661_v30 = vadd.f32 %v2660_v62, %v2659_v25 }
 0xa6c   :  { %v2662_v53 = vrot.slane %v2661_v30, 2 }
 0xa6e   :  { %v2663_v34 = vadd.f32 %v2662_v53, %v2661_v30 }
 0xa70   :  { %v2664_v0 = vrot.slane %v2663_v34, 1 }
 0xa72   :  { %v2665_v36 = vadd.f32 %v2664_v0, %v2663_v34 }
 0xa74   :  { %2666 = vadd.xlane.f32.xlu1 %v2665_v36 }
 0xa7d   :  { %v2912_v37 = vpop.f32.mrb[40].mxu0 }
 0xa7e   :  { %v2913_v32 = vadd.f32 %v5169_v60, %v2912_v37  ;;  %v4172_v23 = vpop.f32.mrb[41].mxu0  ;;  %v4423_v60 = vld [vmem:[#allocation20 + $0x18] sm:$0xff]  }
 0xa7f   :  { %v2915_v7 = vpop.f32.mrb[42].mxu0  ;;  %4201 = vmatpush3.bf16.msra.mxu0 %v4423_v60 }
 0xa80   :  { %v2923_v26 = vadd.f32 %v2922_v33, %v2913_v32  ;;  %v4173_v42 = vpop.f32.mrb[43].mxu0  ;;  %4202 = vmatprep.subr.bf16.mxu0 %v4624_v35 }
 0xa82   :  { %v2925_v44 = vsub.f32 %v2923_v26, %v2924_v41 }
 0xa83   :  { %4203 = vmatpush3.bf16.msra.mxu0 %v4424_v17 }
 0xa84   :  { %vm2927_vm13 = vcmp.gt.f32.partialorder %v2925_v44, 0.5  ;;  %4204 = vmatprep.subr.bf16.mxu0 %v4624_v35 }
 0xa85   :  { %vm3556_vm14 = vmpackc.low %vm2927_vm13, %vm2927_vm13 }
 0xa86   :  { %4191 = vmatmul.mubr.msk.bf16.vlgmr.msra.gmra.mrb[40].mxu1 %vm3556_vm14, %v4626_v15 }
 0xa87   :  { %4205 = vmatpush3.bf16.msra.mxu0 %v4425_v50 }
 0xa88   :  { %4206 = vmatprep.subr.bf16.mxu0 %v4624_v35 }
 0xa8b   :  { %4207 = vmatpush3.bf16.msra.mxu0 %v4426_v16 }
 0xa8c   :  { %4208 = vmatprep.subr.bf16.mxu0 %v4624_v35 }
 0xa8f   :  { %4209 = vmatpush3.bf16.msra.mxu0 %v4427_v57 }
 0xb59   :  { %v3036_v18 = vpop.f32.mrb[40].mxu1 }
 0xb5a   :  { %v3037_v54 = vadd.f32 %v5210_v31, %v3036_v18  ;;  %v4192_v58 = vpop.f32.mrb[41].mxu1 }
 0xb5b   :  { %v3039_v61 = vpop.f32.mrb[42].mxu1 }
 0xb5c   :  { %v3047_v63 = vadd.f32 %v3046_v56, %v3037_v54  ;;  %v4193_v1 = vpop.f32.mrb[43].mxu1 }
 0xb5e   :  { %v3049_v2 = vsub.f32 %v3047_v63, %v3048_v51 }
 0xb60   :  { %vm3051_vm6 = vcmp.gt.f32.partialorder %v3049_v2, 0.5 }
 0xb61   :  { %vm3569_vm15 = vmpackc.low %vm3051_vm6, %vm3051_vm6 }
 0xb62   :  { %4211 = vmatmul.mubr.msk.bf16.vlgmr.msra.gmra.mrb[44].mxu0 %vm3569_vm15, %v4626_v15 }
 0xc35   :  { %v3160_v3 = vpop.f32.mrb[44].mxu0 }
 0xc36   :  { %v3161_v4 = vadd.f32 %v5252_v12, %v3160_v3  ;;  %v4212_v6 = vpop.f32.mrb[45].mxu0 }
 0xc37   :  { %v3163_v21 = vpop.f32.mrb[46].mxu0 }
 0xc38   :  { %v3171_v31 = vadd.f32 %v3170_v5, %v3161_v4  ;;  %v4213_v40 = vpop.f32.mrb[47].mxu0 }
 0xc3a   :  { %v3173_v27 = vsub.f32 %v3171_v31, %v3172_v47 }
 0xc3c   :  { %vm3175_vm1 = vcmp.gt.f32.partialorder %v3173_v27, 0.5 }
 0xc3d   :  { %v3572_v28 = vsel %vm3175_vm1, 1.0, %v4624_v35 }
 0xc3e   :  { %v3181_v43 = vmul.f32 %v3572_v28, %v4966_v55  ;;  %v3179_v38 = vadd.f32 %v3572_v28, %v5267_v29 }
 0xc40   :  { %v3182_v15 = vrot.slane %v3181_v43, 4  ;;  %v3192_v9 = vmul.f32 0.2, %v3179_v38 }
 0xc42   :  { %v3183_v11 = vadd.f32 %v3182_v15, %v3181_v43  ;;  %3193 = vst [vmem:[#allocation22] sm:$0xff] %v3192_v9 }
 0xc44   :  { %v3184_v12 = vrot.slane %v3183_v11, 2 }
 0xc46   :  { %v3185_v13 = vadd.f32 %v3184_v12, %v3183_v11 }
 0xc48   :  { %v3186_v14 = vrot.slane %v3185_v13, 1 }
 0xc4a   :  { %v3187_v8 = vadd.f32 %v3186_v14, %v3185_v13 }
 0xc4c   :  { %3188 = vadd.xlane.f32.xlu0 %v3187_v8 }
 0xc4d   :  { %4571 = shalt.err (!%p4568_p10)
}
 0xc4e   :  { %s4572_s29 = scalar_lea.hbm %s5330_s12, 128 }
 0xc4f   :  { %p4573_p11 = scmp.ne.s32.totalorder %s5330_s12, %s4572_s29  ;;  %p4576_p12 = scmp.lt.u32.totalorder %s4572_s29, %s5330_s12 }
 0xc51   :  { %p4578_p13 = pnand %p4576_p12, %p4573_p11 }
 0xc53   :  { %4581 = shalt.err (!%p4578_p13)
}
 0xc54   :  { %3236 = dma.vmem_to_hbm [thread:$0]  %s3234_s27, 128, %s5330_s12, [#allocation13]   ;;  %v1101_v35 = vpop.xlane.xlu0 %1100  ;;  %v2145_v10 = vpop.xlane.xlu1 %2144 }
 0xc55   :  { %v1102_v19 = vmul.f32 0.045454547, %v1101_v35  ;;  %v2146_v59 = vmul.f32 0.045454547, %v2145_v10  ;;  %s4628_s12 = smov [#allocation23]  }
 0xc56   :  { %s3243_s19 = sshll.u32 %s4628_s12, 4  ;;  %s3244_s19 = int_to_ptr.vmem [resolvable:$true] %s3243_s19 }
 0xc57   :  { %v3195_v0 = vmul.f32 0.001, %v1102_v19  ;;  %s4582_s6 = scalar_lea.vmem %s3244_s19, 128  ;;  %p4587_p1 = scmp.lt.s32.totalorder %s3244_s19, %s3244_s19 }
 0xc58   :  { %v1623_v55 = vpop.xlane.xlu0 %1622  ;;  %v2667_v22 = vpop.xlane.xlu1 %2666  ;;  %p4583_p0 = scmp.ne.s32.totalorder %s3244_s19, %s4582_s6  ;;  %p4588_p2 = scmp.lt.s32.totalorder %s4582_s6, %s4582_s6 }
 0xc59   :  { %v1624_v48 = vmul.f32 0.045454547, %v1623_v55  ;;  %v2668_v29 = vmul.f32 0.045454547, %v2667_v22 }
 0xc5a   :  { %p4589_p3 = por %p4588_p2, %p4587_p1 }
 0xc5b   :  { %v3197_v20 = vadd.f32 %v1624_v48, %v1102_v19 }
 0xc5c   :  { %p4590_p4 = pnand %p4589_p3, %p4583_p0 }
 0xc5d   :  { %v3200_v24 = vsub.f32 %v3197_v20, %v1102_v19  ;;  %v3204_v25 = vadd.f32 %v3197_v20, %v2146_v59  ;;  %v3198_v34 = vmul.f32 0.001, %v3197_v20 }
 0xc5f   :  { %v3201_v62 = vand.u32 2147483647, %v3200_v24  ;;  %v3207_v30 = vsub.f32 %v3204_v25, %v3197_v20  ;;  %v3211_v53 = vadd.f32 %v3204_v25, %v2668_v29  ;;  %v3199_v32 = vadd.f32 %v3198_v34, %v3195_v0 }
 0xc60   :  { %v3205_v33 = vmul.f32 0.001, %v3204_v25 }
 0xc61   :  { %v3202_v36 = vmul.f32 0.001, %v3201_v62  ;;  %v3208_v37 = vand.u32 2147483647, %v3207_v30  ;;  %v3214_v39 = vsub.f32 %v3211_v53, %v3204_v25  ;;  %v3212_v44 = vmul.f32 0.001, %v3211_v53 }
 0xc63   :  { %v3203_v23 = vadd.f32 %v3202_v36, %v3199_v32  ;;  %v3209_v7 = vmul.f32 0.001, %v3208_v37  ;;  %v3215_v26 = vand.u32 2147483647, %v3214_v39 }
 0xc65   :  { %v3206_v42 = vadd.f32 %v3205_v33, %v3203_v23  ;;  %v3216_v49 = vmul.f32 0.001, %v3215_v26 }
 0xc67   :  { %v3210_v46 = vadd.f32 %v3209_v7, %v3206_v42 }
 0xc69   :  { %v3213_v17 = vadd.f32 %v3212_v44, %v3210_v46 }
 0xc6b   :  { %v3217_v57 = vadd.f32 %v3216_v49, %v3213_v17 }
 0xcd9   :  { %v3189_v41 = vpop.xlane.xlu0 %3188 }
 0xcda   :  { %v3190_v45 = vmul.f32 0.045454547, %v3189_v41 }
 0xcdc   :  { %v3218_v60 = vadd.f32 %v3211_v53, %v3190_v45 }
 0xcde   :  { %v3219_v50 = vmul.f32 0.001, %v3218_v60  ;;  %v3221_v16 = vsub.f32 %v3218_v60, %v3211_v53 }
 0xce0   :  { %v3222_v18 = vand.u32 2147483647, %v3221_v16  ;;  %v3220_v52 = vadd.f32 %v3219_v50, %v3217_v57 }
 0xce2   :  { %v3223_v54 = vmul.f32 0.001, %v3222_v18 }
 0xce4   :  { %v3224_v56 = vadd.f32 %v3223_v54, %v3220_v52 }
 0xce6   :  { %v3225_v58 = vmul.f32 0.2, %v3224_v56 }
 0xce8   :  { %3226 = vst [vmem:[#allocation23] sm:$0xff] %v3225_v58 }
 0xce9   :  { %4593 = shalt.err (!%p4590_p4)
}
 0xcea   :  { %s4594_s16 = scalar_lea.hbm %s5331_s13, 128 }
 0xceb   :  { %p4595_p5 = scmp.ne.s32.totalorder %s5331_s13, %s4594_s16  ;;  %p4598_p6 = scmp.lt.u32.totalorder %s4594_s16, %s5331_s13 }
 0xced   :  { %p4600_p7 = pnand %p4598_p6, %p4595_p5 }
 0xcef   :  { %4603 = shalt.err (!%p4600_p7)
}
 0xcf0   :  { %3246 = dma.vmem_to_hbm [thread:$0]  %s3244_s19, 128, %s5331_s13, [#allocation24]  }
 0xcf1   :  { %4612 = dma.done.wait [#allocation13], 128  }
 0xcf2   :  { %4613 = vsyncadd [#allocation13], 4294967168 }
 0xcf3   :  { %4614 = dma.done.wait [#allocation24], 128  }
 0xcf4   :  { %4615 = vsyncadd [#allocation24], 4294967168 }
 0xcf5   :  { %3253 = vsyncpa [#allocation12], 1 }
 0xcf6   :  { %3254 = vsyncpa [#allocation15], 1 }
 0xcf7   :  { %3255 = vsyncpa [#allocation18], 1 }
 0xcf8   :  { %3256 = vsyncpa [#allocation21], 1 }
 0xcf9   :  { %3257 = vsyncpa [#allocation13], 1 }
 0xcfa   :  { %3258 = vsyncpa [#allocation24], 1 }

// kernel: tpu_custom_call.1
= control target key start
LH: loop header
LB: loop body
LE: loop exit
PB: predicated region body
PF: predicated region fallthrough
CT: control target
= control target key end

     0   :  { %20 = vsyncpa [#allocation12], 0  ;;  %s5318_s0 = inlined_call_operand.<no memory space> [shape: s32[1], index: 0, kind: input, shape index: {}]   ;;  %s5319_s1 = inlined_call_operand.hbm [shape: bf16[8,576], index: 1, kind: input, shape index: {}]   ;;  %s5320_s2 = inlined_call_operand.hbm [shape: bf16[576,128], index: 2, kind: input, shape index: {}]   ;;  %s5321_s3 = inlined_call_operand.vmem [shape: f32[1,128], index: 3, kind: input, shape index: {}]   ;;  %s5322_s4 = inlined_call_operand.hbm [shape: bf16[128,128], index: 4, kind: input, shape index: {}]   ;;  %s5323_s5 = inlined_call_operand.vmem [shape: f32[1,128], index: 5, kind: input, shape index: {}]   ;;  %s5324_s6 = inlined_call_operand.hbm [shape: bf16[128,128], index: 6, kind: input, shape index: {}]   ;;  %s5325_s7 = inlined_call_operand.vmem [shape: f32[1,128], index: 7, kind: input, shape index: {}]   ;;  %s5326_s8 = inlined_call_operand.hbm [shape: bf16[128,128], index: 8, kind: input, shape index: {}]   ;;  %s5327_s9 = inlined_call_operand.vmem [shape: f32[1,128], index: 9, kind: input, shape index: {}]   ;;  %s5328_s10 = inlined_call_operand.hbm [shape: bf16[128,128], index: 10, kind: input, shape index: {}]   ;;  %s5329_s11 = inlined_call_operand.vmem [shape: f32[1,128], index: 11, kind: input, shape index: {}]   ;;  %s5330_s12 = inlined_call_operand.hbm [shape: f32[8,128], index: 12, kind: output, shape index: {0}]   ;;  %s5331_s13 = inlined_call_operand.hbm [shape: f32[1,8,128], index: 13, kind: output, shape index: {1}]  }
   0x1   :  { %21 = vsyncpa [#allocation15], 0 }
   0x2   :  { %22 = vsyncpa [#allocation18], 0 }
   0x3   :  { %23 = vsyncpa [#allocation21], 0 }
   0x4   :  { %24 = vsyncpa [#allocation13], 0 }
   0x5   :  { %25 = vsyncpa [#allocation24], 0  ;;  %s4616_s25 = smov [#allocation14]   ;;  %s4428_s29 = scalar_lea.hbm %s5320_s2, 4608 }
   0x6   :  { %s41_s26 = sshll.u32 %s4616_s25, 4  ;;  %p4429_p0 = scmp.ne.s32.totalorder %s5320_s2, %s4428_s29  ;;  %s42_s26 = int_to_ptr.vmem [resolvable:$true] %s41_s26 }
   0x7   :  { %p4432_p1 = scmp.lt.u32.totalorder %s4428_s29, %s5320_s2 }
   0x9   :  { %p4434_p2 = pnand %p4432_p1, %p4429_p0 }
   0xb   :  { %4437 = shalt.err (!%p4434_p2)
}
   0xc   :  { %s4438_s17 = scalar_lea.vmem %s42_s26, 4608  ;;  %p4443_p4 = scmp.lt.s32.totalorder %s42_s26, %s42_s26 }
   0xd   :  { %p4439_p3 = scmp.ne.s32.totalorder %s42_s26, %s4438_s17  ;;  %p4444_p5 = scmp.lt.s32.totalorder %s4438_s17, %s4438_s17 }
   0xf   :  { %p4445_p6 = por %p4444_p5, %p4443_p4 }
  0x11   :  { %p4446_p7 = pnand %p4445_p6, %p4439_p3 }
  0x13   :  { %4449 = shalt.err (!%p4446_p7)
}
  0x14   :  { %s4617_s18 = smov 64   ;;  %s4618_s19 = smov 4  }
  0x15   :  { %47 = dma.hbm_to_vmem [thread:$0]  %s5320_s2, 4608, %s42_s26, [#allocation15], %s4617_s18, %s4617_s18, %s4618_s19  }
  0x16   :  { %s4619_s22 = smov [#allocation17]   ;;  %s4620_s24 = smov [#allocation11]  }
  0x17   :  { %s69_s23 = sshll.u32 %s4619_s22, 4  ;;  %s32_s25 = sshll.u32 %s4620_s24, 4  ;;  %s70_s23 = int_to_ptr.vmem [resolvable:$true] %s69_s23  ;;  %s33_s25 = int_to_ptr.vmem [resolvable:$true] %s32_s25 }
  0x18   :  { %s4450_s29 = scalar_lea.hbm %s5324_s6, 1024 }
  0x19   :  { %p4451_p8 = scmp.ne.s32.totalorder %s5324_s6, %s4450_s29  ;;  %p4454_p9 = scmp.lt.u32.totalorder %s4450_s29, %s5324_s6 }
  0x1b   :  { %p4456_p10 = pnand %p4454_p9, %p4451_p8 }
  0x1d   :  { %4459 = shalt.err (!%p4456_p10)
}
  0x1e   :  { %s4460_s2 = scalar_lea.vmem %s70_s23, 1024  ;;  %p4465_p12 = scmp.lt.s32.totalorder %s70_s23, %s70_s23 }
  0x1f   :  { %p4461_p11 = scmp.ne.s32.totalorder %s70_s23, %s4460_s2  ;;  %p4466_p13 = scmp.lt.s32.totalorder %s4460_s2, %s4460_s2 }
  0x21   :  { %p4467_p0 = por %p4466_p13, %p4465_p12 }
  0x23   :  { %p4468_p1 = pnand %p4467_p0, %p4461_p11 }
  0x25   :  { %4471 = shalt.err (!%p4468_p1)
}
  0x26   :  { %75 = dma.hbm_to_vmem [thread:$0]  %s5324_s6, 1024, %s70_s23, [#allocation18], %s4617_s18, %s4617_s18, %s4618_s19  }
  0x27   :  { %s4472_s22 = scalar_lea.hbm %s5319_s1, 320 }
  0x28   :  { %p4473_p2 = scmp.ne.s32.totalorder %s5319_s1, %s4472_s22  ;;  %p4476_p3 = scmp.lt.u32.totalorder %s4472_s22, %s5319_s1 }
  0x2a   :  { %p4478_p4 = pnand %p4476_p3, %p4473_p2 }
  0x2c   :  { %4481 = shalt.err (!%p4478_p4)
}
  0x2d   :  { %s4482_s30 = scalar_lea.vmem %s33_s25, 320  ;;  %p4487_p6 = scmp.lt.s32.totalorder %s33_s25, %s33_s25 }
  0x2e   :  { %p4483_p5 = scmp.ne.s32.totalorder %s33_s25, %s4482_s30  ;;  %p4488_p7 = scmp.lt.s32.totalorder %s4482_s30, %s4482_s30 }
  0x30   :  { %p4489_p8 = por %p4488_p7, %p4487_p6 }
  0x32   :  { %p4490_p9 = pnand %p4489_p8, %p4483_p5 }
  0x34   :  { %4493 = shalt.err (!%p4490_p9)
}
  0x35   :  { %35 = dma.hbm_to_vmem [thread:$0]  %s5319_s1, 320, %s33_s25, [#allocation12]  }
  0x36   :  { %s4621_s14 = smov [#allocation16]   ;;  %s4622_s16 = smov [#allocation19]  }
  0x37   :  { %s55_s15 = sshll.u32 %s4621_s14, 4  ;;  %s83_s2 = sshll.u32 %s4622_s16, 4  ;;  %s56_s15 = int_to_ptr.vmem [resolvable:$true] %s55_s15  ;;  %s84_s2 = int_to_ptr.vmem [resolvable:$true] %s83_s2 }
  0x38   :  { %s4494_s20 = scalar_lea.hbm %s5322_s4, 1024 }
  0x39   :  { %p4495_p10 = scmp.ne.s32.totalorder %s5322_s4, %s4494_s20  ;;  %p4498_p11 = scmp.lt.u32.totalorder %s4494_s20, %s5322_s4 }
  0x3b   :  { %p4500_p12 = pnand %p4498_p11, %p4495_p10 }
  0x3d   :  { %4503 = shalt.err (!%p4500_p12)
}
  0x3e   :  { %s4504_s1 = scalar_lea.vmem %s56_s15, 1024  ;;  %p4509_p0 = scmp.lt.s32.totalorder %s56_s15, %s56_s15 }
  0x3f   :  { %p4505_p13 = scmp.ne.s32.totalorder %s56_s15, %s4504_s1  ;;  %p4510_p1 = scmp.lt.s32.totalorder %s4504_s1, %s4504_s1 }
  0x41   :  { %p4511_p2 = por %p4510_p1, %p4509_p0 }
  0x43   :  { %p4512_p3 = pnand %p4511_p2, %p4505_p13 }
  0x45   :  { %4515 = shalt.err (!%p4512_p3)
}
  0x46   :  { %61 = dma.hbm_to_vmem [thread:$0]  %s5322_s4, 1024, %s56_s15, [#allocation15], %s4617_s18, %s4617_s18, %s4618_s19  }
  0x47   :  { %s4516_s6 = scalar_lea.hbm %s5326_s8, 1024 }
  0x48   :  { %p4517_p4 = scmp.ne.s32.totalorder %s5326_s8, %s4516_s6  ;;  %p4520_p5 = scmp.lt.u32.totalorder %s4516_s6, %s5326_s8 }
  0x4a   :  { %p4522_p6 = pnand %p4520_p5, %p4517_p4 }
  0x4c   :  { %4525 = shalt.err (!%p4522_p6)
}
  0x4d   :  { %s4526_s17 = scalar_lea.vmem %s84_s2, 1024  ;;  %p4531_p8 = scmp.lt.s32.totalorder %s84_s2, %s84_s2 }
  0x4e   :  { %p4527_p7 = scmp.ne.s32.totalorder %s84_s2, %s4526_s17  ;;  %p4532_p9 = scmp.lt.s32.totalorder %s4526_s17, %s4526_s17 }
  0x50   :  { %p4533_p10 = por %p4532_p9, %p4531_p8 }
  0x52   :  { %p4534_p11 = pnand %p4533_p10, %p4527_p7 }
  0x54   :  { %4537 = shalt.err (!%p4534_p11)
}
  0x55   :  { %89 = dma.hbm_to_vmem [thread:$0]  %s5326_s8, 1024, %s84_s2, [#allocation18], %s4617_s18, %s4617_s18, %s4618_s19  }
  0x56   :  { %s4623_s20 = smov [#allocation20]   ;;  %s4538_s27 = scalar_lea.hbm %s5328_s10, 1024 }
  0x57   :  { %s97_s21 = sshll.u32 %s4623_s20, 4  ;;  %p4539_p12 = scmp.ne.s32.totalorder %s5328_s10, %s4538_s27  ;;  %s98_s21 = int_to_ptr.vmem [resolvable:$true] %s97_s21 }
  0x58   :  { %p4542_p13 = scmp.lt.u32.totalorder %s4538_s27, %s5328_s10 }
  0x5a   :  { %p4544_p0 = pnand %p4542_p13, %p4539_p12 }
  0x5c   :  { %4547 = shalt.err (!%p4544_p0)
}
  0x5d   :  { %s4548_s30 = scalar_lea.vmem %s98_s21, 1024  ;;  %p4553_p2 = scmp.lt.s32.totalorder %s98_s21, %s98_s21 }
  0x5e   :  { %p4549_p1 = scmp.ne.s32.totalorder %s98_s21, %s4548_s30  ;;  %p4554_p3 = scmp.lt.s32.totalorder %s4548_s30, %s4548_s30 }
  0x60   :  { %p4555_p4 = por %p4554_p3, %p4553_p2 }
  0x62   :  { %p4556_p5 = pnand %p4555_p4, %p4549_p1 }
  0x64   :  { %4559 = shalt.err (!%p4556_p5)
}
  0x65   :  { %103 = dma.hbm_to_vmem [thread:$0]  %s5328_s10, 1024, %s98_s21, [#allocation21], %s4617_s18, %s4617_s18, %s4618_s19  }
  0x66   :  { %4604 = dma.done.wait [#allocation12], 320  }
  0x67   :  { %4605 = vsyncadd [#allocation12], 4294966976 }
  0x68   :  { %4606 = dma.done.wait [#allocation15], 5632  }
  0x69   :  { %4607 = vsyncadd [#allocation15], 4294961664 }
  0x6a   :  { %4608 = dma.done.wait [#allocation18], 2048  }
  0x6b   :  { %4609 = vsyncadd [#allocation18], 4294965248 }
  0x6c   :  { %4610 = dma.done.wait [#allocation21], 1024  }
  0x6d   :  { %4611 = vsyncadd [#allocation21], 4294966272  ;;  %v4227_v0 = vld [vmem:[#allocation14 + $0x40] sm:$0xff]   ;;  %v4231_v4 = vld [vmem:[#allocation14 + $0x48] sm:$0xff]   ;;  %v4624_v35 = vmov 0.0   ;;  %vm4625_vm0 = vmmov 0  }
  0x6e   :  { %v4228_v1 = vld [vmem:[#allocation14] sm:$0xff]   ;;  %3573 = vmatprep.subr.bf16.mxu0 %v4227_v0  ;;  %v4232_v5 = vld [vmem:[#allocation14 + $0x8] sm:$0xff]   ;;  %v4235_v8 = vld [vmem:[#allocation14 + $0x50] sm:$0xff]   ;;  %vm450_vm1 = vcmask 523264  }
  0x6f   :  { %v4229_v2 = vld [vmem:[#allocation14 + $0xc0] sm:$0xff]   ;;  %3574 = vmatpush3.bf16.msra.mxu0 %v4228_v1  ;;  %v4233_v6 = vld [vmem:[#allocation14 + $0xc8] sm:$0xff]   ;;  %v4236_v9 = vld [vmem:[#allocation14 + $0x10] sm:$0xff]  }
  0x70   :  { %v4230_v3 = vld [vmem:[#allocation14 + $0x80] sm:$0xff]   ;;  %3595 = vmatprep.subr.bf16.mxu1 %v4229_v2  ;;  %3575 = vmatprep.subr.bf16.mxu0 %v4231_v4  ;;  %v4234_v7 = vld [vmem:[#allocation14 + $0x88] sm:$0xff]   ;;  %v4237_v10 = vld [vmem:[#allocation14 + $0xd0] sm:$0xff]  }
  0x71   :  { %3596 = vmatpush3.bf16.msra.mxu1 %v4230_v3  ;;  %v4238_v11 = vld [vmem:[#allocation14 + $0x90] sm:$0xff]   ;;  %v4239_v12 = vld [vmem:[#allocation14 + $0x58] sm:$0xff]   ;;  %v4243_v16 = vld [vmem:[#allocation14 + $0x60] sm:$0xff]  }
  0x72   :  { %3597 = vmatprep.subr.bf16.mxu1 %v4233_v6  ;;  %v4240_v13 = vld [vmem:[#allocation14 + $0x18] sm:$0xff]   ;;  %v4244_v17 = vld [vmem:[#allocation14 + $0x20] sm:$0xff]   ;;  %v4247_v20 = vld [vmem:[#allocation14 + $0x68] sm:$0xff]  }
  0x73   :  { %3576 = vmatpush3.bf16.msra.mxu0 %v4232_v5  ;;  %v4241_v14 = vld [vmem:[#allocation14 + $0xd8] sm:$0xff]   ;;  %v4245_v18 = vld [vmem:[#allocation14 + $0xe0] sm:$0xff]   ;;  %v4248_v21 = vld [vmem:[#allocation14 + $0x28] sm:$0xff]  }
  0x74   :  { %3577 = vmatprep.subr.bf16.mxu0 %v4235_v8  ;;  %v4242_v15 = vld [vmem:[#allocation14 + $0x98] sm:$0xff]   ;;  %v4246_v19 = vld [vmem:[#allocation14 + $0xa0] sm:$0xff]   ;;  %v4249_v22 = vld [vmem:[#allocation14 + $0xe8] sm:$0xff]  }
  0x75   :  { %3598 = vmatpush3.bf16.msra.mxu1 %v4234_v7  ;;  %v4250_v23 = vld [vmem:[#allocation14 + $0xa8] sm:$0xff]   ;;  %v4251_v24 = vld [vmem:[#allocation14 + $0x70] sm:$0xff]   ;;  %v4255_v28 = vld [vmem:[#allocation14 + $0x78] sm:$0xff]  }
  0x76   :  { %3599 = vmatprep.subr.bf16.mxu1 %v4237_v10  ;;  %v4252_v25 = vld [vmem:[#allocation14 + $0x30] sm:$0xff]   ;;  %v4256_v29 = vld [vmem:[#allocation14 + $0x38] sm:$0xff]   ;;  %v4263_v39 = vld [vmem:[#allocation14 + $0x100] sm:$0xff]  }
  0x77   :  { %3578 = vmatpush3.bf16.msra.mxu0 %v4236_v9  ;;  %v4253_v26 = vld [vmem:[#allocation14 + $0xf0] sm:$0xff]   ;;  %v4257_v30 = vld [vmem:[#allocation14 + $0xf8] sm:$0xff]   ;;  %v4264_v40 = vld [vmem:[#allocation14 + $0x108] sm:$0xff]  }
  0x78   :  { %3579 = vmatprep.subr.bf16.mxu0 %v4239_v12  ;;  %v4254_v27 = vld [vmem:[#allocation14 + $0xb0] sm:$0xff]   ;;  %v4260_v34 = vld [vmem:[#allocation14 + $0xb8] sm:$0xff]   ;;  %v4268_v41 = vld [vmem:[#allocation16] sm:$0xff]  }
  0x79   :  { %3600 = vmatpush3.bf16.msra.mxu1 %v4238_v11  ;;  %v135_v31 = vld [vmem:[#allocation11] sm:$0xff]  ;;  %v136_v36 = vld [vmem:[#allocation11 + $0x8] sm:$0xff]  ;;  %v4267_v46 = vld [vmem:[#allocation11 + $0x10] ss:$0 sps:$4 sm:$0xff]  }
  0x7a   :  { %3601 = vmatprep.subr.bf16.mxu1 %v4241_v14  ;;  %v3261_v32 = vcombine.low %v135_v31, %v135_v31  ;;  %v3262_v33 = vcombine.high %v135_v31, %v135_v31  ;;  %v3263_v37 = vcombine.low %v136_v36, %v136_v36  ;;  %v3264_v38 = vcombine.high %v136_v36, %v136_v36  ;;  %v4265_v42 = vld [vmem:[#allocation14 + $0x110] sm:$0xff]   ;;  %v4269_v43 = vld [vmem:[#allocation16 + $0x8] sm:$0xff]   ;;  %v4266_v44 = vld [vmem:[#allocation14 + $0x118] sm:$0xff]  }
  0x7b   :  { %3580 = vmatpush3.bf16.msra.mxu0 %v4240_v13  ;;  %v4270_v45 = vld [vmem:[#allocation16 + $0x10] sm:$0xff]   ;;  %v4271_v47 = vld [vmem:[#allocation16 + $0x18] sm:$0xff]   ;;  %v4272_v48 = vld [vmem:[#allocation16 + $0x20] sm:$0xff]  }
  0x7c   :  { %3581 = vmatprep.subr.bf16.mxu0 %v4243_v16  ;;  %486 = vmatprep.mubr.bf16.mxu0 %v3262_v33  ;;  %v4273_v49 = vld [vmem:[#allocation16 + $0x28] sm:$0xff]   ;;  %v4274_v50 = vld [vmem:[#allocation16 + $0x30] sm:$0xff]   ;;  %v4275_v51 = vld [vmem:[#allocation16 + $0x38] sm:$0xff]  }
  0x7d   :  { %3602 = vmatpush3.bf16.msra.mxu1 %v4242_v15  ;;  %526 = vmatprep.mubr.bf16.mxu1 %v3264_v38  ;;  %v4276_v52 = vld [vmem:[#allocation17] sm:$0xff]   ;;  %v4277_v53 = vld [vmem:[#allocation17 + $0x8] sm:$0xff]   ;;  %v4278_v54 = vld [vmem:[#allocation17 + $0x10] sm:$0xff]   ;;  %v4626_v15 = vmov 1.0|1.0  }
  0x7e   :  { %3603 = vmatprep.subr.bf16.mxu1 %v4245_v18  ;;  %v4279_v55 = vld [vmem:[#allocation17 + $0x18] sm:$0xff]   ;;  %v4280_v56 = vld [vmem:[#allocation17 + $0x20] sm:$0xff]   ;;  %v4281_v57 = vld [vmem:[#allocation17 + $0x28] sm:$0xff]  }
  0x7f   :  { %3582 = vmatpush3.bf16.msra.mxu0 %v4244_v17  ;;  %v4282_v58 = vld [vmem:[#allocation17 + $0x30] sm:$0xff]   ;;  %v3260_v60 = vld [vmem:[%s5321_s3] ss:$0 sm:$0xff]  ;;  %v4284_v36 = vld [vmem:[#allocation19] sm:$0xff]  }
  0x80   :  { %3583 = vmatprep.subr.bf16.mxu0 %v4247_v20  ;;  %v4286_v38 = vld [vmem:[#allocation19 + $0x10] sm:$0xff]  }
  0x81   :  { %3604 = vmatpush3.bf16.msra.mxu1 %v4246_v19 }
  0x82   :  { %3605 = vmatprep.subr.bf16.mxu1 %v4249_v22 }
  0x83   :  { %3584 = vmatpush3.bf16.msra.mxu0 %v4248_v21 }
  0x84   :  { %3585 = vmatprep.subr.bf16.mxu0 %v4251_v24 }
  0x85   :  { %3606 = vmatpush3.bf16.msra.mxu1 %v4250_v23 }
  0x86   :  { %3607 = vmatprep.subr.bf16.mxu1 %v4253_v26 }
  0x87   :  { %3586 = vmatpush3.bf16.msra.mxu0 %v4252_v25 }
  0x88   :  { %3587 = vmatprep.subr.bf16.mxu0 %v4255_v28 }
  0x89   :  { %3608 = vmatpush3.bf16.msra.mxu1 %v4254_v27 }
  0x8a   :  { %3609 = vmatprep.subr.bf16.mxu1 %v4257_v30 }
  0x8b   :  { %3588 = vmatpush3.bf16.msra.mxu0 %v4256_v29 }
  0x8c   :  { %3802 = vmatprep.subr.bf16.mxu0 %v4624_v35 }
  0x8d   :  { %3610 = vmatpush3.bf16.msra.mxu1 %v4260_v34  ;;  %v4283_v34 = vld [vmem:[#allocation17 + $0x38] sm:$0xff]  }
  0x8e   :  { %487 = vmatmul.mubr.bf16.vlgmr.msra.gmra.mrb[0].mxu0 %v3261_v32  ;;  %3814 = vmatprep.subr.bf16.mxu1 %v4624_v35 }
  0x8f   :  { %3803 = vmatpush3.bf16.msra.mxu0 %v4263_v39  ;;  %3810 = vmatprep.mubr.msk.bf16.mxu0 %vm4625_vm0, %v4624_v35  ;;  %v4287_v39 = vld [vmem:[#allocation19 + $0x18] sm:$0xff]  }
  0x90   :  { %527 = vmatmul.mubr.bf16.vlgmr.msra.gmra.mrb[0].mxu1 %v3263_v37  ;;  %3804 = vmatprep.subr.bf16.mxu0 %v4624_v35  ;;  %v4285_v37 = vld [vmem:[#allocation19 + $0x8] sm:$0xff]  }
  0x91   :  { %3830 = vmatprep.mubr.msk.bf16.mxu1 %vm4625_vm0, %v4624_v35  ;;  %3815 = vmatpush3.bf16.msra.mxu1 %v4268_v41  ;;  %v4289_v41 = vld [vmem:[#allocation19 + $0x28] sm:$0xff]  }
  0x92   :  { %3816 = vmatprep.subr.bf16.mxu1 %v4624_v35 }
  0x93   :  { %3805 = vmatpush3.bf16.msra.mxu0 %v4264_v40  ;;  %v4288_v40 = vld [vmem:[#allocation19 + $0x20] sm:$0xff]  }
  0x94   :  { %3806 = vmatprep.subr.bf16.mxu0 %v4624_v35 }
  0x95   :  { %3817 = vmatpush3.bf16.msra.mxu1 %v4269_v43  ;;  %v4859_v43 = vld [vmem:[%s5323_s5] ss:$0 sm:$0xff] }
  0x96   :  { %3818 = vmatprep.subr.bf16.mxu1 %v4624_v35 }
  0x97   :  { %3807 = vmatpush3.bf16.msra.mxu0 %v4265_v42  ;;  %v4290_v42 = vld [vmem:[#allocation19 + $0x30] sm:$0xff]  }
  0x98   :  { %3808 = vmatprep.subr.bf16.mxu0 %v4624_v35 }
  0x99   :  { %3819 = vmatpush3.bf16.msra.mxu1 %v4270_v45 }
  0x9a   :  { %3820 = vmatprep.subr.bf16.mxu1 %v4624_v35 }
  0x9b   :  { %3809 = vmatpush3.bf16.msra.mxu0 %v4266_v44 }
  0x9c   :  { %3834 = vmatprep.subr.bf16.mxu0 %v4624_v35 }
  0x9d   :  { %3821 = vmatpush3.bf16.msra.mxu1 %v4271_v47 }
  0x9e   :  { %3811 = vmatmul.mubr.msk.bf16.vlgmr.msra.gmra.mrb[4].mxu0 %vm450_vm1, %v4267_v46  ;;  %3822 = vmatprep.subr.bf16.mxu1 %v4624_v35 }
  0x9f   :  { %3850 = vmatprep.mubr.msk.bf16.mxu0 %vm4625_vm0, %v4624_v35  ;;  %3835 = vmatpush3.bf16.msra.mxu0 %v4276_v52  ;;  %v4302_v52 = vld [vmem:[#allocation20 + $0x10] sm:$0xff]  }
  0xa0   :  { %3836 = vmatprep.subr.bf16.mxu0 %v4624_v35 }
  0xa1   :  { %3823 = vmatpush3.bf16.msra.mxu1 %v4272_v48 }
  0xa2   :  { %3824 = vmatprep.subr.bf16.mxu1 %v4624_v35 }
  0xa3   :  { %3837 = vmatpush3.bf16.msra.mxu0 %v4277_v53  ;;  %v4303_v53 = vld [vmem:[#allocation20 + $0x18] sm:$0xff]  }
  0xa4   :  { %3838 = vmatprep.subr.bf16.mxu0 %v4624_v35 }
  0xa5   :  { %3825 = vmatpush3.bf16.msra.mxu1 %v4273_v49  ;;  %v4291_v49 = vld [vmem:[#allocation19 + $0x38] sm:$0xff]  }
  0xa6   :  { %3826 = vmatprep.subr.bf16.mxu1 %v4624_v35 }
  0xa7   :  { %3839 = vmatpush3.bf16.msra.mxu0 %v4278_v54  ;;  %v4304_v54 = vld [vmem:[#allocation20 + $0x20] sm:$0xff]  }
  0xa8   :  { %3840 = vmatprep.subr.bf16.mxu0 %v4624_v35 }
  0xa9   :  { %3827 = vmatpush3.bf16.msra.mxu1 %v4274_v50  ;;  %v4300_v50 = vld [vmem:[#allocation20] sm:$0xff]  }
  0xaa   :  { %3828 = vmatprep.subr.bf16.mxu1 %v4624_v35 }
  0xab   :  { %3841 = vmatpush3.bf16.msra.mxu0 %v4279_v55  ;;  %v4305_v55 = vld [vmem:[#allocation20 + $0x28] sm:$0xff]  }
  0xac   :  { %3842 = vmatprep.subr.bf16.mxu0 %v4624_v35 }
  0xad   :  { %3829 = vmatpush3.bf16.msra.mxu1 %v4275_v51  ;;  %v4301_v51 = vld [vmem:[#allocation20 + $0x8] sm:$0xff]  }
  0xae   :  { %3854 = vmatprep.subr.bf16.mxu1 %v4624_v35 }
  0xaf   :  { %3843 = vmatpush3.bf16.msra.mxu0 %v4280_v56  ;;  %v4306_v56 = vld [vmem:[#allocation20 + $0x30] sm:$0xff]  }
  0xb0   :  { %3844 = vmatprep.subr.bf16.mxu0 %v4624_v35 }
  0xb3   :  { %3845 = vmatpush3.bf16.msra.mxu0 %v4281_v57  ;;  %v4882_v57 = vld [vmem:[%s5325_s7] ss:$0 sm:$0xff] }
  0xb4   :  { %3846 = vmatprep.subr.bf16.mxu0 %v4624_v35 }
  0xb7   :  { %3847 = vmatpush3.bf16.msra.mxu0 %v4282_v58 }
  0xb8   :  { %3848 = vmatprep.subr.bf16.mxu0 %v4624_v35 }
  0xbb   :  { %3849 = vmatpush3.bf16.msra.mxu0 %v4283_v34 }
  0xbc   :  { %3874 = vmatprep.subr.bf16.mxu0 %v4624_v35 }
 0x161   :  { %v3589_v59 = vpop.f32.mrb[0].mxu0 }
 0x162   :  { %v3590_v61 = vpop.f32.mrb[1].mxu0 }
 0x163   :  { %v3591_v62 = vadd.f32 %v3590_v61, %v3589_v59  ;;  %v3592_v63 = vpop.f32.mrb[2].mxu0  ;;  %v3611_v0 = vpop.f32.mrb[0].mxu1 }
 0x164   :  { %v3593_v1 = vpop.f32.mrb[3].mxu0  ;;  %v3612_v2 = vpop.f32.mrb[1].mxu1 }
 0x165   :  { %v489_v3 = vadd.f32 %v3591_v62, %v3260_v60  ;;  %v3613_v4 = vadd.f32 %v3612_v2, %v3611_v0  ;;  %v3614_v5 = vpop.f32.mrb[2].mxu1  ;;  %v4292_v62 = vld [vmem:[#allocation16] sm:$0xff]   ;;  %v4293_v0 = vld [vmem:[#allocation16 + $0x8] sm:$0xff]   ;;  %v4294_v1 = vld [vmem:[#allocation16 + $0x10] sm:$0xff]  }
 0x166   :  { %v3615_v6 = vpop.f32.mrb[3].mxu1  ;;  %v4295_v2 = vld [vmem:[#allocation16 + $0x18] sm:$0xff]   ;;  %v4298_v5 = vld [vmem:[#allocation16 + $0x30] sm:$0xff]  }
 0x167   :  { %v529_v7 = vadd.f32 %v3613_v4, %v489_v3  ;;  %v4296_v3 = vld [vmem:[#allocation16 + $0x20] sm:$0xff]   ;;  %v4297_v4 = vld [vmem:[#allocation16 + $0x28] sm:$0xff]   ;;  %v4299_v6 = vld [vmem:[#allocation16 + $0x38] sm:$0xff]  }
 0x171   :  { %v568_v8 = vpop.f32.mrb[4].mxu0 }
 0x172   :  { %v569_v9 = vadd.f32 %v568_v8, %v529_v7  ;;  %v3812_v10 = vpop.f32.mrb[5].mxu0  ;;  %v4307_v7 = vld [vmem:[#allocation20 + $0x38] sm:$0xff]   ;;  %v4912_v8 = vld [vmem:[%s5327_s9] ss:$0 sm:$0xff] }
 0x173   :  { %v571_v11 = vpop.f32.mrb[6].mxu0 }
 0x174   :  { %v3813_v12 = vpop.f32.mrb[7].mxu0  ;;  %vm591_vm2 = vcmp.gt.f32.partialorder %v569_v9, 0.5  ;;  %v1108_v13 = vmul.f32 0.8, %v569_v9 }
 0x175   :  { %vm3314_vm3 = vmpackc.low %vm591_vm2, %vm591_vm2  ;;  %v3357_v14 = vsel %vm591_vm2, 1.0, %v4624_v35 }
 0x176   :  { %3831 = vmatmul.mubr.msk.bf16.vlgmr.msra.gmra.mrb[4].mxu1 %vm3314_vm3, %v4626_v15  ;;  %v1110_v16 = vmul.f32 0.5, %v3357_v14  ;;  %v1109_v17 = vadd.f32 %v1108_v13, %v569_v9  ;;  %v4308_v13 = vld [vmem:[#allocation17] sm:$0xff]  }
 0x177   :  { %3870 = vmatprep.mubr.msk.bf16.mxu1 %vm4625_vm0, %v4624_v35  ;;  %3855 = vmatpush3.bf16.msra.mxu1 %v4284_v36 }
 0x178   :  { %v4821_v18 = vsub.f32 %v1109_v17, %v1110_v16  ;;  %3856 = vmatprep.subr.bf16.mxu1 %v4624_v35  ;;  %v4309_v16 = vld [vmem:[#allocation17 + $0x8] sm:$0xff]   ;;  %v4310_v17 = vld [vmem:[#allocation17 + $0x10] sm:$0xff]  }
 0x17a   :  { %vm1113_vm4 = vcmp.gt.f32.partialorder %v4821_v18, 0.5  ;;  %v1630_v19 = vmul.f32 0.8, %v4821_v18  ;;  %v4311_v18 = vld [vmem:[#allocation17 + $0x18] sm:$0xff]  }
 0x17b   :  { %v3411_v20 = vsel %vm1113_vm4, 1.0, %v4624_v35  ;;  %3857 = vmatpush3.bf16.msra.mxu1 %v4285_v37  ;;  %vm3368_vm11 = vmpackc.low %vm1113_vm4, %vm1113_vm4 }
 0x17c   :  { %v1632_v21 = vmul.f32 0.5, %v3411_v20  ;;  %v1631_v22 = vadd.f32 %v1630_v19, %v569_v9  ;;  %3858 = vmatprep.subr.bf16.mxu1 %v4624_v35  ;;  %v4312_v19 = vld [vmem:[#allocation17 + $0x20] sm:$0xff]   ;;  %v4313_v20 = vld [vmem:[#allocation17 + $0x28] sm:$0xff]  }
 0x17e   :  { %v4828_v23 = vsub.f32 %v1631_v22, %v1632_v21  ;;  %v4314_v21 = vld [vmem:[#allocation17 + $0x30] sm:$0xff]   ;;  %v4315_v22 = vld [vmem:[#allocation17 + $0x38] sm:$0xff]  }
 0x17f   :  { %3859 = vmatpush3.bf16.msra.mxu1 %v4286_v38 }
 0x180   :  { %vm1635_vm5 = vcmp.gt.f32.partialorder %v4828_v23, 0.5  ;;  %v2152_v24 = vmul.f32 0.8, %v4828_v23  ;;  %3860 = vmatprep.subr.bf16.mxu1 %v4624_v35 }
 0x181   :  { %v3465_v25 = vsel %vm1635_vm5, 1.0, %v4624_v35 }
 0x182   :  { %v2154_v26 = vmul.f32 0.5, %v3465_v25  ;;  %v2153_v27 = vadd.f32 %v2152_v24, %v569_v9 }
 0x183   :  { %3861 = vmatpush3.bf16.msra.mxu1 %v4287_v39  ;;  %v4316_v39 = vld [vmem:[#allocation19] sm:$0xff]  }
 0x184   :  { %v4835_v28 = vsub.f32 %v2153_v27, %v2154_v26  ;;  %3862 = vmatprep.subr.bf16.mxu1 %v4624_v35 }
 0x186   :  { %vm2157_vm6 = vcmp.gt.f32.partialorder %v4835_v28, 0.5  ;;  %v2674_v29 = vmul.f32 0.8, %v4835_v28 }
 0x187   :  { %v3519_v30 = vsel %vm2157_vm6, 1.0, %v4624_v35  ;;  %3863 = vmatpush3.bf16.msra.mxu1 %v4288_v40  ;;  %v4317_v40 = vld [vmem:[#allocation19 + $0x8] sm:$0xff]  }
 0x188   :  { %v4842_v31 = vmul.f32 0.5, %v3519_v30  ;;  %v4844_v32 = vadd.f32 %v2674_v29, %v569_v9  ;;  %3864 = vmatprep.subr.bf16.mxu1 %v4624_v35 }
 0x18a   :  { %v2677_v33 = vsub.f32 %v4844_v32, %v4842_v31  ;;  %v5210_v31 = vld [vmem:[%s5327_s9] ss:$0 sm:$0xff] }
 0x18b   :  { %3865 = vmatpush3.bf16.msra.mxu1 %v4289_v41  ;;  %v4318_v41 = vld [vmem:[#allocation19 + $0x10] sm:$0xff]  }
 0x18c   :  { %3866 = vmatprep.subr.bf16.mxu1 %v4624_v35 }
 0x18f   :  { %3867 = vmatpush3.bf16.msra.mxu1 %v4290_v42  ;;  %v4319_v42 = vld [vmem:[#allocation19 + $0x18] sm:$0xff]  }
 0x190   :  { %3868 = vmatprep.subr.bf16.mxu1 %v4624_v35 }
 0x193   :  { %3869 = vmatpush3.bf16.msra.mxu1 %v4291_v49 }
 0x194   :  { %3894 = vmatprep.subr.bf16.mxu1 %v4624_v35 }
 0x249   :  { %v700_v44 = vpop.f32.mrb[4].mxu1 }
 0x24a   :  { %v4862_v45 = vadd.f32 %v4859_v43, %v700_v44  ;;  %v3832_v46 = vpop.f32.mrb[5].mxu1  ;;  %v4320_v44 = vld [vmem:[#allocation19 + $0x20] sm:$0xff]  }
 0x24b   :  { %v703_v47 = vpop.f32.mrb[6].mxu1  ;;  %v4322_v46 = vld [vmem:[#allocation19 + $0x30] sm:$0xff]  }
 0x24c   :  { %vm715_vm7 = vcmp.gt.f32.partialorder %v4862_v45, 0.5  ;;  %v3833_v48 = vpop.f32.mrb[7].mxu1  ;;  %v1232_v26 = vmul.f32 0.8, %v4862_v45  ;;  %v4321_v45 = vld [vmem:[#allocation19 + $0x28] sm:$0xff]   ;;  %v4323_v47 = vld [vmem:[#allocation19 + $0x38] sm:$0xff]  }
 0x24d   :  { %vm3327_vm8 = vmpackc.low %vm715_vm7, %vm715_vm7  ;;  %v3370_v24 = vsel %vm715_vm7, 1.0, %v4624_v35  ;;  %v125_v48 = vlaneseq }
 0x24e   :  { %3851 = vmatmul.mubr.msk.bf16.vlgmr.msra.gmra.mrb[8].mxu0 %vm3327_vm8, %v4626_v15  ;;  %v1234_v34 = vmul.f32 0.5, %v3370_v24  ;;  %v4326_v24 = vld [vmem:[#allocation16 + $0x10] sm:$0xff]   ;;  %vm3422_vm7 = vmpackc.low %vm1635_vm5, %vm1635_vm5 }
 0x24f   :  { %3890 = vmatprep.mubr.msk.bf16.mxu0 %vm4625_vm0, %v4624_v35  ;;  %3875 = vmatpush3.bf16.msra.mxu0 %v4300_v50  ;;  %v126_v49 = vshrl.u32 %v125_v48, 7  ;;  %v131_v50 = vstv %s5318_s0 }
 0x250   :  { %3876 = vmatprep.subr.bf16.mxu0 %v4624_v35 }
 0x251   :  { %vm132_vm1 = vcmp.lt.s32.totalorder %v126_v49, %v131_v50  ;;  %v4340_v49 = vld [vmem:[#allocation17] sm:$0xff]   ;;  %v4342_v50 = vld [vmem:[#allocation17 + $0x10] sm:$0xff]  }
 0x253   :  { %3877 = vmatpush3.bf16.msra.mxu0 %v4301_v51  ;;  %v4960_v51 = vld [vmem:[%s5329_s11] ss:$0 sm:$0xff] }
 0x254   :  { %3878 = vmatprep.subr.bf16.mxu0 %v4624_v35 }
 0x257   :  { %3879 = vmatpush3.bf16.msra.mxu0 %v4302_v52 }
 0x258   :  { %3880 = vmatprep.subr.bf16.mxu0 %v4624_v35 }
 0x25b   :  { %3881 = vmatpush3.bf16.msra.mxu0 %v4303_v53 }
 0x25c   :  { %3882 = vmatprep.subr.bf16.mxu0 %v4624_v35 }
 0x25f   :  { %3883 = vmatpush3.bf16.msra.mxu0 %v4304_v54 }
 0x260   :  { %3884 = vmatprep.subr.bf16.mxu0 %v4624_v35 }
 0x263   :  { %3885 = vmatpush3.bf16.msra.mxu0 %v4305_v55  ;;  %v4966_v55 = vsel %vm132_vm1, 1.0, %v4624_v35 }
 0x264   :  { %3886 = vmatprep.subr.bf16.mxu0 %v4624_v35 }
 0x267   :  { %3887 = vmatpush3.bf16.msra.mxu0 %v4306_v56 }
 0x268   :  { %3888 = vmatprep.subr.bf16.mxu0 %v4624_v35 }
 0x26b   :  { %3889 = vmatpush3.bf16.msra.mxu0 %v4307_v7 }
 0x26c   :  { %3914 = vmatprep.subr.bf16.mxu0 %v4624_v35 }
 0x321   :  { %v824_v58 = vpop.f32.mrb[8].mxu0 }
 0x322   :  { %v4885_v59 = vadd.f32 %v4882_v57, %v824_v58  ;;  %v3852_v60 = vpop.f32.mrb[9].mxu0 }
 0x323   :  { %v827_v61 = vpop.f32.mrb[10].mxu0 }
 0x324   :  { %vm839_vm9 = vcmp.gt.f32.partialorder %v4885_v59, 0.5  ;;  %v3853_v63 = vpop.f32.mrb[11].mxu0  ;;  %v1356_v7 = vmul.f32 0.8, %v4885_v59  ;;  %v4335_v59 = vld [vmem:[#allocation20 + $0x18] sm:$0xff]  }
 0x325   :  { %vm3340_vm10 = vmpackc.low %vm839_vm9, %vm839_vm9 }
 0x326   :  { %3871 = vmatmul.mubr.msk.bf16.vlgmr.msra.gmra.mrb[8].mxu1 %vm3340_vm10, %v4626_v15 }
 0x327   :  { %3895 = vmatpush3.bf16.msra.mxu1 %v4292_v62  ;;  %3910 = vmatprep.mubr.msk.bf16.mxu1 %vm4625_vm0, %v4624_v35 }
 0x328   :  { %3896 = vmatprep.subr.bf16.mxu1 %v4624_v35 }
 0x32b   :  { %3897 = vmatpush3.bf16.msra.mxu1 %v4293_v0 }
 0x32c   :  { %3898 = vmatprep.subr.bf16.mxu1 %v4624_v35 }
 0x32f   :  { %3899 = vmatpush3.bf16.msra.mxu1 %v4294_v1 }
 0x330   :  { %3900 = vmatprep.subr.bf16.mxu1 %v4624_v35 }
 0x333   :  { %3901 = vmatpush3.bf16.msra.mxu1 %v4295_v2 }
 0x334   :  { %3902 = vmatprep.subr.bf16.mxu1 %v4624_v35 }
 0x337   :  { %3903 = vmatpush3.bf16.msra.mxu1 %v4296_v3 }
 0x338   :  { %3904 = vmatprep.subr.bf16.mxu1 %v4624_v35 }
 0x33b   :  { %3905 = vmatpush3.bf16.msra.mxu1 %v4297_v4  ;;  %v4332_v4 = vld [vmem:[#allocation20] sm:$0xff]  }
 0x33c   :  { %3906 = vmatprep.subr.bf16.mxu1 %v4624_v35 }
 0x33f   :  { %3907 = vmatpush3.bf16.msra.mxu1 %v4298_v5  ;;  %v3383_v5 = vsel %vm839_vm9, 1.0, %v4624_v35 }
 0x340   :  { %3908 = vmatprep.subr.bf16.mxu1 %v4624_v35 }
 0x343   :  { %3909 = vmatpush3.bf16.msra.mxu1 %v4299_v6 }
 0x344   :  { %3934 = vmatprep.subr.bf16.mxu1 %v4624_v35 }
 0x346   :  { %3911 = vmatmul.mubr.msk.bf16.vlgmr.msra.gmra.mrb[12].mxu1 %vm3368_vm11, %v4626_v15 }
 0x347   :  { %3950 = vmatprep.mubr.msk.bf16.mxu1 %vm4625_vm0, %v4624_v35  ;;  %3935 = vmatpush3.bf16.msra.mxu1 %v4316_v39 }
 0x348   :  { %3936 = vmatprep.subr.bf16.mxu1 %v4624_v35 }
 0x34b   :  { %3937 = vmatpush3.bf16.msra.mxu1 %v4317_v40 }
 0x34c   :  { %3938 = vmatprep.subr.bf16.mxu1 %v4624_v35 }
 0x34f   :  { %3939 = vmatpush3.bf16.msra.mxu1 %v4318_v41 }
 0x350   :  { %3940 = vmatprep.subr.bf16.mxu1 %v4624_v35 }
 0x353   :  { %3941 = vmatpush3.bf16.msra.mxu1 %v4319_v42 }
 0x354   :  { %3942 = vmatprep.subr.bf16.mxu1 %v4624_v35 }
 0x357   :  { %3943 = vmatpush3.bf16.msra.mxu1 %v4320_v44 }
 0x358   :  { %3944 = vmatprep.subr.bf16.mxu1 %v4624_v35 }
 0x35b   :  { %3945 = vmatpush3.bf16.msra.mxu1 %v4321_v45 }
 0x35c   :  { %3946 = vmatprep.subr.bf16.mxu1 %v4624_v35 }
 0x35f   :  { %3947 = vmatpush3.bf16.msra.mxu1 %v4322_v46 }
 0x360   :  { %3948 = vmatprep.subr.bf16.mxu1 %v4624_v35 }
 0x363   :  { %3949 = vmatpush3.bf16.msra.mxu1 %v4323_v47 }
 0x364   :  { %3974 = vmatprep.subr.bf16.mxu1 %v4624_v35 }
 0x3f9   :  { %v948_v9 = vpop.f32.mrb[8].mxu1 }
 0x3fa   :  { %v4915_v10 = vadd.f32 %v4912_v8, %v948_v9  ;;  %v3872_v11 = vpop.f32.mrb[9].mxu1 }
 0x3fb   :  { %v951_v12 = vpop.f32.mrb[10].mxu1 }
 0x3fc   :  { %vm963_vm12 = vcmp.gt.f32.partialorder %v4915_v10, 0.5  ;;  %v3873_v14 = vpop.f32.mrb[11].mxu1  ;;  %v4333_v12 = vld [vmem:[#allocation20 + $0x8] sm:$0xff]   ;;  %v1480_v40 = vmul.f32 0.8, %v4915_v10 }
 0x3fd   :  { %vm3353_vm13 = vmpackc.low %vm963_vm12, %vm963_vm12  ;;  %v1358_v14 = vmul.f32 0.5, %v3383_v5  ;;  %v3396_v39 = vsel %vm963_vm12, 1.0, %v4624_v35  ;;  %v4341_v10 = vld [vmem:[#allocation17 + $0x8] sm:$0xff]  }
 0x3fe   :  { %3891 = vmatmul.mubr.msk.bf16.vlgmr.msra.gmra.mrb[12].mxu0 %vm3353_vm13, %v4626_v15  ;;  %v1482_v45 = vmul.f32 0.5, %v3396_v39 }
 0x3ff   :  { %3915 = vmatpush3.bf16.msra.mxu0 %v4308_v13  ;;  %3930 = vmatprep.mubr.msk.bf16.mxu0 %vm4625_vm0, %v4624_v35 }
 0x400   :  { %3916 = vmatprep.subr.bf16.mxu0 %v4624_v35 }
 0x403   :  { %3917 = vmatpush3.bf16.msra.mxu0 %v4309_v16 }
 0x404   :  { %3918 = vmatprep.subr.bf16.mxu0 %v4624_v35 }
 0x407   :  { %3919 = vmatpush3.bf16.msra.mxu0 %v4310_v17 }
 0x408   :  { %3920 = vmatprep.subr.bf16.mxu0 %v4624_v35 }
 0x40b   :  { %3921 = vmatpush3.bf16.msra.mxu0 %v4311_v18 }
 0x40c   :  { %3922 = vmatprep.subr.bf16.mxu0 %v4624_v35 }
 0x40f   :  { %3923 = vmatpush3.bf16.msra.mxu0 %v4312_v19  ;;  %v4334_v19 = vld [vmem:[#allocation20 + $0x10] sm:$0xff]  }
 0x410   :  { %3924 = vmatprep.subr.bf16.mxu0 %v4624_v35 }
 0x413   :  { %3925 = vmatpush3.bf16.msra.mxu0 %v4313_v20  ;;  %v4324_v20 = vld [vmem:[#allocation16] sm:$0xff]  }
 0x414   :  { %3926 = vmatprep.subr.bf16.mxu0 %v4624_v35 }
 0x417   :  { %3927 = vmatpush3.bf16.msra.mxu0 %v4314_v21  ;;  %v4325_v21 = vld [vmem:[#allocation16 + $0x8] sm:$0xff]  }
 0x418   :  { %3928 = vmatprep.subr.bf16.mxu0 %v4624_v35 }
 0x419   :  { %v1222_v25 = vpop.f32.mrb[12].mxu1 }
 0x41a   :  { %v1223_v27 = vadd.f32 %v4859_v43, %v1222_v25  ;;  %v3912_v29 = vpop.f32.mrb[13].mxu1  ;;  %v4337_v25 = vld [vmem:[#allocation20 + $0x28] sm:$0xff]  }
 0x41b   :  { %v1225_v30 = vpop.f32.mrb[14].mxu1  ;;  %3929 = vmatpush3.bf16.msra.mxu0 %v4315_v22  ;;  %v4336_v22 = vld [vmem:[#allocation20 + $0x20] sm:$0xff]   ;;  %v4329_v29 = vld [vmem:[#allocation16 + $0x28] sm:$0xff]  }
 0x41c   :  { %v1233_v36 = vadd.f32 %v1232_v26, %v1223_v27  ;;  %v3913_v37 = vpop.f32.mrb[15].mxu1  ;;  %3954 = vmatprep.subr.bf16.mxu0 %v4624_v35  ;;  %v4327_v26 = vld [vmem:[#allocation16 + $0x18] sm:$0xff]   ;;  %v4328_v27 = vld [vmem:[#allocation16 + $0x20] sm:$0xff]   ;;  %v4330_v30 = vld [vmem:[#allocation16 + $0x30] sm:$0xff]  }
 0x41d   :  { %v4339_v37 = vld [vmem:[#allocation20 + $0x38] sm:$0xff]  }
 0x41e   :  { %v4937_v38 = vsub.f32 %v1233_v36, %v1234_v34  ;;  %v4331_v34 = vld [vmem:[#allocation16 + $0x38] sm:$0xff]   ;;  %v4338_v36 = vld [vmem:[#allocation20 + $0x30] sm:$0xff]  }
 0x420   :  { %vm1237_vm14 = vcmp.gt.f32.partialorder %v4937_v38, 0.5 }
 0x421   :  { %vm3381_vm15 = vmpackc.low %vm1237_vm14, %vm1237_vm14 }
 0x422   :  { %3931 = vmatmul.mubr.msk.bf16.vlgmr.msra.gmra.mrb[16].mxu0 %vm3381_vm15, %v4626_v15 }
 0x423   :  { %3970 = vmatprep.mubr.msk.bf16.mxu0 %vm4625_vm0, %v4624_v35  ;;  %3955 = vmatpush3.bf16.msra.mxu0 %v4332_v4 }
 0x424   :  { %3956 = vmatprep.subr.bf16.mxu0 %v4624_v35 }
 0x427   :  { %3957 = vmatpush3.bf16.msra.mxu0 %v4333_v12  ;;  %v4352_v12 = vld [vmem:[#allocation19 + $0x20] sm:$0xff]  }
 0x428   :  { %3958 = vmatprep.subr.bf16.mxu0 %v4624_v35 }
 0x42b   :  { %3959 = vmatpush3.bf16.msra.mxu0 %v4334_v19 }
 0x42c   :  { %3960 = vmatprep.subr.bf16.mxu0 %v4624_v35 }
 0x42f   :  { %3961 = vmatpush3.bf16.msra.mxu0 %v4335_v59 }
 0x430   :  { %3962 = vmatprep.subr.bf16.mxu0 %v4624_v35 }
 0x433   :  { %3963 = vmatpush3.bf16.msra.mxu0 %v4336_v22 }
 0x434   :  { %3964 = vmatprep.subr.bf16.mxu0 %v4624_v35 }
 0x437   :  { %3965 = vmatpush3.bf16.msra.mxu0 %v4337_v25 }
 0x438   :  { %3966 = vmatprep.subr.bf16.mxu0 %v4624_v35 }
 0x43b   :  { %3967 = vmatpush3.bf16.msra.mxu0 %v4338_v36 }
 0x43c   :  { %3968 = vmatprep.subr.bf16.mxu0 %v4624_v35 }
 0x43f   :  { %3969 = vmatpush3.bf16.msra.mxu0 %v4339_v37 }
 0x440   :  { %3994 = vmatprep.subr.bf16.mxu0 %v4624_v35 }
 0x4d1   :  { %v1072_v52 = vpop.f32.mrb[12].mxu0 }
 0x4d2   :  { %v4963_v53 = vadd.f32 %v4960_v51, %v1072_v52  ;;  %v3892_v54 = vpop.f32.mrb[13].mxu0  ;;  %v4343_v52 = vld [vmem:[#allocation17 + $0x18] sm:$0xff]  }
 0x4d3   :  { %v1075_v56 = vpop.f32.mrb[14].mxu0  ;;  %v4344_v54 = vld [vmem:[#allocation17 + $0x20] sm:$0xff]  }
 0x4d4   :  { %vm1087_vm2 = vcmp.gt.f32.partialorder %v4963_v53, 0.5  ;;  %v3893_v58 = vpop.f32.mrb[15].mxu0  ;;  %v4345_v56 = vld [vmem:[#allocation17 + $0x28] sm:$0xff]   ;;  %v1604_v19 = vmul.f32 0.8, %v4963_v53 }
 0x4d5   :  { %v4970_v60 = vsel %vm1087_vm2, 1.0, %v4624_v35  ;;  %v4346_v58 = vld [vmem:[#allocation17 + $0x30] sm:$0xff]  }
 0x4d6   :  { %v1093_v61 = vmul.f32 %v4970_v60, %v4966_v55  ;;  %v1606_v22 = vmul.f32 0.5, %v4970_v60 }
 0x4d8   :  { %v1094_v62 = vrot.slane %v1093_v61, 4 }
 0x4da   :  { %v1095_v63 = vadd.f32 %v1094_v62, %v1093_v61  ;;  %v3424_v62 = vsel %vm1237_vm14, 1.0, %v4624_v35  ;;  %vm3476_vm14 = vmpackc.low %vm2157_vm6, %vm2157_vm6 }
 0x4db   :  { %v1756_v5 = vmul.f32 0.5, %v3424_v62  ;;  %v4367_v62 = vld [vmem:[#allocation20 + $0x18] sm:$0xff]  }
 0x4dc   :  { %v1096_v0 = vrot.slane %v1095_v63, 2 }
 0x4de   :  { %v1097_v1 = vadd.f32 %v1096_v0, %v1095_v63  ;;  %v1754_v0 = vmul.f32 0.8, %v4937_v38  ;;  %v4349_v38 = vld [vmem:[#allocation19 + $0x8] sm:$0xff]  }
 0x4e0   :  { %v1098_v2 = vrot.slane %v1097_v1, 1 }
 0x4e2   :  { %v1099_v3 = vadd.f32 %v1098_v2, %v1097_v1 }
 0x4e4   :  { %1100 = vadd.xlane.f32.xlu0 %v1099_v3  ;;  %v4347_v3 = vld [vmem:[#allocation17 + $0x38] sm:$0xff]  }
 0x4f5   :  { %v1346_v6 = vpop.f32.mrb[16].mxu0 }
 0x4f6   :  { %v1347_v9 = vadd.f32 %v4882_v57, %v1346_v6  ;;  %v3932_v11 = vpop.f32.mrb[17].mxu0 }
 0x4f7   :  { %v1349_v13 = vpop.f32.mrb[18].mxu0  ;;  %v4351_v11 = vld [vmem:[#allocation19 + $0x18] sm:$0xff]  }
 0x4f8   :  { %v1357_v16 = vadd.f32 %v1356_v7, %v1347_v9  ;;  %v3933_v17 = vpop.f32.mrb[19].mxu0  ;;  %v4350_v9 = vld [vmem:[#allocation19 + $0x10] sm:$0xff]   ;;  %v4353_v13 = vld [vmem:[#allocation19 + $0x28] sm:$0xff]  }
 0x4fa   :  { %v4980_v18 = vsub.f32 %v1357_v16, %v1358_v14  ;;  %v4354_v14 = vld [vmem:[#allocation19 + $0x30] sm:$0xff]   ;;  %v4355_v16 = vld [vmem:[#allocation19 + $0x38] sm:$0xff]  }
 0x4fc   :  { %vm1361_vm3 = vcmp.gt.f32.partialorder %v4980_v18, 0.5 }
 0x4fd   :  { %vm3394_vm4 = vmpackc.low %vm1361_vm3, %vm1361_vm3 }
 0x4fe   :  { %3951 = vmatmul.mubr.msk.bf16.vlgmr.msra.gmra.mrb[16].mxu1 %vm3394_vm4, %v4626_v15 }
 0x4ff   :  { %3975 = vmatpush3.bf16.msra.mxu1 %v4324_v20  ;;  %3990 = vmatprep.mubr.msk.bf16.mxu1 %vm4625_vm0, %v4624_v35 }
 0x500   :  { %3976 = vmatprep.subr.bf16.mxu1 %v4624_v35 }
 0x503   :  { %3977 = vmatpush3.bf16.msra.mxu1 %v4325_v21 }
 0x504   :  { %3978 = vmatprep.subr.bf16.mxu1 %v4624_v35 }
 0x507   :  { %3979 = vmatpush3.bf16.msra.mxu1 %v4326_v24 }
 0x508   :  { %3980 = vmatprep.subr.bf16.mxu1 %v4624_v35 }
 0x50b   :  { %3981 = vmatpush3.bf16.msra.mxu1 %v4327_v26 }
 0x50c   :  { %3982 = vmatprep.subr.bf16.mxu1 %v4624_v35 }
 0x50f   :  { %3983 = vmatpush3.bf16.msra.mxu1 %v4328_v27 }
 0x510   :  { %3984 = vmatprep.subr.bf16.mxu1 %v4624_v35 }
 0x513   :  { %3985 = vmatpush3.bf16.msra.mxu1 %v4329_v29 }
 0x514   :  { %3986 = vmatprep.subr.bf16.mxu1 %v4624_v35 }
 0x517   :  { %3987 = vmatpush3.bf16.msra.mxu1 %v4330_v30 }
 0x518   :  { %3988 = vmatprep.subr.bf16.mxu1 %v4624_v35 }
 0x51b   :  { %3989 = vmatpush3.bf16.msra.mxu1 %v4331_v34 }
 0x51c   :  { %4014 = vmatprep.subr.bf16.mxu1 %v4624_v35 }
 0x51e   :  { %3991 = vmatmul.mubr.msk.bf16.vlgmr.msra.gmra.mrb[20].mxu1 %vm3422_vm7, %v4626_v15 }
 0x51f   :  { %4030 = vmatprep.mubr.msk.bf16.mxu1 %vm4625_vm0, %v4624_v35 }
 0x5d1   :  { %v1470_v23 = vpop.f32.mrb[16].mxu1 }
 0x5d2   :  { %v1471_v41 = vadd.f32 %v4912_v8, %v1470_v23  ;;  %v3952_v42 = vpop.f32.mrb[17].mxu1 }
 0x5d3   :  { %v1473_v44 = vpop.f32.mrb[18].mxu1  ;;  %v1878_v42 = vmul.f32 0.8, %v4980_v18  ;;  %v4358_v18 = vld [vmem:[#allocation16 + $0x10] sm:$0xff]  }
 0x5d4   :  { %v1481_v46 = vadd.f32 %v1480_v40, %v1471_v41  ;;  %v3953_v47 = vpop.f32.mrb[19].mxu1  ;;  %v3437_v40 = vsel %vm1361_vm3, 1.0, %v4624_v35 }
 0x5d5   :  { %v1880_v47 = vmul.f32 0.5, %v3437_v40 }
 0x5d6   :  { %v5015_v48 = vsub.f32 %v1481_v46, %v1482_v45 }
 0x5d8   :  { %vm1485_vm5 = vcmp.gt.f32.partialorder %v5015_v48, 0.5 }
 0x5d9   :  { %vm3407_vm8 = vmpackc.low %vm1485_vm5, %vm1485_vm5  ;;  %v3450_v28 = vsel %vm1485_vm5, 1.0, %v4624_v35  ;;  %vm2679_vm5 = vcmp.gt.f32.partialorder %v2677_v33, 0.5 }
 0x5da   :  { %3971 = vmatmul.mubr.msk.bf16.vlgmr.msra.gmra.mrb[20].mxu0 %vm3407_vm8, %v4626_v15  ;;  %vm3530_vm8 = vmpackc.low %vm2679_vm5, %vm2679_vm5 }
 0x5db   :  { %3995 = vmatpush3.bf16.msra.mxu0 %v4340_v49  ;;  %4010 = vmatprep.mubr.msk.bf16.mxu0 %vm4625_vm0, %v4624_v35 }
 0x5dc   :  { %3996 = vmatprep.subr.bf16.mxu0 %v4624_v35 }
 0x5df   :  { %3997 = vmatpush3.bf16.msra.mxu0 %v4341_v10 }
 0x5e0   :  { %3998 = vmatprep.subr.bf16.mxu0 %v4624_v35 }
 0x5e3   :  { %3999 = vmatpush3.bf16.msra.mxu0 %v4342_v50  ;;  %v4356_v50 = vld [vmem:[#allocation16] sm:$0xff]  }
 0x5e4   :  { %4000 = vmatprep.subr.bf16.mxu0 %v4624_v35 }
 0x5e7   :  { %4001 = vmatpush3.bf16.msra.mxu0 %v4343_v52  ;;  %v4364_v52 = vld [vmem:[#allocation20] sm:$0xff]  }
 0x5e8   :  { %4002 = vmatprep.subr.bf16.mxu0 %v4624_v35 }
 0x5eb   :  { %4003 = vmatpush3.bf16.msra.mxu0 %v4344_v54  ;;  %v4365_v54 = vld [vmem:[#allocation20 + $0x8] sm:$0xff]  }
 0x5ec   :  { %4004 = vmatprep.subr.bf16.mxu0 %v4624_v35 }
 0x5ef   :  { %4005 = vmatpush3.bf16.msra.mxu0 %v4345_v56  ;;  %v4359_v56 = vld [vmem:[#allocation16 + $0x18] sm:$0xff]  }
 0x5f0   :  { %4006 = vmatprep.subr.bf16.mxu0 %v4624_v35 }
 0x5f1   :  { %v1744_v61 = vpop.f32.mrb[20].mxu1 }
 0x5f2   :  { %v1745_v63 = vadd.f32 %v4859_v43, %v1744_v61  ;;  %v3992_v1 = vpop.f32.mrb[21].mxu1  ;;  %v4348_v43 = vld [vmem:[#allocation19] sm:$0xff]  }
 0x5f3   :  { %v1747_v2 = vpop.f32.mrb[22].mxu1  ;;  %4007 = vmatpush3.bf16.msra.mxu0 %v4346_v58  ;;  %4015 = vmatpush3.bf16.msra.mxu1 %v4348_v43  ;;  %v4366_v58 = vld [vmem:[#allocation20 + $0x10] sm:$0xff]   ;;  %v4360_v61 = vld [vmem:[#allocation16 + $0x20] sm:$0xff]  }
 0x5f4   :  { %v1755_v4 = vadd.f32 %v1754_v0, %v1745_v63  ;;  %v3993_v6 = vpop.f32.mrb[23].mxu1  ;;  %4008 = vmatprep.subr.bf16.mxu0 %v4624_v35  ;;  %4016 = vmatprep.subr.bf16.mxu1 %v4624_v35  ;;  %v4361_v63 = vld [vmem:[#allocation16 + $0x28] sm:$0xff]   ;;  %v4368_v0 = vld [vmem:[#allocation20 + $0x20] sm:$0xff]   ;;  %v4362_v1 = vld [vmem:[#allocation16 + $0x30] sm:$0xff]  }
 0x5f5   :  { %v4369_v2 = vld [vmem:[#allocation20 + $0x28] sm:$0xff]  }
 0x5f6   :  { %v5036_v7 = vsub.f32 %v1755_v4, %v1756_v5  ;;  %v4370_v4 = vld [vmem:[#allocation20 + $0x30] sm:$0xff]   ;;  %v4371_v5 = vld [vmem:[#allocation20 + $0x38] sm:$0xff]  }
 0x5f7   :  { %4009 = vmatpush3.bf16.msra.mxu0 %v4347_v3  ;;  %4017 = vmatpush3.bf16.msra.mxu1 %v4349_v38  ;;  %v4363_v3 = vld [vmem:[#allocation16 + $0x38] sm:$0xff]   ;;  %v2002_v38 = vmul.f32 0.8, %v5015_v48  ;;  %v4374_v48 = vld [vmem:[#allocation17 + $0x10] sm:$0xff]  }
 0x5f8   :  { %vm1759_vm9 = vcmp.gt.f32.partialorder %v5036_v7, 0.5  ;;  %4034 = vmatprep.subr.bf16.mxu0 %v4624_v35  ;;  %4018 = vmatprep.subr.bf16.mxu1 %v4624_v35 }
 0x5f9   :  { %vm3435_vm10 = vmpackc.low %vm1759_vm9, %vm1759_vm9 }
 0x5fa   :  { %4011 = vmatmul.mubr.msk.bf16.vlgmr.msra.gmra.mrb[24].mxu0 %vm3435_vm10, %v4626_v15 }
 0x5fb   :  { %4050 = vmatprep.mubr.msk.bf16.mxu0 %vm4625_vm0, %v4624_v35  ;;  %4019 = vmatpush3.bf16.msra.mxu1 %v4350_v9 }
 0x5fc   :  { %4020 = vmatprep.subr.bf16.mxu1 %v4624_v35  ;;  %4035 = vmatpush3.bf16.msra.mxu0 %v4364_v52 }
 0x5fd   :  { %4036 = vmatprep.subr.bf16.mxu0 %v4624_v35 }
 0x5ff   :  { %4021 = vmatpush3.bf16.msra.mxu1 %v4351_v11 }
 0x600   :  { %4022 = vmatprep.subr.bf16.mxu1 %v4624_v35  ;;  %4037 = vmatpush3.bf16.msra.mxu0 %v4365_v54 }
 0x601   :  { %4038 = vmatprep.subr.bf16.mxu0 %v4624_v35 }
 0x603   :  { %4023 = vmatpush3.bf16.msra.mxu1 %v4352_v12 }
 0x604   :  { %4024 = vmatprep.subr.bf16.mxu1 %v4624_v35  ;;  %4039 = vmatpush3.bf16.msra.mxu0 %v4366_v58 }
 0x605   :  { %4040 = vmatprep.subr.bf16.mxu0 %v4624_v35 }
 0x607   :  { %4025 = vmatpush3.bf16.msra.mxu1 %v4353_v13  ;;  %v2004_v13 = vmul.f32 0.5, %v3450_v28 }
 0x608   :  { %4026 = vmatprep.subr.bf16.mxu1 %v4624_v35  ;;  %4041 = vmatpush3.bf16.msra.mxu0 %v4367_v62 }
 0x609   :  { %4042 = vmatprep.subr.bf16.mxu0 %v4624_v35 }
 0x60b   :  { %4027 = vmatpush3.bf16.msra.mxu1 %v4354_v14 }
 0x60c   :  { %4028 = vmatprep.subr.bf16.mxu1 %v4624_v35  ;;  %4043 = vmatpush3.bf16.msra.mxu0 %v4368_v0 }
 0x60d   :  { %4044 = vmatprep.subr.bf16.mxu0 %v4624_v35 }
 0x60f   :  { %4029 = vmatpush3.bf16.msra.mxu1 %v4355_v16 }
 0x610   :  { %4054 = vmatprep.subr.bf16.mxu1 %v4624_v35  ;;  %4045 = vmatpush3.bf16.msra.mxu0 %v4369_v2 }
 0x611   :  { %4046 = vmatprep.subr.bf16.mxu0 %v4624_v35 }
 0x614   :  { %4047 = vmatpush3.bf16.msra.mxu0 %v4370_v4 }
 0x615   :  { %4048 = vmatprep.subr.bf16.mxu0 %v4624_v35 }
 0x618   :  { %4049 = vmatpush3.bf16.msra.mxu0 %v4371_v5 }
 0x619   :  { %4074 = vmatprep.subr.bf16.mxu0 %v4624_v35 }
 0x6ad   :  { %v1594_v17 = vpop.f32.mrb[20].mxu0 }
 0x6ae   :  { %v1595_v20 = vadd.f32 %v4960_v51, %v1594_v17  ;;  %v3972_v59 = vpop.f32.mrb[21].mxu0  ;;  %v4372_v17 = vld [vmem:[#allocation17] sm:$0xff]  }
 0x6af   :  { %v1597_v21 = vpop.f32.mrb[22].mxu0  ;;  %v4377_v59 = vld [vmem:[#allocation17 + $0x28] sm:$0xff]  }
 0x6b0   :  { %v1605_v24 = vadd.f32 %v1604_v19, %v1595_v20  ;;  %v3973_v25 = vpop.f32.mrb[23].mxu0  ;;  %v4375_v19 = vld [vmem:[#allocation17 + $0x18] sm:$0xff]   ;;  %v4376_v20 = vld [vmem:[#allocation17 + $0x20] sm:$0xff]   ;;  %v5123_v21 = vld [vmem:[%s5323_s5] ss:$0 sm:$0xff] }
 0x6b1   :  { %v3478_v25 = vsel %vm1759_vm9, 1.0, %v4624_v35 }
 0x6b2   :  { %v5057_v26 = vsub.f32 %v1605_v24, %v1606_v22  ;;  %v4378_v22 = vld [vmem:[#allocation17 + $0x30] sm:$0xff]  }
 0x6b4   :  { %vm1609_vm11 = vcmp.gt.f32.partialorder %v5057_v26, 0.5 }
 0x6b5   :  { %v5061_v27 = vsel %vm1609_vm11, 1.0, %v4624_v35 }
 0x6b6   :  { %v1615_v29 = vmul.f32 %v5061_v27, %v4966_v55  ;;  %v2128_v58 = vmul.f32 0.5, %v5061_v27 }
 0x6b8   :  { %v1616_v30 = vrot.slane %v1615_v29, 4 }
 0x6ba   :  { %v1617_v53 = vadd.f32 %v1616_v30, %v1615_v29  ;;  %v2276_v30 = vmul.f32 0.8, %v5036_v7  ;;  %v4380_v7 = vld [vmem:[#allocation19] sm:$0xff]  }
 0x6bc   :  { %v1618_v34 = vrot.slane %v1617_v53, 2 }
 0x6be   :  { %v1619_v36 = vadd.f32 %v1618_v34, %v1617_v53 }
 0x6c0   :  { %v1620_v37 = vrot.slane %v1619_v36, 1 }
 0x6c2   :  { %v1621_v39 = vadd.f32 %v1620_v37, %v1619_v36  ;;  %v4379_v36 = vld [vmem:[#allocation17 + $0x38] sm:$0xff]  }
 0x6c4   :  { %1622 = vadd.xlane.f32.xlu0 %v1621_v39  ;;  %v2278_v39 = vmul.f32 0.5, %v3478_v25  ;;  %v4399_v25 = vld [vmem:[#allocation20 + $0x18] sm:$0xff]  }
 0x6cd   :  { %v1868_v23 = vpop.f32.mrb[24].mxu0 }
 0x6ce   :  { %v1869_v41 = vadd.f32 %v4882_v57, %v1868_v23  ;;  %v4012_v44 = vpop.f32.mrb[25].mxu0  ;;  %v4357_v57 = vld [vmem:[#allocation16 + $0x8] sm:$0xff]  }
 0x6cf   :  { %v1871_v45 = vpop.f32.mrb[26].mxu0  ;;  %v4383_v44 = vld [vmem:[#allocation19 + $0x18] sm:$0xff]  }
 0x6d0   :  { %v1879_v46 = vadd.f32 %v1878_v42, %v1869_v41  ;;  %v4013_v49 = vpop.f32.mrb[27].mxu0  ;;  %v4381_v41 = vld [vmem:[#allocation19 + $0x8] sm:$0xff]   ;;  %v4382_v42 = vld [vmem:[#allocation19 + $0x10] sm:$0xff]   ;;  %v4384_v45 = vld [vmem:[#allocation19 + $0x20] sm:$0xff]  }
 0x6d1   :  { %v4387_v49 = vld [vmem:[#allocation19 + $0x38] sm:$0xff]  }
 0x6d2   :  { %v5070_v10 = vsub.f32 %v1879_v46, %v1880_v47  ;;  %v4385_v46 = vld [vmem:[#allocation19 + $0x28] sm:$0xff]   ;;  %v4386_v47 = vld [vmem:[#allocation19 + $0x30] sm:$0xff]  }
 0x6d4   :  { %vm1883_vm12 = vcmp.gt.f32.partialorder %v5070_v10, 0.5 }
 0x6d5   :  { %vm3448_vm13 = vmpackc.low %vm1883_vm12, %vm1883_vm12  ;;  %v3491_v28 = vsel %vm1883_vm12, 1.0, %v4624_v35 }
 0x6d6   :  { %4031 = vmatmul.mubr.msk.bf16.vlgmr.msra.gmra.mrb[24].mxu1 %vm3448_vm13, %v4626_v15 }
 0x6d7   :  { %4055 = vmatpush3.bf16.msra.mxu1 %v4356_v50  ;;  %4070 = vmatprep.mubr.msk.bf16.mxu1 %vm4625_vm0, %v4624_v35 }
 0x6d8   :  { %4056 = vmatprep.subr.bf16.mxu1 %v4624_v35 }
 0x6db   :  { %4057 = vmatpush3.bf16.msra.mxu1 %v4357_v57 }
 0x6dc   :  { %4058 = vmatprep.subr.bf16.mxu1 %v4624_v35 }
 0x6df   :  { %4059 = vmatpush3.bf16.msra.mxu1 %v4358_v18  ;;  %v2126_v18 = vmul.f32 0.8, %v5057_v26 }
 0x6e0   :  { %4060 = vmatprep.subr.bf16.mxu1 %v4624_v35 }
 0x6e3   :  { %4061 = vmatpush3.bf16.msra.mxu1 %v4359_v56 }
 0x6e4   :  { %4062 = vmatprep.subr.bf16.mxu1 %v4624_v35 }
 0x6e7   :  { %4063 = vmatpush3.bf16.msra.mxu1 %v4360_v61 }
 0x6e8   :  { %4064 = vmatprep.subr.bf16.mxu1 %v4624_v35 }
 0x6eb   :  { %4065 = vmatpush3.bf16.msra.mxu1 %v4361_v63  ;;  %v1613_v63 = vadd.f32 %v5061_v27, %v4970_v60  ;;  %v5169_v60 = vld [vmem:[%s5325_s7] ss:$0 sm:$0xff] }
 0x6ec   :  { %4066 = vmatprep.subr.bf16.mxu1 %v4624_v35 }
 0x6ef   :  { %4067 = vmatpush3.bf16.msra.mxu1 %v4362_v1 }
 0x6f0   :  { %4068 = vmatprep.subr.bf16.mxu1 %v4624_v35 }
 0x6f3   :  { %4069 = vmatpush3.bf16.msra.mxu1 %v4363_v3 }
 0x6f4   :  { %4094 = vmatprep.subr.bf16.mxu1 %v4624_v35 }
 0x6f6   :  { %4071 = vmatmul.mubr.msk.bf16.vlgmr.msra.gmra.mrb[28].mxu1 %vm3476_vm14, %v4626_v15 }
 0x6f7   :  { %4110 = vmatprep.mubr.msk.bf16.mxu1 %vm4625_vm0, %v4624_v35  ;;  %4095 = vmatpush3.bf16.msra.mxu1 %v4380_v7 }
 0x6f8   :  { %4096 = vmatprep.subr.bf16.mxu1 %v4624_v35 }
 0x6fb   :  { %4097 = vmatpush3.bf16.msra.mxu1 %v4381_v41 }
 0x6fc   :  { %4098 = vmatprep.subr.bf16.mxu1 %v4624_v35 }
 0x6ff   :  { %4099 = vmatpush3.bf16.msra.mxu1 %v4382_v42 }
 0x700   :  { %4100 = vmatprep.subr.bf16.mxu1 %v4624_v35 }
 0x703   :  { %4101 = vmatpush3.bf16.msra.mxu1 %v4383_v44 }
 0x704   :  { %4102 = vmatprep.subr.bf16.mxu1 %v4624_v35 }
 0x707   :  { %4103 = vmatpush3.bf16.msra.mxu1 %v4384_v45 }
 0x708   :  { %4104 = vmatprep.subr.bf16.mxu1 %v4624_v35 }
 0x70b   :  { %4105 = vmatpush3.bf16.msra.mxu1 %v4385_v46 }
 0x70c   :  { %4106 = vmatprep.subr.bf16.mxu1 %v4624_v35 }
 0x70f   :  { %4107 = vmatpush3.bf16.msra.mxu1 %v4386_v47 }
 0x710   :  { %4108 = vmatprep.subr.bf16.mxu1 %v4624_v35 }
 0x713   :  { %4109 = vmatpush3.bf16.msra.mxu1 %v4387_v49  ;;  %v4404_v49 = vld [vmem:[#allocation17] sm:$0xff]  }
 0x714   :  { %4134 = vmatprep.subr.bf16.mxu1 %v4624_v35 }
 0x7a9   :  { %v1992_v6 = vpop.f32.mrb[24].mxu1 }
 0x7aa   :  { %v1993_v43 = vadd.f32 %v4912_v8, %v1992_v6  ;;  %v4032_v9 = vpop.f32.mrb[25].mxu1  ;;  %v4373_v8 = vld [vmem:[#allocation17 + $0x8] sm:$0xff]  }
 0x7ab   :  { %v1995_v11 = vpop.f32.mrb[26].mxu1 }
 0x7ac   :  { %v2003_v12 = vadd.f32 %v2002_v38, %v1993_v43  ;;  %v4033_v14 = vpop.f32.mrb[27].mxu1  ;;  %v2400_v38 = vmul.f32 0.8, %v5070_v10  ;;  %v4396_v10 = vld [vmem:[#allocation20] sm:$0xff]  }
 0x7ae   :  { %v5106_v16 = vsub.f32 %v2003_v12, %v2004_v13  ;;  %v2402_v13 = vmul.f32 0.5, %v3491_v28  ;;  %v4415_v28 = vld [vmem:[#allocation19 + $0x18] sm:$0xff]  }
 0x7b0   :  { %vm2007_vm6 = vcmp.gt.f32.partialorder %v5106_v16, 0.5  ;;  %v2524_v7 = vmul.f32 0.8, %v5106_v16  ;;  %v4406_v16 = vld [vmem:[#allocation17 + $0x10] sm:$0xff]  }
 0x7b1   :  { %vm3461_vm15 = vmpackc.low %vm2007_vm6, %vm2007_vm6  ;;  %v3504_v33 = vsel %vm2007_vm6, 1.0, %v4624_v35 }
 0x7b2   :  { %4051 = vmatmul.mubr.msk.bf16.vlgmr.msra.gmra.mrb[28].mxu0 %vm3461_vm15, %v4626_v15  ;;  %v2526_v45 = vmul.f32 0.5, %v3504_v33 }
 0x7b3   :  { %4075 = vmatpush3.bf16.msra.mxu0 %v4372_v17  ;;  %4090 = vmatprep.mubr.msk.bf16.mxu0 %vm4625_vm0, %v4624_v35 }
 0x7b4   :  { %4076 = vmatprep.subr.bf16.mxu0 %v4624_v35 }
 0x7b7   :  { %4077 = vmatpush3.bf16.msra.mxu0 %v4373_v8  ;;  %v4388_v8 = vld [vmem:[#allocation16] sm:$0xff]  }
 0x7b8   :  { %4078 = vmatprep.subr.bf16.mxu0 %v4624_v35 }
 0x7bb   :  { %4079 = vmatpush3.bf16.msra.mxu0 %v4374_v48  ;;  %v4389_v48 = vld [vmem:[#allocation16 + $0x8] sm:$0xff]  }
 0x7bc   :  { %4080 = vmatprep.subr.bf16.mxu0 %v4624_v35 }
 0x7bf   :  { %4081 = vmatpush3.bf16.msra.mxu0 %v4375_v19  ;;  %v4390_v19 = vld [vmem:[#allocation16 + $0x10] sm:$0xff]  }
 0x7c0   :  { %4082 = vmatprep.subr.bf16.mxu0 %v4624_v35 }
 0x7c3   :  { %4083 = vmatpush3.bf16.msra.mxu0 %v4376_v20  ;;  %v4397_v20 = vld [vmem:[#allocation20 + $0x8] sm:$0xff]  }
 0x7c4   :  { %4084 = vmatprep.subr.bf16.mxu0 %v4624_v35 }
 0x7c7   :  { %4085 = vmatpush3.bf16.msra.mxu0 %v4377_v59  ;;  %v4391_v59 = vld [vmem:[#allocation16 + $0x18] sm:$0xff]  }
 0x7c8   :  { %4086 = vmatprep.subr.bf16.mxu0 %v4624_v35 }
 0x7c9   :  { %v2266_v24 = vpop.f32.mrb[28].mxu1 }
 0x7ca   :  { %v2267_v29 = vadd.f32 %v5123_v21, %v2266_v24  ;;  %v4072_v53 = vpop.f32.mrb[29].mxu1  ;;  %v4392_v24 = vld [vmem:[#allocation16 + $0x20] sm:$0xff]  }
 0x7cb   :  { %v2269_v34 = vpop.f32.mrb[30].mxu1  ;;  %4087 = vmatpush3.bf16.msra.mxu0 %v4378_v22  ;;  %v4398_v22 = vld [vmem:[#allocation20 + $0x10] sm:$0xff]  }
 0x7cc   :  { %v2277_v37 = vadd.f32 %v2276_v30, %v2267_v29  ;;  %v4073_v23 = vpop.f32.mrb[31].mxu1  ;;  %4088 = vmatprep.subr.bf16.mxu0 %v4624_v35  ;;  %v4393_v29 = vld [vmem:[#allocation16 + $0x28] sm:$0xff]   ;;  %v4400_v30 = vld [vmem:[#allocation20 + $0x20] sm:$0xff]   ;;  %v4394_v53 = vld [vmem:[#allocation16 + $0x30] sm:$0xff]  }
 0x7cd   :  { %v4401_v34 = vld [vmem:[#allocation20 + $0x28] sm:$0xff]  }
 0x7ce   :  { %v5132_v40 = vsub.f32 %v2277_v37, %v2278_v39  ;;  %v4402_v37 = vld [vmem:[#allocation20 + $0x30] sm:$0xff]   ;;  %v4403_v39 = vld [vmem:[#allocation20 + $0x38] sm:$0xff]  }
 0x7cf   :  { %4089 = vmatpush3.bf16.msra.mxu0 %v4379_v36  ;;  %v4395_v36 = vld [vmem:[#allocation16 + $0x38] sm:$0xff]  }
 0x7d0   :  { %vm2281_vm1 = vcmp.gt.f32.partialorder %v5132_v40, 0.5  ;;  %4114 = vmatprep.subr.bf16.mxu0 %v4624_v35 }
 0x7d1   :  { %vm3489_vm2 = vmpackc.low %vm2281_vm1, %vm2281_vm1 }
 0x7d2   :  { %4091 = vmatmul.mubr.msk.bf16.vlgmr.msra.gmra.mrb[32].mxu0 %vm3489_vm2, %v4626_v15 }
 0x7d3   :  { %4130 = vmatprep.mubr.msk.bf16.mxu0 %vm4625_vm0, %v4624_v35  ;;  %4115 = vmatpush3.bf16.msra.mxu0 %v4396_v10 }
 0x7d4   :  { %4116 = vmatprep.subr.bf16.mxu0 %v4624_v35 }
 0x7d7   :  { %4117 = vmatpush3.bf16.msra.mxu0 %v4397_v20 }
 0x7d8   :  { %4118 = vmatprep.subr.bf16.mxu0 %v4624_v35 }
 0x7db   :  { %4119 = vmatpush3.bf16.msra.mxu0 %v4398_v22 }
 0x7dc   :  { %4120 = vmatprep.subr.bf16.mxu0 %v4624_v35 }
 0x7df   :  { %4121 = vmatpush3.bf16.msra.mxu0 %v4399_v25 }
 0x7e0   :  { %4122 = vmatprep.subr.bf16.mxu0 %v4624_v35 }
 0x7e3   :  { %4123 = vmatpush3.bf16.msra.mxu0 %v4400_v30 }
 0x7e4   :  { %4124 = vmatprep.subr.bf16.mxu0 %v4624_v35 }
 0x7e7   :  { %4125 = vmatpush3.bf16.msra.mxu0 %v4401_v34 }
 0x7e8   :  { %4126 = vmatprep.subr.bf16.mxu0 %v4624_v35 }
 0x7eb   :  { %4127 = vmatpush3.bf16.msra.mxu0 %v4402_v37 }
 0x7ec   :  { %4128 = vmatprep.subr.bf16.mxu0 %v4624_v35 }
 0x7ef   :  { %4129 = vmatpush3.bf16.msra.mxu0 %v4403_v39 }
 0x7f0   :  { %4154 = vmatprep.subr.bf16.mxu0 %v4624_v35 }
 0x885   :  { %v2116_v50 = vpop.f32.mrb[28].mxu0 }
 0x886   :  { %v2117_v57 = vadd.f32 %v4960_v51, %v2116_v50  ;;  %v4052_v52 = vpop.f32.mrb[29].mxu0  ;;  %v4405_v50 = vld [vmem:[#allocation17 + $0x8] sm:$0xff]  }
 0x887   :  { %v2119_v54 = vpop.f32.mrb[30].mxu0  ;;  %v4409_v52 = vld [vmem:[#allocation17 + $0x28] sm:$0xff]  }
 0x888   :  { %v2127_v56 = vadd.f32 %v2126_v18, %v2117_v57  ;;  %v4053_v61 = vpop.f32.mrb[31].mxu0  ;;  %v4407_v57 = vld [vmem:[#allocation17 + $0x18] sm:$0xff]   ;;  %v4408_v18 = vld [vmem:[#allocation17 + $0x20] sm:$0xff]   ;;  %v4410_v54 = vld [vmem:[#allocation17 + $0x30] sm:$0xff]  }
 0x88a   :  { %v5153_v62 = vsub.f32 %v2127_v56, %v2128_v58  ;;  %v3532_v58 = vsel %vm2281_vm1, 1.0, %v4624_v35 }
 0x88c   :  { %vm2131_vm3 = vcmp.gt.f32.partialorder %v5153_v62, 0.5 }
 0x88d   :  { %v5159_v0 = vsel %vm2131_vm3, 1.0, %v4624_v35 }
 0x88e   :  { %v2137_v51 = vmul.f32 %v5159_v0, %v4966_v55  ;;  %v5164_v26 = vadd.f32 %v5159_v0, %v1613_v63  ;;  %v2798_v63 = vmul.f32 0.8, %v5132_v40  ;;  %v4413_v40 = vld [vmem:[#allocation19 + $0x8] sm:$0xff]   ;;  %v2650_v20 = vmul.f32 0.5, %v5159_v0 }
 0x890   :  { %v2138_v1 = vrot.slane %v2137_v51, 4 }
 0x892   :  { %v2139_v2 = vadd.f32 %v2138_v1, %v2137_v51 }
 0x894   :  { %v2140_v3 = vrot.slane %v2139_v2, 2 }
 0x896   :  { %v2141_v4 = vadd.f32 %v2140_v3, %v2139_v2  ;;  %v4411_v2 = vld [vmem:[#allocation17 + $0x38] sm:$0xff]  }
 0x898   :  { %v2142_v5 = vrot.slane %v2141_v4, 1 }
 0x89a   :  { %v2143_v6 = vadd.f32 %v2142_v5, %v2141_v4  ;;  %v2800_v4 = vmul.f32 0.5, %v3532_v58 }
 0x89c   :  { %2144 = vadd.xlane.f32.xlu1 %v2143_v6 }
 0x8a5   :  { %v2390_v27 = vpop.f32.mrb[32].mxu0 }
 0x8a6   :  { %v2391_v43 = vadd.f32 %v5169_v60, %v2390_v27  ;;  %v4092_v9 = vpop.f32.mrb[33].mxu0  ;;  %v4414_v27 = vld [vmem:[#allocation19 + $0x10] sm:$0xff]  }
 0x8a7   :  { %v2393_v11 = vpop.f32.mrb[34].mxu0  ;;  %v4418_v9 = vld [vmem:[#allocation19 + $0x30] sm:$0xff]  }
 0x8a8   :  { %v2401_v12 = vadd.f32 %v2400_v38, %v2391_v43  ;;  %v4093_v14 = vpop.f32.mrb[35].mxu0  ;;  %v4416_v43 = vld [vmem:[#allocation19 + $0x20] sm:$0xff]   ;;  %v4417_v38 = vld [vmem:[#allocation19 + $0x28] sm:$0xff]   ;;  %v4419_v11 = vld [vmem:[#allocation19 + $0x38] sm:$0xff]  }
 0x8aa   :  { %v5176_v17 = vsub.f32 %v2401_v12, %v2402_v13  ;;  %v5252_v12 = vld [vmem:[%s5329_s11] ss:$0 sm:$0xff]  ;;  %s4627_s11 = smov [#allocation22]  }
 0x8ab   :  { %s3233_s27 = sshll.u32 %s4627_s11, 4  ;;  %s3234_s27 = int_to_ptr.vmem [resolvable:$true] %s3233_s27 }
 0x8ac   :  { %vm2405_vm4 = vcmp.gt.f32.partialorder %v5176_v17, 0.5  ;;  %v2922_v33 = vmul.f32 0.8, %v5176_v17  ;;  %v4424_v17 = vld [vmem:[#allocation20 + $0x20] sm:$0xff]   ;;  %s4560_s1 = scalar_lea.vmem %s3234_s27, 128  ;;  %p4565_p7 = scmp.lt.s32.totalorder %s3234_s27, %s3234_s27 }
 0x8ad   :  { %vm3502_vm7 = vmpackc.low %vm2405_vm4, %vm2405_vm4  ;;  %v3545_v39 = vsel %vm2405_vm4, 1.0, %v4624_v35  ;;  %p4561_p6 = scmp.ne.s32.totalorder %s3234_s27, %s4560_s1  ;;  %p4566_p8 = scmp.lt.s32.totalorder %s4560_s1, %s4560_s1 }
 0x8ae   :  { %4111 = vmatmul.mubr.msk.bf16.vlgmr.msra.gmra.mrb[32].mxu1 %vm3502_vm7, %v4626_v15 }
 0x8af   :  { %4135 = vmatpush3.bf16.msra.mxu1 %v4388_v8  ;;  %4150 = vmatprep.mubr.msk.bf16.mxu1 %vm4625_vm0, %v4624_v35  ;;  %v2648_v8 = vmul.f32 0.8, %v5153_v62  ;;  %p4567_p9 = por %p4566_p8, %p4565_p7 }
 0x8b0   :  { %4136 = vmatprep.subr.bf16.mxu1 %v4624_v35 }
 0x8b1   :  { %p4568_p10 = pnand %p4567_p9, %p4561_p6 }
 0x8b3   :  { %4137 = vmatpush3.bf16.msra.mxu1 %v4389_v48 }
 0x8b4   :  { %4138 = vmatprep.subr.bf16.mxu1 %v4624_v35 }
 0x8b7   :  { %4139 = vmatpush3.bf16.msra.mxu1 %v4390_v19 }
 0x8b8   :  { %4140 = vmatprep.subr.bf16.mxu1 %v4624_v35 }
 0x8bb   :  { %4141 = vmatpush3.bf16.msra.mxu1 %v4391_v59 }
 0x8bc   :  { %4142 = vmatprep.subr.bf16.mxu1 %v4624_v35 }
 0x8bf   :  { %4143 = vmatpush3.bf16.msra.mxu1 %v4392_v24 }
 0x8c0   :  { %4144 = vmatprep.subr.bf16.mxu1 %v4624_v35 }
 0x8c3   :  { %4145 = vmatpush3.bf16.msra.mxu1 %v4393_v29 }
 0x8c4   :  { %4146 = vmatprep.subr.bf16.mxu1 %v4624_v35 }
 0x8c7   :  { %4147 = vmatpush3.bf16.msra.mxu1 %v4394_v53 }
 0x8c8   :  { %4148 = vmatprep.subr.bf16.mxu1 %v4624_v35 }
 0x8cb   :  { %4149 = vmatpush3.bf16.msra.mxu1 %v4395_v36 }
 0x8cc   :  { %4174 = vmatprep.subr.bf16.mxu1 %v4624_v35 }
 0x8ce   :  { %4151 = vmatmul.mubr.msk.bf16.vlgmr.msra.gmra.mrb[36].mxu1 %vm3530_vm8, %v4626_v15 }
 0x8cf   :  { %4190 = vmatprep.mubr.msk.bf16.mxu1 %vm4625_vm0, %v4624_v35 }
 0x981   :  { %v2514_v32 = vpop.f32.mrb[32].mxu1 }
 0x982   :  { %v2515_v23 = vadd.f32 %v5210_v31, %v2514_v32  ;;  %v4112_v41 = vpop.f32.mrb[33].mxu1 }
 0x983   :  { %v2517_v42 = vpop.f32.mrb[34].mxu1  ;;  %v2924_v41 = vmul.f32 0.5, %v3545_v39 }
 0x984   :  { %v2525_v44 = vadd.f32 %v2524_v7, %v2515_v23  ;;  %v4113_v46 = vpop.f32.mrb[35].mxu1 }
 0x985   :  { %v4421_v46 = vld [vmem:[#allocation20 + $0x8] sm:$0xff]  }
 0x986   :  { %v5217_v47 = vsub.f32 %v2525_v44, %v2526_v45  ;;  %v4420_v45 = vld [vmem:[#allocation20] sm:$0xff]  }
 0x988   :  { %vm2529_vm9 = vcmp.gt.f32.partialorder %v5217_v47, 0.5 }
 0x989   :  { %vm3515_vm10 = vmpackc.low %vm2529_vm9, %vm2529_vm9 }
 0x98a   :  { %4131 = vmatmul.mubr.msk.bf16.vlgmr.msra.gmra.mrb[36].mxu0 %vm3515_vm10, %v4626_v15 }
 0x98b   :  { %4155 = vmatpush3.bf16.msra.mxu0 %v4404_v49  ;;  %4170 = vmatprep.mubr.msk.bf16.mxu0 %vm4625_vm0, %v4624_v35  ;;  %v4422_v49 = vld [vmem:[#allocation20 + $0x10] sm:$0xff]  }
 0x98c   :  { %4156 = vmatprep.subr.bf16.mxu0 %v4624_v35 }
 0x98f   :  { %4157 = vmatpush3.bf16.msra.mxu0 %v4405_v50  ;;  %v4425_v50 = vld [vmem:[#allocation20 + $0x28] sm:$0xff]  }
 0x990   :  { %4158 = vmatprep.subr.bf16.mxu0 %v4624_v35 }
 0x993   :  { %4159 = vmatpush3.bf16.msra.mxu0 %v4406_v16  ;;  %v4426_v16 = vld [vmem:[#allocation20 + $0x30] sm:$0xff]  }
 0x994   :  { %4160 = vmatprep.subr.bf16.mxu0 %v4624_v35 }
 0x997   :  { %4161 = vmatpush3.bf16.msra.mxu0 %v4407_v57  ;;  %v4427_v57 = vld [vmem:[#allocation20 + $0x38] sm:$0xff]  }
 0x998   :  { %4162 = vmatprep.subr.bf16.mxu0 %v4624_v35 }
 0x99b   :  { %4163 = vmatpush3.bf16.msra.mxu0 %v4408_v18 }
 0x99c   :  { %4164 = vmatprep.subr.bf16.mxu0 %v4624_v35 }
 0x99f   :  { %4165 = vmatpush3.bf16.msra.mxu0 %v4409_v52  ;;  %v3558_v52 = vsel %vm2529_vm9, 1.0, %v4624_v35 }
 0x9a0   :  { %4166 = vmatprep.subr.bf16.mxu0 %v4624_v35 }
 0x9a1   :  { %v2788_v56 = vpop.f32.mrb[36].mxu1 }
 0x9a2   :  { %v2789_v61 = vadd.f32 %v5123_v21, %v2788_v56  ;;  %v4152_v51 = vpop.f32.mrb[37].mxu1  ;;  %v4412_v21 = vld [vmem:[#allocation19] sm:$0xff]   ;;  %v3046_v56 = vmul.f32 0.8, %v5217_v47 }
 0x9a3   :  { %v2791_v1 = vpop.f32.mrb[38].mxu1  ;;  %4167 = vmatpush3.bf16.msra.mxu0 %v4410_v54  ;;  %4175 = vmatpush3.bf16.msra.mxu1 %v4412_v21  ;;  %v3048_v51 = vmul.f32 0.5, %v3558_v52 }
 0x9a4   :  { %v2799_v3 = vadd.f32 %v2798_v63, %v2789_v61  ;;  %v4153_v5 = vpop.f32.mrb[39].mxu1  ;;  %4168 = vmatprep.subr.bf16.mxu0 %v4624_v35  ;;  %4176 = vmatprep.subr.bf16.mxu1 %v4624_v35 }
 0x9a6   :  { %v2801_v6 = vsub.f32 %v2799_v3, %v2800_v4 }
 0x9a7   :  { %4169 = vmatpush3.bf16.msra.mxu0 %v4411_v2  ;;  %4177 = vmatpush3.bf16.msra.mxu1 %v4413_v40 }
 0x9a8   :  { %vm2803_vm11 = vcmp.gt.f32.partialorder %v2801_v6, 0.5  ;;  %4194 = vmatprep.subr.bf16.mxu0 %v4624_v35  ;;  %4178 = vmatprep.subr.bf16.mxu1 %v4624_v35 }
 0x9a9   :  { %vm3543_vm12 = vmpackc.low %vm2803_vm11, %vm2803_vm11 }
 0x9aa   :  { %4171 = vmatmul.mubr.msk.bf16.vlgmr.msra.gmra.mrb[40].mxu0 %vm3543_vm12, %v4626_v15 }
 0x9ab   :  { %4210 = vmatprep.mubr.msk.bf16.mxu0 %vm4625_vm0, %v4624_v35  ;;  %4179 = vmatpush3.bf16.msra.mxu1 %v4414_v27 }
 0x9ac   :  { %4180 = vmatprep.subr.bf16.mxu1 %v4624_v35  ;;  %4195 = vmatpush3.bf16.msra.mxu0 %v4420_v45 }
 0x9ad   :  { %4196 = vmatprep.subr.bf16.mxu0 %v4624_v35 }
 0x9af   :  { %4181 = vmatpush3.bf16.msra.mxu1 %v4415_v28 }
 0x9b0   :  { %4182 = vmatprep.subr.bf16.mxu1 %v4624_v35  ;;  %4197 = vmatpush3.bf16.msra.mxu0 %v4421_v46 }
 0x9b1   :  { %4198 = vmatprep.subr.bf16.mxu0 %v4624_v35 }
 0x9b3   :  { %4183 = vmatpush3.bf16.msra.mxu1 %v4416_v43 }
 0x9b4   :  { %4184 = vmatprep.subr.bf16.mxu1 %v4624_v35  ;;  %4199 = vmatpush3.bf16.msra.mxu0 %v4422_v49 }
 0x9b5   :  { %4200 = vmatprep.subr.bf16.mxu0 %v4624_v35 }
 0x9b7   :  { %4185 = vmatpush3.bf16.msra.mxu1 %v4417_v38 }
 0x9b8   :  { %4186 = vmatprep.subr.bf16.mxu1 %v4624_v35 }
 0x9bb   :  { %4187 = vmatpush3.bf16.msra.mxu1 %v4418_v9 }
 0x9bc   :  { %4188 = vmatprep.subr.bf16.mxu1 %v4624_v35 }
 0x9bf   :  { %4189 = vmatpush3.bf16.msra.mxu1 %v4419_v11 }
 0xa5d   :  { %v2638_v13 = vpop.f32.mrb[36].mxu0 }
 0xa5e   :  { %v2639_v14 = vadd.f32 %v5252_v12, %v2638_v13  ;;  %v4132_v48 = vpop.f32.mrb[37].mxu0 }
 0xa5f   :  { %v2641_v10 = vpop.f32.mrb[38].mxu0 }
 0xa60   :  { %v2649_v19 = vadd.f32 %v2648_v8, %v2639_v14  ;;  %v4133_v59 = vpop.f32.mrb[39].mxu0 }
 0xa62   :  { %v5257_v22 = vsub.f32 %v2649_v19, %v2650_v20 }
 0xa64   :  { %vm2653_vm0 = vcmp.gt.f32.partialorder %v5257_v22, 0.5  ;;  %v3170_v5 = vmul.f32 0.8, %v5257_v22 }
 0xa65   :  { %v5261_v24 = vsel %vm2653_vm0, 1.0, %v4624_v35 }
 0xa66   :  { %v2659_v25 = vmul.f32 %v5261_v24, %v4966_v55  ;;  %v5267_v29 = vadd.f32 %v5261_v24, %v5164_v26  ;;  %v3172_v47 = vmul.f32 0.5, %v5261_v24 }
 0xa68   :  { %v2660_v62 = vrot.slane %v2659_v25, 4 }
 0xa6a   :  { %v2661_v30 = vadd.f32 %v2660_v62, %v2659_v25 }
 0xa6c   :  { %v2662_v53 = vrot.slane %v2661_v30, 2 }
 0xa6e   :  { %v2663_v34 = vadd.f32 %v2662_v53, %v2661_v30 }
 0xa70   :  { %v2664_v0 = vrot.slane %v2663_v34, 1 }
 0xa72   :  { %v2665_v36 = vadd.f32 %v2664_v0, %v2663_v34 }
 0xa74   :  { %2666 = vadd.xlane.f32.xlu1 %v2665_v36 }
 0xa7d   :  { %v2912_v37 = vpop.f32.mrb[40].mxu0 }
 0xa7e   :  { %v2913_v32 = vadd.f32 %v5169_v60, %v2912_v37  ;;  %v4172_v23 = vpop.f32.mrb[41].mxu0  ;;  %v4423_v60 = vld [vmem:[#allocation20 + $0x18] sm:$0xff]  }
 0xa7f   :  { %v2915_v7 = vpop.f32.mrb[42].mxu0  ;;  %4201 = vmatpush3.bf16.msra.mxu0 %v4423_v60 }
 0xa80   :  { %v2923_v26 = vadd.f32 %v2922_v33, %v2913_v32  ;;  %v4173_v42 = vpop.f32.mrb[43].mxu0  ;;  %4202 = vmatprep.subr.bf16.mxu0 %v4624_v35 }
 0xa82   :  { %v2925_v44 = vsub.f32 %v2923_v26, %v2924_v41 }
 0xa83   :  { %4203 = vmatpush3.bf16.msra.mxu0 %v4424_v17 }
 0xa84   :  { %vm2927_vm13 = vcmp.gt.f32.partialorder %v2925_v44, 0.5  ;;  %4204 = vmatprep.subr.bf16.mxu0 %v4624_v35 }
 0xa85   :  { %vm3556_vm14 = vmpackc.low %vm2927_vm13, %vm2927_vm13 }
 0xa86   :  { %4191 = vmatmul.mubr.msk.bf16.vlgmr.msra.gmra.mrb[40].mxu1 %vm3556_vm14, %v4626_v15 }
 0xa87   :  { %4205 = vmatpush3.bf16.msra.mxu0 %v4425_v50 }
 0xa88   :  { %4206 = vmatprep.subr.bf16.mxu0 %v4624_v35 }
 0xa8b   :  { %4207 = vmatpush3.bf16.msra.mxu0 %v4426_v16 }
 0xa8c   :  { %4208 = vmatprep.subr.bf16.mxu0 %v4624_v35 }
 0xa8f   :  { %4209 = vmatpush3.bf16.msra.mxu0 %v4427_v57 }
 0xb59   :  { %v3036_v18 = vpop.f32.mrb[40].mxu1 }
 0xb5a   :  { %v3037_v54 = vadd.f32 %v5210_v31, %v3036_v18  ;;  %v4192_v58 = vpop.f32.mrb[41].mxu1 }
 0xb5b   :  { %v3039_v61 = vpop.f32.mrb[42].mxu1 }
 0xb5c   :  { %v3047_v63 = vadd.f32 %v3046_v56, %v3037_v54  ;;  %v4193_v1 = vpop.f32.mrb[43].mxu1 }
 0xb5e   :  { %v3049_v2 = vsub.f32 %v3047_v63, %v3048_v51 }
 0xb60   :  { %vm3051_vm6 = vcmp.gt.f32.partialorder %v3049_v2, 0.5 }
 0xb61   :  { %vm3569_vm15 = vmpackc.low %vm3051_vm6, %vm3051_vm6 }
 0xb62   :  { %4211 = vmatmul.mubr.msk.bf16.vlgmr.msra.gmra.mrb[44].mxu0 %vm3569_vm15, %v4626_v15 }
 0xc35   :  { %v3160_v3 = vpop.f32.mrb[44].mxu0 }
 0xc36   :  { %v3161_v4 = vadd.f32 %v5252_v12, %v3160_v3  ;;  %v4212_v6 = vpop.f32.mrb[45].mxu0 }
 0xc37   :  { %v3163_v21 = vpop.f32.mrb[46].mxu0 }
 0xc38   :  { %v3171_v31 = vadd.f32 %v3170_v5, %v3161_v4  ;;  %v4213_v40 = vpop.f32.mrb[47].mxu0 }
 0xc3a   :  { %v3173_v27 = vsub.f32 %v3171_v31, %v3172_v47 }
 0xc3c   :  { %vm3175_vm1 = vcmp.gt.f32.partialorder %v3173_v27, 0.5 }
 0xc3d   :  { %v3572_v28 = vsel %vm3175_vm1, 1.0, %v4624_v35 }
 0xc3e   :  { %v3181_v43 = vmul.f32 %v3572_v28, %v4966_v55  ;;  %v3179_v38 = vadd.f32 %v3572_v28, %v5267_v29 }
 0xc40   :  { %v3182_v15 = vrot.slane %v3181_v43, 4  ;;  %v3192_v9 = vmul.f32 0.2, %v3179_v38 }
 0xc42   :  { %v3183_v11 = vadd.f32 %v3182_v15, %v3181_v43  ;;  %3193 = vst [vmem:[#allocation22] sm:$0xff] %v3192_v9 }
 0xc44   :  { %v3184_v12 = vrot.slane %v3183_v11, 2 }
 0xc46   :  { %v3185_v13 = vadd.f32 %v3184_v12, %v3183_v11 }
 0xc48   :  { %v3186_v14 = vrot.slane %v3185_v13, 1 }
 0xc4a   :  { %v3187_v8 = vadd.f32 %v3186_v14, %v3185_v13 }
 0xc4c   :  { %3188 = vadd.xlane.f32.xlu0 %v3187_v8 }
 0xc4d   :  { %4571 = shalt.err (!%p4568_p10)
}
 0xc4e   :  { %s4572_s29 = scalar_lea.hbm %s5330_s12, 128 }
 0xc4f   :  { %p4573_p11 = scmp.ne.s32.totalorder %s5330_s12, %s4572_s29  ;;  %p4576_p12 = scmp.lt.u32.totalorder %s4572_s29, %s5330_s12 }
 0xc51   :  { %p4578_p13 = pnand %p4576_p12, %p4573_p11 }
 0xc53   :  { %4581 = shalt.err (!%p4578_p13)
}
 0xc54   :  { %3236 = dma.vmem_to_hbm [thread:$0]  %s3234_s27, 128, %s5330_s12, [#allocation13]   ;;  %v1101_v35 = vpop.xlane.xlu0 %1100  ;;  %v2145_v10 = vpop.xlane.xlu1 %2144 }
 0xc55   :  { %v1102_v19 = vmul.f32 0.045454547, %v1101_v35  ;;  %v2146_v59 = vmul.f32 0.045454547, %v2145_v10  ;;  %s4628_s12 = smov [#allocation23]  }
 0xc56   :  { %s3243_s19 = sshll.u32 %s4628_s12, 4  ;;  %s3244_s19 = int_to_ptr.vmem [resolvable:$true] %s3243_s19 }
 0xc57   :  { %v3195_v0 = vmul.f32 0.001, %v1102_v19  ;;  %s4582_s6 = scalar_lea.vmem %s3244_s19, 128  ;;  %p4587_p1 = scmp.lt.s32.totalorder %s3244_s19, %s3244_s19 }
 0xc58   :  { %v1623_v55 = vpop.xlane.xlu0 %1622  ;;  %v2667_v22 = vpop.xlane.xlu1 %2666  ;;  %p4583_p0 = scmp.ne.s32.totalorder %s3244_s19, %s4582_s6  ;;  %p4588_p2 = scmp.lt.s32.totalorder %s4582_s6, %s4582_s6 }
 0xc59   :  { %v1624_v48 = vmul.f32 0.045454547, %v1623_v55  ;;  %v2668_v29 = vmul.f32 0.045454547, %v2667_v22 }
 0xc5a   :  { %p4589_p3 = por %p4588_p2, %p4587_p1 }
 0xc5b   :  { %v3197_v20 = vadd.f32 %v1624_v48, %v1102_v19 }
 0xc5c   :  { %p4590_p4 = pnand %p4589_p3, %p4583_p0 }
 0xc5d   :  { %v3200_v24 = vsub.f32 %v3197_v20, %v1102_v19  ;;  %v3204_v25 = vadd.f32 %v3197_v20, %v2146_v59  ;;  %v3198_v34 = vmul.f32 0.001, %v3197_v20 }
 0xc5f   :  { %v3201_v62 = vand.u32 2147483647, %v3200_v24  ;;  %v3207_v30 = vsub.f32 %v3204_v25, %v3197_v20  ;;  %v3211_v53 = vadd.f32 %v3204_v25, %v2668_v29  ;;  %v3199_v32 = vadd.f32 %v3198_v34, %v3195_v0 }
 0xc60   :  { %v3205_v33 = vmul.f32 0.001, %v3204_v25 }
 0xc61   :  { %v3202_v36 = vmul.f32 0.001, %v3201_v62  ;;  %v3208_v37 = vand.u32 2147483647, %v3207_v30  ;;  %v3214_v39 = vsub.f32 %v3211_v53, %v3204_v25  ;;  %v3212_v44 = vmul.f32 0.001, %v3211_v53 }
 0xc63   :  { %v3203_v23 = vadd.f32 %v3202_v36, %v3199_v32  ;;  %v3209_v7 = vmul.f32 0.001, %v3208_v37  ;;  %v3215_v26 = vand.u32 2147483647, %v3214_v39 }
 0xc65   :  { %v3206_v42 = vadd.f32 %v3205_v33, %v3203_v23  ;;  %v3216_v49 = vmul.f32 0.001, %v3215_v26 }
 0xc67   :  { %v3210_v46 = vadd.f32 %v3209_v7, %v3206_v42 }
 0xc69   :  { %v3213_v17 = vadd.f32 %v3212_v44, %v3210_v46 }
 0xc6b   :  { %v3217_v57 = vadd.f32 %v3216_v49, %v3213_v17 }
 0xcd9   :  { %v3189_v41 = vpop.xlane.xlu0 %3188 }
 0xcda   :  { %v3190_v45 = vmul.f32 0.045454547, %v3189_v41 }
 0xcdc   :  { %v3218_v60 = vadd.f32 %v3211_v53, %v3190_v45 }
 0xcde   :  { %v3219_v50 = vmul.f32 0.001, %v3218_v60  ;;  %v3221_v16 = vsub.f32 %v3218_v60, %v3211_v53 }
 0xce0   :  { %v3222_v18 = vand.u32 2147483647, %v3221_v16  ;;  %v3220_v52 = vadd.f32 %v3219_v50, %v3217_v57 }
 0xce2   :  { %v3223_v54 = vmul.f32 0.001, %v3222_v18 }
 0xce4   :  { %v3224_v56 = vadd.f32 %v3223_v54, %v3220_v52 }
 0xce6   :  { %v3225_v58 = vmul.f32 0.2, %v3224_v56 }
 0xce8   :  { %3226 = vst [vmem:[#allocation23] sm:$0xff] %v3225_v58 }
 0xce9   :  { %4593 = shalt.err (!%p4590_p4)
}
 0xcea   :  { %s4594_s16 = scalar_lea.hbm %s5331_s13, 128 }
 0xceb   :  { %p4595_p5 = scmp.ne.s32.totalorder %s5331_s13, %s4594_s16  ;;  %p4598_p6 = scmp.lt.u32.totalorder %s4594_s16, %s5331_s13 }
 0xced   :  { %p4600_p7 = pnand %p4598_p6, %p4595_p5 }
 0xcef   :  { %4603 = shalt.err (!%p4600_p7)
}
 0xcf0   :  { %3246 = dma.vmem_to_hbm [thread:$0]  %s3244_s19, 128, %s5331_s13, [#allocation24]  }
 0xcf1   :  { %4612 = dma.done.wait [#allocation13], 128  }
 0xcf2   :  { %4613 = vsyncadd [#allocation13], 4294967168 }
 0xcf3   :  { %4614 = dma.done.wait [#allocation24], 128  }
 0xcf4   :  { %4615 = vsyncadd [#allocation24], 4294967168 }
 0xcf5   :  { %3253 = vsyncpa [#allocation12], 1 }
 0xcf6   :  { %3254 = vsyncpa [#allocation15], 1 }
 0xcf7   :  { %3255 = vsyncpa [#allocation18], 1 }
 0xcf8   :  { %3256 = vsyncpa [#allocation21], 1 }
 0xcf9   :  { %3257 = vsyncpa [#allocation13], 1 }
 0xcfa   :  { %3258 = vsyncpa [#allocation24], 1 }

</bundles_post_ra>
